<compile_context>
chip_gen: v7x
topology: tpu7x:2x2x1
jax: 0.10.0
libtpu: 0.0.40
codegen_flags: <defaults>
</compile_context>

<pallas_src>
import functools

import jax
import jax.numpy as jnp
import numpy as np
from jax.experimental import pallas as pl
from jax.experimental.pallas import tpu as pltpu

LN_EPS = 1e-6  # SublayerConnection's LayerNorm eps


def _layer_norm(x, g, b):
    mu = jnp.mean(x, axis=-1, keepdims=True)
    var = jnp.mean((x - mu) ** 2, axis=-1, keepdims=True)
    return (x - mu) * jax.lax.rsqrt(var + LN_EPS) * g + b


def transformer_block_kernel(
    x_ref, madd_ref, bias_ref,
    ln1_g_ref, ln1_b_ref,
    wq_ref, bq_ref, wk_ref, bk_ref, wv_ref, bv_ref, wo_ref, bo_ref,
    ln2_g_ref, ln2_b_ref,
    w1_ref, b1_ref, w2_ref, b2_ref,
    out_ref,
    k_sc, v_sc, ctx_sc,
    *, num_heads, q_tile, bias_resident,
):
    qt = pl.program_id(1)
    _, S, H = x_ref.shape
    dk = H // num_heads
    cdt = wq_ref.dtype                     # compute dtype (bf16 or f32)
    exact_recip = cdt == jnp.float32       # exact reciprocal on the f32 path

    # ---- K / V for the whole sequence: computed once per batch row ----------
    @pl.when(qt == 0)
    def _():
        x_full = x_ref[0]                  # [S, H] f32 — only loaded at qt == 0
        h_full = _layer_norm(x_full, ln1_g_ref[...], ln1_b_ref[...]).astype(cdt)
        k_sc[...] = (jnp.dot(h_full, wk_ref[...],
                             preferred_element_type=jnp.float32)
                     + bk_ref[...]).astype(cdt)
        v_sc[...] = (jnp.dot(h_full, wv_ref[...],
                             preferred_element_type=jnp.float32)
                     + bv_ref[...]).astype(cdt)

    # ---- query tile ----------------------------------------------------------
    row0 = pl.multiple_of(qt * q_tile, q_tile)
    x_t = x_ref[0, pl.ds(row0, q_tile), :]                      # [TQ, H] f32
    h_t = _layer_norm(x_t, ln1_g_ref[...], ln1_b_ref[...]).astype(cdt)
    # scale (1/sqrt(dk)) already folded into wq / bq by the wrapper
    q_t = (jnp.dot(h_t, wq_ref[...], preferred_element_type=jnp.float32)
           + bq_ref[...])                                       # [TQ, H] f32
    q_cdt = q_t.astype(cdt)                 # single cast; sliced per head below

    k_all = k_sc[...]                                           # [S, H] cdt
    v_all = v_sc[...]
    m_add = madd_ref[0]                                         # [TQ, S] cdt

    for hd in range(num_heads):                 # one head's [TQ,S] live at a time
        sl = slice(hd * dk, (hd + 1) * dk)
        q_h = q_cdt[:, sl]                                      # [TQ, dk]
        k_h = k_all[:, sl]                                      # [S, dk]
        v_h = v_all[:, sl]                                      # [S, dk]
        s = jax.lax.dot_general(q_h, k_h, (((1,), (1,)), ((), ())),
                                preferred_element_type=jnp.float32)  # [TQ,S] f32
        if bias_resident:
            b_h = bias_ref[hd, pl.ds(row0, q_tile), :]          # [TQ, S]
        else:
            b_h = bias_ref[hd]                                  # [TQ, S]
        s = s + b_h + m_add                 # bf16 bias/mask upcast to f32 here
        s = s - jnp.max(s, axis=-1, keepdims=True)              # f32 statistics
        # exp in compute dtype (bf16 on v6e/v7x); keep sum statistics in f32.
        p = jnp.exp(s.astype(cdt))                              # [TQ, S] cdt
        row_sum = jnp.sum(p.astype(jnp.float32), axis=-1, keepdims=True)
        ctx = jnp.dot(p, v_h, preferred_element_type=jnp.float32)    # [TQ, dk]
        # deferred normalization: scale the [TQ,dk] context, not the [TQ,S] probs
        ctx = ctx * pl.reciprocal(row_sum, approx=not exact_recip)
        ctx_sc[:, sl] = ctx.astype(cdt)

    # one output projection with full contraction depth K=H (instead of per-head)
    attn = (jnp.dot(ctx_sc[...], wo_ref[...], preferred_element_type=jnp.float32)
            + bo_ref[...])
    x1 = x_t + attn                              # residual (dropout = identity)

    # ---- output sublayer: x1 + FFN(LayerNorm(x1)) -----------------------------
    h2 = _layer_norm(x1, ln2_g_ref[...], ln2_b_ref[...]).astype(cdt)
    ff = jnp.dot(h2, w1_ref[...], preferred_element_type=jnp.float32) + b1_ref[...]
    ff = jax.nn.gelu(ff, approximate=True).astype(cdt)
    ff = jnp.dot(ff, w2_ref[...], preferred_element_type=jnp.float32) + b2_ref[...]
    out_ref[0] = (x1 + ff).astype(out_ref.dtype)   # final dropout = identity (eval)


def transformer_block(x, mask, rel_kernel, abs_kernel, layer, params, *,
                      num_heads, compute_dtype=jnp.bfloat16, q_tile=None,
                      out_dtype=None, weight_buffers=None,
                      vmem_limit_bytes=48 * 1024 * 1024):
    B, S, H = x.shape
    dk = H // num_heads
    scale = 1.0 / np.sqrt(dk)
    cdt = compute_dtype
    out_dtype = out_dtype if out_dtype is not None else x.dtype

    if q_tile is None:
        # v6e/v5e: 256 is also a good choice when S % 256 == 0 (fewer grid steps).
        q_tile = 128 if (S % 128 == 0 and S > 128) else S
    assert S % q_tile == 0
    n_qt = S // q_tile

    # ---- wrapper-side glue (constant folding, dtype casts) -----------------
    # Pre-combined additive score bias (rel + abs), batch independent.
    bias = (rel_kernel[layer] + abs_kernel[layer]).astype(cdt)            # [nH,S,S]
    # Additive mask (0 / -1e9); upcast to f32 at the in-kernel score add.
    mask_add = jnp.where(mask[:, 0] > 0, 0.0, -1e9).astype(cdt)          # [B,S,S]

    wq = (params["wq"] * scale).astype(cdt)
    bq = (params["bq"] * scale).astype(jnp.float32)
    wk = params["wk"].astype(cdt)
    wv = params["wv"].astype(cdt)
    wo = params["wo"].astype(cdt)
    w1 = params["w1"].astype(cdt)
    w2 = params["w2"].astype(cdt)

    weights = [
        params["ln1_g"], params["ln1_b"],
        wq, bq, wk, params["bk"], wv, params["bv"], wo, params["bo"],
        params["ln2_g"], params["ln2_b"],
        w1, params["b1"], w2, params["b2"],
    ]

    # Batch-independent bias: keep fully VMEM-resident (fetched once for the whole
    # grid) whenever it fits comfortably; otherwise stream per query tile.
    bias_bytes = num_heads * S * S * jnp.dtype(cdt).itemsize
    bias_resident = (2 * bias_bytes) <= (vmem_limit_bytes // 2)
    if bias_resident:
        bias_spec = pl.BlockSpec((num_heads, S, S), lambda b, qt: (0, 0, 0))
    else:
        bias_spec = pl.BlockSpec((num_heads, q_tile, S), lambda b, qt: (0, qt, 0))

    in_specs = [
        pl.BlockSpec((1, S, H), lambda b, qt: (b, 0, 0)),              # x (resident per row)
        pl.BlockSpec((1, q_tile, S), lambda b, qt: (b, qt, 0)),        # additive mask
        bias_spec,                                                     # score bias
    ]
    for w in weights:                                                  # full, shared
        if weight_buffers is None:
            spec = pl.BlockSpec(w.shape, lambda b, qt, nd=w.ndim: (0,) * nd)
        else:
            # e.g. weight_buffers=1 on v7x to avoid dead double-buffered weights.
            spec = pl.BlockSpec(w.shape, lambda b, qt, nd=w.ndim: (0,) * nd,
                                pipeline_mode=pl.Buffered(weight_buffers))
        in_specs.append(spec)

    kernel = functools.partial(transformer_block_kernel,
                               num_heads=num_heads, q_tile=q_tile,
                               bias_resident=bias_resident)
    return pl.pallas_call(
        kernel,
        out_shape=jax.ShapeDtypeStruct((B, S, H), out_dtype),
        grid=(B, n_qt),
        in_specs=in_specs,
        out_specs=pl.BlockSpec((1, q_tile, H), lambda b, qt: (b, qt, 0)),
        scratch_shapes=[pltpu.VMEM((S, H), cdt),       # K cache (per batch row)
                        pltpu.VMEM((S, H), cdt),       # V cache
                        pltpu.VMEM((q_tile, H), cdt)], # per-tile head contexts
        compiler_params=pltpu.CompilerParams(
            dimension_semantics=("parallel", "arbitrary"),
            vmem_limit_bytes=vmem_limit_bytes,
        ),
    )(x, mask_add, bias, *weights)


# ---------------- pure-JAX reference (for correctness check) ----------------
def transformer_block_ref(x, mask, rel_kernel, abs_kernel, layer, params, *, num_heads):
    B, S, H = x.shape
    dk = H // num_heads
    scale = 1.0 / np.sqrt(dk)
    rel_l, abs_l = rel_kernel[layer], abs_kernel[layer]

    h = _layer_norm(x, params["ln1_g"], params["ln1_b"])
    q = h @ params["wq"] + params["bq"]
    k = h @ params["wk"] + params["bk"]
    v = h @ params["wv"] + params["bv"]
    qh = q.reshape(B, S, num_heads, dk).transpose(0, 2, 1, 3)
    kh = k.reshape(B, S, num_heads, dk).transpose(0, 2, 1, 3)
    vh = v.reshape(B, S, num_heads, dk).transpose(0, 2, 1, 3)
    scores = jnp.einsum("bhqd,bhkd->bhqk", qh, kh) * scale
    scores = scores + rel_l[None] + abs_l[None]
    scores = jnp.where(mask > 0, scores, -1e9)
    p = jax.nn.softmax(scores, axis=-1)
    ctx = jnp.einsum("bhqk,bhkd->bhqd", p, vh).transpose(0, 2, 1, 3).reshape(B, S, H)
    x1 = x + (ctx @ params["wo"] + params["bo"])

    h2 = _layer_norm(x1, params["ln2_g"], params["ln2_b"])
    ff = jax.nn.gelu(h2 @ params["w1"] + params["b1"], approximate=True)
    ff = ff @ params["w2"] + params["b2"]
    return x1 + ff


if __name__ == "__main__":
    # Small but lane-dense shapes (H, d_ff multiples of 128; S exercises 2 q-tiles).
    B, S, H = 2, 256, 128
    num_heads = 4
    num_layers = 2
    layer = 1
    d_ff = 4 * H

    key = jax.random.PRNGKey(0)
    ks = jax.random.split(key, 16)

    x = jax.random.normal(ks[0], (B, S, H), dtype=jnp.float32)
    mask = jnp.tril(jnp.ones((S, S), jnp.float32))[None, None].repeat(B, axis=0)
    rel_kernel = 0.1 * jax.random.normal(ks[1], (num_layers, num_heads, S, S), jnp.float32)
    abs_kernel = 0.1 * jax.random.normal(ks[2], (num_layers, num_heads, S, S), jnp.float32)

    sc = 0.05
    params = {
        "ln1_g": jnp.ones((1, H), jnp.float32),
        "ln1_b": jnp.zeros((1, H), jnp.float32),
        "wq": sc * jax.random.normal(ks[3], (H, H), jnp.float32),
        "bq": sc * jax.random.normal(ks[4], (1, H), jnp.float32),
        "wk": sc * jax.random.normal(ks[5], (H, H), jnp.float32),
        "bk": sc * jax.random.normal(ks[6], (1, H), jnp.float32),
        "wv": sc * jax.random.normal(ks[7], (H, H), jnp.float32),
        "bv": sc * jax.random.normal(ks[8], (1, H), jnp.float32),
        "wo": sc * jax.random.normal(ks[9], (H, H), jnp.float32),
        "bo": sc * jax.random.normal(ks[10], (1, H), jnp.float32),
        "ln2_g": jnp.ones((1, H), jnp.float32),
        "ln2_b": jnp.zeros((1, H), jnp.float32),
        "w1": sc * jax.random.normal(ks[11], (H, d_ff), jnp.float32),
        "b1": sc * jax.random.normal(ks[12], (1, d_ff), jnp.float32),
        "w2": sc * jax.random.normal(ks[13], (d_ff, H), jnp.float32),
        "b2": sc * jax.random.normal(ks[14], (1, H), jnp.float32),
    }

    ref = transformer_block_ref(x, mask, rel_kernel, abs_kernel, layer, params,
                                num_heads=num_heads)

    # f32 compute path: tight check of the kernel semantics.
    out_f32 = transformer_block(x, mask, rel_kernel, abs_kernel, layer, params,
                                num_heads=num_heads, compute_dtype=jnp.float32)
    out_f32 = jax.block_until_ready(out_f32)
    np.testing.assert_allclose(np.asarray(out_f32), np.asarray(ref),
                               atol=2e-3, rtol=2e-3)

    # bf16 compute path (default / optimized): sanity check vs f32 reference.
    out_bf16 = transformer_block(x, mask, rel_kernel, abs_kernel, layer, params,
                                 num_heads=num_heads, compute_dtype=jnp.bfloat16)
    out_bf16 = jax.block_until_ready(out_bf16)
    np.testing.assert_allclose(np.asarray(out_bf16), np.asarray(ref),
                               atol=8e-2, rtol=8e-2)

    print("KERNEL_OK")
</pallas_src>

<mosaic_0001>
module attributes {stable_mosaic.version = 11 : i64} {
  func.func @transformer_block_kernel(%arg0: i32, %arg1: i32, %arg2: memref<1x256x128xf32, #tpu.memory_space<vmem>>, %arg3: memref<1x128x256xf32, #tpu.memory_space<vmem>>, %arg4: memref<4x256x256xf32, #tpu.memory_space<vmem>>, %arg5: memref<1x128xf32, #tpu.memory_space<vmem>>, %arg6: memref<1x128xf32, #tpu.memory_space<vmem>>, %arg7: memref<128x128xf32, #tpu.memory_space<vmem>>, %arg8: memref<1x128xf32, #tpu.memory_space<vmem>>, %arg9: memref<128x128xf32, #tpu.memory_space<vmem>>, %arg10: memref<1x128xf32, #tpu.memory_space<vmem>>, %arg11: memref<128x128xf32, #tpu.memory_space<vmem>>, %arg12: memref<1x128xf32, #tpu.memory_space<vmem>>, %arg13: memref<128x128xf32, #tpu.memory_space<vmem>>, %arg14: memref<1x128xf32, #tpu.memory_space<vmem>>, %arg15: memref<1x128xf32, #tpu.memory_space<vmem>>, %arg16: memref<1x128xf32, #tpu.memory_space<vmem>>, %arg17: memref<128x512xf32, #tpu.memory_space<vmem>>, %arg18: memref<1x512xf32, #tpu.memory_space<vmem>>, %arg19: memref<512x128xf32, #tpu.memory_space<vmem>>, %arg20: memref<1x128xf32, #tpu.memory_space<vmem>>, %arg21: memref<1x128x128xf32, #tpu.memory_space<vmem>>, %arg22: memref<256x128xf32, #tpu.memory_space<vmem>>, %arg23: memref<256x128xf32, #tpu.memory_space<vmem>>, %arg24: memref<128x128xf32, #tpu.memory_space<vmem>>) attributes {dimension_semantics = [#tpu.dimension_semantics<parallel>, #tpu.dimension_semantics<arbitrary>], iteration_bounds = array<i64: 2, 2>, scalar_prefetch = 0 : i64, scratch_operands = 3 : i64, tpu.core_type = #tpu.core_type<tc>, window_params = [{transform_indices = @transform_0, window_bounds = array<i64: 1, 256, 128>}, {transform_indices = @transform_1, window_bounds = array<i64: 1, 128, 256>}, {pipeline_mode = #tpu.pipeline_mode<synchronous>, transform_indices = @transform_2, window_bounds = array<i64: 4, 256, 256>}, {pipeline_mode = #tpu.pipeline_mode<synchronous>, transform_indices = @transform_3, window_bounds = array<i64: 1, 128>}, {pipeline_mode = #tpu.pipeline_mode<synchronous>, transform_indices = @transform_4, window_bounds = array<i64: 1, 128>}, {pipeline_mode = #tpu.pipeline_mode<synchronous>, transform_indices = @transform_5, window_bounds = array<i64: 128, 128>}, {pipeline_mode = #tpu.pipeline_mode<synchronous>, transform_indices = @transform_6, window_bounds = array<i64: 1, 128>}, {pipeline_mode = #tpu.pipeline_mode<synchronous>, transform_indices = @transform_7, window_bounds = array<i64: 128, 128>}, {pipeline_mode = #tpu.pipeline_mode<synchronous>, transform_indices = @transform_8, window_bounds = array<i64: 1, 128>}, {pipeline_mode = #tpu.pipeline_mode<synchronous>, transform_indices = @transform_9, window_bounds = array<i64: 128, 128>}, {pipeline_mode = #tpu.pipeline_mode<synchronous>, transform_indices = @transform_10, window_bounds = array<i64: 1, 128>}, {pipeline_mode = #tpu.pipeline_mode<synchronous>, transform_indices = @transform_11, window_bounds = array<i64: 128, 128>}, {pipeline_mode = #tpu.pipeline_mode<synchronous>, transform_indices = @transform_12, window_bounds = array<i64: 1, 128>}, {pipeline_mode = #tpu.pipeline_mode<synchronous>, transform_indices = @transform_13, window_bounds = array<i64: 1, 128>}, {pipeline_mode = #tpu.pipeline_mode<synchronous>, transform_indices = @transform_14, window_bounds = array<i64: 1, 128>}, {pipeline_mode = #tpu.pipeline_mode<synchronous>, transform_indices = @transform_15, window_bounds = array<i64: 128, 512>}, {pipeline_mode = #tpu.pipeline_mode<synchronous>, transform_indices = @transform_16, window_bounds = array<i64: 1, 512>}, {pipeline_mode = #tpu.pipeline_mode<synchronous>, transform_indices = @transform_17, window_bounds = array<i64: 512, 128>}, {pipeline_mode = #tpu.pipeline_mode<synchronous>, transform_indices = @transform_18, window_bounds = array<i64: 1, 128>}, {transform_indices = @transform_19, window_bounds = array<i64: 1, 128, 128>}]} {
    %c0_i32 = arith.constant 0 : i32
    %0 = arith.cmpi eq, %arg1, %c0_i32 : i32
    %1 = arith.extui %0 : i1 to i32
    %c0_i32_0 = arith.constant 0 : i32
    %2 = arith.cmpi ne, %1, %c0_i32_0 : i32
    scf.if %2 {
      %c0_81 = arith.constant 0 : index
      %c0_82 = arith.constant 0 : index
      %c0_83 = arith.constant 0 : index
      %183 = vector.load %arg2[%c0_81, %c0_82, %c0_83] : memref<1x256x128xf32, #tpu.memory_space<vmem>>, vector<1x256x128xf32>
      %184 = vector.shape_cast %183 : vector<1x256x128xf32> to vector<256x128xf32>
      %c0_84 = arith.constant 0 : index
      %c0_85 = arith.constant 0 : index
      %185 = vector.load %arg5[%c0_84, %c0_85] : memref<1x128xf32, #tpu.memory_space<vmem>>, vector<1x128xf32>
      %c0_86 = arith.constant 0 : index
      %c0_87 = arith.constant 0 : index
      %186 = vector.load %arg6[%c0_86, %c0_87] : memref<1x128xf32, #tpu.memory_space<vmem>>, vector<1x128xf32>
      %cst_88 = arith.constant dense<0.000000e+00> : vector<256xf32>
      %187 = vector.multi_reduction <add>, %184, %cst_88 [1] : vector<256x128xf32> to vector<256xf32>
      %188 = vector.shape_cast %187 : vector<256xf32> to vector<256x1xf32>
      %cst_89 = arith.constant 1.280000e+02 : f32
      %189 = vector.broadcast %cst_89 : f32 to vector<256x1xf32>
      %190 = arith.divf %188, %189 : vector<256x1xf32>
      %191 = vector.broadcast %190 : vector<256x1xf32> to vector<256x128xf32>
      %192 = arith.subf %184, %191 : vector<256x128xf32>
      %193 = arith.mulf %192, %192 : vector<256x128xf32>
      %cst_90 = arith.constant dense<0.000000e+00> : vector<256xf32>
      %194 = vector.multi_reduction <add>, %193, %cst_90 [1] : vector<256x128xf32> to vector<256xf32>
      %195 = vector.shape_cast %194 : vector<256xf32> to vector<256x1xf32>
      %cst_91 = arith.constant 1.280000e+02 : f32
      %196 = vector.broadcast %cst_91 : f32 to vector<256x1xf32>
      %197 = arith.divf %195, %196 : vector<256x1xf32>
      %198 = vector.broadcast %190 : vector<256x1xf32> to vector<256x128xf32>
      %199 = arith.subf %184, %198 : vector<256x128xf32>
      %cst_92 = arith.constant 9.99999997E-7 : f32
      %200 = vector.broadcast %cst_92 : f32 to vector<256x1xf32>
      %201 = arith.addf %197, %200 : vector<256x1xf32>
      %202 = math.rsqrt %201 : vector<256x1xf32>
      %203 = vector.broadcast %202 : vector<256x1xf32> to vector<256x128xf32>
      %204 = arith.mulf %199, %203 : vector<256x128xf32>
      %205 = vector.broadcast %185 : vector<1x128xf32> to vector<256x128xf32>
      %206 = arith.mulf %204, %205 : vector<256x128xf32>
      %207 = vector.broadcast %186 : vector<1x128xf32> to vector<256x128xf32>
      %208 = arith.addf %206, %207 : vector<256x128xf32>
      %c0_93 = arith.constant 0 : index
      %c0_94 = arith.constant 0 : index
      %209 = vector.load %arg9[%c0_93, %c0_94] : memref<128x128xf32, #tpu.memory_space<vmem>>, vector<128x128xf32>
      %cst_95 = arith.constant dense<0.000000e+00> : vector<256x128xf32>
      %210 = tpu.matmul %208, %209, %cst_95 {dimension_numbers = #tpu.dot_dimension_numbers<[1], [0], [0], [1], [0, 0, 1, 1], [], []>} : vector<256x128xf32>, vector<128x128xf32>, vector<256x128xf32> -> vector<256x128xf32>
      %c0_96 = arith.constant 0 : index
      %c0_97 = arith.constant 0 : index
      %211 = vector.load %arg10[%c0_96, %c0_97] : memref<1x128xf32, #tpu.memory_space<vmem>>, vector<1x128xf32>
      %212 = vector.broadcast %211 : vector<1x128xf32> to vector<256x128xf32>
      %213 = arith.addf %210, %212 : vector<256x128xf32>
      %c0_98 = arith.constant 0 : index
      %c0_99 = arith.constant 0 : index
      %214 = vector.load %arg22[%c0_98, %c0_99] : memref<256x128xf32, #tpu.memory_space<vmem>>, vector<256x128xf32>
      tpu.vector_store %arg22[%c0_98, %c0_99], %213 {strides = array<i32>} : memref<256x128xf32, #tpu.memory_space<vmem>>, vector<256x128xf32>,
      %c0_100 = arith.constant 0 : index
      %c0_101 = arith.constant 0 : index
      %215 = vector.load %arg11[%c0_100, %c0_101] : memref<128x128xf32, #tpu.memory_space<vmem>>, vector<128x128xf32>
      %cst_102 = arith.constant dense<0.000000e+00> : vector<256x128xf32>
      %216 = tpu.matmul %208, %215, %cst_102 {dimension_numbers = #tpu.dot_dimension_numbers<[1], [0], [0], [1], [0, 0, 1, 1], [], []>} : vector<256x128xf32>, vector<128x128xf32>, vector<256x128xf32> -> vector<256x128xf32>
      %c0_103 = arith.constant 0 : index
      %c0_104 = arith.constant 0 : index
      %217 = vector.load %arg12[%c0_103, %c0_104] : memref<1x128xf32, #tpu.memory_space<vmem>>, vector<1x128xf32>
      %218 = vector.broadcast %217 : vector<1x128xf32> to vector<256x128xf32>
      %219 = arith.addf %216, %218 : vector<256x128xf32>
      %c0_105 = arith.constant 0 : index
      %c0_106 = arith.constant 0 : index
      %220 = vector.load %arg23[%c0_105, %c0_106] : memref<256x128xf32, #tpu.memory_space<vmem>>, vector<256x128xf32>
      tpu.vector_store %arg23[%c0_105, %c0_106], %219 {strides = array<i32>} : memref<256x128xf32, #tpu.memory_space<vmem>>, vector<256x128xf32>,
    } else {
    }
    %c128_i32 = arith.constant 128 : i32
    %3 = arith.muli %arg1, %c128_i32 : i32
    %4 = tpu.assume_multiple %3, 128 : i32
    %c0 = arith.constant 0 : index
    %5 = arith.index_cast %4 : i32 to index
    %c0_1 = arith.constant 0 : index
    %6 = vector.load %arg2[%c0, %5, %c0_1] : memref<1x256x128xf32, #tpu.memory_space<vmem>>, vector<1x128x128xf32>
    %7 = vector.shape_cast %6 : vector<1x128x128xf32> to vector<128x128xf32>
    %c0_2 = arith.constant 0 : index
    %c0_3 = arith.constant 0 : index
    %8 = vector.load %arg5[%c0_2, %c0_3] : memref<1x128xf32, #tpu.memory_space<vmem>>, vector<1x128xf32>
    %c0_4 = arith.constant 0 : index
    %c0_5 = arith.constant 0 : index
    %9 = vector.load %arg6[%c0_4, %c0_5] : memref<1x128xf32, #tpu.memory_space<vmem>>, vector<1x128xf32>
    %cst = arith.constant dense<0.000000e+00> : vector<128xf32>
    %10 = vector.multi_reduction <add>, %7, %cst [1] : vector<128x128xf32> to vector<128xf32>
    %11 = vector.shape_cast %10 : vector<128xf32> to vector<128x1xf32>
    %cst_6 = arith.constant 1.280000e+02 : f32
    %12 = vector.broadcast %cst_6 : f32 to vector<128x1xf32>
    %13 = arith.divf %11, %12 : vector<128x1xf32>
    %14 = vector.broadcast %13 : vector<128x1xf32> to vector<128x128xf32>
    %15 = arith.subf %7, %14 : vector<128x128xf32>
    %16 = arith.mulf %15, %15 : vector<128x128xf32>
    %cst_7 = arith.constant dense<0.000000e+00> : vector<128xf32>
    %17 = vector.multi_reduction <add>, %16, %cst_7 [1] : vector<128x128xf32> to vector<128xf32>
    %18 = vector.shape_cast %17 : vector<128xf32> to vector<128x1xf32>
    %cst_8 = arith.constant 1.280000e+02 : f32
    %19 = vector.broadcast %cst_8 : f32 to vector<128x1xf32>
    %20 = arith.divf %18, %19 : vector<128x1xf32>
    %21 = vector.broadcast %13 : vector<128x1xf32> to vector<128x128xf32>
    %22 = arith.subf %7, %21 : vector<128x128xf32>
    %cst_9 = arith.constant 9.99999997E-7 : f32
    %23 = vector.broadcast %cst_9 : f32 to vector<128x1xf32>
    %24 = arith.addf %20, %23 : vector<128x1xf32>
    %25 = math.rsqrt %24 : vector<128x1xf32>
    %26 = vector.broadcast %25 : vector<128x1xf32> to vector<128x128xf32>
    %27 = arith.mulf %22, %26 : vector<128x128xf32>
    %28 = vector.broadcast %8 : vector<1x128xf32> to vector<128x128xf32>
    %29 = arith.mulf %27, %28 : vector<128x128xf32>
    %30 = vector.broadcast %9 : vector<1x128xf32> to vector<128x128xf32>
    %31 = arith.addf %29, %30 : vector<128x128xf32>
    %c0_10 = arith.constant 0 : index
    %c0_11 = arith.constant 0 : index
    %32 = vector.load %arg7[%c0_10, %c0_11] : memref<128x128xf32, #tpu.memory_space<vmem>>, vector<128x128xf32>
    %cst_12 = arith.constant dense<0.000000e+00> : vector<128x128xf32>
    %33 = tpu.matmul %31, %32, %cst_12 {dimension_numbers = #tpu.dot_dimension_numbers<[1], [0], [0], [1], [0, 0, 1, 1], [], []>} : vector<128x128xf32>, vector<128x128xf32>, vector<128x128xf32> -> vector<128x128xf32>
    %c0_13 = arith.constant 0 : index
    %c0_14 = arith.constant 0 : index
    %34 = vector.load %arg8[%c0_13, %c0_14] : memref<1x128xf32, #tpu.memory_space<vmem>>, vector<1x128xf32>
    %35 = vector.broadcast %34 : vector<1x128xf32> to vector<128x128xf32>
    %36 = arith.addf %33, %35 : vector<128x128xf32>
    %c0_15 = arith.constant 0 : index
    %c0_16 = arith.constant 0 : index
    %37 = vector.load %arg22[%c0_15, %c0_16] : memref<256x128xf32, #tpu.memory_space<vmem>>, vector<256x128xf32>
    %c0_17 = arith.constant 0 : index
    %c0_18 = arith.constant 0 : index
    %38 = vector.load %arg23[%c0_17, %c0_18] : memref<256x128xf32, #tpu.memory_space<vmem>>, vector<256x128xf32>
    %c0_19 = arith.constant 0 : index
    %c0_20 = arith.constant 0 : index
    %c0_21 = arith.constant 0 : index
    %39 = vector.load %arg3[%c0_19, %c0_20, %c0_21] : memref<1x128x256xf32, #tpu.memory_space<vmem>>, vector<1x128x256xf32>
    %40 = vector.shape_cast %39 : vector<1x128x256xf32> to vector<128x256xf32>
    %41 = vector.extract_strided_slice %36 {offsets = [0, 0], sizes = [128, 32], strides = [1, 1]} : vector<128x128xf32> to vector<128x32xf32>
    %42 = vector.extract_strided_slice %37 {offsets = [0, 0], sizes = [256, 32], strides = [1, 1]} : vector<256x128xf32> to vector<256x32xf32>
    %43 = vector.extract_strided_slice %38 {offsets = [0, 0], sizes = [256, 32], strides = [1, 1]} : vector<256x128xf32> to vector<256x32xf32>
    %cst_22 = arith.constant dense<0.000000e+00> : vector<128x256xf32>
    %44 = tpu.matmul %41, %42, %cst_22 {dimension_numbers = #tpu.dot_dimension_numbers<[1], [1], [0], [0], [0, 0, 1, 0], [], []>} : vector<128x32xf32>, vector<256x32xf32>, vector<128x256xf32> -> vector<128x256xf32>
    %c0_23 = arith.constant 0 : index
    %45 = arith.index_cast %4 : i32 to index
    %c0_24 = arith.constant 0 : index
    %46 = vector.load %arg4[%c0_23, %45, %c0_24] : memref<4x256x256xf32, #tpu.memory_space<vmem>>, vector<1x128x256xf32>
    %47 = vector.shape_cast %46 : vector<1x128x256xf32> to vector<128x256xf32>
    %48 = arith.addf %44, %47 : vector<128x256xf32>
    %49 = arith.addf %48, %40 : vector<128x256xf32>
    %cst_25 = arith.constant dense<0xFF800000> : vector<128xf32>
    %50 = vector.multi_reduction <maximumf>, %49, %cst_25 [1] : vector<128x256xf32> to vector<128xf32>
    %51 = vector.shape_cast %50 : vector<128xf32> to vector<128x1xf32>
    %52 = vector.broadcast %51 : vector<128x1xf32> to vector<128x256xf32>
    %53 = arith.subf %49, %52 : vector<128x256xf32>
    %54 = math.exp %53 : vector<128x256xf32>
    %cst_26 = arith.constant dense<0.000000e+00> : vector<128xf32>
    %55 = vector.multi_reduction <add>, %54, %cst_26 [1] : vector<128x256xf32> to vector<128xf32>
    %56 = vector.shape_cast %55 : vector<128xf32> to vector<128x1xf32>
    %cst_27 = arith.constant dense<0.000000e+00> : vector<128x32xf32>
    %57 = tpu.matmul %54, %43, %cst_27 {dimension_numbers = #tpu.dot_dimension_numbers<[1], [0], [0], [1], [0, 0, 1, 1], [], []>} : vector<128x256xf32>, vector<256x32xf32>, vector<128x32xf32> -> vector<128x32xf32>
    %58 = tpu.reciprocal %56 : vector<128x1xf32> -> vector<128x1xf32>
    %59 = vector.broadcast %58 : vector<128x1xf32> to vector<128x32xf32>
    %60 = arith.mulf %57, %59 : vector<128x32xf32>
    %c0_28 = arith.constant 0 : index
    %c0_29 = arith.constant 0 : index
    %61 = vector.load %arg24[%c0_28, %c0_29] : memref<128x128xf32, #tpu.memory_space<vmem>>, vector<128x32xf32>
    tpu.vector_store %arg24[%c0_28, %c0_29], %60 {strides = array<i32>} : memref<128x128xf32, #tpu.memory_space<vmem>>, vector<128x32xf32>,
    %62 = vector.extract_strided_slice %36 {offsets = [0, 32], sizes = [128, 32], strides = [1, 1]} : vector<128x128xf32> to vector<128x32xf32>
    %63 = vector.extract_strided_slice %37 {offsets = [0, 32], sizes = [256, 32], strides = [1, 1]} : vector<256x128xf32> to vector<256x32xf32>
    %64 = vector.extract_strided_slice %38 {offsets = [0, 32], sizes = [256, 32], strides = [1, 1]} : vector<256x128xf32> to vector<256x32xf32>
    %cst_30 = arith.constant dense<0.000000e+00> : vector<128x256xf32>
    %65 = tpu.matmul %62, %63, %cst_30 {dimension_numbers = #tpu.dot_dimension_numbers<[1], [1], [0], [0], [0, 0, 1, 0], [], []>} : vector<128x32xf32>, vector<256x32xf32>, vector<128x256xf32> -> vector<128x256xf32>
    %c1 = arith.constant 1 : index
    %66 = arith.index_cast %4 : i32 to index
    %c0_31 = arith.constant 0 : index
    %67 = vector.load %arg4[%c1, %66, %c0_31] : memref<4x256x256xf32, #tpu.memory_space<vmem>>, vector<1x128x256xf32>
    %68 = vector.shape_cast %67 : vector<1x128x256xf32> to vector<128x256xf32>
    %69 = arith.addf %65, %68 : vector<128x256xf32>
    %70 = arith.addf %69, %40 : vector<128x256xf32>
    %cst_32 = arith.constant dense<0xFF800000> : vector<128xf32>
    %71 = vector.multi_reduction <maximumf>, %70, %cst_32 [1] : vector<128x256xf32> to vector<128xf32>
    %72 = vector.shape_cast %71 : vector<128xf32> to vector<128x1xf32>
    %73 = vector.broadcast %72 : vector<128x1xf32> to vector<128x256xf32>
    %74 = arith.subf %70, %73 : vector<128x256xf32>
    %75 = math.exp %74 : vector<128x256xf32>
    %cst_33 = arith.constant dense<0.000000e+00> : vector<128xf32>
    %76 = vector.multi_reduction <add>, %75, %cst_33 [1] : vector<128x256xf32> to vector<128xf32>
    %77 = vector.shape_cast %76 : vector<128xf32> to vector<128x1xf32>
    %cst_34 = arith.constant dense<0.000000e+00> : vector<128x32xf32>
    %78 = tpu.matmul %75, %64, %cst_34 {dimension_numbers = #tpu.dot_dimension_numbers<[1], [0], [0], [1], [0, 0, 1, 1], [], []>} : vector<128x256xf32>, vector<256x32xf32>, vector<128x32xf32> -> vector<128x32xf32>
    %79 = tpu.reciprocal %77 : vector<128x1xf32> -> vector<128x1xf32>
    %80 = vector.broadcast %79 : vector<128x1xf32> to vector<128x32xf32>
    %81 = arith.mulf %78, %80 : vector<128x32xf32>
    %c0_35 = arith.constant 0 : index
    %c32 = arith.constant 32 : index
    %82 = vector.load %arg24[%c0_35, %c32] : memref<128x128xf32, #tpu.memory_space<vmem>>, vector<128x32xf32>
    tpu.vector_store %arg24[%c0_35, %c32], %81 {strides = array<i32>} : memref<128x128xf32, #tpu.memory_space<vmem>>, vector<128x32xf32>,
    %83 = vector.extract_strided_slice %36 {offsets = [0, 64], sizes = [128, 32], strides = [1, 1]} : vector<128x128xf32> to vector<128x32xf32>
    %84 = vector.extract_strided_slice %37 {offsets = [0, 64], sizes = [256, 32], strides = [1, 1]} : vector<256x128xf32> to vector<256x32xf32>
    %85 = vector.extract_strided_slice %38 {offsets = [0, 64], sizes = [256, 32], strides = [1, 1]} : vector<256x128xf32> to vector<256x32xf32>
    %cst_36 = arith.constant dense<0.000000e+00> : vector<128x256xf32>
    %86 = tpu.matmul %83, %84, %cst_36 {dimension_numbers = #tpu.dot_dimension_numbers<[1], [1], [0], [0], [0, 0, 1, 0], [], []>} : vector<128x32xf32>, vector<256x32xf32>, vector<128x256xf32> -> vector<128x256xf32>
    %c2 = arith.constant 2 : index
    %87 = arith.index_cast %4 : i32 to index
    %c0_37 = arith.constant 0 : index
    %88 = vector.load %arg4[%c2, %87, %c0_37] : memref<4x256x256xf32, #tpu.memory_space<vmem>>, vector<1x128x256xf32>
    %89 = vector.shape_cast %88 : vector<1x128x256xf32> to vector<128x256xf32>
    %90 = arith.addf %86, %89 : vector<128x256xf32>
    %91 = arith.addf %90, %40 : vector<128x256xf32>
    %cst_38 = arith.constant dense<0xFF800000> : vector<128xf32>
    %92 = vector.multi_reduction <maximumf>, %91, %cst_38 [1] : vector<128x256xf32> to vector<128xf32>
    %93 = vector.shape_cast %92 : vector<128xf32> to vector<128x1xf32>
    %94 = vector.broadcast %93 : vector<128x1xf32> to vector<128x256xf32>
    %95 = arith.subf %91, %94 : vector<128x256xf32>
    %96 = math.exp %95 : vector<128x256xf32>
    %cst_39 = arith.constant dense<0.000000e+00> : vector<128xf32>
    %97 = vector.multi_reduction <add>, %96, %cst_39 [1] : vector<128x256xf32> to vector<128xf32>
    %98 = vector.shape_cast %97 : vector<128xf32> to vector<128x1xf32>
    %cst_40 = arith.constant dense<0.000000e+00> : vector<128x32xf32>
    %99 = tpu.matmul %96, %85, %cst_40 {dimension_numbers = #tpu.dot_dimension_numbers<[1], [0], [0], [1], [0, 0, 1, 1], [], []>} : vector<128x256xf32>, vector<256x32xf32>, vector<128x32xf32> -> vector<128x32xf32>
    %100 = tpu.reciprocal %98 : vector<128x1xf32> -> vector<128x1xf32>
    %101 = vector.broadcast %100 : vector<128x1xf32> to vector<128x32xf32>
    %102 = arith.mulf %99, %101 : vector<128x32xf32>
    %c0_41 = arith.constant 0 : index
    %c64 = arith.constant 64 : index
    %103 = vector.load %arg24[%c0_41, %c64] : memref<128x128xf32, #tpu.memory_space<vmem>>, vector<128x32xf32>
    tpu.vector_store %arg24[%c0_41, %c64], %102 {strides = array<i32>} : memref<128x128xf32, #tpu.memory_space<vmem>>, vector<128x32xf32>,
    %104 = vector.extract_strided_slice %36 {offsets = [0, 96], sizes = [128, 32], strides = [1, 1]} : vector<128x128xf32> to vector<128x32xf32>
    %105 = vector.extract_strided_slice %37 {offsets = [0, 96], sizes = [256, 32], strides = [1, 1]} : vector<256x128xf32> to vector<256x32xf32>
    %106 = vector.extract_strided_slice %38 {offsets = [0, 96], sizes = [256, 32], strides = [1, 1]} : vector<256x128xf32> to vector<256x32xf32>
    %cst_42 = arith.constant dense<0.000000e+00> : vector<128x256xf32>
    %107 = tpu.matmul %104, %105, %cst_42 {dimension_numbers = #tpu.dot_dimension_numbers<[1], [1], [0], [0], [0, 0, 1, 0], [], []>} : vector<128x32xf32>, vector<256x32xf32>, vector<128x256xf32> -> vector<128x256xf32>
    %c3 = arith.constant 3 : index
    %108 = arith.index_cast %4 : i32 to index
    %c0_43 = arith.constant 0 : index
    %109 = vector.load %arg4[%c3, %108, %c0_43] : memref<4x256x256xf32, #tpu.memory_space<vmem>>, vector<1x128x256xf32>
    %110 = vector.shape_cast %109 : vector<1x128x256xf32> to vector<128x256xf32>
    %111 = arith.addf %107, %110 : vector<128x256xf32>
    %112 = arith.addf %111, %40 : vector<128x256xf32>
    %cst_44 = arith.constant dense<0xFF800000> : vector<128xf32>
    %113 = vector.multi_reduction <maximumf>, %112, %cst_44 [1] : vector<128x256xf32> to vector<128xf32>
    %114 = vector.shape_cast %113 : vector<128xf32> to vector<128x1xf32>
    %115 = vector.broadcast %114 : vector<128x1xf32> to vector<128x256xf32>
    %116 = arith.subf %112, %115 : vector<128x256xf32>
    %117 = math.exp %116 : vector<128x256xf32>
    %cst_45 = arith.constant dense<0.000000e+00> : vector<128xf32>
    %118 = vector.multi_reduction <add>, %117, %cst_45 [1] : vector<128x256xf32> to vector<128xf32>
    %119 = vector.shape_cast %118 : vector<128xf32> to vector<128x1xf32>
    %cst_46 = arith.constant dense<0.000000e+00> : vector<128x32xf32>
    %120 = tpu.matmul %117, %106, %cst_46 {dimension_numbers = #tpu.dot_dimension_numbers<[1], [0], [0], [1], [0, 0, 1, 1], [], []>} : vector<128x256xf32>, vector<256x32xf32>, vector<128x32xf32> -> vector<128x32xf32>
    %121 = tpu.reciprocal %119 : vector<128x1xf32> -> vector<128x1xf32>
    %122 = vector.broadcast %121 : vector<128x1xf32> to vector<128x32xf32>
    %123 = arith.mulf %120, %122 : vector<128x32xf32>
    %c0_47 = arith.constant 0 : index
    %c96 = arith.constant 96 : index
    %124 = vector.load %arg24[%c0_47, %c96] : memref<128x128xf32, #tpu.memory_space<vmem>>, vector<128x32xf32>
    tpu.vector_store %arg24[%c0_47, %c96], %123 {strides = array<i32>} : memref<128x128xf32, #tpu.memory_space<vmem>>, vector<128x32xf32>,
    %c0_48 = arith.constant 0 : index
    %c0_49 = arith.constant 0 : index
    %125 = vector.load %arg24[%c0_48, %c0_49] : memref<128x128xf32, #tpu.memory_space<vmem>>, vector<128x128xf32>
    %c0_50 = arith.constant 0 : index
    %c0_51 = arith.constant 0 : index
    %126 = vector.load %arg13[%c0_50, %c0_51] : memref<128x128xf32, #tpu.memory_space<vmem>>, vector<128x128xf32>
    %cst_52 = arith.constant dense<0.000000e+00> : vector<128x128xf32>
    %127 = tpu.matmul %125, %126, %cst_52 {dimension_numbers = #tpu.dot_dimension_numbers<[1], [0], [0], [1], [0, 0, 1, 1], [], []>} : vector<128x128xf32>, vector<128x128xf32>, vector<128x128xf32> -> vector<128x128xf32>
    %c0_53 = arith.constant 0 : index
    %c0_54 = arith.constant 0 : index
    %128 = vector.load %arg14[%c0_53, %c0_54] : memref<1x128xf32, #tpu.memory_space<vmem>>, vector<1x128xf32>
    %129 = vector.broadcast %128 : vector<1x128xf32> to vector<128x128xf32>
    %130 = arith.addf %127, %129 : vector<128x128xf32>
    %131 = arith.addf %7, %130 : vector<128x128xf32>
    %c0_55 = arith.constant 0 : index
    %c0_56 = arith.constant 0 : index
    %132 = vector.load %arg15[%c0_55, %c0_56] : memref<1x128xf32, #tpu.memory_space<vmem>>, vector<1x128xf32>
    %c0_57 = arith.constant 0 : index
    %c0_58 = arith.constant 0 : index
    %133 = vector.load %arg16[%c0_57, %c0_58] : memref<1x128xf32, #tpu.memory_space<vmem>>, vector<1x128xf32>
    %cst_59 = arith.constant dense<0.000000e+00> : vector<128xf32>
    %134 = vector.multi_reduction <add>, %131, %cst_59 [1] : vector<128x128xf32> to vector<128xf32>
    %135 = vector.shape_cast %134 : vector<128xf32> to vector<128x1xf32>
    %cst_60 = arith.constant 1.280000e+02 : f32
    %136 = vector.broadcast %cst_60 : f32 to vector<128x1xf32>
    %137 = arith.divf %135, %136 : vector<128x1xf32>
    %138 = vector.broadcast %137 : vector<128x1xf32> to vector<128x128xf32>
    %139 = arith.subf %131, %138 : vector<128x128xf32>
    %140 = arith.mulf %139, %139 : vector<128x128xf32>
    %cst_61 = arith.constant dense<0.000000e+00> : vector<128xf32>
    %141 = vector.multi_reduction <add>, %140, %cst_61 [1] : vector<128x128xf32> to vector<128xf32>
    %142 = vector.shape_cast %141 : vector<128xf32> to vector<128x1xf32>
    %cst_62 = arith.constant 1.280000e+02 : f32
    %143 = vector.broadcast %cst_62 : f32 to vector<128x1xf32>
    %144 = arith.divf %142, %143 : vector<128x1xf32>
    %145 = vector.broadcast %137 : vector<128x1xf32> to vector<128x128xf32>
    %146 = arith.subf %131, %145 : vector<128x128xf32>
    %cst_63 = arith.constant 9.99999997E-7 : f32
    %147 = vector.broadcast %cst_63 : f32 to vector<128x1xf32>
    %148 = arith.addf %144, %147 : vector<128x1xf32>
    %149 = math.rsqrt %148 : vector<128x1xf32>
    %150 = vector.broadcast %149 : vector<128x1xf32> to vector<128x128xf32>
    %151 = arith.mulf %146, %150 : vector<128x128xf32>
    %152 = vector.broadcast %132 : vector<1x128xf32> to vector<128x128xf32>
    %153 = arith.mulf %151, %152 : vector<128x128xf32>
    %154 = vector.broadcast %133 : vector<1x128xf32> to vector<128x128xf32>
    %155 = arith.addf %153, %154 : vector<128x128xf32>
    %c0_64 = arith.constant 0 : index
    %c0_65 = arith.constant 0 : index
    %156 = vector.load %arg17[%c0_64, %c0_65] : memref<128x512xf32, #tpu.memory_space<vmem>>, vector<128x512xf32>
    %cst_66 = arith.constant dense<0.000000e+00> : vector<128x512xf32>
    %157 = tpu.matmul %155, %156, %cst_66 {dimension_numbers = #tpu.dot_dimension_numbers<[1], [0], [0], [1], [0, 0, 1, 1], [], []>} : vector<128x128xf32>, vector<128x512xf32>, vector<128x512xf32> -> vector<128x512xf32>
    %c0_67 = arith.constant 0 : index
    %c0_68 = arith.constant 0 : index
    %158 = vector.load %arg18[%c0_67, %c0_68] : memref<1x512xf32, #tpu.memory_space<vmem>>, vector<1x512xf32>
    %159 = vector.broadcast %158 : vector<1x512xf32> to vector<128x512xf32>
    %160 = arith.addf %157, %159 : vector<128x512xf32>
    %161 = arith.mulf %160, %160 : vector<128x512xf32>
    %162 = arith.mulf %160, %161 : vector<128x512xf32>
    %cst_69 = arith.constant 4.471500e-02 : f32
    %163 = vector.broadcast %cst_69 : f32 to vector<128x512xf32>
    %164 = arith.mulf %163, %162 : vector<128x512xf32>
    %165 = arith.addf %160, %164 : vector<128x512xf32>
    %cst_70 = arith.constant 0.797884583 : f32
    %166 = vector.broadcast %cst_70 : f32 to vector<128x512xf32>
    %167 = arith.mulf %166, %165 : vector<128x512xf32>
    %168 = math.tanh %167 : vector<128x512xf32>
    %cst_71 = arith.constant 1.000000e+00 : f32
    %169 = vector.broadcast %cst_71 : f32 to vector<128x512xf32>
    %170 = arith.addf %169, %168 : vector<128x512xf32>
    %cst_72 = arith.constant 5.000000e-01 : f32
    %171 = vector.broadcast %cst_72 : f32 to vector<128x512xf32>
    %172 = arith.mulf %171, %170 : vector<128x512xf32>
    %173 = arith.mulf %160, %172 : vector<128x512xf32>
    %c0_73 = arith.constant 0 : index
    %c0_74 = arith.constant 0 : index
    %174 = vector.load %arg19[%c0_73, %c0_74] : memref<512x128xf32, #tpu.memory_space<vmem>>, vector<512x128xf32>
    %cst_75 = arith.constant dense<0.000000e+00> : vector<128x128xf32>
    %175 = tpu.matmul %173, %174, %cst_75 {dimension_numbers = #tpu.dot_dimension_numbers<[1], [0], [0], [1], [0, 0, 1, 1], [], []>} : vector<128x512xf32>, vector<512x128xf32>, vector<128x128xf32> -> vector<128x128xf32>
    %c0_76 = arith.constant 0 : index
    %c0_77 = arith.constant 0 : index
    %176 = vector.load %arg20[%c0_76, %c0_77] : memref<1x128xf32, #tpu.memory_space<vmem>>, vector<1x128xf32>
    %177 = vector.broadcast %176 : vector<1x128xf32> to vector<128x128xf32>
    %178 = arith.addf %175, %177 : vector<128x128xf32>
    %179 = arith.addf %131, %178 : vector<128x128xf32>
    %c0_78 = arith.constant 0 : index
    %c0_79 = arith.constant 0 : index
    %c0_80 = arith.constant 0 : index
    %180 = vector.load %arg21[%c0_78, %c0_79, %c0_80] : memref<1x128x128xf32, #tpu.memory_space<vmem>>, vector<1x128x128xf32>
    %181 = vector.shape_cast %180 : vector<1x128x128xf32> to vector<128x128xf32>
    %182 = vector.shape_cast %179 : vector<128x128xf32> to vector<1x128x128xf32>
    tpu.vector_store %arg21[%c0_78, %c0_79, %c0_80], %182 {strides = array<i32>} : memref<1x128x128xf32, #tpu.memory_space<vmem>>, vector<1x128x128xf32>,
    return
  }
  func.func @transform_0(%arg0: i32, %arg1: i32) -> (i32, i32, i32) {
    %c0_i32 = arith.constant 0 : i32
    %c0_i32_0 = arith.constant 0 : i32
    %c0_i32_1 = arith.constant 0 : i32
    return %arg0, %c0_i32, %c0_i32_0 : i32, i32, i32
  }
  func.func @transform_1(%arg0: i32, %arg1: i32) -> (i32, i32, i32) {
    %c0_i32 = arith.constant 0 : i32
    %c0_i32_0 = arith.constant 0 : i32
    return %arg0, %arg1, %c0_i32 : i32, i32, i32
  }
  func.func @transform_2(%arg0: i32, %arg1: i32) -> (i32, i32, i32) {
    %c0_i32 = arith.constant 0 : i32
    %c0_i32_0 = arith.constant 0 : i32
    %c0_i32_1 = arith.constant 0 : i32
    %c0_i32_2 = arith.constant 0 : i32
    return %c0_i32, %c0_i32_0, %c0_i32_1 : i32, i32, i32
  }
  func.func @transform_3(%arg0: i32, %arg1: i32) -> (i32, i32) {
    %c0_i32 = arith.constant 0 : i32
    %c0_i32_0 = arith.constant 0 : i32
    %c0_i32_1 = arith.constant 0 : i32
    return %c0_i32, %c0_i32_0 : i32, i32
  }
  func.func @transform_4(%arg0: i32, %arg1: i32) -> (i32, i32) {
    %c0_i32 = arith.constant 0 : i32
    %c0_i32_0 = arith.constant 0 : i32
    %c0_i32_1 = arith.constant 0 : i32
    return %c0_i32, %c0_i32_0 : i32, i32
  }
  func.func @transform_5(%arg0: i32, %arg1: i32) -> (i32, i32) {
    %c0_i32 = arith.constant 0 : i32
    %c0_i32_0 = arith.constant 0 : i32
    %c0_i32_1 = arith.constant 0 : i32
    return %c0_i32, %c0_i32_0 : i32, i32
  }
  func.func @transform_6(%arg0: i32, %arg1: i32) -> (i32, i32) {
    %c0_i32 = arith.constant 0 : i32
    %c0_i32_0 = arith.constant 0 : i32
    %c0_i32_1 = arith.constant 0 : i32
    return %c0_i32, %c0_i32_0 : i32, i32
  }
  func.func @transform_7(%arg0: i32, %arg1: i32) -> (i32, i32) {
    %c0_i32 = arith.constant 0 : i32
    %c0_i32_0 = arith.constant 0 : i32
    %c0_i32_1 = arith.constant 0 : i32
    return %c0_i32, %c0_i32_0 : i32, i32
  }
  func.func @transform_8(%arg0: i32, %arg1: i32) -> (i32, i32) {
    %c0_i32 = arith.constant 0 : i32
    %c0_i32_0 = arith.constant 0 : i32
    %c0_i32_1 = arith.constant 0 : i32
    return %c0_i32, %c0_i32_0 : i32, i32
  }
  func.func @transform_9(%arg0: i32, %arg1: i32) -> (i32, i32) {
    %c0_i32 = arith.constant 0 : i32
    %c0_i32_0 = arith.constant 0 : i32
    %c0_i32_1 = arith.constant 0 : i32
    return %c0_i32, %c0_i32_0 : i32, i32
  }
  func.func @transform_10(%arg0: i32, %arg1: i32) -> (i32, i32) {
    %c0_i32 = arith.constant 0 : i32
    %c0_i32_0 = arith.constant 0 : i32
    %c0_i32_1 = arith.constant 0 : i32
    return %c0_i32, %c0_i32_0 : i32, i32
  }
  func.func @transform_11(%arg0: i32, %arg1: i32) -> (i32, i32) {
    %c0_i32 = arith.constant 0 : i32
    %c0_i32_0 = arith.constant 0 : i32
    %c0_i32_1 = arith.constant 0 : i32
    return %c0_i32, %c0_i32_0 : i32, i32
  }
  func.func @transform_12(%arg0: i32, %arg1: i32) -> (i32, i32) {
    %c0_i32 = arith.constant 0 : i32
    %c0_i32_0 = arith.constant 0 : i32
    %c0_i32_1 = arith.constant 0 : i32
    return %c0_i32, %c0_i32_0 : i32, i32
  }
  func.func @transform_13(%arg0: i32, %arg1: i32) -> (i32, i32) {
    %c0_i32 = arith.constant 0 : i32
    %c0_i32_0 = arith.constant 0 : i32
    %c0_i32_1 = arith.constant 0 : i32
    return %c0_i32, %c0_i32_0 : i32, i32
  }
  func.func @transform_14(%arg0: i32, %arg1: i32) -> (i32, i32) {
    %c0_i32 = arith.constant 0 : i32
    %c0_i32_0 = arith.constant 0 : i32
    %c0_i32_1 = arith.constant 0 : i32
    return %c0_i32, %c0_i32_0 : i32, i32
  }
  func.func @transform_15(%arg0: i32, %arg1: i32) -> (i32, i32) {
    %c0_i32 = arith.constant 0 : i32
    %c0_i32_0 = arith.constant 0 : i32
    %c0_i32_1 = arith.constant 0 : i32
    return %c0_i32, %c0_i32_0 : i32, i32
  }
  func.func @transform_16(%arg0: i32, %arg1: i32) -> (i32, i32) {
    %c0_i32 = arith.constant 0 : i32
    %c0_i32_0 = arith.constant 0 : i32
    %c0_i32_1 = arith.constant 0 : i32
    return %c0_i32, %c0_i32_0 : i32, i32
  }
  func.func @transform_17(%arg0: i32, %arg1: i32) -> (i32, i32) {
    %c0_i32 = arith.constant 0 : i32
    %c0_i32_0 = arith.constant 0 : i32
    %c0_i32_1 = arith.constant 0 : i32
    return %c0_i32, %c0_i32_0 : i32, i32
  }
  func.func @transform_18(%arg0: i32, %arg1: i32) -> (i32, i32) {
    %c0_i32 = arith.constant 0 : i32
    %c0_i32_0 = arith.constant 0 : i32
    %c0_i32_1 = arith.constant 0 : i32
    return %c0_i32, %c0_i32_0 : i32, i32
  }
  func.func @transform_19(%arg0: i32, %arg1: i32) -> (i32, i32, i32) {
    %c0_i32 = arith.constant 0 : i32
    %c0_i32_0 = arith.constant 0 : i32
    return %arg0, %arg1, %c0_i32 : i32, i32, i32
  }
}

</mosaic_0001>

<bundles_post_ra>
// kernel: tpu_custom_call.1
= control target key start
LH: loop header
LB: loop body
LE: loop exit
PB: predicated region body
PF: predicated region fallthrough
CT: control target
= control target key end

     0   :  { %s17345_s0 = inlined_call_operand.hbm [shape: f32[2,256,128], index: 0, kind: input, shape index: {}]   ;;  %s17346_s1 = inlined_call_operand.hbm [shape: f32[2,256,256], index: 1, kind: input, shape index: {}]   ;;  %s17347_s2 = inlined_call_operand.hbm [shape: f32[4,256,256], index: 2, kind: input, shape index: {}]   ;;  %s17348_s3 = inlined_call_operand.vmem [shape: f32[1,128], index: 3, kind: input, shape index: {}]   ;;  %s17349_s4 = inlined_call_operand.vmem [shape: f32[1,128], index: 4, kind: input, shape index: {}]   ;;  %s17350_s5 = inlined_call_operand.hbm [shape: f32[128,128], index: 5, kind: input, shape index: {}]   ;;  %s17351_s6 = inlined_call_operand.vmem [shape: f32[1,128], index: 6, kind: input, shape index: {}]   ;;  %s17352_s7 = inlined_call_operand.hbm [shape: f32[128,128], index: 7, kind: input, shape index: {}]   ;;  %s17353_s8 = inlined_call_operand.vmem [shape: f32[1,128], index: 8, kind: input, shape index: {}]   ;;  %s17354_s9 = inlined_call_operand.hbm [shape: f32[128,128], index: 9, kind: input, shape index: {}]   ;;  %s17355_s10 = inlined_call_operand.vmem [shape: f32[1,128], index: 10, kind: input, shape index: {}]   ;;  %s17356_s11 = inlined_call_operand.hbm [shape: f32[128,128], index: 11, kind: input, shape index: {}]   ;;  %s17357_s12 = inlined_call_operand.vmem [shape: f32[1,128], index: 12, kind: input, shape index: {}]   ;;  %s17358_s13 = inlined_call_operand.vmem [shape: f32[1,128], index: 13, kind: input, shape index: {}]   ;;  %s17359_s14 = inlined_call_operand.vmem [shape: f32[1,128], index: 14, kind: input, shape index: {}]   ;;  %s17360_s15 = inlined_call_operand.hbm [shape: f32[128,512], index: 15, kind: input, shape index: {}]   ;;  %s17361_s16 = inlined_call_operand.vmem [shape: f32[1,512], index: 16, kind: input, shape index: {}]   ;;  %s17362_s17 = inlined_call_operand.hbm [shape: f32[512,128], index: 17, kind: input, shape index: {}]   ;;  %s17363_s18 = inlined_call_operand.vmem [shape: f32[1,128], index: 18, kind: input, shape index: {}]   ;;  %s17364_s19 = inlined_call_operand.hbm [shape: f32[2,256,128], index: 19, kind: output, shape index: {}]  }
   0x1   :  { %17575 = sst [smem:[#allocation149_spill]] %s17345_s0 }
   0x2   :  { %17576 = sst [smem:[#allocation150_spill]] %s17346_s1 }
   0x3   :  { %17577 = sst [smem:[#allocation151_spill]] %s17347_s2 }
   0x4   :  { %17578 = sst [smem:[#allocation152_spill]] %s17348_s3 }
   0x5   :  { %17579 = sst [smem:[#allocation153_spill]] %s17349_s4 }
   0x6   :  { %17580 = sst [smem:[#allocation154_spill]] %s17350_s5 }
   0x7   :  { %17581 = sst [smem:[#allocation155_spill]] %s17351_s6 }
   0x8   :  { %17582 = sst [smem:[#allocation156_spill]] %s17352_s7 }
   0x9   :  { %17583 = sst [smem:[#allocation157_spill]] %s17353_s8 }
   0xa   :  { %17584 = sst [smem:[#allocation158_spill]] %s17354_s9 }
   0xb   :  { %17585 = sst [smem:[#allocation159_spill]] %s17355_s10 }
   0xc   :  { %17586 = sst [smem:[#allocation160_spill]] %s17356_s11 }
   0xd   :  { %17587 = sst [smem:[#allocation161_spill]] %s17357_s12 }
   0xe   :  { %17588 = sst [smem:[#allocation162_spill]] %s17358_s13 }
   0xf   :  { %17589 = sst [smem:[#allocation163_spill]] %s17359_s14 }
  0x10   :  { %17590 = sst [smem:[#allocation164_spill]] %s17360_s15 }
  0x11   :  { %17591 = sst [smem:[#allocation165_spill]] %s17361_s16 }
  0x12   :  { %17592 = sst [smem:[#allocation166_spill]] %s17362_s17 }
  0x13   :  { %17593 = sst [smem:[#allocation167_spill]] %s17363_s18 }
  0x14   :  { %17594 = sst [smem:[#allocation168_spill]] %s17364_s19 }
  0x15   :  { %24 = vsyncpa [#allocation6], 0 }
  0x16   :  { %26 = vsyncpa [#allocation6 + $0x1], 0 }
  0x17   :  { %27 = vsyncpa [#allocation9], 0 }
  0x18   :  { %29 = vsyncpa [#allocation9 + $0x1], 0 }
  0x19   :  { %30 = vsyncpa [#allocation12], 0 }
  0x1a   :  { %31 = vsyncpa [#allocation15], 0 }
  0x1b   :  { %32 = vsyncpa [#allocation18], 0 }
  0x1c   :  { %33 = vsyncpa [#allocation7], 0 }
  0x1d   :  { %35 = vsyncpa [#allocation7 + $0x1], 0  ;;  %s12096_s0 = smov 0   ;;  %s12098_s30 = smov 0  }
  0x1e   :  { %s12100_s20 = smov 0   ;;  %s12102_s21 = smov 0  }
  0x1f   :  { %s12104_s1 = smov 0   ;;  %s12106_s22 = smov 0  }
  0x20   :  { %s12108_s2 = smov 0   ;;  %s12110_s23 = smov 0  }
  0x21   :  { %s12112_s24 = smov 0   ;;  %s12114_s25 = smov 0  }
  0x22   :  { %s12116_s3 = smov 0  }
  0x23 LB: > { %17595 = sst [smem:[#allocation28_spill]] %s11932_s0  ;;  %s12152_s26 = sadd.s32 4294967295, %s11972_s3   ;;  %s11972_s3 = sphi %s12116_s3, %s41_s3   ;;  %s11968_s25 = sphi %s12114_s25, %s18147_s25   ;;  %s11964_s24 = sphi %s12112_s24, %s18146_s24   ;;  %s11960_s23 = sphi %s12110_s23, %s18145_s23   ;;  %s11956_s2 = sphi %s12108_s2, %s18144_s2   ;;  %s11952_s22 = sphi %s12106_s22, %s18143_s22   ;;  %s11948_s1 = sphi %s12104_s1, %s18142_s1   ;;  %s11944_s21 = sphi %s12102_s21, %s18141_s21   ;;  %s11940_s20 = sphi %s12100_s20, %s18140_s20   ;;  %s11936_s30 = sphi %s12098_s30, %s18139_s30   ;;  %s11932_s0 = sphi %s12096_s0, %s18138_s0  }
  0x24   : > { %17596 = sst [smem:[#allocation29_spill]] %s11956_s2  ;;  %p8017_p0 = scmp.ge.s32.totalorder %s11972_s3, 1 }
  0x25   : > { %17597 = sst [smem:[#allocation30_spill]] %s11960_s23  ;;  %p17369_p1 = scmp.eq.s32.totalorder %s12152_s26, 0 }
  0x26   : > { %p497_p2 = scmp.lt.s32.totalorder %s11972_s3, 5  ;;  %s11974_s28 = smov [#allocation10]  }
  0x27   : > { %s509_s29 = sshll.u32 %s11974_s28, 4  ;;  %s11975_s23 = smov [#allocation11]   ;;  %s510_s29 = int_to_ptr.vmem [resolvable:$true] %s509_s29 }
  0x28   : > { %p12157_p3 = pnand %p8017_p0, %p497_p2  ;;  %s528_s18 = sshll.u32 %s11975_s23, 4  ;;  %s12169_s18 = int_to_ptr.vmem [resolvable:$true] %s528_s18 }
  0x29   : > { %s17601_s13 = sld [smem:[#allocation151_spill]] }
  0x2a   : > { %s17598_s27 = scalar_select %p12157_p3, 1, 0 }
  0x2b   : > { %p10160_p4 = pneg %p12157_p3 }
  0x2c   : > { %17599 = sst [smem:[#allocation31_spill]] %s17598_s27 }
  0x2d   : > { %p12165_p5 = pnand %p10160_p4, %p17369_p1 }
  0x2f   : > { %s11574_s12 = scalar_lea.hbm %s17601_s13, 32768  ;;  %p12179_p7 = pneg %p12165_p5 }
  0x30   : > { %p11575_p6 = scmp.ne.s32.totalorder %s17601_s13, %s11574_s12  ;;  %p11581_p10 = scmp.lt.u32.totalorder %s11574_s12, %s17601_s13 }
  0x32   : > { %p11577_p8 = pnand %p12179_p7, %p11575_p6 }
  0x34   : > { %p11578_p9 = pneg %p11577_p8 }
  0x36   : > { %p11583_p11 = pnand %p11581_p10, %p11578_p9 }
  0x38   : > { %11586 = shalt.err (!%p11583_p11)
}
  0x39   : > { %s11587_s14 = scalar_lea.vmem %s510_s29, 32768  ;;  %p11595_p2 = scmp.lt.s32.totalorder %s510_s29, %s510_s29 }
  0x3a   : > { %p11588_p12 = scmp.ne.s32.totalorder %s510_s29, %s11587_s14  ;;  %p11596_p4 = scmp.lt.s32.totalorder %s11587_s14, %s11587_s14 }
  0x3c   : > { %p11590_p13 = pnand %p11588_p12, %p12179_p7  ;;  %p11597_p1 = por %p11596_p4, %p11595_p2 }
  0x3e   : > { %p11591_p0 = pneg %p11590_p13 }
  0x40   : > { %p11598_p3 = pnand %p11597_p1, %p11591_p0 }
  0x42   : > { %11601 = shalt.err (!%p11598_p3)
}
  0x43   : > { %s17373_s6 = smov 256   ;;  %s17374_s10 = smov 16  }
  0x44   : > { %10163 = dma.hbm_to_vmem [thread:$0]  (!%p12165_p5), %s17601_s13, 32768, %s510_s29, [#allocation9], %s17373_s6, %s17373_s6, %s17374_s10  }
  0x45   : > { %s17603_s5 = sld [smem:[#allocation154_spill]] }
  0x4b   : > { %s11602_s4 = scalar_lea.hbm %s17603_s5, 2048 }
  0x4c   : > { %p11603_p1 = scmp.ne.s32.totalorder %s17603_s5, %s11602_s4  ;;  %p11609_p8 = scmp.lt.u32.totalorder %s11602_s4, %s17603_s5 }
  0x4e   : > { %p11605_p3 = pnand %p11603_p1, %p12179_p7 }
  0x50   : > { %p11606_p6 = pneg %p11605_p3 }
  0x52   : > { %p11611_p9 = pnand %p11609_p8, %p11606_p6 }
  0x54   : > { %11614 = shalt.err (!%p11611_p9)
}
  0x55   : > { %s11615_s29 = scalar_lea.vmem %s12169_s18, 2048  ;;  %p11623_p13 = scmp.lt.s32.totalorder %s12169_s18, %s12169_s18 }
  0x56   : > { %p11616_p10 = scmp.ne.s32.totalorder %s12169_s18, %s11615_s29  ;;  %p11624_p0 = scmp.lt.s32.totalorder %s11615_s29, %s11615_s29 }
  0x58   : > { %p11618_p11 = pnand %p11616_p10, %p12179_p7  ;;  %p11625_p2 = por %p11624_p0, %p11623_p13 }
  0x5a   : > { %p11619_p12 = pneg %p11618_p11 }
  0x5c   : > { %p11626_p4 = pnand %p11625_p2, %p11619_p12 }
  0x5e   : > { %11629 = shalt.err (!%p11626_p4)
}
  0x5f   : > { %s17376_s2 = smov 128   ;;  %s17378_s4 = smov 8  }
  0x60   : > { %10166 = dma.hbm_to_vmem [thread:$0]  (!%p12165_p5), %s17603_s5, 2048, %s12169_s18, [#allocation12], %s17376_s2, %s17376_s2, %s17378_s4  }
  0x61   : > { %s11980_s8 = smov [#allocation14]   ;;  %s11981_s16 = smov [#allocation17]  }
  0x62   : > { %s560_s12 = sshll.u32 %s11980_s8, 4  ;;  %s598_s23 = sshll.u32 %s11981_s16, 4  ;;  %s561_s12 = int_to_ptr.vmem [resolvable:$true] %s560_s12  ;;  %s12224_s23 = int_to_ptr.vmem [resolvable:$true] %s598_s23 }
  0x63   : > { %s17604_s9 = sld [smem:[#allocation158_spill]] }
  0x69   : > { %s11630_s6 = scalar_lea.hbm %s17604_s9, 2048 }
  0x6a   : > { %p11631_p1 = scmp.ne.s32.totalorder %s17604_s9, %s11630_s6  ;;  %p11637_p8 = scmp.lt.u32.totalorder %s11630_s6, %s17604_s9 }
  0x6c   : > { %p11633_p3 = pnand %p11631_p1, %p12179_p7 }
  0x6e   : > { %p11634_p6 = pneg %p11633_p3 }
  0x70   : > { %p11639_p9 = pnand %p11637_p8, %p11634_p6 }
  0x72   : > { %11642 = shalt.err (!%p11639_p9)
}
  0x73   : > { %s11643_s27 = scalar_lea.vmem %s561_s12, 2048  ;;  %p11651_p13 = scmp.lt.s32.totalorder %s561_s12, %s561_s12 }
  0x74   : > { %p11644_p10 = scmp.ne.s32.totalorder %s561_s12, %s11643_s27  ;;  %p11652_p0 = scmp.lt.s32.totalorder %s11643_s27, %s11643_s27 }
  0x76   : > { %p11646_p11 = pnand %p11644_p10, %p12179_p7  ;;  %p11653_p2 = por %p11652_p0, %p11651_p13 }
  0x78   : > { %p11647_p12 = pneg %p11646_p11 }
  0x7a   : > { %p11654_p4 = pnand %p11653_p2, %p11647_p12 }
  0x7c   : > { %11657 = shalt.err (!%p11654_p4)
}
  0x7d   : > { %10172 = dma.hbm_to_vmem [thread:$0]  (!%p12165_p5), %s17604_s9, 2048, %s561_s12, [#allocation15], %s17376_s2, %s17376_s2, %s17378_s4  }
  0x7e   : > { %s17605_s15 = sld [smem:[#allocation164_spill]] }
  0x84   : > { %s11658_s16 = scalar_lea.hbm %s17605_s15, 8192 }
  0x85   : > { %p11659_p1 = scmp.ne.s32.totalorder %s17605_s15, %s11658_s16  ;;  %p11665_p8 = scmp.lt.u32.totalorder %s11658_s16, %s17605_s15 }
  0x87   : > { %p11661_p3 = pnand %p11659_p1, %p12179_p7 }
  0x89   : > { %p11662_p6 = pneg %p11661_p3 }
  0x8b   : > { %p11667_p9 = pnand %p11665_p8, %p11662_p6 }
  0x8d   : > { %11670 = shalt.err (!%p11667_p9)
}
  0x8e   : > { %s11671_s12 = scalar_lea.vmem %s12224_s23, 8192  ;;  %p11679_p13 = scmp.lt.s32.totalorder %s12224_s23, %s12224_s23 }
  0x8f   : > { %p11672_p10 = scmp.ne.s32.totalorder %s12224_s23, %s11671_s12  ;;  %p11680_p0 = scmp.lt.s32.totalorder %s11671_s12, %s11671_s12 }
  0x91   : > { %p11674_p11 = pnand %p11672_p10, %p12179_p7  ;;  %p11681_p2 = por %p11680_p0, %p11679_p13 }
  0x93   : > { %p11675_p12 = pneg %p11674_p11 }
  0x95   : > { %p11682_p4 = pnand %p11681_p2, %p11675_p12 }
  0x97   : > { %11685 = shalt.err (!%p11682_p4)
}
  0x98   : > { %s11982_s27 = smov 512   ;;  %s11983_s13 = smov 32  }
  0x99   : > { %10178 = dma.hbm_to_vmem [thread:$0]  (!%p12165_p5), %s17605_s15, 8192, %s12224_s23, [#allocation18], %s11982_s27, %s11982_s27, %s11983_s13  }
  0x9a   : > { %s11984_s8 = smov [#allocation13]   ;;  %s11985_s14 = smov [#allocation16]  }
  0x9b   : > { %s544_s16 = sshll.u32 %s11984_s8, 4  ;;  %s576_s29 = sshll.u32 %s11985_s14, 4  ;;  %s545_s16 = int_to_ptr.vmem [resolvable:$true] %s544_s16  ;;  %s12270_s29 = int_to_ptr.vmem [resolvable:$true] %s576_s29 }
  0x9c   : > { %s17606_s7 = sld [smem:[#allocation156_spill]] }
  0xa2   : > { %s11686_s12 = scalar_lea.hbm %s17606_s7, 2048 }
  0xa3   : > { %p11687_p1 = scmp.ne.s32.totalorder %s17606_s7, %s11686_s12  ;;  %p11693_p8 = scmp.lt.u32.totalorder %s11686_s12, %s17606_s7 }
  0xa5   : > { %p11689_p3 = pnand %p11687_p1, %p12179_p7 }
  0xa7   : > { %p11690_p6 = pneg %p11689_p3 }
  0xa9   : > { %p11695_p9 = pnand %p11693_p8, %p11690_p6 }
  0xab   : > { %11698 = shalt.err (!%p11695_p9)
}
  0xac   : > { %s11699_s27 = scalar_lea.vmem %s545_s16, 2048  ;;  %p11707_p13 = scmp.lt.s32.totalorder %s545_s16, %s545_s16 }
  0xad   : > { %p11700_p10 = scmp.ne.s32.totalorder %s545_s16, %s11699_s27  ;;  %p11708_p0 = scmp.lt.s32.totalorder %s11699_s27, %s11699_s27 }
  0xaf   : > { %p11702_p11 = pnand %p11700_p10, %p12179_p7  ;;  %p11709_p2 = por %p11708_p0, %p11707_p13 }
  0xb1   : > { %p11703_p12 = pneg %p11702_p11 }
  0xb3   : > { %p11710_p4 = pnand %p11709_p2, %p11703_p12 }
  0xb5   : > { %11713 = shalt.err (!%p11710_p4)
}
  0xb6   : > { %s17607_s2 = smov 8   ;;  %s17608_s4 = smov 128  }
  0xb7   : > { %10169 = dma.hbm_to_vmem [thread:$0]  (!%p12165_p5), %s17606_s7, 2048, %s545_s16, [#allocation12], %s17608_s4, %s17608_s4, %s17607_s2  }
  0xb8   : > { %s17609_s11 = sld [smem:[#allocation160_spill]] }
  0xbe   : > { %s11714_s0 = scalar_lea.hbm %s17609_s11, 2048 }
  0xbf   : > { %p11715_p1 = scmp.ne.s32.totalorder %s17609_s11, %s11714_s0  ;;  %p11721_p8 = scmp.lt.u32.totalorder %s11714_s0, %s17609_s11 }
  0xc1   : > { %p11717_p3 = pnand %p11715_p1, %p12179_p7 }
  0xc3   : > { %p11718_p6 = pneg %p11717_p3 }
  0xc5   : > { %p11723_p9 = pnand %p11721_p8, %p11718_p6 }
  0xc7   : > { %11726 = shalt.err (!%p11723_p9)
}
  0xc8   : > { %s11727_s16 = scalar_lea.vmem %s12270_s29, 2048  ;;  %p11735_p13 = scmp.lt.s32.totalorder %s12270_s29, %s12270_s29 }
  0xc9   : > { %p11728_p10 = scmp.ne.s32.totalorder %s12270_s29, %s11727_s16  ;;  %p11736_p0 = scmp.lt.s32.totalorder %s11727_s16, %s11727_s16 }
  0xcb   : > { %p11730_p11 = pnand %p11728_p10, %p12179_p7  ;;  %p11737_p2 = por %p11736_p0, %p11735_p13 }
  0xcd   : > { %p11731_p12 = pneg %p11730_p11 }
  0xcf   : > { %p11738_p4 = pnand %p11737_p2, %p11731_p12 }
  0xd1   : > { %11741 = shalt.err (!%p11738_p4)
}
  0xd2   : > { %10175 = dma.hbm_to_vmem [thread:$0]  (!%p12165_p5), %s17609_s11, 2048, %s12270_s29, [#allocation15], %s17608_s4, %s17608_s4, %s17607_s2  }
  0xd3   : > { %s11986_s10 = smov [#allocation19]   ;;  %s17610_s17 = sld [smem:[#allocation166_spill]] }
  0xd4   : > { %s614_s8 = sshll.u32 %s11986_s10, 4  ;;  %s615_s8 = int_to_ptr.vmem [resolvable:$true] %s614_s8 }
  0xd9   : > { %s11742_s18 = scalar_lea.hbm %s17610_s17, 8192 }
  0xda   : > { %p11743_p1 = scmp.ne.s32.totalorder %s17610_s17, %s11742_s18  ;;  %p11749_p8 = scmp.lt.u32.totalorder %s11742_s18, %s17610_s17 }
  0xdc   : > { %p11745_p3 = pnand %p11743_p1, %p12179_p7 }
  0xde   : > { %p11746_p6 = pneg %p11745_p3 }
  0xe0   : > { %p11751_p9 = pnand %p11749_p8, %p11746_p6 }
  0xe2   : > { %11754 = shalt.err (!%p11751_p9)
}
  0xe3   : > { %s11755_s29 = scalar_lea.vmem %s615_s8, 8192  ;;  %p11763_p13 = scmp.lt.s32.totalorder %s615_s8, %s615_s8 }
  0xe4   : > { %p11756_p10 = scmp.ne.s32.totalorder %s615_s8, %s11755_s29  ;;  %p11764_p0 = scmp.lt.s32.totalorder %s11755_s29, %s11755_s29 }
  0xe6   : > { %p11758_p11 = pnand %p11756_p10, %p12179_p7  ;;  %p11765_p2 = por %p11764_p0, %p11763_p13 }
  0xe8   : > { %p11759_p12 = pneg %p11758_p11 }
  0xea   : > { %p11766_p4 = pnand %p11765_p2, %p11759_p12 }
  0xec   : > { %11769 = shalt.err (!%p11766_p4)
}
  0xed   : > { %10181 = dma.hbm_to_vmem [thread:$0]  (!%p12165_p5), %s17610_s17, 8192, %s615_s8, [#allocation18], %s17608_s4, %s17608_s4, %s17607_s2  }
  0xee   : > { %s53_s19 = sadd.s32 1, %s11968_s25  ;;  %s60_s28 = sadd.s32 1, %s11952_s22 }
  0xef   : > { %p67_p7 = scmp.ne.s32.totalorder %s11952_s22, %s11948_s1  ;;  %p17381_p1 = scmp.eq.s32.totalorder %s11972_s3, 0 }
  0xf0   : > { %p73_p3 = scmp.ne.s32.totalorder %s11948_s1, %s11944_s21  ;;  %p17380_p6 = scmp.lt.s32.totalorder %s11972_s3, 4 }
  0xf1   : > { %s631_s10 = sand.u32 1, %s11952_s22   ;;  %p69_p8 = por %p17381_p1, %p67_p7 }
  0xf2   : > { %p17611_p9 = scmp.eq.s32.totalorder %s12152_s26, 0  ;;  %s8026_s0 = sshll.u32 %s631_s10, 8 }
  0xf3   : > { %s8360_s18 = sshll.u32 %s11968_s25, 12  ;;  %s17613_s8 = sld [smem:[#allocation149_spill]] }
  0xf4   : > { %p12353_p10 = por %p17611_p9, %p73_p3  ;;  %s635_s21 = scalar_lea.vmem [#allocation5], %s8026_s0 }
  0xf5   : > { %s642_s16 = sshll.u32 %s635_s21, 4  ;;  %p12367_p5 = pnand %p17380_p6, %p69_p8  ;;  %s12363_s16 = int_to_ptr.vmem [resolvable:$true] %s642_s16 }
  0xf6   : > { %s12371_s27 = scalar_lea.sflag [#allocation6], %s631_s10 }
  0xf7   : > { %p11772_p12 = pneg %p12367_p5 }
  0xf9   : > { %s12361_s23 = scalar_lea.hbm %s17613_s8, %s8360_s18  ;;  %s11775_s12 = scalar_lea.hbm %s17613_s8, 8192 }
  0xfa   : > { %s11770_s13 = scalar_lea.hbm %s12361_s23, 4096  ;;  %p11776_p2 = scmp.lt.u32.totalorder %s12361_s23, %s17613_s8 }
  0xfb   : > { %p11771_p11 = scmp.ne.s32.totalorder %s12361_s23, %s11770_s13  ;;  %p11777_p4 = scmp.lt.u32.totalorder %s11775_s12, %s11770_s13 }
  0xfc   : > { %p11779_p3 = scmp.lt.u32.totalorder %s11770_s13, %s12361_s23 }
  0xfd   : > { %p11773_p13 = pnand %p11772_p12, %p11771_p11  ;;  %p11778_p7 = por %p11777_p4, %p11776_p2 }
  0xff   : > { %p11774_p0 = pneg %p11773_p13  ;;  %p11780_p8 = por %p11779_p3, %p11778_p7 }
 0x101   : > { %p11781_p9 = pnand %p11780_p8, %p11774_p0 }
 0x103   : > { %11784 = shalt.err (!%p11781_p9)
}
 0x104   : > { %s11785_s10 = scalar_lea.vmem %s12363_s16, 4096  ;;  %s11987_s0 = smov [#allocation5]  }
 0x105   : > { %p11786_p11 = scmp.ne.s32.totalorder %s12363_s16, %s11785_s10  ;;  %s11790_s18 = sshll.u32 %s11987_s0, 4  ;;  %s11791_s18 = int_to_ptr.vmem [resolvable:$false] %s11790_s18 }
 0x106   : > { %s11792_s6 = scalar_lea.vmem %s11791_s18, 8192  ;;  %p11793_p1 = scmp.lt.s32.totalorder %s12363_s16, %s11791_s18 }
 0x107   : > { %p11788_p13 = pnand %p11786_p11, %p11772_p12  ;;  %p11794_p2 = scmp.lt.s32.totalorder %s11792_s6, %s11785_s10 }
 0x109   : > { %p11789_p6 = pneg %p11788_p13  ;;  %p11795_p4 = por %p11794_p2, %p11793_p1 }
 0x10b   : > { %p11796_p7 = pnand %p11795_p4, %p11789_p6 }
 0x10d   : > { %11799 = shalt.err (!%p11796_p7)
}
 0x10e   : > { %s17615_s13 = sld [smem:[#allocation28_spill]]  ;;  %s8016_s29 = sadd.s32 4294967294, %s11972_s3  }
 0x10f   : > { %10185 = dma.hbm_to_vmem [thread:$0]  (!%p12367_p5), %s12361_s23, 4096, %s12363_s16, %s12371_s27, %s17608_s4, %s17608_s4, %s17607_s2  }
 0x110   : > { %s50_s12 = sadd.s32 1, %s11964_s24  ;;  %s88_s21 = sadd.s32 1, %s11940_s20 }
 0x111   : > { %p51_p1 = scmp.ge.s32.totalorder %s50_s12, 2  ;;  %p95_p6 = scmp.ne.s32.totalorder %s11940_s20, %s11936_s30 }
 0x112   : > { %p484_p0 = scmp.eq.s32.totalorder %s12152_s26, 3  ;;  %p17617_p5 = scmp.eq.s32.totalorder %s11972_s3, 0 }
 0x113   : > { %s18149_s12 = smov (%p51_p1, %s50_s12), 0  ;;  %s18151_s19 = smov (!%p51_p1, %s53_s19), %s11968_s25 }
 0x114   : > { %p101_p12 = scmp.ne.s32.totalorder %s11936_s30, %s17615_s13  ;;  %17616 = sst [smem:[#allocation32_spill]] %s18149_s12 }
 0x115   : > { %s84_s10 = ssub.s32 %s11964_s24, %s18149_s12  ;;  %p12419_p3 = por %p95_p6, %p17617_p5 }
 0x116   : > { %p55_p8 = scmp.ge.s32.totalorder %s18151_s19, 2  ;;  %p17619_p9 = scmp.eq.s32.totalorder %s12152_s26, 0 }
 0x117   : > { %p12429_p13 = por %p484_p0, %p95_p6  ;;  %p490_p2 = scmp.eq.s32.totalorder %s8016_s29, 3 }
 0x118   : > { %p12425_p11 = por %p101_p12, %p17619_p9  ;;  %s18153_s19 = smov (%p55_p8, %s18151_s19), 0 }
 0x119   : > { %s17621_s23 = scalar_select %p12429_p13, 1, 0 }
 0x11a   : > { %s17620_s4 = scalar_select %p12425_p11, 1, 0 }
 0x11b   : > { %17622 = sst [smem:[#allocation33_spill]] %s18153_s19  ;;  %p12435_p4 = por %p490_p2, %p101_p12 }
 0x11c   : > { %s652_s27 = sand.u32 1, %s11972_s3   ;;  %s57_s0 = ssub.s32 %s11968_s25, %s18153_s19 }
 0x11d   : > { %s17623_s16 = scalar_select %p12435_p4, 1, 0 }
 0x11e   : > { %p58_p7 = scmp.eq.s32.totalorder %s57_s0, 0  ;;  %s85_s18 = sor.u32 %s84_s10, %s57_s0 }
 0x11f   : > { %17624 = sst [smem:[#allocation34_spill]] %s17623_s16  ;;  %p86_p1 = scmp.eq.s32.totalorder %s85_s18, 0 }
 0x120   : > { %s654_s6 = sand.u32 1, %s11940_s20   ;;  %s8361_s7 = sshll.u32 %s11964_s24, 5 }
 0x121   : > { %s12446_s13 = scalar_select %p58_p7, %s11952_s22, %s60_s28  }
 0x122   : > { %s12449_s5 = scalar_select %p86_p1, %s11940_s20, %s88_s21  }
 0x123   : > { %s8029_s29 = sshll.u32 %s654_s6, 8  ;;  %s8032_s8 = sshll.u32 %s11968_s25, 6 }
 0x124   : > { %s663_s9 = sadd.s32 %s8361_s7, %s8032_s8  ;;  %s656_s11 = scalar_lea.vmem [#allocation8], %s8029_s29 }
 0x125   : > { %s666_s15 = sshll.u32 %s656_s11, 4  ;;  %s8033_s17 = sshll.u32 %s663_s9, 7  ;;  %s12453_s15 = int_to_ptr.vmem [resolvable:$true] %s666_s15 }
 0x126   : > { %s17625_s16 = sld [smem:[#allocation150_spill]]  ;;  %p17626_p6 = scmp.lt.s32.totalorder %s11972_s3, 4 }
 0x127   : > { %s12468_s7 = scalar_lea.sflag [#allocation9], %s652_s27 }
 0x128   : > { %p12464_p12 = pnand %p17626_p6, %p12419_p3 }
 0x12a   : > { %p11802_p5 = pneg %p12464_p12 }
 0x12c   : > { %s12458_s10 = scalar_lea.hbm %s17625_s16, %s8033_s17  ;;  %s11805_s19 = scalar_lea.hbm %s17625_s16, 16384 }
 0x12d   : > { %s11800_s9 = scalar_lea.hbm %s12458_s10, 4096  ;;  %p11806_p3 = scmp.lt.u32.totalorder %s12458_s10, %s17625_s16 }
 0x12e   : > { %p11801_p0 = scmp.ne.s32.totalorder %s12458_s10, %s11800_s9  ;;  %p11807_p2 = scmp.lt.u32.totalorder %s11805_s19, %s11800_s9 }
 0x12f   : > { %p11809_p1 = scmp.lt.u32.totalorder %s11800_s9, %s12458_s10 }
 0x130   : > { %p11803_p8 = pnand %p11802_p5, %p11801_p0  ;;  %p11808_p7 = por %p11807_p2, %p11806_p3 }
 0x132   : > { %p11804_p9 = pneg %p11803_p8  ;;  %p11810_p6 = por %p11809_p1, %p11808_p7 }
 0x134   : > { %p11811_p4 = pnand %p11810_p6, %p11804_p9 }
 0x136   : > { %11814 = shalt.err (!%p11811_p4)
}
 0x137   : > { %s11815_s21 = scalar_lea.vmem %s12453_s15, 4096  ;;  %s11988_s2 = smov [#allocation8]  }
 0x138   : > { %p11816_p0 = scmp.ne.s32.totalorder %s12453_s15, %s11815_s21  ;;  %s11820_s27 = sshll.u32 %s11988_s2, 4  ;;  %s11821_s27 = int_to_ptr.vmem [resolvable:$false] %s11820_s27 }
 0x139   : > { %s11822_s0 = scalar_lea.vmem %s11821_s27, 8192  ;;  %p11823_p11 = scmp.lt.s32.totalorder %s12453_s15, %s11821_s27 }
 0x13a   : > { %p11818_p8 = pnand %p11816_p0, %p11802_p5  ;;  %p11824_p3 = scmp.lt.s32.totalorder %s11822_s0, %s11815_s21 }
 0x13c   : > { %p11819_p13 = pneg %p11818_p8  ;;  %p11825_p2 = por %p11824_p3, %p11823_p11 }
 0x13e   : > { %p11826_p7 = pnand %p11825_p2, %p11819_p13 }
 0x140   : > { %11829 = shalt.err (!%p11826_p7)
}
 0x141   : > { %s17628_s18 = smov 16   ;;  %s17629_s6 = smov 256  }
 0x142   : > { %10188 = dma.hbm_to_vmem [thread:$0]  (!%p12464_p12), %s12458_s10, 4096, %s12453_s15, %s12468_s7, %s17629_s6, %s17629_s6, %s17628_s18  }
 0x143   : > { %s17630_s29 = sld [smem:[#allocation31_spill]] }
 0x149   : > { %p17631_p4 = scmp.ne.s32.totalorder %s17630_s29, 0 }
 0x14b   : > { %678 = sbr.rel (%p17631_p4) target bundleno = 4108 (0x100c), region = 96 }
 0x152   : > { %s680_s9 = sand.u32 1, %s11948_s1  }
 0x153   : > { %s8035_s11 = sshll.u32 %s680_s9, 8  ;;  %s681_s17 = scalar_lea.sflag [#allocation6], %s680_s9 }
 0x154   : > { %s12502_s19 = scalar_lea.vmem [#allocation5], %s8035_s11 }
 0x155   : > { %11903 = dma.done.wait (%p12353_p10), %s681_s17, 4096  }
 0x156   : > { %11905 = vsyncadd (%p12353_p10), %s681_s17, 4294963200  ;;  %s689_s28 = sand.u32 1, %s12152_s26   ;;  %s12510_s15 = sand.u32 1, %s11936_s30  }
 0x157   : > { %s8036_s10 = sshll.u32 %s12510_s15, 8  ;;  %s690_s7 = scalar_lea.sflag [#allocation9], %s689_s28 }
 0x158   : > { %s12513_s8 = scalar_lea.vmem [#allocation8], %s8036_s10  ;;  %p17632_p11 = scmp.ne.s32.totalorder %s17620_s4, 0 }
 0x15a   : > { %11907 = dma.done.wait (%p17632_p11), %s690_s7, 4096  }
 0x15b   : > { %11909 = vsyncadd (%p17632_p11), %s690_s7, 4294963200  ;;  %p17633_p13 = scmp.eq.s32.totalorder %s12152_s26, 0 }
 0x15d   : > { %11911 = dma.done.wait (%p17633_p13), [#allocation9], 32768   ;;  %p17634_p10 = pmov %p17633_p13 }
 0x15f   : > { %11913 = vsyncadd (%p17634_p10), [#allocation9], 4294934528  ;;  %p17635_p12 = pmov %p17634_p10 }
 0x160   : > { %p17636_p5 = pmov %p17634_p10 }
 0x161   : > { %11915 = dma.done.wait (%p17635_p12), [#allocation12], 4096  }
 0x162   : > { %11917 = vsyncadd (%p17636_p5), [#allocation12], 4294963200  ;;  %p17637_p9 = pmov %p17636_p5 }
 0x163   : > { %p17638_p1 = pmov %p17636_p5 }
 0x164   : > { %11919 = dma.done.wait (%p17637_p9), [#allocation15], 4096  }
 0x165   : > { %11921 = vsyncadd (%p17638_p1), [#allocation15], 4294963200  ;;  %p17639_p6 = pmov %p17638_p1 }
 0x166   : > { %p17640_p0 = pmov %p17638_p1 }
 0x167   : > { %11923 = dma.done.wait (%p17639_p6), [#allocation18], 16384  }
 0x168   : > { %11925 = vsyncadd (%p17640_p0), [#allocation18], 4294950912  ;;  %s8044_s14 = sshll.u32 %s12510_s15, 7  ;;  %s17641_s12 = sld [smem:[#allocation29_spill]] }
 0x169   : > { %s12536_s4 = scalar_lea.vmem [#allocation20], %s8044_s14 }
 0x16e   : > { %p8045_p8 = scmp.ne.s32.totalorder %s17641_s12, 0 }
 0x16f   : > { %v12540_v0 = vld [vmem:[%s12502_s19] sm:$0xff] (!%p8045_p8)  ;;  %v12543_v1 = vld [vmem:[%s12502_s19 + $0x10] sm:$0xff] (!%p8045_p8)  ;;  %v12548_v2 = vld [vmem:[%s12502_s19 + $0x8] sm:$0xff] (!%p8045_p8)  ;;  %s17642_s2 = sld [smem:[#allocation152_spill]] (!%p8045_p8)  ;;  %s17643_s18 = sld [smem:[#allocation153_spill]] (!%p8045_p8) }
 0x170   : > { %786 = sbr.rel (%p8045_p8) target bundleno = 959 (0x3bf), region = 136  ;;  %821 = vadd.xlane.f32.xlu0 (!%p8045_p8), %v12540_v0  ;;  %825 = vadd.xlane.f32.xlu1 (!%p8045_p8), %v12543_v1  ;;  %v12551_v3 = vld [vmem:[%s12502_s19 + $0x18] sm:$0xff] (!%p8045_p8)  ;;  %v12556_v4 = vld [vmem:[%s12502_s19 + $0x20] sm:$0xff] (!%p8045_p8)  ;;  %v12559_v5 = vld [vmem:[%s12502_s19 + $0x28] sm:$0xff] (!%p8045_p8)  ;;  %s17644_s9 = sld [smem:[#allocation157_spill]] (!%p8045_p8) }
 0x171   : > { %v12564_v6 = vld [vmem:[%s12502_s19 + $0x30] sm:$0xff] (!%p8045_p8)  ;;  %v12567_v7 = vld [vmem:[%s12502_s19 + $0x38] sm:$0xff] (!%p8045_p8)  ;;  %v12572_v8 = vld [vmem:[%s12502_s19 + $0x40] sm:$0xff] (!%p8045_p8)  ;;  %s17645_s28 = sld [smem:[#allocation159_spill]] (!%p8045_p8) }
 0x172   : > { %v12575_v9 = vld [vmem:[%s12502_s19 + $0x48] sm:$0xff] (!%p8045_p8)  ;;  %v12580_v10 = vld [vmem:[%s12502_s19 + $0x50] sm:$0xff] (!%p8045_p8)  ;;  %v12583_v11 = vld [vmem:[%s12502_s19 + $0x58] sm:$0xff] (!%p8045_p8) }
 0x173   : > { %v12588_v12 = vld [vmem:[%s12502_s19 + $0x60] sm:$0xff] (!%p8045_p8)  ;;  %v12591_v13 = vld [vmem:[%s12502_s19 + $0x68] sm:$0xff] (!%p8045_p8)  ;;  %v12596_v14 = vld [vmem:[%s12502_s19 + $0x70] sm:$0xff] (!%p8045_p8) }
 0x174   : > { %823 = vadd.xlane.f32.xlu0 (!%p8045_p8), %v12548_v2  ;;  %827 = vadd.xlane.f32.xlu1 (!%p8045_p8), %v12551_v3  ;;  %v12599_v15 = vld [vmem:[%s12502_s19 + $0x78] sm:$0xff] (!%p8045_p8)  ;;  %v12604_v16 = vld [vmem:[%s12502_s19 + $0x80] sm:$0xff] (!%p8045_p8)  ;;  %v12607_v17 = vld [vmem:[%s12502_s19 + $0x88] sm:$0xff] (!%p8045_p8) }
 0x175   : > { %v12612_v18 = vld [vmem:[%s12502_s19 + $0x90] sm:$0xff] (!%p8045_p8)  ;;  %v12615_v19 = vld [vmem:[%s12502_s19 + $0x98] sm:$0xff] (!%p8045_p8)  ;;  %v12620_v20 = vld [vmem:[%s12502_s19 + $0xa0] sm:$0xff] (!%p8045_p8) }
 0x176   : > { %v12623_v21 = vld [vmem:[%s12502_s19 + $0xa8] sm:$0xff] (!%p8045_p8)  ;;  %v12628_v22 = vld [vmem:[%s12502_s19 + $0xb0] sm:$0xff] (!%p8045_p8)  ;;  %v12631_v23 = vld [vmem:[%s12502_s19 + $0xb8] sm:$0xff] (!%p8045_p8) }
 0x177   : > { %v12636_v24 = vld [vmem:[%s12502_s19 + $0xc0] sm:$0xff]  ;;  %v12639_v25 = vld [vmem:[%s12502_s19 + $0xc8] sm:$0xff]  ;;  %v12644_v26 = vld [vmem:[%s12502_s19 + $0xd0] sm:$0xff] }
 0x178   : > { %829 = vadd.xlane.f32.xlu0 %v12556_v4  ;;  %831 = vadd.xlane.f32.xlu1 %v12559_v5  ;;  %v12647_v27 = vld [vmem:[%s12502_s19 + $0xd8] sm:$0xff]  ;;  %v12652_v28 = vld [vmem:[%s12502_s19 + $0xe0] sm:$0xff]  ;;  %v12655_v29 = vld [vmem:[%s12502_s19 + $0xe8] sm:$0xff] }
 0x179   : > { %v12660_v30 = vld [vmem:[%s12502_s19 + $0xf0] sm:$0xff]  ;;  %v12663_v31 = vld [vmem:[%s12502_s19 + $0xf8] sm:$0xff]  ;;  %v1250_v32 = vld [vmem:[#allocation13] sm:$0xff] }
 0x17a   : > { %v1251_v33 = vld [vmem:[#allocation13 + $0x8] sm:$0xff]  ;;  %v1530_v34 = vld [vmem:[#allocation14] sm:$0xff]  ;;  %v1252_v37 = vld [vmem:[#allocation13 + $0x10] sm:$0xff] }
 0x17b   : > { %v9534_v35 = vpack.c.bf16 %v1251_v33, %v1250_v32  ;;  %v1531_v36 = vld [vmem:[#allocation14 + $0x8] sm:$0xff]  ;;  %v1253_v38 = vld [vmem:[#allocation13 + $0x18] sm:$0xff]  ;;  %v1532_v41 = vld [vmem:[#allocation14 + $0x10] sm:$0xff] }
 0x17c   : > { %833 = vadd.xlane.f32.xlu0 %v12564_v6  ;;  %835 = vadd.xlane.f32.xlu1 %v12567_v7  ;;  %v9566_v39 = vpack.c.bf16 %v1531_v36, %v1530_v34  ;;  %v9538_v40 = vpack.c.bf16 %v1253_v38, %v1252_v37  ;;  %v1533_v42 = vld [vmem:[#allocation14 + $0x18] sm:$0xff] }
 0x17d   : > { %9535 = vmatprep.subr.bf16.mxu0 %v9534_v35  ;;  %v9570_v43 = vpack.c.bf16 %v1533_v42, %v1532_v41  ;;  %v1254_v42 = vld [vmem:[#allocation13 + $0x20] sm:$0xff] }
 0x17e   : > { %9567 = vmatprep.subr.bf16.mxu1 %v9566_v39  ;;  %9537 = vmatpush3.bf16.msra.mxu0 %v9534_v35 }
 0x17f   : > { %9569 = vmatpush3.bf16.msra.mxu1 %v9566_v39  ;;  %9539 = vmatprep.subr.bf16.mxu0 %v9538_v40 }
 0x180   : > { %837 = vadd.xlane.f32.xlu0 %v12572_v8  ;;  %839 = vadd.xlane.f32.xlu1 %v12575_v9 }
 0x181   : > { %9571 = vmatprep.subr.bf16.mxu1 %v9570_v43 }
 0x182   : > { %9541 = vmatpush3.bf16.msra.mxu0 %v9538_v40 }
 0x183   : > { %9573 = vmatpush3.bf16.msra.mxu1 %v9570_v43  ;;  %v1255_v43 = vld [vmem:[#allocation13 + $0x28] sm:$0xff] }
 0x184   : > { %841 = vadd.xlane.f32.xlu0 %v12580_v10  ;;  %843 = vadd.xlane.f32.xlu1 %v12583_v11 }
 0x188   : > { %845 = vadd.xlane.f32.xlu0 %v12588_v12  ;;  %847 = vadd.xlane.f32.xlu1 %v12591_v13 }
 0x18c   : > { %849 = vadd.xlane.f32.xlu0 %v12596_v14  ;;  %851 = vadd.xlane.f32.xlu1 %v12599_v15 }
 0x190   : > { %853 = vadd.xlane.f32.xlu0 %v12604_v16  ;;  %855 = vadd.xlane.f32.xlu1 %v12607_v17 }
 0x194   : > { %857 = vadd.xlane.f32.xlu0 %v12612_v18  ;;  %859 = vadd.xlane.f32.xlu1 %v12615_v19 }
 0x198   : > { %861 = vadd.xlane.f32.xlu0 %v12620_v20  ;;  %863 = vadd.xlane.f32.xlu1 %v12623_v21 }
 0x19c   : > { %865 = vadd.xlane.f32.xlu0 %v12628_v22  ;;  %867 = vadd.xlane.f32.xlu1 %v12631_v23 }
 0x1a0   : > { %869 = vadd.xlane.f32.xlu0 %v12636_v24  ;;  %871 = vadd.xlane.f32.xlu1 %v12639_v25 }
 0x1a4   : > { %873 = vadd.xlane.f32.xlu0 %v12644_v26  ;;  %875 = vadd.xlane.f32.xlu1 %v12647_v27 }
 0x1a8   : > { %877 = vadd.xlane.f32.xlu0 %v12652_v28  ;;  %879 = vadd.xlane.f32.xlu1 %v12655_v29 }
 0x1ac   : > { %881 = vadd.xlane.f32.xlu0 %v12660_v30  ;;  %883 = vadd.xlane.f32.xlu1 %v12663_v31 }
 0x1fd   : > { %v822_v44 = vpop.xlane.xlu0 %821  ;;  %v826_v45 = vpop.xlane.xlu1 %825 }
 0x1fe   : > { %v886_v46 = vmul.f32 0.0078125, %v822_v44  ;;  %v888_v47 = vmul.f32 0.0078125, %v826_v45  ;;  %v1534_v44 = vld [vmem:[#allocation14 + $0x20] sm:$0xff] }
 0x200   : > { %v12668_v48 = vsub.f32 %v12540_v0, %v886_v46  ;;  %v12671_v49 = vsub.f32 %v12543_v1, %v888_v47  ;;  %v9542_v47 = vpack.c.bf16 %v1255_v43, %v1254_v42  ;;  %v1539_v43 = vld [vmem:[#allocation14 + $0x48] sm:$0xff] }
 0x201   : > { %v824_v50 = vpop.xlane.xlu0 %823  ;;  %v828_v51 = vpop.xlane.xlu1 %827 }
 0x202   : > { %v887_v52 = vmul.f32 0.0078125, %v824_v50  ;;  %v950_v53 = vmul.f32 %v12668_v48, %v12668_v48  ;;  %v889_v54 = vmul.f32 0.0078125, %v828_v51  ;;  %v952_v57 = vmul.f32 %v12671_v49, %v12671_v49  ;;  %v1535_v50 = vld [vmem:[#allocation14 + $0x28] sm:$0xff]  ;;  %9543 = vmatprep.subr.bf16.mxu0 %v9542_v47 }
 0x203   : > { %9545 = vmatpush3.bf16.msra.mxu0 %v9542_v47 }
 0x204   : > { %v12676_v55 = vsub.f32 %v12548_v2, %v887_v52  ;;  %982 = vadd.xlane.f32.xlu0 %v950_v53  ;;  %v12679_v56 = vsub.f32 %v12551_v3, %v889_v54  ;;  %v9574_v53 = vpack.c.bf16 %v1535_v50, %v1534_v44 }
 0x205   : > { %v830_v58 = vpop.xlane.xlu0 %829  ;;  %v832_v59 = vpop.xlane.xlu1 %831 }
 0x206   : > { %v890_v60 = vmul.f32 0.0078125, %v830_v58  ;;  %v951_v61 = vmul.f32 %v12676_v55, %v12676_v55  ;;  %v891_v62 = vmul.f32 0.0078125, %v832_v59  ;;  %v953_v1 = vmul.f32 %v12679_v56, %v12679_v56  ;;  %9575 = vmatprep.subr.bf16.mxu1 %v9574_v53 }
 0x207   : > { %9577 = vmatpush3.bf16.msra.mxu1 %v9574_v53  ;;  %v1540_v53 = vld [vmem:[#allocation14 + $0x50] sm:$0xff] }
 0x208   : > { %v12686_v63 = vsub.f32 %v12556_v4, %v890_v60  ;;  %986 = vadd.xlane.f32.xlu0 %v952_v57  ;;  %984 = vadd.xlane.f32.xlu1 %v951_v61  ;;  %v12689_v0 = vsub.f32 %v12559_v5, %v891_v62  ;;  %v1256_v60 = vld [vmem:[#allocation13 + $0x30] sm:$0xff]  ;;  %v1257_v61 = vld [vmem:[#allocation13 + $0x38] sm:$0xff] }
 0x209   : > { %v834_v2 = vpop.xlane.xlu0 %833  ;;  %v836_v3 = vpop.xlane.xlu1 %835  ;;  %v1536_v62 = vld [vmem:[#allocation14 + $0x30] sm:$0xff] }
 0x20a   : > { %v892_v32 = vmul.f32 0.0078125, %v834_v2  ;;  %v954_v33 = vmul.f32 %v12686_v63, %v12686_v63  ;;  %v893_v34 = vmul.f32 0.0078125, %v836_v3  ;;  %v955_v5 = vmul.f32 %v12689_v0, %v12689_v0  ;;  %v1537_v3 = vld [vmem:[#allocation14 + $0x38] sm:$0xff] }
 0x20c   : > { %v12696_v35 = vsub.f32 %v12564_v6, %v892_v32  ;;  %988 = vadd.xlane.f32.xlu1 %v953_v1  ;;  %990 = vadd.xlane.f32.xlu0 %v954_v33  ;;  %v12699_v4 = vsub.f32 %v12567_v7, %v893_v34  ;;  %v9546_v32 = vpack.c.bf16 %v1257_v61, %v1256_v60 }
 0x20d   : > { %v838_v36 = vpop.xlane.xlu0 %837  ;;  %v840_v37 = vpop.xlane.xlu1 %839 }
 0x20e   : > { %v894_v38 = vmul.f32 0.0078125, %v838_v36  ;;  %v956_v39 = vmul.f32 %v12696_v35, %v12696_v35  ;;  %v895_v40 = vmul.f32 0.0078125, %v840_v37  ;;  %v957_v7 = vmul.f32 %v12699_v4, %v12699_v4  ;;  %9547 = vmatprep.subr.bf16.mxu0 %v9546_v32 }
 0x20f   : > { %9549 = vmatpush3.bf16.msra.mxu0 %v9546_v32  ;;  %v1263_v32 = vld [vmem:[#allocation13 + $0x68] sm:$0xff] }
 0x210   : > { %v12706_v41 = vsub.f32 %v12572_v8, %v894_v38  ;;  %992 = vadd.xlane.f32.xlu1 %v955_v5  ;;  %994 = vadd.xlane.f32.xlu0 %v956_v39  ;;  %v12709_v6 = vsub.f32 %v12575_v9, %v895_v40  ;;  %v1258_v38 = vld [vmem:[#allocation13 + $0x40] sm:$0xff]  ;;  %v1259_v39 = vld [vmem:[#allocation13 + $0x48] sm:$0xff] }
 0x211   : > { %v842_v45 = vpop.xlane.xlu0 %841  ;;  %v844_v46 = vpop.xlane.xlu1 %843  ;;  %v1538_v40 = vld [vmem:[#allocation14 + $0x40] sm:$0xff] }
 0x212   : > { %v896_v51 = vmul.f32 0.0078125, %v842_v45  ;;  %v958_v8 = vmul.f32 %v12706_v41, %v12706_v41  ;;  %v897_v52 = vmul.f32 0.0078125, %v844_v46  ;;  %v959_v57 = vmul.f32 %v12709_v6, %v12709_v6 }
 0x213   : > { %v9582_v44 = vpack.c.bf16 %v1539_v43, %v1538_v40  ;;  %v1264_v43 = vld [vmem:[#allocation13 + $0x70] sm:$0xff] }
 0x214   : > { %v12716_v9 = vsub.f32 %v12580_v10, %v896_v51  ;;  %996 = vadd.xlane.f32.xlu1 %v957_v7  ;;  %998 = vadd.xlane.f32.xlu0 %v958_v8  ;;  %v12719_v54 = vsub.f32 %v12583_v11, %v897_v52  ;;  %v9578_v11 = vpack.c.bf16 %v1537_v3, %v1536_v62  ;;  %v1260_v8 = vld [vmem:[#allocation13 + $0x50] sm:$0xff]  ;;  %v1261_v52 = vld [vmem:[#allocation13 + $0x58] sm:$0xff]  ;;  %v1262_v3 = vld [vmem:[#allocation13 + $0x60] sm:$0xff] }
 0x215   : > { %v846_v58 = vpop.xlane.xlu0 %845  ;;  %v848_v59 = vpop.xlane.xlu1 %847 }
 0x216   : > { %v898_v1 = vmul.f32 0.0078125, %v846_v58  ;;  %v960_v10 = vmul.f32 %v12716_v9, %v12716_v9  ;;  %v899_v2 = vmul.f32 0.0078125, %v848_v59  ;;  %v961_v5 = vmul.f32 %v12719_v54, %v12719_v54  ;;  %9579 = vmatprep.subr.bf16.mxu1 %v9578_v11  ;;  %v1541_v59 = vld [vmem:[#allocation14 + $0x58] sm:$0xff] }
 0x217   : > { %9581 = vmatpush3.bf16.msra.mxu1 %v9578_v11  ;;  %v9586_v60 = vpack.c.bf16 %v1541_v59, %v1540_v53  ;;  %v1542_v11 = vld [vmem:[#allocation14 + $0x60] sm:$0xff] }
 0x218   : > { %v12726_v33 = vsub.f32 %v12588_v12, %v898_v1  ;;  %1000 = vadd.xlane.f32.xlu1 %v959_v57  ;;  %1002 = vadd.xlane.f32.xlu0 %v960_v10  ;;  %v12729_v34 = vsub.f32 %v12591_v13, %v899_v2  ;;  %v9550_v13 = vpack.c.bf16 %v1259_v39, %v1258_v38 }
 0x219   : > { %v850_v36 = vpop.xlane.xlu0 %849  ;;  %v852_v37 = vpop.xlane.xlu1 %851  ;;  %9583 = vmatprep.subr.bf16.mxu1 %v9582_v44 }
 0x21a   : > { %v900_v7 = vmul.f32 0.0078125, %v850_v36  ;;  %v962_v12 = vmul.f32 %v12726_v33, %v12726_v33  ;;  %v901_v42 = vmul.f32 0.0078125, %v852_v37  ;;  %v963_v47 = vmul.f32 %v12729_v34, %v12729_v34  ;;  %9551 = vmatprep.subr.bf16.mxu0 %v9550_v13  ;;  %v1543_v37 = vld [vmem:[#allocation14 + $0x68] sm:$0xff] }
 0x21b   : > { %9553 = vmatpush3.bf16.msra.mxu0 %v9550_v13  ;;  %9585 = vmatpush3.bf16.msra.mxu1 %v9582_v44  ;;  %v9590_v38 = vpack.c.bf16 %v1543_v37, %v1542_v11  ;;  %v1265_v13 = vld [vmem:[#allocation13 + $0x78] sm:$0xff] }
 0x21c   : > { %v12736_v45 = vsub.f32 %v12596_v14, %v900_v7  ;;  %1004 = vadd.xlane.f32.xlu1 %v961_v5  ;;  %1006 = vadd.xlane.f32.xlu0 %v962_v12  ;;  %v12739_v46 = vsub.f32 %v12599_v15, %v901_v42  ;;  %v9554_v15 = vpack.c.bf16 %v1261_v52, %v1260_v8 }
 0x21d   : > { %v854_v50 = vpop.xlane.xlu0 %853  ;;  %v856_v51 = vpop.xlane.xlu1 %855  ;;  %9587 = vmatprep.subr.bf16.mxu1 %v9586_v60 }
 0x21e   : > { %v902_v57 = vmul.f32 0.0078125, %v854_v50  ;;  %v964_v14 = vmul.f32 %v12736_v45, %v12736_v45  ;;  %v903_v58 = vmul.f32 0.0078125, %v856_v51  ;;  %v965_v1 = vmul.f32 %v12739_v46, %v12739_v46  ;;  %9555 = vmatprep.subr.bf16.mxu0 %v9554_v15  ;;  %v1544_v50 = vld [vmem:[#allocation14 + $0x70] sm:$0xff]  ;;  %v1545_v51 = vld [vmem:[#allocation14 + $0x78] sm:$0xff] }
 0x21f   : > { %9557 = vmatpush3.bf16.msra.mxu0 %v9554_v15  ;;  %9589 = vmatpush3.bf16.msra.mxu1 %v9586_v60  ;;  %v9594_v8 = vpack.c.bf16 %v1545_v51, %v1544_v50 }
 0x220   : > { %v12746_v61 = vsub.f32 %v12604_v16, %v902_v57  ;;  %1008 = vadd.xlane.f32.xlu1 %v963_v47  ;;  %1010 = vadd.xlane.f32.xlu0 %v964_v14  ;;  %v12749_v62 = vsub.f32 %v12607_v17, %v903_v58  ;;  %v9558_v17 = vpack.c.bf16 %v1263_v32, %v1262_v3 }
 0x221   : > { %v858_v10 = vpop.xlane.xlu0 %857  ;;  %v860_v2 = vpop.xlane.xlu1 %859  ;;  %9591 = vmatprep.subr.bf16.mxu1 %v9590_v38 }
 0x222   : > { %v904_v5 = vmul.f32 0.0078125, %v858_v10  ;;  %v966_v16 = vmul.f32 %v12746_v61, %v12746_v61  ;;  %v905_v36 = vmul.f32 0.0078125, %v860_v2  ;;  %v967_v7 = vmul.f32 %v12749_v62, %v12749_v62  ;;  %9559 = vmatprep.subr.bf16.mxu0 %v9558_v17 }
 0x223   : > { %9561 = vmatpush3.bf16.msra.mxu0 %v9558_v17  ;;  %9593 = vmatpush3.bf16.msra.mxu1 %v9590_v38 }
 0x224   : > { %v12756_v39 = vsub.f32 %v12612_v18, %v904_v5  ;;  %1012 = vadd.xlane.f32.xlu1 %v965_v1  ;;  %1014 = vadd.xlane.f32.xlu0 %v966_v16  ;;  %v12759_v40 = vsub.f32 %v12615_v19, %v905_v36  ;;  %v9562_v19 = vpack.c.bf16 %v1265_v13, %v1264_v43 }
 0x225   : > { %v862_v12 = vpop.xlane.xlu0 %861  ;;  %v864_v42 = vpop.xlane.xlu1 %863  ;;  %9595 = vmatprep.subr.bf16.mxu1 %v9594_v8 }
 0x226   : > { %v906_v44 = vmul.f32 0.0078125, %v862_v12  ;;  %v968_v47 = vmul.f32 %v12756_v39, %v12756_v39  ;;  %v907_v18 = vmul.f32 0.0078125, %v864_v42  ;;  %v969_v57 = vmul.f32 %v12759_v40, %v12759_v40  ;;  %9563 = vmatprep.subr.bf16.mxu0 %v9562_v19 }
 0x227   : > { %9565 = vmatpush3.bf16.msra.mxu0 %v9562_v19  ;;  %9597 = vmatpush3.bf16.msra.mxu1 %v9594_v8 }
 0x228   : > { %v12766_v52 = vsub.f32 %v12620_v20, %v906_v44  ;;  %1016 = vadd.xlane.f32.xlu1 %v967_v7  ;;  %1018 = vadd.xlane.f32.xlu0 %v968_v47  ;;  %v12769_v53 = vsub.f32 %v12623_v21, %v907_v18 }
 0x229   : > { %v866_v14 = vpop.xlane.xlu0 %865  ;;  %v868_v58 = vpop.xlane.xlu1 %867 }
 0x22a   : > { %v908_v59 = vmul.f32 0.0078125, %v866_v14  ;;  %v970_v15 = vmul.f32 %v12766_v52, %v12766_v52  ;;  %v909_v60 = vmul.f32 0.0078125, %v868_v58  ;;  %v971_v1 = vmul.f32 %v12769_v53, %v12769_v53 }
 0x22c   : > { %v12776_v20 = vsub.f32 %v12628_v22, %v908_v59  ;;  %1020 = vadd.xlane.f32.xlu1 %v969_v57  ;;  %1022 = vadd.xlane.f32.xlu0 %v970_v15  ;;  %v12779_v21 = vsub.f32 %v12631_v23, %v909_v60 }
 0x22d   : > { %v870_v10 = vpop.xlane.xlu0 %869  ;;  %v872_v2 = vpop.xlane.xlu1 %871 }
 0x22e   : > { %v910_v3 = vmul.f32 0.0078125, %v870_v10  ;;  %v972_v32 = vmul.f32 %v12776_v20, %v12776_v20  ;;  %v911_v11 = vmul.f32 0.0078125, %v872_v2  ;;  %v973_v23 = vmul.f32 %v12779_v21, %v12779_v21 }
 0x230   : > { %v12786_v5 = vsub.f32 %v12636_v24, %v910_v3  ;;  %1024 = vadd.xlane.f32.xlu1 %v971_v1  ;;  %1026 = vadd.xlane.f32.xlu0 %v972_v32  ;;  %v12789_v22 = vsub.f32 %v12639_v25, %v911_v11 }
 0x231   : > { %v874_v16 = vpop.xlane.xlu0 %873  ;;  %v876_v36 = vpop.xlane.xlu1 %875 }
 0x232   : > { %v912_v37 = vmul.f32 0.0078125, %v874_v16  ;;  %v974_v17 = vmul.f32 %v12786_v5, %v12786_v5  ;;  %v913_v38 = vmul.f32 0.0078125, %v876_v36  ;;  %v975_v25 = vmul.f32 %v12789_v22, %v12789_v22 }
 0x234   : > { %v12796_v7 = vsub.f32 %v12644_v26, %v912_v37  ;;  %1028 = vadd.xlane.f32.xlu1 %v973_v23  ;;  %1030 = vadd.xlane.f32.xlu0 %v974_v17  ;;  %v12799_v24 = vsub.f32 %v12647_v27, %v913_v38 }
 0x235   : > { %v878_v12 = vpop.xlane.xlu0 %877  ;;  %v880_v42 = vpop.xlane.xlu1 %879 }
 0x236   : > { %v914_v43 = vmul.f32 0.0078125, %v878_v12  ;;  %v976_v13 = vmul.f32 %v12796_v7, %v12796_v7  ;;  %v915_v44 = vmul.f32 0.0078125, %v880_v42  ;;  %v977_v27 = vmul.f32 %v12799_v24, %v12799_v24 }
 0x238   : > { %v12806_v47 = vsub.f32 %v12652_v28, %v914_v43  ;;  %1032 = vadd.xlane.f32.xlu1 %v975_v25  ;;  %1034 = vadd.xlane.f32.xlu0 %v976_v13  ;;  %v12809_v26 = vsub.f32 %v12655_v29, %v915_v44  ;;  %v12830_v44 = vld [vmem:[%s17642_s2] ss:$0 sm:$0xff] }
 0x239   : > { %v882_v18 = vpop.xlane.xlu0 %881  ;;  %v884_v50 = vpop.xlane.xlu1 %883 }
 0x23a   : > { %v916_v51 = vmul.f32 0.0078125, %v882_v18  ;;  %v978_v19 = vmul.f32 %v12806_v47, %v12806_v47  ;;  %v917_v8 = vmul.f32 0.0078125, %v884_v50  ;;  %v979_v29 = vmul.f32 %v12809_v26, %v12809_v26 }
 0x23c   : > { %v12816_v57 = vsub.f32 %v12660_v30, %v916_v51  ;;  %1036 = vadd.xlane.f32.xlu1 %v977_v27  ;;  %1038 = vadd.xlane.f32.xlu0 %v978_v19  ;;  %v12819_v28 = vsub.f32 %v12663_v31, %v917_v8  ;;  %v12836_v8 = vld [vmem:[%s17643_s18] ss:$0 sm:$0xff] }
 0x23e   : > { %v980_v14 = vmul.f32 %v12816_v57, %v12816_v57  ;;  %v981_v58 = vmul.f32 %v12819_v28, %v12819_v28 }
 0x240   : > { %1040 = vadd.xlane.f32.xlu1 %v979_v29  ;;  %1042 = vadd.xlane.f32.xlu0 %v980_v14 }
 0x244   : > { %1044 = vadd.xlane.f32.xlu1 %v981_v58 }
 0x291   : > { %v983_v59 = vpop.xlane.xlu0 %982 }
 0x292   : > { %v1046_v30 = vmul.f32 0.0078125, %v983_v59 }
 0x294   : > { %v1078_v15 = vadd.f32 1e-06, %v1046_v30 }
 0x295   : > { %v985_v60 = vpop.xlane.xlu1 %984  ;;  %v987_v1 = vpop.xlane.xlu0 %986 }
 0x296   : > { %10316 = vrsqrt.f32 %v1078_v15  ;;  %v1047_v31 = vmul.f32 0.0078125, %v985_v60  ;;  %v1048_v10 = vmul.f32 0.0078125, %v987_v1 }
 0x298   : > { %v1079_v2 = vadd.f32 1e-06, %v1047_v31  ;;  %v1080_v3 = vadd.f32 1e-06, %v1048_v10 }
 0x299   : > { %v989_v32 = vpop.xlane.xlu1 %988  ;;  %v991_v11 = vpop.xlane.xlu0 %990 }
 0x29a   : > { %10318 = vrsqrt.f32 %v1079_v2  ;;  %v1049_v23 = vmul.f32 0.0078125, %v989_v32  ;;  %v1050_v16 = vmul.f32 0.0078125, %v991_v11 }
 0x29b   : > { %10320 = vrsqrt.f32 %v1080_v3 }
 0x29c   : > { %v1081_v36 = vadd.f32 1e-06, %v1049_v23  ;;  %v1082_v37 = vadd.f32 1e-06, %v1050_v16 }
 0x29d   : > { %v993_v17 = vpop.xlane.xlu1 %992  ;;  %v995_v38 = vpop.xlane.xlu0 %994 }
 0x29e   : > { %10322 = vrsqrt.f32 %v1081_v36  ;;  %v1051_v25 = vmul.f32 0.0078125, %v993_v17  ;;  %v1052_v12 = vmul.f32 0.0078125, %v995_v38 }
 0x29f   : > { %10324 = vrsqrt.f32 %v1082_v37 }
 0x2a0   : > { %v10317_v42 = vpop.eup %10316  ;;  %v1083_v43 = vadd.f32 1e-06, %v1051_v25  ;;  %v1084_v13 = vadd.f32 1e-06, %v1052_v12 }
 0x2a1   : > { %v997_v27 = vpop.xlane.xlu1 %996  ;;  %v999_v18 = vpop.xlane.xlu0 %998  ;;  %v1142_v50 = vmul.f32 %v10317_v42, %v12668_v48 }
 0x2a2   : > { %10326 = vrsqrt.f32 %v1083_v43  ;;  %v1053_v51 = vmul.f32 0.0078125, %v997_v27  ;;  %v1054_v19 = vmul.f32 0.0078125, %v999_v18 }
 0x2a3   : > { %10328 = vrsqrt.f32 %v1084_v13  ;;  %v1180_v29 = vmul.f32 %v12830_v44, %v1142_v50 }
 0x2a4   : > { %v10319_v14 = vpop.eup %10318  ;;  %v1085_v58 = vadd.f32 1e-06, %v1053_v51  ;;  %v1086_v59 = vadd.f32 1e-06, %v1054_v19 }
 0x2a5   : > { %v10321_v30 = vpop.eup %10320  ;;  %v1001_v15 = vpop.xlane.xlu1 %1000  ;;  %v1218_v1 = vadd.f32 %v12836_v8, %v1180_v29  ;;  %v1143_v48 = vmul.f32 %v10319_v14, %v12676_v55 }
 0x2a6   : > { %v1003_v60 = vpop.xlane.xlu0 %1002  ;;  %10330 = vrsqrt.f32 %v1085_v58  ;;  %v1055_v31 = vmul.f32 0.0078125, %v1001_v15  ;;  %v1144_v2 = vmul.f32 %v10321_v30, %v12671_v49 }
 0x2a7   : > { %v1056_v10 = vmul.f32 0.0078125, %v1003_v60  ;;  %10332 = vrsqrt.f32 %v1086_v59  ;;  %9294 = vmatprep.mubr.f32.mxu0 %v1218_v1  ;;  %9374 = vmatprep.mubr.f32.mxu1 %v1218_v1  ;;  %v1181_v3 = vmul.f32 %v12830_v44, %v1143_v48 }
 0x2a8   : > { %v10323_v32 = vpop.eup %10322  ;;  %v1087_v11 = vadd.f32 1e-06, %v1055_v31  ;;  %v1182_v16 = vmul.f32 %v12830_v44, %v1144_v2 }
 0x2a9   : > { %v1088_v23 = vadd.f32 1e-06, %v1056_v10  ;;  %v10325_v36 = vpop.eup %10324  ;;  %v1005_v37 = vpop.xlane.xlu1 %1004  ;;  %v1219_v55 = vadd.f32 %v12836_v8, %v1181_v3  ;;  %v1145_v38 = vmul.f32 %v10323_v32, %v12679_v56 }
 0x2aa   : > { %v1007_v17 = vpop.xlane.xlu0 %1006  ;;  %10334 = vrsqrt.f32 %v1087_v11  ;;  %v1057_v25 = vmul.f32 0.0078125, %v1005_v37  ;;  %v1220_v12 = vadd.f32 %v12836_v8, %v1182_v16  ;;  %v1146_v43 = vmul.f32 %v10325_v36, %v12686_v63 }
 0x2ab   : > { %v1058_v49 = vmul.f32 0.0078125, %v1007_v17  ;;  %10336 = vrsqrt.f32 %v1088_v23  ;;  %9295 = vmatmul.mubr.f32.vlgmr.msra.gmra.mrb[0].mxu0 %v1219_v55  ;;  %9375 = vmatmul.mubr.f32.vlgmr.msra.gmra.mrb[0].mxu1 %v1219_v55  ;;  %v1183_v42 = vmul.f32 %v12830_v44, %v1145_v38 }
 0x2ac   : > { %v10327_v13 = vpop.eup %10326  ;;  %v1089_v27 = vadd.f32 1e-06, %v1057_v25  ;;  %9297 = vmatprep.mubr.f32.mxu0 %v1220_v12  ;;  %9377 = vmatprep.mubr.f32.mxu1 %v1220_v12  ;;  %v1184_v29 = vmul.f32 %v12830_v44, %v1146_v43 }
 0x2ad   : > { %v1090_v18 = vadd.f32 1e-06, %v1058_v49  ;;  %v10329_v50 = vpop.eup %10328  ;;  %v1009_v51 = vpop.xlane.xlu1 %1008  ;;  %v1221_v19 = vadd.f32 %v12836_v8, %v1183_v42  ;;  %v1147_v14 = vmul.f32 %v10327_v13, %v12689_v0 }
 0x2ae   : > { %v1011_v56 = vpop.xlane.xlu0 %1010  ;;  %10338 = vrsqrt.f32 %v1089_v27  ;;  %v1059_v58 = vmul.f32 0.0078125, %v1009_v51  ;;  %v1148_v30 = vmul.f32 %v10329_v50, %v12696_v35  ;;  %v1222_v63 = vadd.f32 %v12836_v8, %v1184_v29 }
 0x2af   : > { %v1060_v59 = vmul.f32 0.0078125, %v1011_v56  ;;  %10340 = vrsqrt.f32 %v1090_v18  ;;  %9298 = vmatmul.mubr.f32.gmra.mrb[2].mxu0 %v1221_v19  ;;  %9378 = vmatmul.mubr.f32.gmra.mrb[2].mxu1 %v1221_v19  ;;  %v1185_v15 = vmul.f32 %v12830_v44, %v1147_v14 }
 0x2b0   : > { %v10331_v60 = vpop.eup %10330  ;;  %v1091_v1 = vadd.f32 1e-06, %v1059_v58  ;;  %v1186_v31 = vmul.f32 %v12830_v44, %v1148_v30  ;;  %9300 = vmatprep.mubr.f32.mxu0 %v1222_v63  ;;  %9380 = vmatprep.mubr.f32.mxu1 %v1222_v63 }
 0x2b1   : > { %v1092_v48 = vadd.f32 1e-06, %v1060_v59  ;;  %v10333_v10 = vpop.eup %10332  ;;  %v1013_v0 = vpop.xlane.xlu1 %1012  ;;  %v1223_v3 = vadd.f32 %v12836_v8, %v1185_v15  ;;  %v1149_v35 = vmul.f32 %v10331_v60, %v12699_v4 }
 0x2b2   : > { %v1015_v2 = vpop.xlane.xlu0 %1014  ;;  %10342 = vrsqrt.f32 %v1091_v1  ;;  %v1061_v32 = vmul.f32 0.0078125, %v1013_v0  ;;  %v1224_v23 = vadd.f32 %v12836_v8, %v1186_v31  ;;  %v1150_v36 = vmul.f32 %v10333_v10, %v12706_v41 }
 0x2b3   : > { %v1062_v11 = vmul.f32 0.0078125, %v1015_v2  ;;  %10344 = vrsqrt.f32 %v1092_v48  ;;  %9301 = vmatmul.mubr.f32.gmra.mrb[4].mxu0 %v1223_v3  ;;  %9381 = vmatmul.mubr.f32.gmra.mrb[4].mxu1 %v1223_v3  ;;  %v1187_v16 = vmul.f32 %v12830_v44, %v1149_v35 }
 0x2b4   : > { %v10335_v37 = vpop.eup %10334  ;;  %v1093_v17 = vadd.f32 1e-06, %v1061_v32  ;;  %9303 = vmatprep.mubr.f32.mxu0 %v1224_v23  ;;  %9383 = vmatprep.mubr.f32.mxu1 %v1224_v23  ;;  %v1188_v12 = vmul.f32 %v12830_v44, %v1150_v36 }
 0x2b5   : > { %v1094_v55 = vadd.f32 1e-06, %v1062_v11  ;;  %v10337_v38 = vpop.eup %10336  ;;  %v1017_v25 = vpop.xlane.xlu1 %1016  ;;  %v1225_v49 = vadd.f32 %v12836_v8, %v1187_v16  ;;  %v1151_v42 = vmul.f32 %v10335_v37, %v12709_v6 }
 0x2b6   : > { %v1019_v4 = vpop.xlane.xlu0 %1018  ;;  %10346 = vrsqrt.f32 %v1093_v17  ;;  %v1063_v43 = vmul.f32 0.0078125, %v1017_v25  ;;  %v1152_v27 = vmul.f32 %v10337_v38, %v12716_v9  ;;  %v1226_v41 = vadd.f32 %v12836_v8, %v1188_v12 }
 0x2b7   : > { %v1064_v13 = vmul.f32 0.0078125, %v1019_v4  ;;  %10348 = vrsqrt.f32 %v1094_v55  ;;  %9304 = vmatmul.mubr.f32.gmra.mrb[6].mxu0 %v1225_v49  ;;  %9384 = vmatmul.mubr.f32.gmra.mrb[6].mxu1 %v1225_v49  ;;  %v1189_v18 = vmul.f32 %v12830_v44, %v1151_v42 }
 0x2b8   : > { %v10339_v50 = vpop.eup %10338  ;;  %v1095_v51 = vadd.f32 1e-06, %v1063_v43  ;;  %v1190_v19 = vmul.f32 %v12830_v44, %v1152_v27  ;;  %9306 = vmatprep.mubr.f32.mxu0 %v1226_v41  ;;  %9386 = vmatprep.mubr.f32.mxu1 %v1226_v41 }
 0x2b9   : > { %v1096_v56 = vadd.f32 1e-06, %v1064_v13  ;;  %v10341_v29 = vpop.eup %10340  ;;  %v1021_v6 = vpop.xlane.xlu1 %1020  ;;  %v1227_v58 = vadd.f32 %v12836_v8, %v1189_v18  ;;  %v1153_v9 = vmul.f32 %v10339_v50, %v12719_v54 }
 0x2ba   : > { %v1023_v14 = vpop.xlane.xlu0 %1022  ;;  %10350 = vrsqrt.f32 %v1095_v51  ;;  %v1065_v59 = vmul.f32 0.0078125, %v1021_v6  ;;  %v1228_v63 = vadd.f32 %v12836_v8, %v1190_v19  ;;  %v1154_v60 = vmul.f32 %v10341_v29, %v12726_v33 }
 0x2bb   : > { %v1066_v30 = vmul.f32 0.0078125, %v1023_v14  ;;  %10352 = vrsqrt.f32 %v1096_v56  ;;  %9307 = vmatmul.mubr.f32.gmra.mrb[8].mxu0 %v1227_v58  ;;  %9387 = vmatmul.mubr.f32.gmra.mrb[8].mxu1 %v1227_v58  ;;  %v1191_v15 = vmul.f32 %v12830_v44, %v1153_v9 }
 0x2bc   : > { %v10343_v1 = vpop.eup %10342  ;;  %v1097_v48 = vadd.f32 1e-06, %v1065_v59  ;;  %9309 = vmatprep.mubr.f32.mxu0 %v1228_v63  ;;  %9389 = vmatprep.mubr.f32.mxu1 %v1228_v63  ;;  %v1192_v3 = vmul.f32 %v12830_v44, %v1154_v60 }
 0x2bd   : > { %v1098_v31 = vadd.f32 1e-06, %v1066_v30  ;;  %v10345_v10 = vpop.eup %10344  ;;  %v1025_v0 = vpop.xlane.xlu1 %1024  ;;  %v1229_v2 = vadd.f32 %v12836_v8, %v1191_v15  ;;  %v1155_v35 = vmul.f32 %v10343_v1, %v12729_v34 }
 0x2be   : > { %v1027_v54 = vpop.xlane.xlu0 %1026  ;;  %10354 = vrsqrt.f32 %v1097_v48  ;;  %v1067_v32 = vmul.f32 0.0078125, %v1025_v0  ;;  %v1156_v23 = vmul.f32 %v10345_v10, %v12736_v45  ;;  %v1230_v33 = vadd.f32 %v12836_v8, %v1192_v3 }
 0x2bf   : > { %v1068_v11 = vmul.f32 0.0078125, %v1027_v54  ;;  %10356 = vrsqrt.f32 %v1098_v31  ;;  %9310 = vmatmul.mubr.f32.gmra.mrb[10].mxu0 %v1229_v2  ;;  %9390 = vmatmul.mubr.f32.gmra.mrb[10].mxu1 %v1229_v2  ;;  %v1193_v16 = vmul.f32 %v12830_v44, %v1155_v35 }
 0x2c0   : > { %v10347_v36 = vpop.eup %10346  ;;  %v1099_v37 = vadd.f32 1e-06, %v1067_v32  ;;  %v1194_v55 = vmul.f32 %v12830_v44, %v1156_v23  ;;  %9312 = vmatprep.mubr.f32.mxu0 %v1230_v33  ;;  %9392 = vmatprep.mubr.f32.mxu1 %v1230_v33 }
 0x2c1   : > { %v1100_v17 = vadd.f32 1e-06, %v1068_v11  ;;  %v10349_v38 = vpop.eup %10348  ;;  %v1029_v34 = vpop.xlane.xlu1 %1028  ;;  %v1231_v4 = vadd.f32 %v12836_v8, %v1193_v16  ;;  %v1157_v45 = vmul.f32 %v10347_v36, %v12739_v46 }
 0x2c2   : > { %v1031_v25 = vpop.xlane.xlu0 %1030  ;;  %10358 = vrsqrt.f32 %v1099_v37  ;;  %v1069_v49 = vmul.f32 0.0078125, %v1029_v34  ;;  %v1232_v42 = vadd.f32 %v12836_v8, %v1194_v55  ;;  %v1158_v13 = vmul.f32 %v10349_v38, %v12746_v61 }
 0x2c3   : > { %v1070_v12 = vmul.f32 0.0078125, %v1031_v25  ;;  %10360 = vrsqrt.f32 %v1100_v17  ;;  %9313 = vmatmul.mubr.f32.gmra.mrb[12].mxu0 %v1231_v4  ;;  %9393 = vmatmul.mubr.f32.gmra.mrb[12].mxu1 %v1231_v4  ;;  %v1195_v43 = vmul.f32 %v12830_v44, %v1157_v45 }
 0x2c4   : > { %v10351_v27 = vpop.eup %10350  ;;  %v1101_v41 = vadd.f32 1e-06, %v1069_v49  ;;  %9315 = vmatprep.mubr.f32.mxu0 %v1232_v42  ;;  %9395 = vmatprep.mubr.f32.mxu1 %v1232_v42  ;;  %v1196_v19 = vmul.f32 %v12830_v44, %v1158_v13 }
 0x2c5   : > { %v1102_v18 = vadd.f32 1e-06, %v1070_v12  ;;  %v10353_v50 = vpop.eup %10352  ;;  %v1033_v51 = vpop.xlane.xlu1 %1032  ;;  %v1233_v56 = vadd.f32 %v12836_v8, %v1195_v43  ;;  %v1159_v29 = vmul.f32 %v10351_v27, %v12749_v62 }
 0x2c6   : > { %v1035_v46 = vpop.xlane.xlu0 %1034  ;;  %10362 = vrsqrt.f32 %v1101_v41  ;;  %v1071_v6 = vmul.f32 0.0078125, %v1033_v51  ;;  %v1160_v58 = vmul.f32 %v10353_v50, %v12756_v39  ;;  %v1234_v61 = vadd.f32 %v12836_v8, %v1196_v19 }
 0x2c7   : > { %v1072_v14 = vmul.f32 0.0078125, %v1035_v46  ;;  %10364 = vrsqrt.f32 %v1102_v18  ;;  %9316 = vmatmul.mubr.f32.gmra.mrb[14].mxu0 %v1233_v56  ;;  %9396 = vmatmul.mubr.f32.gmra.mrb[14].mxu1 %v1233_v56  ;;  %v1197_v9 = vmul.f32 %v12830_v44, %v1159_v29 }
 0x2c8   : > { %v10355_v59 = vpop.eup %10354  ;;  %v1103_v30 = vadd.f32 1e-06, %v1071_v6  ;;  %v1198_v15 = vmul.f32 %v12830_v44, %v1160_v58  ;;  %9318 = vmatprep.mubr.f32.mxu0 %v1234_v61  ;;  %9398 = vmatprep.mubr.f32.mxu1 %v1234_v61 }
 0x2c9   : > { %v1104_v63 = vadd.f32 1e-06, %v1072_v14  ;;  %v10357_v60 = vpop.eup %10356  ;;  %v1037_v62 = vpop.xlane.xlu1 %1036  ;;  %v1235_v48 = vadd.f32 %v12836_v8, %v1197_v9  ;;  %v1161_v39 = vmul.f32 %v10355_v59, %v12759_v40 }
 0x2ca   : > { %v1039_v1 = vpop.xlane.xlu0 %1038  ;;  %10366 = vrsqrt.f32 %v1103_v30  ;;  %v1073_v31 = vmul.f32 0.0078125, %v1037_v62  ;;  %v1236_v0 = vadd.f32 %v12836_v8, %v1198_v15  ;;  %v1162_v2 = vmul.f32 %v10357_v60, %v12766_v52 }
 0x2cb   : > { %v1074_v10 = vmul.f32 0.0078125, %v1039_v1  ;;  %10368 = vrsqrt.f32 %v1104_v63  ;;  %9319 = vmatmul.mubr.f32.gmra.mrb[16].mxu0 %v1235_v48  ;;  %9399 = vmatmul.mubr.f32.gmra.mrb[16].mxu1 %v1235_v48  ;;  %v1199_v54 = vmul.f32 %v12830_v44, %v1161_v39 }
 0x2cc   : > { %v10359_v3 = vpop.eup %10358  ;;  %v1105_v35 = vadd.f32 1e-06, %v1073_v31  ;;  %9321 = vmatprep.mubr.f32.mxu0 %v1236_v0  ;;  %9401 = vmatprep.mubr.f32.mxu1 %v1236_v0  ;;  %v1200_v16 = vmul.f32 %v12830_v44, %v1162_v2  ;;  %v12936_v0 = vld [vmem:[%s17644_s9] ss:$0 sm:$0xff] }
 0x2cd   : > { %v1106_v32 = vadd.f32 1e-06, %v1074_v10  ;;  %v10361_v11 = vpop.eup %10360  ;;  %v1041_v23 = vpop.xlane.xlu1 %1040  ;;  %v1237_v33 = vadd.f32 %v12836_v8, %v1199_v54  ;;  %v1163_v36 = vmul.f32 %v10359_v3, %v12769_v53 }
 0x2ce   : > { %v1043_v40 = vpop.xlane.xlu0 %1042  ;;  %10370 = vrsqrt.f32 %v1105_v35  ;;  %v1075_v37 = vmul.f32 0.0078125, %v1041_v23  ;;  %v1164_v55 = vmul.f32 %v10361_v11, %v12776_v20  ;;  %v1238_v52 = vadd.f32 %v12836_v8, %v1200_v16 }
 0x2cf   : > { %v1076_v17 = vmul.f32 0.0078125, %v1043_v40  ;;  %10372 = vrsqrt.f32 %v1106_v32  ;;  %9322 = vmatmul.mubr.f32.gmra.mrb[18].mxu0 %v1237_v33  ;;  %9402 = vmatmul.mubr.f32.gmra.mrb[18].mxu1 %v1237_v33  ;;  %v1201_v38 = vmul.f32 %v12830_v44, %v1163_v36 }
 0x2d0   : > { %v10363_v34 = vpop.eup %10362  ;;  %v1107_v25 = vadd.f32 1e-06, %v1075_v37  ;;  %v1202_v45 = vmul.f32 %v12830_v44, %v1164_v55  ;;  %9324 = vmatprep.mubr.f32.mxu0 %v1238_v52  ;;  %9404 = vmatprep.mubr.f32.mxu1 %v1238_v52 }
 0x2d1   : > { %v1108_v4 = vadd.f32 1e-06, %v1076_v17  ;;  %v10365_v49 = vpop.eup %10364  ;;  %v1045_v53 = vpop.xlane.xlu1 %1044  ;;  %v1239_v12 = vadd.f32 %v12836_v8, %v1201_v38  ;;  %v1165_v20 = vmul.f32 %v10363_v34, %v12779_v21 }
 0x2d2   : > { %10374 = vrsqrt.f32 %v1107_v25  ;;  %v1077_v42 = vmul.f32 0.0078125, %v1045_v53  ;;  %v1240_v43 = vadd.f32 %v12836_v8, %v1202_v45  ;;  %v1166_v13 = vmul.f32 %v10365_v49, %v12786_v5 }
 0x2d3   : > { %10376 = vrsqrt.f32 %v1108_v4  ;;  %9325 = vmatmul.mubr.f32.gmra.mrb[20].mxu0 %v1239_v12  ;;  %9405 = vmatmul.mubr.f32.gmra.mrb[20].mxu1 %v1239_v12  ;;  %v1203_v27 = vmul.f32 %v12830_v44, %v1165_v20 }
 0x2d4   : > { %v10367_v41 = vpop.eup %10366  ;;  %v1109_v18 = vadd.f32 1e-06, %v1077_v42  ;;  %9327 = vmatprep.mubr.f32.mxu0 %v1240_v43  ;;  %9407 = vmatprep.mubr.f32.mxu1 %v1240_v43  ;;  %v1204_v50 = vmul.f32 %v12830_v44, %v1166_v13 }
 0x2d5   : > { %v10369_v51 = vpop.eup %10368  ;;  %v1241_v21 = vadd.f32 %v12836_v8, %v1203_v27  ;;  %v1167_v46 = vmul.f32 %v10367_v41, %v12789_v22 }
 0x2d6   : > { %10378 = vrsqrt.f32 %v1109_v18  ;;  %v1242_v56 = vadd.f32 %v12836_v8, %v1204_v50  ;;  %v1168_v5 = vmul.f32 %v10369_v51, %v12796_v7 }
 0x2d7   : > { %9328 = vmatmul.mubr.f32.gmra.mrb[22].mxu0 %v1241_v21  ;;  %9408 = vmatmul.mubr.f32.gmra.mrb[22].mxu1 %v1241_v21  ;;  %v1205_v19 = vmul.f32 %v12830_v44, %v1167_v46 }
 0x2d8   : > { %v10371_v29 = vpop.eup %10370  ;;  %9330 = vmatprep.mubr.f32.mxu0 %v1242_v56  ;;  %9410 = vmatprep.mubr.f32.mxu1 %v1242_v56  ;;  %v1206_v6 = vmul.f32 %v12830_v44, %v1168_v5 }
 0x2d9   : > { %v10373_v14 = vpop.eup %10372  ;;  %v1243_v58 = vadd.f32 %v12836_v8, %v1205_v19  ;;  %v1169_v61 = vmul.f32 %v10371_v29, %v12799_v24 }
 0x2da   : > { %v1244_v22 = vadd.f32 %v12836_v8, %v1206_v6  ;;  %v1170_v9 = vmul.f32 %v10373_v14, %v12806_v47 }
 0x2db   : > { %9331 = vmatmul.mubr.f32.gmra.mrb[24].mxu0 %v1243_v58  ;;  %9411 = vmatmul.mubr.f32.gmra.mrb[24].mxu1 %v1243_v58  ;;  %v1207_v7 = vmul.f32 %v12830_v44, %v1169_v61 }
 0x2dc   : > { %v10375_v59 = vpop.eup %10374  ;;  %9333 = vmatprep.mubr.f32.mxu0 %v1244_v22  ;;  %9413 = vmatprep.mubr.f32.mxu1 %v1244_v22  ;;  %v1208_v30 = vmul.f32 %v12830_v44, %v1170_v9 }
 0x2dd   : > { %v10377_v63 = vpop.eup %10376  ;;  %v1245_v15 = vadd.f32 %v12836_v8, %v1207_v7  ;;  %v1171_v60 = vmul.f32 %v10375_v59, %v12809_v26 }
 0x2de   : > { %v1246_v24 = vadd.f32 %v12836_v8, %v1208_v30  ;;  %v1172_v62 = vmul.f32 %v10377_v63, %v12816_v57 }
 0x2df   : > { %9334 = vmatmul.mubr.f32.gmra.mrb[26].mxu0 %v1245_v15  ;;  %9414 = vmatmul.mubr.f32.gmra.mrb[26].mxu1 %v1245_v15  ;;  %v1209_v47 = vmul.f32 %v12830_v44, %v1171_v60 }
 0x2e0   : > { %v10379_v1 = vpop.eup %10378  ;;  %9336 = vmatprep.mubr.f32.mxu0 %v1246_v24  ;;  %9416 = vmatprep.mubr.f32.mxu1 %v1246_v24  ;;  %v1210_v48 = vmul.f32 %v12830_v44, %v1172_v62 }
 0x2e1   : > { %v1247_v39 = vadd.f32 %v12836_v8, %v1209_v47  ;;  %v1173_v31 = vmul.f32 %v10379_v1, %v12819_v28  ;;  %v12941_v28 = vld [vmem:[%s17645_s28] ss:$0 sm:$0xff] }
 0x2e2   : > { %v1248_v10 = vadd.f32 %v12836_v8, %v1210_v48 }
 0x2e3   : > { %9337 = vmatmul.mubr.f32.gmra.mrb[28].mxu0 %v1247_v39  ;;  %9417 = vmatmul.mubr.f32.gmra.mrb[28].mxu1 %v1247_v39  ;;  %v1211_v26 = vmul.f32 %v12830_v44, %v1173_v31 }
 0x2e4   : > { %9339 = vmatprep.mubr.f32.mxu0 %v1248_v10  ;;  %9419 = vmatprep.mubr.f32.mxu1 %v1248_v10 }
 0x2e5   : > { %v1249_v57 = vadd.f32 %v12836_v8, %v1211_v26 }
 0x2e7   : > { %9340 = vmatmul.mubr.f32.gmra.mrb[30].mxu0 %v1249_v57  ;;  %9420 = vmatmul.mubr.f32.gmra.mrb[30].mxu1 %v1249_v57 }
 0x37e   : > { %v9296_v54 = vpop.f32.mrb[0].mxu0  ;;  %v9376_v2 = vpop.f32.mrb[0].mxu1 }
 0x37f   : > { %v1345_v44 = vadd.f32 %v9296_v54, %v12936_v0  ;;  %v1625_v3 = vadd.f32 %v9376_v2, %v12941_v28  ;;  %v1339_v35 = vpop.f32.mrb[1].mxu0  ;;  %v1619_v8 = vpop.f32.mrb[1].mxu1 }
 0x380   : > { %v1340_v32 = vadd.f32 %v12936_v0, %v1339_v35  ;;  %v1620_v11 = vadd.f32 %v12941_v28, %v1619_v8 }
 0x381   : > { %1499 = vst [vmem:[#allocation2 + $0x8] sm:$0xff] %v1345_v44  ;;  %1779 = vst [vmem:[#allocation3 + $0x8] sm:$0xff] %v1625_v3 }
 0x382   : > { %1498 = vst [vmem:[#allocation2] sm:$0xff] %v1340_v32  ;;  %1778 = vst [vmem:[#allocation3] sm:$0xff] %v1620_v11  ;;  %v9299_v23 = vpop.f32.mrb[2].mxu0  ;;  %v9379_v40 = vpop.f32.mrb[2].mxu1 }
 0x383   : > { %v1355_v33 = vadd.f32 %v9299_v23, %v12936_v0  ;;  %v1635_v16 = vadd.f32 %v9379_v40, %v12941_v28  ;;  %v1349_v36 = vpop.f32.mrb[3].mxu0  ;;  %v1629_v37 = vpop.f32.mrb[3].mxu1 }
 0x384   : > { %v1350_v17 = vadd.f32 %v12936_v0, %v1349_v36  ;;  %v1630_v55 = vadd.f32 %v12941_v28, %v1629_v37 }
 0x385   : > { %1501 = vst [vmem:[#allocation2 + $0x18] sm:$0xff] %v1355_v33  ;;  %1781 = vst [vmem:[#allocation3 + $0x18] sm:$0xff] %v1635_v16 }
 0x386   : > { %1500 = vst [vmem:[#allocation2 + $0x10] sm:$0xff] %v1350_v17  ;;  %1780 = vst [vmem:[#allocation3 + $0x10] sm:$0xff] %v1630_v55  ;;  %v9302_v52 = vpop.f32.mrb[4].mxu0  ;;  %v9382_v38 = vpop.f32.mrb[4].mxu1 }
 0x387   : > { %v1365_v34 = vadd.f32 %v9302_v52, %v12936_v0  ;;  %v1645_v25 = vadd.f32 %v9382_v38, %v12941_v28  ;;  %v1359_v4 = vpop.f32.mrb[5].mxu0  ;;  %v1639_v45 = vpop.f32.mrb[5].mxu1 }
 0x388   : > { %v1360_v49 = vadd.f32 %v12936_v0, %v1359_v4  ;;  %v1640_v53 = vadd.f32 %v12941_v28, %v1639_v45 }
 0x389   : > { %1503 = vst [vmem:[#allocation2 + $0x28] sm:$0xff] %v1365_v34  ;;  %1783 = vst [vmem:[#allocation3 + $0x28] sm:$0xff] %v1645_v25 }
 0x38a   : > { %1502 = vst [vmem:[#allocation2 + $0x20] sm:$0xff] %v1360_v49  ;;  %1782 = vst [vmem:[#allocation3 + $0x20] sm:$0xff] %v1640_v53  ;;  %v9305_v12 = vpop.f32.mrb[6].mxu0  ;;  %v9385_v20 = vpop.f32.mrb[6].mxu1 }
 0x38b   : > { %v1375_v42 = vadd.f32 %v9305_v12, %v12936_v0  ;;  %v1655_v43 = vadd.f32 %v9385_v20, %v12941_v28  ;;  %v1369_v13 = vpop.f32.mrb[7].mxu0  ;;  %v1649_v27 = vpop.f32.mrb[7].mxu1 }
 0x38c   : > { %v1370_v41 = vadd.f32 %v12936_v0, %v1369_v13  ;;  %v1650_v18 = vadd.f32 %v12941_v28, %v1649_v27 }
 0x38d   : > { %1505 = vst [vmem:[#allocation2 + $0x38] sm:$0xff] %v1375_v42  ;;  %1785 = vst [vmem:[#allocation3 + $0x38] sm:$0xff] %v1655_v43 }
 0x38e   : > { %1504 = vst [vmem:[#allocation2 + $0x30] sm:$0xff] %v1370_v41  ;;  %1784 = vst [vmem:[#allocation3 + $0x30] sm:$0xff] %v1650_v18  ;;  %v9308_v50 = vpop.f32.mrb[8].mxu0  ;;  %v9388_v51 = vpop.f32.mrb[8].mxu1 }
 0x38f   : > { %v1385_v21 = vadd.f32 %v9308_v50, %v12936_v0  ;;  %v1665_v46 = vadd.f32 %v9388_v51, %v12941_v28  ;;  %v1379_v56 = vpop.f32.mrb[9].mxu0  ;;  %v1659_v5 = vpop.f32.mrb[9].mxu1 }
 0x390   : > { %v1380_v19 = vadd.f32 %v12936_v0, %v1379_v56  ;;  %v1660_v29 = vadd.f32 %v12941_v28, %v1659_v5 }
 0x391   : > { %1507 = vst [vmem:[#allocation2 + $0x48] sm:$0xff] %v1385_v21  ;;  %1787 = vst [vmem:[#allocation3 + $0x48] sm:$0xff] %v1665_v46 }
 0x392   : > { %1506 = vst [vmem:[#allocation2 + $0x40] sm:$0xff] %v1380_v19  ;;  %1786 = vst [vmem:[#allocation3 + $0x40] sm:$0xff] %v1660_v29  ;;  %v9311_v6 = vpop.f32.mrb[10].mxu0  ;;  %v9391_v14 = vpop.f32.mrb[10].mxu1 }
 0x393   : > { %v1395_v58 = vadd.f32 %v9311_v6, %v12936_v0  ;;  %v1675_v61 = vadd.f32 %v9391_v14, %v12941_v28  ;;  %v1389_v22 = vpop.f32.mrb[11].mxu0  ;;  %v1669_v9 = vpop.f32.mrb[11].mxu1 }
 0x394   : > { %v1390_v7 = vadd.f32 %v12936_v0, %v1389_v22  ;;  %v1670_v59 = vadd.f32 %v12941_v28, %v1669_v9 }
 0x395   : > { %1509 = vst [vmem:[#allocation2 + $0x58] sm:$0xff] %v1395_v58  ;;  %1789 = vst [vmem:[#allocation3 + $0x58] sm:$0xff] %v1675_v61 }
 0x396   : > { %1508 = vst [vmem:[#allocation2 + $0x50] sm:$0xff] %v1390_v7  ;;  %1788 = vst [vmem:[#allocation3 + $0x50] sm:$0xff] %v1670_v59  ;;  %v9314_v30 = vpop.f32.mrb[12].mxu0  ;;  %v9394_v63 = vpop.f32.mrb[12].mxu1 }
 0x397   : > { %v1405_v15 = vadd.f32 %v9314_v30, %v12936_v0  ;;  %v1685_v60 = vadd.f32 %v9394_v63, %v12941_v28  ;;  %v1399_v24 = vpop.f32.mrb[13].mxu0  ;;  %v1679_v62 = vpop.f32.mrb[13].mxu1 }
 0x398   : > { %v1400_v47 = vadd.f32 %v12936_v0, %v1399_v24  ;;  %v1680_v1 = vadd.f32 %v12941_v28, %v1679_v62 }
 0x399   : > { %1511 = vst [vmem:[#allocation2 + $0x68] sm:$0xff] %v1405_v15  ;;  %1791 = vst [vmem:[#allocation3 + $0x68] sm:$0xff] %v1685_v60 }
 0x39a   : > { %1510 = vst [vmem:[#allocation2 + $0x60] sm:$0xff] %v1400_v47  ;;  %1790 = vst [vmem:[#allocation3 + $0x60] sm:$0xff] %v1680_v1  ;;  %v9317_v48 = vpop.f32.mrb[14].mxu0  ;;  %v9397_v39 = vpop.f32.mrb[14].mxu1 }
 0x39b   : > { %v1415_v31 = vadd.f32 %v9317_v48, %v12936_v0  ;;  %v1695_v10 = vadd.f32 %v9397_v39, %v12941_v28  ;;  %v1409_v26 = vpop.f32.mrb[15].mxu0  ;;  %v1689_v57 = vpop.f32.mrb[15].mxu1 }
 0x39c   : > { %v1410_v54 = vadd.f32 %v12936_v0, %v1409_v26  ;;  %v1690_v2 = vadd.f32 %v12941_v28, %v1689_v57 }
 0x39d   : > { %1513 = vst [vmem:[#allocation2 + $0x78] sm:$0xff] %v1415_v31  ;;  %1793 = vst [vmem:[#allocation3 + $0x78] sm:$0xff] %v1695_v10 }
 0x39e   : > { %1512 = vst [vmem:[#allocation2 + $0x70] sm:$0xff] %v1410_v54  ;;  %1792 = vst [vmem:[#allocation3 + $0x70] sm:$0xff] %v1690_v2  ;;  %v9320_v44 = vpop.f32.mrb[16].mxu0  ;;  %v9400_v3 = vpop.f32.mrb[16].mxu1 }
 0x39f   : > { %v1425_v35 = vadd.f32 %v9320_v44, %v12936_v0  ;;  %v1705_v8 = vadd.f32 %v9400_v3, %v12941_v28  ;;  %v1419_v32 = vpop.f32.mrb[17].mxu0  ;;  %v1699_v11 = vpop.f32.mrb[17].mxu1 }
 0x3a0   : > { %v1420_v23 = vadd.f32 %v12936_v0, %v1419_v32  ;;  %v1700_v40 = vadd.f32 %v12941_v28, %v1699_v11 }
 0x3a1   : > { %1515 = vst [vmem:[#allocation2 + $0x88] sm:$0xff] %v1425_v35  ;;  %1795 = vst [vmem:[#allocation3 + $0x88] sm:$0xff] %v1705_v8 }
 0x3a2   : > { %1514 = vst [vmem:[#allocation2 + $0x80] sm:$0xff] %v1420_v23  ;;  %1794 = vst [vmem:[#allocation3 + $0x80] sm:$0xff] %v1700_v40  ;;  %v9323_v33 = vpop.f32.mrb[18].mxu0  ;;  %v9403_v16 = vpop.f32.mrb[18].mxu1 }
 0x3a3   : > { %v1435_v36 = vadd.f32 %v9323_v33, %v12936_v0  ;;  %v1715_v37 = vadd.f32 %v9403_v16, %v12941_v28  ;;  %v1429_v17 = vpop.f32.mrb[19].mxu0  ;;  %v1709_v55 = vpop.f32.mrb[19].mxu1 }
 0x3a4   : > { %v1430_v52 = vadd.f32 %v12936_v0, %v1429_v17  ;;  %v1710_v38 = vadd.f32 %v12941_v28, %v1709_v55 }
 0x3a5   : > { %1517 = vst [vmem:[#allocation2 + $0x98] sm:$0xff] %v1435_v36  ;;  %1797 = vst [vmem:[#allocation3 + $0x98] sm:$0xff] %v1715_v37 }
 0x3a6   : > { %1516 = vst [vmem:[#allocation2 + $0x90] sm:$0xff] %v1430_v52  ;;  %1796 = vst [vmem:[#allocation3 + $0x90] sm:$0xff] %v1710_v38  ;;  %v9326_v34 = vpop.f32.mrb[20].mxu0  ;;  %v9406_v25 = vpop.f32.mrb[20].mxu1 }
 0x3a7   : > { %v1445_v4 = vadd.f32 %v9326_v34, %v12936_v0  ;;  %v1725_v45 = vadd.f32 %v9406_v25, %v12941_v28  ;;  %v1439_v49 = vpop.f32.mrb[21].mxu0  ;;  %v1719_v53 = vpop.f32.mrb[21].mxu1 }
 0x3a8   : > { %v1440_v12 = vadd.f32 %v12936_v0, %v1439_v49  ;;  %v1720_v20 = vadd.f32 %v12941_v28, %v1719_v53 }
 0x3a9   : > { %1519 = vst [vmem:[#allocation2 + $0xa8] sm:$0xff] %v1445_v4  ;;  %1799 = vst [vmem:[#allocation3 + $0xa8] sm:$0xff] %v1725_v45 }
 0x3aa   : > { %1518 = vst [vmem:[#allocation2 + $0xa0] sm:$0xff] %v1440_v12  ;;  %1798 = vst [vmem:[#allocation3 + $0xa0] sm:$0xff] %v1720_v20  ;;  %v9329_v42 = vpop.f32.mrb[22].mxu0  ;;  %v9409_v43 = vpop.f32.mrb[22].mxu1 }
 0x3ab   : > { %v1455_v13 = vadd.f32 %v9329_v42, %v12936_v0  ;;  %v1735_v27 = vadd.f32 %v9409_v43, %v12941_v28  ;;  %v1449_v41 = vpop.f32.mrb[23].mxu0  ;;  %v1729_v18 = vpop.f32.mrb[23].mxu1 }
 0x3ac   : > { %v1450_v50 = vadd.f32 %v12936_v0, %v1449_v41  ;;  %v1730_v51 = vadd.f32 %v12941_v28, %v1729_v18 }
 0x3ad   : > { %1521 = vst [vmem:[#allocation2 + $0xb8] sm:$0xff] %v1455_v13  ;;  %1801 = vst [vmem:[#allocation3 + $0xb8] sm:$0xff] %v1735_v27 }
 0x3ae   : > { %1520 = vst [vmem:[#allocation2 + $0xb0] sm:$0xff] %v1450_v50  ;;  %1800 = vst [vmem:[#allocation3 + $0xb0] sm:$0xff] %v1730_v51  ;;  %v9332_v21 = vpop.f32.mrb[24].mxu0  ;;  %v9412_v46 = vpop.f32.mrb[24].mxu1 }
 0x3af   : > { %v1465_v56 = vadd.f32 %v9332_v21, %v12936_v0  ;;  %v1745_v5 = vadd.f32 %v9412_v46, %v12941_v28  ;;  %v1459_v19 = vpop.f32.mrb[25].mxu0  ;;  %v1739_v29 = vpop.f32.mrb[25].mxu1 }
 0x3b0   : > { %v1460_v6 = vadd.f32 %v12936_v0, %v1459_v19  ;;  %v1740_v14 = vadd.f32 %v12941_v28, %v1739_v29 }
 0x3b1   : > { %1523 = vst [vmem:[#allocation2 + $0xc8] sm:$0xff] %v1465_v56  ;;  %1803 = vst [vmem:[#allocation3 + $0xc8] sm:$0xff] %v1745_v5 }
 0x3b2   : > { %1522 = vst [vmem:[#allocation2 + $0xc0] sm:$0xff] %v1460_v6  ;;  %1802 = vst [vmem:[#allocation3 + $0xc0] sm:$0xff] %v1740_v14  ;;  %v9335_v58 = vpop.f32.mrb[26].mxu0  ;;  %v9415_v61 = vpop.f32.mrb[26].mxu1 }
 0x3b3   : > { %v1475_v22 = vadd.f32 %v9335_v58, %v12936_v0  ;;  %v1755_v9 = vadd.f32 %v9415_v61, %v12941_v28  ;;  %v1469_v7 = vpop.f32.mrb[27].mxu0  ;;  %v1749_v59 = vpop.f32.mrb[27].mxu1 }
 0x3b4   : > { %v1470_v30 = vadd.f32 %v12936_v0, %v1469_v7  ;;  %v1750_v63 = vadd.f32 %v12941_v28, %v1749_v59 }
 0x3b5   : > { %1525 = vst [vmem:[#allocation2 + $0xd8] sm:$0xff] %v1475_v22  ;;  %1805 = vst [vmem:[#allocation3 + $0xd8] sm:$0xff] %v1755_v9 }
 0x3b6   : > { %1524 = vst [vmem:[#allocation2 + $0xd0] sm:$0xff] %v1470_v30  ;;  %1804 = vst [vmem:[#allocation3 + $0xd0] sm:$0xff] %v1750_v63  ;;  %v9338_v15 = vpop.f32.mrb[28].mxu0  ;;  %v9418_v60 = vpop.f32.mrb[28].mxu1 }
 0x3b7   : > { %v1485_v24 = vadd.f32 %v9338_v15, %v12936_v0  ;;  %v1765_v62 = vadd.f32 %v9418_v60, %v12941_v28  ;;  %v1479_v47 = vpop.f32.mrb[29].mxu0  ;;  %v1759_v1 = vpop.f32.mrb[29].mxu1 }
 0x3b8   : > { %v1480_v48 = vadd.f32 %v12936_v0, %v1479_v47  ;;  %v1760_v39 = vadd.f32 %v12941_v28, %v1759_v1 }
 0x3b9   : > { %1527 = vst [vmem:[#allocation2 + $0xe8] sm:$0xff] %v1485_v24  ;;  %1807 = vst [vmem:[#allocation3 + $0xe8] sm:$0xff] %v1765_v62 }
 0x3ba   : > { %1526 = vst [vmem:[#allocation2 + $0xe0] sm:$0xff] %v1480_v48  ;;  %1806 = vst [vmem:[#allocation3 + $0xe0] sm:$0xff] %v1760_v39  ;;  %v9341_v31 = vpop.f32.mrb[30].mxu0  ;;  %v9421_v10 = vpop.f32.mrb[30].mxu1 }
 0x3bb   : > { %v1495_v26 = vadd.f32 %v9341_v31, %v12936_v0  ;;  %v1775_v57 = vadd.f32 %v9421_v10, %v12941_v28  ;;  %v1489_v54 = vpop.f32.mrb[31].mxu0  ;;  %v1769_v2 = vpop.f32.mrb[31].mxu1 }
 0x3bc   : > { %v1490_v44 = vadd.f32 %v12936_v0, %v1489_v54  ;;  %v1770_v3 = vadd.f32 %v12941_v28, %v1769_v2 }
 0x3bd   : > { %1529 = vst [vmem:[#allocation2 + $0xf8] sm:$0xff] %v1495_v26  ;;  %1809 = vst [vmem:[#allocation3 + $0xf8] sm:$0xff] %v1775_v57 }
 0x3be   : > { %1528 = vst [vmem:[#allocation2 + $0xf0] sm:$0xff] %v1490_v44  ;;  %1808 = vst [vmem:[#allocation3 + $0xf0] sm:$0xff] %v1770_v3 }
 0x3bf PF: > { %s17646_s10 = sld [smem:[#allocation29_spill]]  ;;  %v2051_v34 = vld [vmem:[#allocation11] sm:$0xff]  ;;  %v2052_v25 = vld [vmem:[#allocation11 + $0x8] sm:$0xff]  ;;  %v2053_v4 = vld [vmem:[#allocation11 + $0x10] sm:$0xff]  ;;  %vm2352_vm0 = vcmask 261120   ;;  %s17649_s21 = sld [smem:[#allocation152_spill]] }
 0x3c0   : > { %v9598_v45 = vpack.c.bf16 %v2052_v25, %v2051_v34  ;;  %v2054_v49 = vld [vmem:[#allocation11 + $0x18] sm:$0xff]  ;;  %v2055_v54 = vld [vmem:[#allocation11 + $0x20] sm:$0xff]  ;;  %v2056_v2 = vld [vmem:[#allocation11 + $0x28] sm:$0xff]  ;;  %s17650_s0 = sld [smem:[#allocation153_spill]]  ;;  %s17651_s29 = sld [smem:[#allocation155_spill]]  ;;  %vm4056_vm2 = vcmask 523520  }
 0x3c1   : > { %v9602_v53 = vpack.c.bf16 %v2054_v49, %v2053_v4  ;;  %v2058_v34 = vld [vmem:[#allocation11 + $0x38] sm:$0xff]  ;;  %vm13141_vm1 = vmpackc.low %vm2352_vm0, %vm2352_vm0  ;;  %s11990_s9 = smov 64   ;;  %vm5022_vm3 = vcmask 785920   ;;  %vm5988_vm4 = vcmask 1048320   ;;  %s17972_s12 = sld [smem:[#allocation161_spill]] }
 0x3c2   : > { %9599 = vmatprep.subr.bf16.mxu0 %v9598_v45  ;;  %p18132_p2 = scmp.ne.s32.totalorder %s17621_s23, 0  ;;  %s11993_s6 = smov [#allocation20]  }
 0x3c3   : > { %9601 = vmatpush3.bf16.msra.mxu0 %v9598_v45 }
 0x3c4   : > { %9603 = vmatprep.subr.bf16.mxu0 %v9602_v53 }
 0x3c5   : > { %s8050_s7 = sshll.u32 %s17646_s10, 7 }
 0x3c6   : > { %s13011_s14 = scalar_lea.vmem %s12502_s19, %s8050_s7 [#allocation5]  ;;  %s11989_s19 = smov 96  }
 0x3c7   : > { %v1812_v0 = vld [vmem:[%s13011_s14] sm:$0xff]  ;;  %v1814_v28 = vld [vmem:[%s13011_s14 + $0x10] sm:$0xff]  ;;  %v1813_v35 = vld [vmem:[%s13011_s14 + $0x8] sm:$0xff]  ;;  %9605 = vmatpush3.bf16.msra.mxu0 %v9602_v53  ;;  %s2315_s11 = sshra.s32 %s8050_s7, 3  ;;  %s11991_s7 = smov 32  }
 0x3c8   : > { %1830 = vadd.xlane.f32.xlu0 %v1812_v0  ;;  %1834 = vadd.xlane.f32.xlu1 %v1814_v28  ;;  %v1815_v8 = vld [vmem:[%s13011_s14 + $0x18] sm:$0xff]  ;;  %v1816_v32 = vld [vmem:[%s13011_s14 + $0x20] sm:$0xff]  ;;  %v1817_v11 = vld [vmem:[%s13011_s14 + $0x28] sm:$0xff]  ;;  %s8362_s17 = sshll.u32 %s2315_s11, 4 }
 0x3c9   : > { %v13020_v23 = vld [vmem:[%s13011_s14 + $0x30] sm:$0xff]  ;;  %v13023_v40 = vld [vmem:[%s13011_s14 + $0x38] sm:$0xff]  ;;  %v13028_v33 = vld [vmem:[%s13011_s14 + $0x40] sm:$0xff]  ;;  %s13433_s28 = scalar_lea.vmem [#allocation10], %s8362_s17  ;;  %s18112_s17 = sld [smem:[#allocation167_spill]] }
 0x3ca   : > { %v13031_v16 = vld [vmem:[%s13011_s14 + $0x48] sm:$0xff]  ;;  %v13036_v36 = vld [vmem:[%s13011_s14 + $0x50] sm:$0xff]  ;;  %v13039_v37 = vld [vmem:[%s13011_s14 + $0x58] sm:$0xff] }
 0x3cb   : > { %v13044_v17 = vld [vmem:[%s13011_s14 + $0x60] sm:$0xff]  ;;  %v13047_v55 = vld [vmem:[%s13011_s14 + $0x68] sm:$0xff]  ;;  %v13052_v52 = vld [vmem:[%s13011_s14 + $0x70] sm:$0xff] }
 0x3cc   : > { %1832 = vadd.xlane.f32.xlu0 %v1813_v35  ;;  %1836 = vadd.xlane.f32.xlu1 %v1815_v8  ;;  %v13055_v38 = vld [vmem:[%s13011_s14 + $0x78] sm:$0xff] }
 0x3d0   : > { %1838 = vadd.xlane.f32.xlu0 %v1816_v32  ;;  %1840 = vadd.xlane.f32.xlu1 %v1817_v11 }
 0x3d4   : > { %1842 = vadd.xlane.f32.xlu0 %v13020_v23  ;;  %1844 = vadd.xlane.f32.xlu1 %v13023_v40 }
 0x3d8   : > { %1846 = vadd.xlane.f32.xlu0 %v13028_v33  ;;  %1848 = vadd.xlane.f32.xlu1 %v13031_v16 }
 0x3dc   : > { %1850 = vadd.xlane.f32.xlu0 %v13036_v36  ;;  %1852 = vadd.xlane.f32.xlu1 %v13039_v37 }
 0x3e0   : > { %1854 = vadd.xlane.f32.xlu0 %v13044_v17  ;;  %1856 = vadd.xlane.f32.xlu1 %v13047_v55 }
 0x3e4   : > { %1858 = vadd.xlane.f32.xlu0 %v13052_v52  ;;  %1860 = vadd.xlane.f32.xlu1 %v13055_v38 }
 0x455   : > { %v1831_v12 = vpop.xlane.xlu0 %1830  ;;  %v1835_v20 = vpop.xlane.xlu1 %1834 }
 0x456   : > { %v1863_v42 = vmul.f32 0.0078125, %v1831_v12  ;;  %v1865_v43 = vmul.f32 0.0078125, %v1835_v20 }
 0x458   : > { %v13059_v13 = vsub.f32 %v1812_v0, %v1863_v42  ;;  %v13061_v27 = vsub.f32 %v1814_v28, %v1865_v43  ;;  %v9606_v0 = vpack.c.bf16 %v2056_v2, %v2055_v54  ;;  %v2059_v42 = vld [vmem:[#allocation11 + $0x40] sm:$0xff]  ;;  %v2060_v43 = vld [vmem:[#allocation11 + $0x48] sm:$0xff]  ;;  %v2221_v2 = vld [vmem:[#allocation2 + $0x10] sm:$0xff] }
 0x459   : > { %v1833_v41 = vpop.xlane.xlu0 %1832  ;;  %v1837_v18 = vpop.xlane.xlu1 %1836 }
 0x45a   : > { %v1864_v50 = vmul.f32 0.0078125, %v1833_v41  ;;  %v1895_v51 = vmul.f32 %v13059_v13, %v13059_v13  ;;  %v1866_v21 = vmul.f32 0.0078125, %v1837_v18  ;;  %v1897_v46 = vmul.f32 %v13061_v27, %v13061_v27  ;;  %9607 = vmatprep.subr.bf16.mxu0 %v9606_v0 }
 0x45b   : > { %9609 = vmatpush3.bf16.msra.mxu0 %v9606_v0  ;;  %v13161_v0 = vld [vmem:[#allocation2 + $0xa0] sm:$0xff] }
 0x45c   : > { %1911 = vadd.xlane.f32.xlu0 %v1895_v51  ;;  %v13067_v56 = vsub.f32 %v1813_v35, %v1864_v50  ;;  %v13069_v5 = vsub.f32 %v1815_v8, %v1866_v21  ;;  %v9614_v51 = vpack.c.bf16 %v2060_v43, %v2059_v42  ;;  %v2245_v43 = vld [vmem:[#allocation2 + $0xd0] sm:$0xff] }
 0x45d   : > { %v1839_v19 = vpop.xlane.xlu0 %1838  ;;  %v1841_v29 = vpop.xlane.xlu1 %1840 }
 0x45e   : > { %v1867_v6 = vmul.f32 0.0078125, %v1839_v19  ;;  %v1896_v14 = vmul.f32 %v13067_v56, %v13067_v56  ;;  %v1868_v58 = vmul.f32 0.0078125, %v1841_v29  ;;  %v1898_v61 = vmul.f32 %v13069_v5, %v13069_v5  ;;  %v2062_v19 = vld [vmem:[#allocation11 + $0x58] sm:$0xff] }
 0x460   : > { %1915 = vadd.xlane.f32.xlu0 %v1897_v46  ;;  %1913 = vadd.xlane.f32.xlu1 %v1896_v14  ;;  %v13075_v22 = vsub.f32 %v1816_v32, %v1867_v6  ;;  %v13077_v9 = vsub.f32 %v1817_v11, %v1868_v58  ;;  %v2061_v46 = vld [vmem:[#allocation11 + $0x50] sm:$0xff]  ;;  %v2063_v58 = vld [vmem:[#allocation11 + $0x60] sm:$0xff] }
 0x461   : > { %v1843_v7 = vpop.xlane.xlu0 %1842  ;;  %v1845_v59 = vpop.xlane.xlu1 %1844  ;;  %v9618_v6 = vpack.c.bf16 %v2062_v19, %v2061_v46  ;;  %v2230_v46 = vld [vmem:[#allocation2 + $0x58] sm:$0xff] }
 0x462   : > { %v1869_v30 = vmul.f32 0.0078125, %v1843_v7  ;;  %v1899_v63 = vmul.f32 %v13075_v22, %v13075_v22  ;;  %v1870_v15 = vmul.f32 0.0078125, %v1845_v59  ;;  %v1900_v60 = vmul.f32 %v13077_v9, %v13077_v9  ;;  %v2066_v7 = vld [vmem:[#allocation11 + $0x78] sm:$0xff] }
 0x464   : > { %1917 = vadd.xlane.f32.xlu1 %v1898_v61  ;;  %1919 = vadd.xlane.f32.xlu0 %v1899_v63  ;;  %v13084_v24 = vsub.f32 %v13020_v23, %v1869_v30  ;;  %v13087_v62 = vsub.f32 %v13023_v40, %v1870_v15  ;;  %v13133_v30 = vld [vmem:[#allocation2 + $0x80] sm:$0xff]  ;;  %v13135_v63 = vld [vmem:[#allocation2 + $0x88] sm:$0xff] }
 0x465   : > { %v1847_v47 = vpop.xlane.xlu0 %1846  ;;  %v1849_v1 = vpop.xlane.xlu1 %1848  ;;  %v2219_v15 = vld [vmem:[#allocation2] sm:$0xff] }
 0x466   : > { %v1871_v48 = vmul.f32 0.0078125, %v1847_v47  ;;  %v1901_v39 = vmul.f32 %v13084_v24, %v13084_v24  ;;  %v1872_v31 = vmul.f32 0.0078125, %v1849_v1  ;;  %v1902_v10 = vmul.f32 %v13087_v62, %v13087_v62  ;;  %v2220_v1 = vld [vmem:[#allocation2 + $0x8] sm:$0xff] }
 0x468   : > { %1921 = vadd.xlane.f32.xlu1 %v1900_v60  ;;  %1923 = vadd.xlane.f32.xlu0 %v1901_v39  ;;  %v13094_v26 = vsub.f32 %v13028_v33, %v1871_v48  ;;  %v13097_v57 = vsub.f32 %v13031_v16, %v1872_v31  ;;  %v2057_v16 = vld [vmem:[#allocation11 + $0x30] sm:$0xff]  ;;  %v9630_v60 = vpack.c.bf16 %v13135_v63, %v13133_v30  ;;  %v13147_v31 = vld [vmem:[#allocation2 + $0x98] sm:$0xff] }
 0x469   : > { %v1851_v44 = vpop.xlane.xlu0 %1850  ;;  %v1853_v3 = vpop.xlane.xlu1 %1852  ;;  %v9610_v49 = vpack.c.bf16 %v2058_v34, %v2057_v16  ;;  %v13145_v48 = vld [vmem:[#allocation2 + $0x90] sm:$0xff]  ;;  %v9633_v39 = vpack.c.bf16 %v2220_v1, %v2219_v15  ;;  %v2226_v34 = vld [vmem:[#allocation2 + $0x38] sm:$0xff] }
 0x46a   : > { %v1873_v28 = vmul.f32 0.0078125, %v1851_v44  ;;  %v1903_v35 = vmul.f32 %v13094_v26, %v13094_v26  ;;  %v1874_v8 = vmul.f32 0.0078125, %v1853_v3  ;;  %v1904_v32 = vmul.f32 %v13097_v57, %v13097_v57  ;;  %9632 = vmatprep.subr.msk.bf16.mxu1 %vm13141_vm1, %v9630_v60  ;;  %v2222_v44 = vld [vmem:[#allocation2 + $0x18] sm:$0xff]  ;;  %v2225_v16 = vld [vmem:[#allocation2 + $0x30] sm:$0xff]  ;;  %v13203_v60 = vld [vmem:[#allocation2 + $0xe0] sm:$0xff] }
 0x46b   : > { %9611 = vmatprep.subr.bf16.mxu0 %v9610_v49  ;;  %v9636_v54 = vpack.c.bf16 %v13147_v31, %v13145_v48  ;;  %9635 = vmatpush3.bf16.xpose.msk.msra.mxu1 %vm13141_vm1, %v9633_v39  ;;  %v10395_v3 = vpack.i.bf16 %v2222_v44, %v2221_v2  ;;  %v9651_v19 = vpack.c.bf16 %v2226_v34, %v2225_v16 }
 0x46c   : > { %1925 = vadd.xlane.f32.xlu1 %v1902_v10  ;;  %1927 = vadd.xlane.f32.xlu0 %v1903_v35  ;;  %v13104_v11 = vsub.f32 %v13036_v36, %v1873_v28  ;;  %v13107_v23 = vsub.f32 %v13039_v37, %v1874_v8  ;;  %v13149_v10 = vpack.i.bf16 %v2220_v1, %v2219_v15  ;;  %v13163_v28 = vld [vmem:[#allocation2 + $0xa8] sm:$0xff]  ;;  %v2223_v35 = vld [vmem:[#allocation2 + $0x20] sm:$0xff] }
 0x46d   : > { %v1855_v40 = vpop.xlane.xlu0 %1854  ;;  %v1857_v33 = vpop.xlane.xlu1 %1856  ;;  %9613 = vmatpush3.bf16.msra.mxu0 %v9610_v49  ;;  %9638 = vmatprep.subr.msk.bf16.mxu1 %vm13141_vm1, %v9636_v54  ;;  %v2224_v8 = vld [vmem:[#allocation2 + $0x28] sm:$0xff]  ;;  %v2227_v49 = vld [vmem:[#allocation2 + $0x40] sm:$0xff] }
 0x46e   : > { %v1875_v25 = vmul.f32 0.0078125, %v1855_v40  ;;  %v1905_v4 = vmul.f32 %v13104_v11, %v13104_v11  ;;  %v1876_v45 = vmul.f32 0.0078125, %v1857_v33  ;;  %v1906_v36 = vmul.f32 %v13107_v23, %v13107_v23  ;;  %9615 = vmatprep.subr.bf16.mxu0 %v9614_v51  ;;  %v13205_v1 = vld [vmem:[#allocation2 + $0xe8] sm:$0xff] }
 0x46f   : > { %v10405_v40 = vpack.i.bf16 %v2224_v8, %v2223_v35  ;;  %v9642_v33 = vpack.c.bf16 %v13163_v28, %v13161_v0  ;;  %v9666_v54 = vpack.c.bf16 %v13205_v1, %v13203_v60 }
 0x470   : > { %1929 = vadd.xlane.f32.xlu1 %v1904_v32  ;;  %1931 = vadd.xlane.f32.xlu0 %v1905_v4  ;;  %v13114_v53 = vsub.f32 %v13044_v17, %v1875_v25  ;;  %v13117_v37 = vsub.f32 %v13047_v55, %v1876_v45  ;;  %v9639_v32 = vpack.c.bf16 %v2222_v44, %v2221_v2  ;;  %v13173_v4 = vld [vmem:[#allocation2 + $0xb0] sm:$0xff]  ;;  %v13175_v45 = vld [vmem:[#allocation2 + $0xb8] sm:$0xff] }
 0x471   : > { %v1859_v12 = vpop.xlane.xlu0 %1858  ;;  %v1861_v20 = vpop.xlane.xlu1 %1860  ;;  %9617 = vmatpush3.bf16.msra.mxu0 %v9614_v51  ;;  %v10415_v25 = vpack.i.bf16 %v2226_v34, %v2225_v16  ;;  %v9648_v42 = vpack.c.bf16 %v13175_v45, %v13173_v4  ;;  %v13187_v51 = vld [vmem:[#allocation2 + $0xc8] sm:$0xff]  ;;  %v13213_v2 = vld [vmem:[#allocation2 + $0xf0] sm:$0xff]  ;;  %v13215_v44 = vld [vmem:[#allocation2 + $0xf8] sm:$0xff] }
 0x472   : > { %v1877_v41 = vmul.f32 0.0078125, %v1859_v12  ;;  %v1907_v18 = vmul.f32 %v13114_v53, %v13114_v53  ;;  %v1878_v50 = vmul.f32 0.0078125, %v1861_v20  ;;  %v1908_v17 = vmul.f32 %v13117_v37, %v13117_v37  ;;  %9619 = vmatprep.subr.bf16.mxu0 %v9618_v6 }
 0x473   : > { %9641 = vmatpush3.bf16.xpose.msk.msra.mxu1 %vm13141_vm1, %v9639_v32  ;;  %v9645_v12 = vpack.c.bf16 %v2224_v8, %v2223_v35  ;;  %v9672_v35 = vpack.c.bf16 %v13215_v44, %v13213_v2 }
 0x474   : > { %1933 = vadd.xlane.f32.xlu1 %v1906_v36  ;;  %1935 = vadd.xlane.f32.xlu0 %v1907_v18  ;;  %v13124_v55 = vsub.f32 %v13052_v52, %v1877_v41  ;;  %v13127_v21 = vsub.f32 %v13055_v38, %v1878_v50  ;;  %v2064_v52 = vld [vmem:[#allocation11 + $0x68] sm:$0xff]  ;;  %v2065_v38 = vld [vmem:[#allocation11 + $0x70] sm:$0xff]  ;;  %v2246_v41 = vld [vmem:[#allocation2 + $0xd8] sm:$0xff] }
 0x475   : > { %9621 = vmatpush3.bf16.msra.mxu0 %v9618_v6  ;;  %v9622_v61 = vpack.c.bf16 %v2064_v52, %v2063_v58  ;;  %v9626_v59 = vpack.c.bf16 %v2066_v7, %v2065_v38  ;;  %9644 = vmatprep.subr.msk.bf16.mxu1 %vm13141_vm1, %v9642_v33  ;;  %v2228_v36 = vld [vmem:[#allocation2 + $0x48] sm:$0xff]  ;;  %v10430_v18 = vpack.i.bf16 %v2246_v41, %v2245_v43  ;;  %v13185_v50 = vld [vmem:[#allocation2 + $0xc0] sm:$0xff]  ;;  %v2234_v38 = vld [vmem:[#allocation2 + $0x78] sm:$0xff] }
 0x476   : > { %v1909_v29 = vmul.f32 %v13124_v55, %v13124_v55  ;;  %v1910_v14 = vmul.f32 %v13127_v21, %v13127_v21  ;;  %v10425_v20 = vpack.i.bf16 %v2228_v36, %v2227_v49  ;;  %v9654_v6 = vpack.c.bf16 %v13187_v51, %v13185_v50  ;;  %v2232_v58 = vld [vmem:[#allocation2 + $0x68] sm:$0xff] }
 0x477   : > { %9623 = vmatprep.subr.bf16.mxu0 %v9622_v61  ;;  %v9657_v7 = vpack.c.bf16 %v2228_v36, %v2227_v49  ;;  %v9660_v15 = vpack.c.bf16 %v2246_v41, %v2245_v43 }
 0x478   : > { %1937 = vadd.xlane.f32.xlu1 %v1908_v17  ;;  %1939 = vadd.xlane.f32.xlu0 %v1909_v29  ;;  %v2229_v17 = vld [vmem:[#allocation2 + $0x50] sm:$0xff] }
 0x479   : > { %9625 = vmatpush3.bf16.msra.mxu0 %v9622_v61  ;;  %v10435_v29 = vpack.i.bf16 %v2230_v46, %v2229_v17  ;;  %v2233_v61 = vld [vmem:[#allocation2 + $0x70] sm:$0xff]  ;;  %v9663_v39 = vpack.c.bf16 %v2230_v46, %v2229_v17 }
 0x47a   : > { %9627 = vmatprep.subr.bf16.mxu0 %v9626_v59  ;;  %v9675_v8 = vpack.c.bf16 %v2234_v38, %v2233_v61 }
 0x47b   : > { %9647 = vmatpush3.bf16.xpose.msk.msra.mxu1 %vm13141_vm1, %v9645_v12 }
 0x47c   : > { %1941 = vadd.xlane.f32.xlu1 %v1910_v14  ;;  %9650 = vmatprep.subr.msk.bf16.mxu1 %vm13141_vm1, %v9648_v42  ;;  %v2231_v14 = vld [vmem:[#allocation2 + $0x60] sm:$0xff] }
 0x47d   : > { %9629 = vmatpush3.bf16.msra.mxu0 %v9626_v59  ;;  %v10445_v52 = vpack.i.bf16 %v2232_v58, %v2231_v14  ;;  %v10455_v59 = vpack.i.bf16 %v2234_v38, %v2233_v61  ;;  %v13228_v61 = vld [vmem:[%s17649_s21] ss:$0 sm:$0xff]  ;;  %s17989_s21 = sld [smem:[#allocation162_spill]] }
 0x483   : > { %9653 = vmatpush3.bf16.xpose.msk.msra.mxu1 %vm13141_vm1, %v9651_v19 }
 0x484   : > { %9656 = vmatprep.subr.msk.bf16.mxu1 %vm13141_vm1, %v9654_v6 }
 0x48b   : > { %9659 = vmatpush3.bf16.xpose.msk.msra.mxu1 %vm13141_vm1, %v9657_v7 }
 0x48c   : > { %9662 = vmatprep.subr.msk.bf16.mxu1 %vm13141_vm1, %v9660_v15 }
 0x48d   : > { %10386 = vrot.lane.b32.xlu1 %v13149_v10, %s11989_s19 }
 0x491   : > { %10396 = vrot.lane.b32.xlu1 %v10395_v3, %s11989_s19  ;;  %v9669_v3 = vpack.c.bf16 %v2232_v58, %v2231_v14 }
 0x493   : > { %9665 = vmatpush3.bf16.xpose.msk.msra.mxu1 %vm13141_vm1, %v9663_v39 }
 0x494   : > { %9668 = vmatprep.subr.msk.bf16.mxu1 %vm13141_vm1, %v9666_v54  ;;  %v13234_v54 = vld [vmem:[%s17650_s0] ss:$0 sm:$0xff]  ;;  %s17990_s0 = sld [smem:[#allocation163_spill]] }
 0x495   : > { %10406 = vrot.lane.b32.xlu1 %v10405_v40, %s11989_s19 }
 0x499   : > { %10416 = vrot.lane.b32.xlu1 %v10415_v25, %s11989_s19 }
 0x49b   : > { %9671 = vmatpush3.bf16.xpose.msk.msra.mxu1 %vm13141_vm1, %v9669_v3 }
 0x49c   : > { %9674 = vmatprep.subr.msk.bf16.mxu1 %vm13141_vm1, %v9672_v35 }
 0x49d   : > { %10426 = vrot.lane.b32.xlu1 %v10425_v20, %s11989_s19 }
 0x4a1   : > { %10431 = vrot.lane.b32.xlu1 %v10430_v18, %s11989_s19 }
 0x4a3   : > { %9677 = vmatpush3.bf16.xpose.msk.msra.mxu1 %vm13141_vm1, %v9675_v8 }
 0x4a5   : > { %10436 = vrot.lane.b32.xlu1 %v10435_v29, %s11989_s19 }
 0x4a9   : > { %10446 = vrot.lane.b32.xlu1 %v10445_v52, %s11989_s19 }
 0x4ad   : > { %10456 = vrot.lane.b32.xlu1 %v10455_v59, %s11989_s19 }
 0x4e9   : > { %v1912_v32 = vpop.xlane.xlu0 %1911 }
 0x4ea   : > { %v1943_v40 = vmul.f32 0.0078125, %v1912_v32 }
 0x4ec   : > { %v1959_v33 = vadd.f32 1e-06, %v1943_v40 }
 0x4ed   : > { %v1914_v16 = vpop.xlane.xlu1 %1913  ;;  %v1916_v34 = vpop.xlane.xlu0 %1915 }
 0x4ee   : > { %10860 = vrsqrt.f32 %v1959_v33  ;;  %v1944_v25 = vmul.f32 0.0078125, %v1914_v16  ;;  %v1945_v49 = vmul.f32 0.0078125, %v1916_v34 }
 0x4f0   : > { %v1960_v36 = vadd.f32 1e-06, %v1944_v25  ;;  %v1961_v12 = vadd.f32 1e-06, %v1945_v49 }
 0x4f1   : > { %v1918_v20 = vpop.xlane.xlu1 %1917  ;;  %v1920_v42 = vpop.xlane.xlu0 %1919 }
 0x4f2   : > { %10862 = vrsqrt.f32 %v1960_v36  ;;  %v1946_v43 = vmul.f32 0.0078125, %v1918_v20  ;;  %v1947_v41 = vmul.f32 0.0078125, %v1920_v42 }
 0x4f3   : > { %10864 = vrsqrt.f32 %v1961_v12 }
 0x4f4   : > { %v1962_v18 = vadd.f32 1e-06, %v1946_v43  ;;  %v1963_v17 = vadd.f32 1e-06, %v1947_v41 }
 0x4f5   : > { %v1922_v46 = vpop.xlane.xlu1 %1921  ;;  %v1924_v19 = vpop.xlane.xlu0 %1923 }
 0x4f6   : > { %10866 = vrsqrt.f32 %v1962_v18  ;;  %v1948_v29 = vmul.f32 0.0078125, %v1922_v46  ;;  %v1949_v6 = vmul.f32 0.0078125, %v1924_v19 }
 0x4f7   : > { %10868 = vrsqrt.f32 %v1963_v17 }
 0x4f8   : > { %v10861_v14 = vpop.eup %10860  ;;  %v1964_v58 = vadd.f32 1e-06, %v1948_v29  ;;  %v1965_v52 = vadd.f32 1e-06, %v1949_v6 }
 0x4f9   : > { %v1926_v38 = vpop.xlane.xlu1 %1925  ;;  %v1928_v7 = vpop.xlane.xlu0 %1927  ;;  %v1991_v59 = vmul.f32 %v10861_v14, %v13059_v13 }
 0x4fa   : > { %10870 = vrsqrt.f32 %v1964_v58  ;;  %v1950_v15 = vmul.f32 0.0078125, %v1926_v38  ;;  %v1951_v39 = vmul.f32 0.0078125, %v1928_v7 }
 0x4fb   : > { %10872 = vrsqrt.f32 %v1965_v52  ;;  %v2013_v3 = vmul.f32 %v13228_v61, %v1991_v59 }
 0x4fc   : > { %v10863_v35 = vpop.eup %10862  ;;  %v1966_v8 = vadd.f32 1e-06, %v1950_v15  ;;  %v1967_v32 = vadd.f32 1e-06, %v1951_v39 }
 0x4fd   : > { %v10865_v40 = vpop.eup %10864  ;;  %v1930_v33 = vpop.xlane.xlu1 %1929  ;;  %v2035_v34 = vadd.f32 %v13234_v54, %v2013_v3  ;;  %v1992_v13 = vmul.f32 %v10863_v35, %v13067_v56 }
 0x4fe   : > { %v1932_v16 = vpop.xlane.xlu0 %1931  ;;  %10874 = vrsqrt.f32 %v1966_v8  ;;  %v1952_v25 = vmul.f32 0.0078125, %v1930_v33  ;;  %v1993_v36 = vmul.f32 %v10865_v40, %v13061_v27 }
 0x4ff   : > { %v1953_v49 = vmul.f32 0.0078125, %v1932_v16  ;;  %10876 = vrsqrt.f32 %v1967_v32  ;;  %9454 = vmatprep.mubr.f32.mxu0 %v2035_v34  ;;  %v2014_v12 = vmul.f32 %v13228_v61, %v1992_v13 }
 0x500   : > { %v10867_v20 = vpop.eup %10866  ;;  %v1968_v42 = vadd.f32 1e-06, %v1952_v25  ;;  %v2015_v41 = vmul.f32 %v13228_v61, %v1993_v36 }
 0x501   : > { %v1969_v43 = vadd.f32 1e-06, %v1953_v49  ;;  %v10869_v18 = vpop.eup %10868  ;;  %v1934_v17 = vpop.xlane.xlu1 %1933  ;;  %v2036_v19 = vadd.f32 %v13234_v54, %v2014_v12  ;;  %v1994_v56 = vmul.f32 %v10867_v20, %v13069_v5 }
 0x502   : > { %v1936_v46 = vpop.xlane.xlu0 %1935  ;;  %10878 = vrsqrt.f32 %v1968_v42  ;;  %v1954_v29 = vmul.f32 0.0078125, %v1934_v17  ;;  %v2037_v27 = vadd.f32 %v13234_v54, %v2015_v41  ;;  %v1995_v58 = vmul.f32 %v10869_v18, %v13075_v22 }
 0x503   : > { %v1955_v6 = vmul.f32 0.0078125, %v1936_v46  ;;  %10880 = vrsqrt.f32 %v1969_v43  ;;  %9455 = vmatmul.mubr.f32.vlgmr.msra.gmra.mrb[0].mxu0 %v2036_v19  ;;  %v2016_v14 = vmul.f32 %v13228_v61, %v1994_v56 }
 0x504   : > { %v10871_v52 = vpop.eup %10870  ;;  %v1970_v38 = vadd.f32 1e-06, %v1954_v29  ;;  %9457 = vmatprep.mubr.f32.mxu0 %v2037_v27  ;;  %v2017_v3 = vmul.f32 %v13228_v61, %v1995_v58 }
 0x505   : > { %v1971_v7 = vadd.f32 1e-06, %v1955_v6  ;;  %v10873_v59 = vpop.eup %10872  ;;  %v1938_v15 = vpop.xlane.xlu1 %1937  ;;  %v2038_v5 = vadd.f32 %v13234_v54, %v2016_v14  ;;  %v1996_v35 = vmul.f32 %v10871_v52, %v13077_v9 }
 0x506   : > { %v1940_v39 = vpop.xlane.xlu0 %1939  ;;  %10882 = vrsqrt.f32 %v1970_v38  ;;  %v1956_v8 = vmul.f32 0.0078125, %v1938_v15  ;;  %v1997_v40 = vmul.f32 %v10873_v59, %v13084_v24  ;;  %v2039_v22 = vadd.f32 %v13234_v54, %v2017_v3 }
 0x507   : > { %v1957_v32 = vmul.f32 0.0078125, %v1940_v39  ;;  %10884 = vrsqrt.f32 %v1971_v7  ;;  %9458 = vmatmul.mubr.f32.gmra.mrb[2].mxu0 %v2038_v5  ;;  %v2018_v33 = vmul.f32 %v13228_v61, %v1996_v35 }
 0x508   : > { %v10875_v16 = vpop.eup %10874  ;;  %v1972_v34 = vadd.f32 1e-06, %v1956_v8  ;;  %v2019_v25 = vmul.f32 %v13228_v61, %v1997_v40  ;;  %9460 = vmatprep.mubr.f32.mxu0 %v2039_v22 }
 0x509   : > { %v1973_v13 = vadd.f32 1e-06, %v1957_v32  ;;  %v10877_v49 = vpop.eup %10876  ;;  %v1942_v36 = vpop.xlane.xlu1 %1941  ;;  %v2040_v9 = vadd.f32 %v13234_v54, %v2018_v33  ;;  %v1998_v12 = vmul.f32 %v10875_v16, %v13087_v62  ;;  %v10390_v16 = vpack.i.bf16 %v13147_v31, %v13145_v48 }
 0x50a   : > { %10886 = vrsqrt.f32 %v1972_v34  ;;  %v1958_v24 = vmul.f32 0.0078125, %v1942_v36  ;;  %v2041_v20 = vadd.f32 %v13234_v54, %v2019_v25  ;;  %v1999_v42 = vmul.f32 %v10877_v49, %v13094_v26 }
 0x50b   : > { %10888 = vrsqrt.f32 %v1973_v13  ;;  %9461 = vmatmul.mubr.f32.gmra.mrb[4].mxu0 %v2040_v9  ;;  %v2020_v43 = vmul.f32 %v13228_v61, %v1998_v12  ;;  %v10410_v48 = vpack.i.bf16 %v13175_v45, %v13173_v4  ;;  %v10440_v25 = vpack.i.bf16 %v13205_v1, %v13203_v60 }
 0x50c   : > { %v10879_v41 = vpop.eup %10878  ;;  %v1974_v18 = vadd.f32 1e-06, %v1958_v24  ;;  %9463 = vmatprep.mubr.f32.mxu0 %v2041_v20  ;;  %v2021_v17 = vmul.f32 %v13228_v61, %v1999_v42  ;;  %v10450_v36 = vpack.i.bf16 %v13215_v44, %v13213_v2 }
 0x50d   : > { %v10881_v46 = vpop.eup %10880  ;;  %v2042_v19 = vadd.f32 %v13234_v54, %v2020_v43  ;;  %v2000_v62 = vmul.f32 %v10879_v41, %v13097_v57 }
 0x50e   : > { %10890 = vrsqrt.f32 %v1974_v18  ;;  %v2043_v56 = vadd.f32 %v13234_v54, %v2021_v17  ;;  %v2001_v29 = vmul.f32 %v10881_v46, %v13104_v11 }
 0x50f   : > { %9464 = vmatmul.mubr.f32.gmra.mrb[6].mxu0 %v2042_v19  ;;  %v2022_v26 = vmul.f32 %v13228_v61, %v2000_v62 }
 0x510   : > { %v10883_v6 = vpop.eup %10882  ;;  %9466 = vmatprep.mubr.f32.mxu0 %v2043_v56  ;;  %v2023_v27 = vmul.f32 %v13228_v61, %v2001_v29 }
 0x511   : > { %v10885_v14 = vpop.eup %10884  ;;  %v2044_v58 = vadd.f32 %v13234_v54, %v2022_v26  ;;  %v2002_v52 = vmul.f32 %v10883_v6, %v13107_v23  ;;  %v2267_v6 = vld [vmem:[#allocation3 + $0x80] sm:$0xff] }
 0x512   : > { %v2045_v38 = vadd.f32 %v13234_v54, %v2023_v27  ;;  %v2003_v57 = vmul.f32 %v10885_v14, %v13114_v53  ;;  %v2268_v27 = vld [vmem:[#allocation3 + $0x88] sm:$0xff] }
 0x513   : > { %9467 = vmatmul.mubr.f32.gmra.mrb[8].mxu0 %v2044_v58  ;;  %v2024_v7 = vmul.f32 %v13228_v61, %v2002_v52  ;;  %v9678_v14 = vpack.c.bf16 %v2268_v27, %v2267_v6  ;;  %v2251_v58 = vld [vmem:[#allocation3] sm:$0xff]  ;;  %v2252_v52 = vld [vmem:[#allocation3 + $0x8] sm:$0xff]  ;;  %v2265_v27 = vld [vmem:[#allocation3 + $0x70] sm:$0xff] }
 0x514   : > { %v10887_v11 = vpop.eup %10886  ;;  %9469 = vmatprep.mubr.f32.mxu0 %v2045_v38  ;;  %v2025_v59 = vmul.f32 %v13228_v61, %v2003_v57  ;;  %v9680_v38 = vpack.c.bf16 %v2252_v52, %v2251_v58  ;;  %v2269_v57 = vld [vmem:[#allocation3 + $0x90] sm:$0xff] }
 0x515   : > { %v10889_v15 = vpop.eup %10888  ;;  %v2046_v39 = vadd.f32 %v13234_v54, %v2024_v7  ;;  %v2004_v5 = vmul.f32 %v10887_v11, %v13117_v37  ;;  %9679 = vmatprep.subr.bf16.mxu0 %v9678_v14  ;;  %v2270_v7 = vld [vmem:[#allocation3 + $0x98] sm:$0xff] }
 0x516   : > { %v2047_v3 = vadd.f32 %v13234_v54, %v2025_v59  ;;  %v2005_v23 = vmul.f32 %v10889_v15, %v13124_v55  ;;  %v10380_v55 = vpack.i.bf16 %v13135_v63, %v13133_v30  ;;  %9681 = vmatpush3.bf16.msra.mxu0 %v9680_v38  ;;  %v9682_v11 = vpack.c.bf16 %v2270_v7, %v2269_v57  ;;  %v2253_v59 = vld [vmem:[#allocation3 + $0x10] sm:$0xff]  ;;  %v2254_v15 = vld [vmem:[#allocation3 + $0x18] sm:$0xff]  ;;  %v2320_v38 = vld [vmem:[%s13433_s28] sm:$0xff] }
 0x517   : > { %9470 = vmatmul.mubr.f32.gmra.mrb[10].mxu0 %v2046_v39  ;;  %v2026_v35 = vmul.f32 %v13228_v61, %v2004_v5  ;;  %v9684_v39 = vpack.c.bf16 %v2254_v15, %v2253_v59  ;;  %v2271_v5 = vld [vmem:[#allocation3 + $0xa0] sm:$0xff]  ;;  %v2266_v14 = vld [vmem:[#allocation3 + $0x78] sm:$0xff]  ;;  %v2321_v57 = vld [vmem:[%s13433_s28 + $0x8] sm:$0xff] }
 0x518   : > { %v10891_v53 = vpop.eup %10890  ;;  %9472 = vmatprep.mubr.f32.mxu0 %v2047_v3  ;;  %v2027_v8 = vmul.f32 %v13228_v61, %v2005_v23  ;;  %10381 = vrot.lane.b32.xlu0 %v10380_v55, %s11989_s19  ;;  %v2272_v3 = vld [vmem:[#allocation3 + $0xa8] sm:$0xff]  ;;  %v9708_v58 = vpack.c.bf16 %v2266_v14, %v2265_v27  ;;  %v2283_v7 = vld [vmem:[%s12513_s8] sm:$0xff] }
 0x519   : > { %v2048_v32 = vadd.f32 %v13234_v54, %v2026_v35  ;;  %v2006_v40 = vmul.f32 %v10891_v53, %v13127_v21  ;;  %v13291_v21 = vld [vmem:[%s17651_s29] ss:$0 sm:$0xff]  ;;  %9683 = vmatprep.subr.bf16.mxu0 %v9682_v11  ;;  %v9686_v23 = vpack.c.bf16 %v2272_v3, %v2271_v5  ;;  %v2256_v53 = vld [vmem:[#allocation3 + $0x28] sm:$0xff]  ;;  %v2322_v3 = vld [vmem:[%s13433_s28 + $0x10] sm:$0xff]  ;;  %s18003_s29 = sld [smem:[#allocation165_spill]] }
 0x51a   : > { %v2049_v22 = vadd.f32 %v13234_v54, %v2027_v8  ;;  %9685 = vmatpush3.bf16.msra.mxu0 %v9684_v39  ;;  %v2255_v35 = vld [vmem:[#allocation3 + $0x20] sm:$0xff]  ;;  %v2284_v15 = vld [vmem:[%s12513_s8 + $0x8] sm:$0xff] }
 0x51b   : > { %9473 = vmatmul.mubr.f32.gmra.mrb[12].mxu0 %v2048_v32  ;;  %v2028_v37 = vmul.f32 %v13228_v61, %v2006_v40  ;;  %v10400_v61 = vpack.i.bf16 %v13163_v28, %v13161_v0  ;;  %v10420_v28 = vpack.i.bf16 %v13187_v51, %v13185_v50  ;;  %v9688_v8 = vpack.c.bf16 %v2256_v53, %v2255_v35  ;;  %v2273_v32 = vld [vmem:[#allocation3 + $0xb0] sm:$0xff]  ;;  %v2274_v40 = vld [vmem:[#allocation3 + $0xb8] sm:$0xff]  ;;  %v2329_v27 = vld [vmem:[%s13433_s28 + $0x48] sm:$0xff] }
 0x51c   : > { %9475 = vmatprep.mubr.f32.mxu0 %v2049_v22  ;;  %10391 = vrot.lane.b32.xlu0 %v10390_v16, %s11989_s19  ;;  %v2257_v22 = vld [vmem:[#allocation3 + $0x30] sm:$0xff]  ;;  %v2323_v35 = vld [vmem:[%s13433_s28 + $0x18] sm:$0xff] }
 0x51d   : > { %v2050_v33 = vadd.f32 %v13234_v54, %v2028_v37  ;;  %9687 = vmatprep.subr.bf16.mxu0 %v9686_v23  ;;  %v9690_v37 = vpack.c.bf16 %v2274_v40, %v2273_v32 }
 0x51e   : > { %9689 = vmatpush3.bf16.msra.mxu0 %v9688_v8  ;;  %v2285_v8 = vld [vmem:[%s12513_s8 + $0x10] sm:$0xff] }
 0x51f   : > { %9476 = vmatmul.mubr.f32.gmra.mrb[14].mxu0 %v2050_v33  ;;  %v2258_v33 = vld [vmem:[#allocation3 + $0x38] sm:$0xff]  ;;  %9691 = vmatprep.subr.bf16.mxu0 %v9690_v37 }
 0x520   : > { %10401 = vrot.lane.b32.xlu0 %v10400_v61, %s11989_s19 }
 0x524   : > { %10411 = vrot.lane.b32.xlu0 %v10410_v48, %s11989_s19 }
 0x528   : > { %10421 = vrot.lane.b32.xlu0 %v10420_v28, %s11989_s19 }
 0x52c   : > { %10441 = vrot.lane.b32.xlu0 %v10440_v25, %s11989_s19  ;;  %v2279_v25 = vld [vmem:[#allocation3 + $0xe0] sm:$0xff] }
 0x530   : > { %10451 = vrot.lane.b32.xlu0 %v10450_v36, %s11989_s19  ;;  %v2263_v36 = vld [vmem:[#allocation3 + $0x60] sm:$0xff] }
 0x534   : > { %10461 = vrot.lane.b32.xlu0 %v10380_v55, %s11990_s9  ;;  %v2275_v55 = vld [vmem:[#allocation3 + $0xc0] sm:$0xff] }
 0x538   : > { %10466 = vrot.lane.b32.xlu0 %v13149_v10, %s11990_s9 }
 0x53c   : > { %10471 = vrot.lane.b32.xlu0 %v10390_v16, %s11990_s9  ;;  %v2276_v16 = vld [vmem:[#allocation3 + $0xc8] sm:$0xff] }
 0x53d   : > { %v9694_v61 = vpack.c.bf16 %v2276_v16, %v2275_v55  ;;  %v2324_v16 = vld [vmem:[%s13433_s28 + $0x20] sm:$0xff] }
 0x5d6   : > { %v9456_v54 = vpop.f32.mrb[0].mxu0 }
 0x5d7   : > { %v13297_v34 = vadd.f32 %v9456_v54, %v13291_v21  ;;  %v2140_v30 = vpop.f32.mrb[1].mxu0  ;;  %v2259_v54 = vld [vmem:[#allocation3 + $0x40] sm:$0xff] }
 0x5d8   : > { %v13300_v63 = vadd.f32 %v13291_v21, %v2140_v30  ;;  %v2260_v30 = vld [vmem:[#allocation3 + $0x48] sm:$0xff] }
 0x5d9   : > { %3112 = vrot.lane.b32.xlu1 %v13297_v34, %s11989_s19  ;;  %v9696_v48 = vpack.c.bf16 %v2260_v30, %v2259_v54  ;;  %v2287_v30 = vld [vmem:[%s12513_s8 + $0x20] sm:$0xff] }
 0x5da   : > { %v9459_v31 = vpop.f32.mrb[2].mxu0  ;;  %8526 = vmatprep.mubr.msk.f32.mxu1 %vm2352_vm0, %v13300_v63 }
 0x5db   : > { %v2150_v0 = vpop.f32.mrb[3].mxu0  ;;  %8527 = vmatmul.mubr.msk.f32.vlgmr.msra.gmra.mrb[0].mxu1 %vm2352_vm0, %v13300_v63  ;;  %v13329_v49 = vadd.f32 %v9459_v31, %v13291_v21  ;;  %v2277_v31 = vld [vmem:[#allocation3 + $0xd0] sm:$0xff] }
 0x5dc   : > { %8528 = vmatprep.mubr.msk.f32.mxu1 %vm2352_vm0, %v13297_v34  ;;  %v13319_v4 = vadd.f32 %v13291_v21, %v2150_v0  ;;  %v2278_v0 = vld [vmem:[#allocation3 + $0xd8] sm:$0xff] }
 0x5dd   : > { %3110 = vrot.lane.b32.xlu1 %v13300_v63, %s11989_s19  ;;  %v9698_v28 = vpack.c.bf16 %v2278_v0, %v2277_v31  ;;  %v2288_v0 = vld [vmem:[%s12513_s8 + $0x28] sm:$0xff] }
 0x5de   : > { %v9462_v45 = vpop.f32.mrb[4].mxu0 }
 0x5df   : > { %v2160_v13 = vpop.f32.mrb[5].mxu0  ;;  %8529 = vmatmul.mubr.msk.f32.gmra.mrb[2].mxu1 %vm2352_vm0, %v13297_v34  ;;  %v13347_v12 = vadd.f32 %v9462_v45, %v13291_v21  ;;  %v2261_v45 = vld [vmem:[#allocation3 + $0x50] sm:$0xff] }
 0x5e0   : > { %8530 = vmatprep.mubr.msk.f32.mxu1 %vm2352_vm0, %v13319_v4  ;;  %v13339_v9 = vadd.f32 %v13291_v21, %v2160_v13  ;;  %v2262_v13 = vld [vmem:[#allocation3 + $0x58] sm:$0xff] }
 0x5e2   : > { %v9465_v50 = vpop.f32.mrb[6].mxu0 }
 0x5e3   : > { %v2170_v51 = vpop.f32.mrb[7].mxu0  ;;  %8531 = vmatmul.mubr.msk.f32.gmra.mrb[4].mxu1 %vm2352_vm0, %v13319_v4  ;;  %v13364_v43 = vadd.f32 %v9465_v50, %v13291_v21  ;;  %v9700_v50 = vpack.c.bf16 %v2262_v13, %v2261_v45 }
 0x5e4   : > { %8532 = vmatprep.mubr.msk.f32.mxu1 %vm2352_vm0, %v13329_v49  ;;  %v13355_v2 = vadd.f32 %v13291_v21, %v2170_v51  ;;  %v2280_v51 = vld [vmem:[#allocation3 + $0xe8] sm:$0xff] }
 0x5e6   : > { %v9468_v60 = vpop.f32.mrb[8].mxu0 }
 0x5e7   : > { %v2180_v1 = vpop.f32.mrb[9].mxu0  ;;  %8533 = vmatmul.mubr.msk.f32.gmra.mrb[6].mxu1 %vm2352_vm0, %v13329_v49  ;;  %v13379_v10 = vadd.f32 %v9468_v60, %v13291_v21  ;;  %v2264_v60 = vld [vmem:[#allocation3 + $0x68] sm:$0xff] }
 0x5e8   : > { %8534 = vmatprep.mubr.msk.f32.mxu1 %vm2352_vm0, %v13339_v9  ;;  %v13372_v17 = vadd.f32 %v13291_v21, %v2180_v1  ;;  %v10382_v1 = vpop.permute.xlu0 %10381 }
 0x5ea   : > { %v9471_v24 = vpop.f32.mrb[10].mxu0 }
 0x5eb   : > { %v2190_v20 = vpop.f32.mrb[11].mxu0  ;;  %8535 = vmatmul.mubr.msk.f32.gmra.mrb[8].mxu1 %vm2352_vm0, %v13339_v9  ;;  %v13393_v19 = vadd.f32 %v9471_v24, %v13291_v21  ;;  %v9702_v24 = vpack.c.bf16 %v2280_v51, %v2279_v25  ;;  %v2326_v25 = vld [vmem:[%s13433_s28 + $0x30] sm:$0xff]  ;;  %v2327_v51 = vld [vmem:[%s13433_s28 + $0x38] sm:$0xff] }
 0x5ec   : > { %8536 = vmatprep.mubr.msk.f32.mxu1 %vm2352_vm0, %v13347_v12  ;;  %v13386_v46 = vadd.f32 %v13291_v21, %v2190_v20  ;;  %v2281_v20 = vld [vmem:[#allocation3 + $0xf0] sm:$0xff] }
 0x5ed   : > { %17653 = vst [vmem:[#allocation36_spill] sm:$0xff] %v13393_v19 }
 0x5ee   : > { %v9474_v44 = vpop.f32.mrb[12].mxu0  ;;  %17652 = vst [vmem:[#allocation35_spill] sm:$0xff] %v13386_v46 }
 0x5ef   : > { %v2200_v42 = vpop.f32.mrb[13].mxu0  ;;  %8537 = vmatmul.mubr.msk.f32.gmra.mrb[10].mxu1 %vm2352_vm0, %v13347_v12  ;;  %v13407_v56 = vadd.f32 %v9474_v44, %v13291_v21  ;;  %v2282_v44 = vld [vmem:[#allocation3 + $0xf8] sm:$0xff] }
 0x5f0   : > { %8538 = vmatprep.mubr.msk.f32.mxu1 %vm2352_vm0, %v13355_v2  ;;  %v13400_v62 = vadd.f32 %v13291_v21, %v2200_v42  ;;  %v9704_v42 = vpack.c.bf16 %v2264_v60, %v2263_v36  ;;  %v9706_v6 = vpack.c.bf16 %v2282_v44, %v2281_v20  ;;  %v2289_v60 = vld [vmem:[%s12513_s8 + $0x30] sm:$0xff]  ;;  %v2290_v20 = vld [vmem:[%s12513_s8 + $0x38] sm:$0xff] }
 0x5f2   : > { %v9477_v41 = vpop.f32.mrb[14].mxu0  ;;  %17654 = vst [vmem:[#allocation37_spill] sm:$0xff] %v13400_v62 }
 0x5f3   : > { %v2210_v18 = vpop.f32.mrb[15].mxu0  ;;  %8539 = vmatmul.mubr.msk.f32.gmra.mrb[12].mxu1 %vm2352_vm0, %v13355_v2  ;;  %v13421_v26 = vadd.f32 %v9477_v41, %v13291_v21  ;;  %v10384_v41 = vunpack.i.h.bf16 %v10382_v1 }
 0x5f4   : > { %8540 = vmatprep.mubr.msk.f32.mxu1 %vm2352_vm0, %v13364_v43  ;;  %v13414_v29 = vadd.f32 %v13291_v21, %v2210_v18  ;;  %v9692_v21 = vpack.c.bf16 %v2258_v33, %v2257_v22  ;;  %v10383_v18 = vunpack.i.l.bf16 %v10382_v1  ;;  %v2286_v22 = vld [vmem:[%s12513_s8 + $0x18] sm:$0xff] }
 0x5f6   : > { %9693 = vmatpush3.bf16.msra.mxu0 %v9692_v21  ;;  %v9710_v52 = vpack.c.bf16 %v10384_v41, %v10383_v18  ;;  %v2328_v18 = vld [vmem:[%s13433_s28 + $0x40] sm:$0xff] }
 0x5f7   : > { %8541 = vmatmul.mubr.msk.f32.gmra.mrb[14].mxu1 %vm2352_vm0, %v13364_v43  ;;  %9695 = vmatprep.subr.bf16.mxu0 %v9694_v61  ;;  %v2325_v61 = vld [vmem:[%s13433_s28 + $0x28] sm:$0xff] }
 0x5f8   : > { %8542 = vmatprep.mubr.msk.f32.mxu1 %vm2352_vm0, %v13372_v17 }
 0x5fa   : > { %9697 = vmatpush3.bf16.msra.mxu0 %v9696_v48 }
 0x5fb   : > { %8543 = vmatmul.mubr.msk.f32.gmra.mrb[16].mxu1 %vm2352_vm0, %v13372_v17  ;;  %9699 = vmatprep.subr.bf16.mxu0 %v9698_v28 }
 0x5fc   : > { %8544 = vmatprep.mubr.msk.f32.mxu1 %vm2352_vm0, %v13379_v10 }
 0x5fe   : > { %9701 = vmatpush3.bf16.msra.mxu0 %v9700_v50 }
 0x5ff   : > { %8545 = vmatmul.mubr.msk.f32.gmra.mrb[18].mxu1 %vm2352_vm0, %v13379_v10  ;;  %9703 = vmatprep.subr.bf16.mxu0 %v9702_v24 }
 0x600   : > { %8546 = vmatprep.mubr.msk.f32.mxu1 %vm2352_vm0, %v13386_v46 }
 0x602   : > { %9705 = vmatpush3.bf16.msra.mxu0 %v9704_v42 }
 0x603   : > { %8547 = vmatmul.mubr.msk.f32.gmra.mrb[20].mxu1 %vm2352_vm0, %v13386_v46  ;;  %9707 = vmatprep.subr.bf16.mxu0 %v9706_v6 }
 0x604   : > { %8548 = vmatprep.mubr.msk.f32.mxu1 %vm2352_vm0, %v13393_v19 }
 0x606   : > { %9709 = vmatpush3.bf16.msra.mxu0 %v9708_v58  ;;  %v2291_v58 = vld [vmem:[%s12513_s8 + $0x40] sm:$0xff] }
 0x607   : > { %8549 = vmatmul.mubr.msk.f32.gmra.mrb[22].mxu1 %vm2352_vm0, %v13393_v19  ;;  %9712 = vmatprep.subr.msk.bf16.mxu0 %vm13141_vm1, %v9710_v52 }
 0x608   : > { %8550 = vmatprep.mubr.msk.f32.mxu1 %vm2352_vm0, %v13400_v62 }
 0x60b   : > { %8551 = vmatmul.mubr.msk.f32.gmra.mrb[24].mxu1 %vm2352_vm0, %v13400_v62 }
 0x60c   : > { %8552 = vmatprep.mubr.msk.f32.mxu1 %vm2352_vm0, %v13407_v56 }
 0x60f   : > { %8553 = vmatmul.mubr.msk.f32.gmra.mrb[26].mxu1 %vm2352_vm0, %v13407_v56 }
 0x610   : > { %8554 = vmatprep.mubr.msk.f32.mxu1 %vm2352_vm0, %v13414_v29 }
 0x613   : > { %8555 = vmatmul.mubr.msk.f32.gmra.mrb[28].mxu1 %vm2352_vm0, %v13414_v29 }
 0x614   : > { %8556 = vmatprep.mubr.msk.f32.mxu1 %vm2352_vm0, %v13421_v26 }
 0x617   : > { %8557 = vmatmul.mubr.msk.f32.gmra.mrb[30].mxu1 %vm2352_vm0, %v13421_v26 }
 0x6ae   : > { %v2563_v11 = vpop.f32.mrb[0].mxu1 }
 0x6af   : > { %v2564_v59 = vadd.f32 %v2563_v11, %v2320_v38  ;;  %v2565_v39 = vpop.f32.mrb[1].mxu1 }
 0x6b0   : > { %v2566_v5 = vadd.f32 %v2565_v39, %v2321_v57  ;;  %v2292_v57 = vld [vmem:[%s12513_s8 + $0x48] sm:$0xff] }
 0x6b1   : > { %v13440_v23 = vadd.f32 %v2564_v59, %v2283_v7 }
 0x6b2   : > { %v13443_v53 = vadd.f32 %v2566_v5, %v2284_v15  ;;  %v2569_v32 = vpop.f32.mrb[2].mxu1  ;;  %v2330_v15 = vld [vmem:[%s13433_s28 + $0x50] sm:$0xff]  ;;  %v2331_v5 = vld [vmem:[%s13433_s28 + $0x58] sm:$0xff] }
 0x6b3   : > { %v2570_v40 = vadd.f32 %v2569_v32, %v2322_v3  ;;  %v2571_v37 = vpop.f32.mrb[3].mxu1 }
 0x6b4   : > { %v2572_v33 = vadd.f32 %v2571_v37, %v2323_v35  ;;  %v2690_v55 = vmax.f32 %v13440_v23, %v13443_v53  ;;  %v2293_v35 = vld [vmem:[%s12513_s8 + $0x50] sm:$0xff] }
 0x6b5   : > { %v13450_v21 = vadd.f32 %v2570_v40, %v2285_v8  ;;  %v2294_v40 = vld [vmem:[%s12513_s8 + $0x58] sm:$0xff] }
 0x6b6   : > { %v13453_v54 = vadd.f32 %v2572_v33, %v2286_v22  ;;  %2691 = vmax.xlane.f32.xlu0 %v2690_v55  ;;  %v2575_v48 = vpop.f32.mrb[4].mxu1  ;;  %v2332_v55 = vld [vmem:[%s13433_s28 + $0x60] sm:$0xff] }
 0x6b7   : > { %v2576_v31 = vadd.f32 %v2575_v48, %v2324_v16  ;;  %v2577_v28 = vpop.f32.mrb[5].mxu1  ;;  %v2295_v48 = vld [vmem:[%s12513_s8 + $0x60] sm:$0xff] }
 0x6b8   : > { %v2578_v45 = vadd.f32 %v2577_v28, %v2325_v61  ;;  %v2693_v13 = vmax.f32 %v13450_v21, %v13453_v54  ;;  %v2333_v61 = vld [vmem:[%s13433_s28 + $0x68] sm:$0xff] }
 0x6b9   : > { %v13460_v50 = vadd.f32 %v2576_v31, %v2287_v30  ;;  %v2296_v28 = vld [vmem:[%s12513_s8 + $0x68] sm:$0xff] }
 0x6ba   : > { %v13463_v36 = vadd.f32 %v2578_v45, %v2288_v0  ;;  %2694 = vmax.xlane.f32.xlu1 %v2693_v13  ;;  %v2581_v1 = vpop.f32.mrb[6].mxu1 }
 0x6bb   : > { %v2582_v24 = vadd.f32 %v2581_v1, %v2326_v25  ;;  %v2583_v44 = vpop.f32.mrb[7].mxu1  ;;  %v2335_v1 = vld [vmem:[%s13433_s28 + $0x78] sm:$0xff] }
 0x6bc   : > { %v2584_v42 = vadd.f32 %v2583_v44, %v2327_v51  ;;  %v2696_v41 = vmax.f32 %v13460_v50, %v13463_v36  ;;  %v2334_v51 = vld [vmem:[%s13433_s28 + $0x70] sm:$0xff] }
 0x6bd   : > { %v13470_v6 = vadd.f32 %v2582_v24, %v2289_v60 }
 0x6be   : > { %v13473_v14 = vadd.f32 %v2584_v42, %v2290_v20  ;;  %2697 = vmax.xlane.f32.xlu0 %v2696_v41  ;;  %v2587_v52 = vpop.f32.mrb[8].mxu1  ;;  %v2297_v20 = vld [vmem:[%s12513_s8 + $0x70] sm:$0xff]  ;;  %v2298_v41 = vld [vmem:[%s12513_s8 + $0x78] sm:$0xff] }
 0x6bf   : > { %v2588_v38 = vadd.f32 %v2587_v52, %v2328_v18  ;;  %v2589_v7 = vpop.f32.mrb[9].mxu1  ;;  %v2336_v52 = vld [vmem:[%s13433_s28 + $0x80] sm:$0xff] }
 0x6c0   : > { %v2590_v11 = vadd.f32 %v2589_v7, %v2329_v27  ;;  %v2699_v59 = vmax.f32 %v13470_v6, %v13473_v14 }
 0x6c1   : > { %v13480_v39 = vadd.f32 %v2588_v38, %v2291_v58 }
 0x6c2   : > { %v13483_v3 = vadd.f32 %v2590_v11, %v2292_v57  ;;  %2700 = vmax.xlane.f32.xlu1 %v2699_v59  ;;  %v2593_v8 = vpop.f32.mrb[10].mxu1  ;;  %v2337_v57 = vld [vmem:[%s13433_s28 + $0x88] sm:$0xff]  ;;  %v2299_v11 = vld [vmem:[%s12513_s8 + $0x80] sm:$0xff] }
 0x6c3   : > { %v2594_v32 = vadd.f32 %v2593_v8, %v2330_v15  ;;  %v2595_v22 = vpop.f32.mrb[11].mxu1 }
 0x6c4   : > { %v2596_v37 = vadd.f32 %v2595_v22, %v2331_v5  ;;  %v2702_v33 = vmax.f32 %v13480_v39, %v13483_v3  ;;  %v2300_v5 = vld [vmem:[%s12513_s8 + $0x88] sm:$0xff] }
 0x6c5   : > { %v13490_v16 = vadd.f32 %v2594_v32, %v2293_v35 }
 0x6c6   : > { %v13493_v30 = vadd.f32 %v2596_v37, %v2294_v40  ;;  %2703 = vmax.xlane.f32.xlu0 %v2702_v33  ;;  %v2599_v31 = vpop.f32.mrb[12].mxu1  ;;  %v2338_v40 = vld [vmem:[%s13433_s28 + $0x90] sm:$0xff]  ;;  %v2339_v37 = vld [vmem:[%s13433_s28 + $0x98] sm:$0xff] }
 0x6c7   : > { %v2600_v0 = vadd.f32 %v2599_v31, %v2332_v55  ;;  %v2601_v45 = vpop.f32.mrb[13].mxu1  ;;  %v2301_v55 = vld [vmem:[%s12513_s8 + $0x90] sm:$0xff]  ;;  %v2302_v31 = vld [vmem:[%s12513_s8 + $0x98] sm:$0xff] }
 0x6c8   : > { %v2602_v13 = vadd.f32 %v2601_v45, %v2333_v61  ;;  %v2705_v25 = vmax.f32 %v13490_v16, %v13493_v30 }
 0x6c9   : > { %v13500_v60 = vadd.f32 %v2600_v0, %v2295_v48 }
 0x6ca   : > { %v13503_v24 = vadd.f32 %v2602_v13, %v2296_v28  ;;  %2706 = vmax.xlane.f32.xlu1 %v2705_v25  ;;  %v2605_v44 = vpop.f32.mrb[14].mxu1  ;;  %v2340_v13 = vld [vmem:[%s13433_s28 + $0xa0] sm:$0xff] }
 0x6cb   : > { %v2606_v42 = vadd.f32 %v2605_v44, %v2334_v51  ;;  %v2607_v18 = vpop.f32.mrb[15].mxu1  ;;  %v2341_v51 = vld [vmem:[%s13433_s28 + $0xa8] sm:$0xff] }
 0x6cc   : > { %v2608_v27 = vadd.f32 %v2607_v18, %v2335_v1  ;;  %v2708_v58 = vmax.f32 %v13500_v60, %v13503_v24 }
 0x6cd   : > { %v13510_v38 = vadd.f32 %v2606_v42, %v2297_v20  ;;  %v2303_v20 = vld [vmem:[%s12513_s8 + $0xa0] sm:$0xff] }
 0x6ce   : > { %v13513_v7 = vadd.f32 %v2608_v27, %v2298_v41  ;;  %2709 = vmax.xlane.f32.xlu0 %v2708_v58  ;;  %v2611_v59 = vpop.f32.mrb[16].mxu1  ;;  %v2304_v41 = vld [vmem:[%s12513_s8 + $0xa8] sm:$0xff] }
 0x6cf   : > { %v2612_v15 = vadd.f32 %v2611_v59, %v2336_v52  ;;  %v2613_v35 = vpop.f32.mrb[17].mxu1  ;;  %v2342_v52 = vld [vmem:[%s13433_s28 + $0xb0] sm:$0xff] }
 0x6d0   : > { %v2614_v8 = vadd.f32 %v2613_v35, %v2337_v57  ;;  %v2711_v32 = vmax.f32 %v13510_v38, %v13513_v7 }
 0x6d1   : > { %v13520_v22 = vadd.f32 %v2612_v15, %v2299_v11  ;;  %v2343_v11 = vld [vmem:[%s13433_s28 + $0xb8] sm:$0xff]  ;;  %v2305_v15 = vld [vmem:[%s12513_s8 + $0xb0] sm:$0xff] }
 0x6d2   : > { %v13523_v33 = vadd.f32 %v2614_v8, %v2300_v5  ;;  %2712 = vmax.xlane.f32.xlu1 %v2711_v32  ;;  %v2617_v61 = vpop.f32.mrb[18].mxu1  ;;  %v2306_v8 = vld [vmem:[%s12513_s8 + $0xb8] sm:$0xff] }
 0x6d3   : > { %v2618_v48 = vadd.f32 %v2617_v61, %v2338_v40  ;;  %v2619_v0 = vpop.f32.mrb[19].mxu1 }
 0x6d4   : > { %v2620_v28 = vadd.f32 %v2619_v0, %v2339_v37  ;;  %v2714_v45 = vmax.f32 %v13520_v22, %v13523_v33  ;;  %v2307_v0 = vld [vmem:[%s12513_s8 + $0xc0] sm:$0xff] }
 0x6d5   : > { %v13530_v25 = vadd.f32 %v2618_v48, %v2301_v55  ;;  %v2344_v55 = vld [vmem:[%s13433_s28 + $0xc0] sm:$0xff]  ;;  %v2345_v48 = vld [vmem:[%s13433_s28 + $0xc8] sm:$0xff] }
 0x6d6   : > { %v13533_v1 = vadd.f32 %v2620_v28, %v2302_v31  ;;  %2715 = vmax.xlane.f32.xlu1 %v2714_v45  ;;  %v2623_v44 = vpop.f32.mrb[20].mxu1 }
 0x6d7   : > { %v2624_v42 = vadd.f32 %v2623_v44, %v2340_v13  ;;  %v2625_v18 = vpop.f32.mrb[21].mxu1  ;;  %v2308_v13 = vld [vmem:[%s12513_s8 + $0xc8] sm:$0xff] }
 0x6d8   : > { %v2626_v27 = vadd.f32 %v2625_v18, %v2341_v51  ;;  %v2717_v58 = vmax.f32 %v13530_v25, %v13533_v1 }
 0x6d9   : > { %v13540_v57 = vadd.f32 %v2624_v42, %v2303_v20 }
 0x6da   : > { %v13543_v59 = vadd.f32 %v2626_v27, %v2304_v41  ;;  %2718 = vmax.xlane.f32.xlu0 %v2717_v58  ;;  %v2629_v5 = vpop.f32.mrb[22].mxu1 }
 0x6db   : > { %v2630_v35 = vadd.f32 %v2629_v5, %v2342_v52  ;;  %v2631_v32 = vpop.f32.mrb[23].mxu1 }
 0x6dc   : > { %17655 = vst [vmem:[#allocation38_spill] sm:$0xff] %v13543_v59  ;;  %v2632_v40 = vadd.f32 %v2631_v32, %v2343_v11  ;;  %v2720_v37 = vmax.f32 %v13540_v57, %v13543_v59 }
 0x6dd   : > { %v13550_v61 = vadd.f32 %v2630_v35, %v2305_v15  ;;  %v11436_v35 = vld [vmem:[#allocation2 + $0x10] sm:$0xff] }
 0x6de   : > { %v13553_v31 = vadd.f32 %v2632_v40, %v2306_v8  ;;  %2721 = vmax.xlane.f32.xlu1 %v2720_v37  ;;  %v2635_v28 = vpop.f32.mrb[24].mxu1  ;;  %v11437_v8 = vld [vmem:[#allocation2 + $0x18] sm:$0xff]  ;;  %v13575_v40 = vpop.permute.xlu1 %10386  ;;  %v2346_v37 = vld [vmem:[%s13433_s28 + $0xd0] sm:$0xff] }
 0x6df   : > { %17656 = vst [vmem:[#allocation39_spill] sm:$0xff] %v13550_v61  ;;  %v2636_v45 = vadd.f32 %v2635_v28, %v2344_v55  ;;  %v2637_v51 = vpop.f32.mrb[25].mxu1  ;;  %v13569_v32 = vpack.i.bf16 %v11437_v8, %v11436_v35  ;;  %v2347_v55 = vld [vmem:[%s13433_s28 + $0xd8] sm:$0xff] }
 0x6e0   : > { %17657 = vst [vmem:[#allocation40_spill] sm:$0xff] %v13553_v31  ;;  %v2638_v20 = vadd.f32 %v2637_v51, %v2345_v48  ;;  %v2723_v44 = vmax.f32 %v13550_v61, %v13553_v31  ;;  %v2348_v51 = vld [vmem:[%s13433_s28 + $0xe0] sm:$0xff] }
 0x6e1   : > { %v13559_v42 = vadd.f32 %v2636_v45, %v2307_v0  ;;  %17660 = vst [vmem:[#allocation43_spill] sm:$0xff] %v13569_v32  ;;  %v2309_v0 = vld [vmem:[%s12513_s8 + $0xd0] sm:$0xff] }
 0x6e2   : > { %v13561_v41 = vadd.f32 %v2638_v20, %v2308_v13  ;;  %2724 = vmax.xlane.f32.xlu0 %v2723_v44  ;;  %v2641_v18 = vpop.f32.mrb[26].mxu1  ;;  %v13579_v48 = vpop.permute.xlu1 %10396  ;;  %v2310_v13 = vld [vmem:[%s12513_s8 + $0xd8] sm:$0xff]  ;;  %v2349_v20 = vld [vmem:[%s13433_s28 + $0xe8] sm:$0xff] }
 0x6e3   : > { %17658 = vst [vmem:[#allocation41_spill] sm:$0xff] %v13559_v42  ;;  %v2643_v27 = vpop.f32.mrb[27].mxu1  ;;  %v2642_v28 = vadd.f32 %v2641_v18, %v2346_v37  ;;  %v13585_v44 = vpop.permute.xlu0 %10391 }
 0x6e4   : > { %17659 = vst [vmem:[#allocation42_spill] sm:$0xff] %v13561_v41  ;;  %v2726_v58 = vmax.f32 %v13559_v42, %v13561_v41  ;;  %v2644_v45 = vadd.f32 %v2643_v27, %v2347_v55  ;;  %v2311_v41 = vld [vmem:[%s12513_s8 + $0xe0] sm:$0xff]  ;;  %v2312_v42 = vld [vmem:[%s12513_s8 + $0xe8] sm:$0xff] }
 0x6e6   : > { %2727 = vmax.xlane.f32.xlu1 %v2726_v58  ;;  %v2647_v52 = vpop.f32.mrb[28].mxu1  ;;  %v13587_v58 = vadd.f32 %v2642_v28, %v2309_v0  ;;  %v13589_v35 = vadd.f32 %v2644_v45, %v2310_v13  ;;  %v13593_v31 = vpop.permute.xlu1 %10406  ;;  %v11438_v0 = vld [vmem:[#allocation2 + $0xa0] sm:$0xff]  ;;  %v11439_v28 = vld [vmem:[#allocation2 + $0xa8] sm:$0xff] }
 0x6e7   : > { %v2649_v11 = vpop.f32.mrb[29].mxu1  ;;  %v2648_v8 = vadd.f32 %v2647_v52, %v2348_v51  ;;  %v13599_v18 = vpop.permute.xlu0 %10401  ;;  %v13617_v45 = vpack.i.bf16 %v11439_v28, %v11438_v0  ;;  %v11442_v0 = vld [vmem:[#allocation2 + $0xb0] sm:$0xff]  ;;  %v11443_v28 = vld [vmem:[#allocation2 + $0xb8] sm:$0xff] }
 0x6e8   : > { %17661 = vst [vmem:[#allocation44_spill] sm:$0xff] %v13587_v58  ;;  %17662 = vst [vmem:[#allocation45_spill] sm:$0xff] %v13589_v35  ;;  %v2729_v27 = vmax.f32 %v13587_v58, %v13589_v35 }
 0x6e9   : > { %v13595_v61 = vadd.f32 %v2648_v8, %v2311_v41  ;;  %17665 = vst [vmem:[#allocation48_spill] sm:$0xff] %v13617_v45  ;;  %v11441_v8 = vld [vmem:[#allocation2 + $0x28] sm:$0xff] }
 0x6ea   : > { %v13565_v15 = vpop.f32.mrb[30].mxu1  ;;  %v13603_v37 = vpop.permute.xlu1 %10416 }
 0x6eb   : > { %v13567_v5 = vpop.f32.mrb[31].mxu1  ;;  %17663 = vst [vmem:[#allocation46_spill] sm:$0xff] %v13595_v61 }
 0x6ee   : > { %v13609_v55 = vpop.permute.xlu1 %10426 }
 0x6f7   : > { %3114 = vrot.lane.b32.xlu1 %v13319_v4, %s11989_s19 }
 0x6f8   : > { %10476 = vrot.lane.b32.xlu0 %v13569_v32, %s11990_s9  ;;  %v2650_v32 = vadd.f32 %v2649_v11, %v2349_v20  ;;  %v13607_v11 = vpop.permute.xlu0 %10411  ;;  %v11440_v20 = vld [vmem:[#allocation2 + $0x20] sm:$0xff] }
 0x6fa   : > { %v13597_v59 = vadd.f32 %v2650_v32, %v2312_v42  ;;  %v13613_v42 = vpop.permute.xlu1 %10431 }
 0x6fc   : > { %17664 = vst [vmem:[#allocation47_spill] sm:$0xff] %v13597_v59  ;;  %v2732_v52 = vmax.f32 %v13595_v61, %v13597_v59  ;;  %v13611_v41 = vpop.permute.xlu0 %10421  ;;  %v13635_v59 = vpack.i.bf16 %v11443_v28, %v11442_v0  ;;  %v11446_v0 = vld [vmem:[#allocation2 + $0xc0] sm:$0xff]  ;;  %v11447_v28 = vld [vmem:[#allocation2 + $0xc8] sm:$0xff] }
 0x6fe   : > { %v13619_v13 = vpop.permute.xlu1 %10436  ;;  %17667 = vst [vmem:[#allocation50_spill] sm:$0xff] %v13635_v59 }
 0x700   : > { %v13615_v32 = vpop.permute.xlu0 %10441 }
 0x704   : > { %v13623_v51 = vpop.permute.xlu0 %10451 }
 0x708   : > { %v13637_v61 = vpop.permute.xlu0 %10461 }
 0x709   : > { %17668 = vst [vmem:[#allocation51_spill] sm:$0xff] %v13637_v61 }
 0x717   : > { %2730 = vmax.xlane.f32.xlu0 %v2729_v27  ;;  %v13627_v27 = vpack.i.bf16 %v11441_v8, %v11440_v20  ;;  %v11444_v20 = vld [vmem:[#allocation2 + $0x30] sm:$0xff]  ;;  %v11445_v8 = vld [vmem:[#allocation2 + $0x38] sm:$0xff] }
 0x718   : > { %v13643_v35 = vpack.i.bf16 %v11445_v8, %v11444_v20 }
 0x719   : > { %17666 = vst [vmem:[#allocation49_spill] sm:$0xff] %v13627_v27 }
 0x71a   : > { %17669 = vst [vmem:[#allocation52_spill] sm:$0xff] %v13643_v35 }
 0x71b   : > { %2733 = vmax.xlane.f32.xlu1 %v2732_v52  ;;  %v13631_v52 = vpop.permute.xlu1 %10446 }
 0x71f   : > { %v13645_v58 = vpop.permute.xlu1 %10456 }
 0x72c   : > { %3116 = vrot.lane.b32.xlu1 %v13329_v49, %s11989_s19 }
 0x72d   : > { %10481 = vrot.lane.b32.xlu0 %v13617_v45, %s11990_s9  ;;  %v13653_v45 = vpack.i.bf16 %v11447_v28, %v11446_v0 }
 0x72f   : > { %17671 = vst [vmem:[#allocation54_spill] sm:$0xff] %v13653_v45 }
 0x730   : > { %3118 = vrot.lane.b32.xlu1 %v13339_v9, %s11989_s19 }
 0x731   : > { %10486 = vrot.lane.b32.xlu0 %v13627_v27, %s11990_s9  ;;  %v13649_v27 = vpop.permute.xlu0 %10466 }
 0x732   : > { %17670 = vst [vmem:[#allocation53_spill] sm:$0xff] %v13649_v27 }
 0x734   : > { %3120 = vrot.lane.b32.xlu1 %v13347_v12, %s11989_s19 }
 0x735   : > { %10491 = vrot.lane.b32.xlu0 %v13635_v59, %s11990_s9  ;;  %v13657_v59 = vpop.permute.xlu1 %3112  ;;  %v13661_v20 = vpop.permute.xlu0 %10471 }
 0x736   : > { %17672 = vst [vmem:[#allocation55_spill] sm:$0xff] %v13657_v59  ;;  %17673 = vst [vmem:[#allocation56_spill] sm:$0xff] %v13661_v20 }
 0x738   : > { %3122 = vrot.lane.b32.xlu1 %v13355_v2, %s11989_s19 }
 0x739   : > { %10496 = vrot.lane.b32.xlu0 %v13643_v35, %s11990_s9  ;;  %v13665_v8 = vpop.permute.xlu1 %3110 }
 0x73a   : > { %17674 = vst [vmem:[#allocation57_spill] sm:$0xff] %v13665_v8 }
 0x73c   : > { %3124 = vrot.lane.b32.xlu1 %v13364_v43, %s11989_s19 }
 0x73d   : > { %10501 = vrot.lane.b32.xlu0 %v13653_v45, %s11990_s9 }
 0x740   : > { %3126 = vrot.lane.b32.xlu1 %v13372_v17, %s11989_s19 }
 0x743   : > { %v2692_v27 = vpop.xlane.xlu0 %2691 }
 0x744   : > { %v2738_v35 = vsub.f32 %v13440_v23, %v2692_v27  ;;  %v2739_v0 = vsub.f32 %v13443_v53, %v2692_v27  ;;  %3128 = vrot.lane.b32.xlu1 %v13379_v10, %s11989_s19 }
 0x746   : > { %v2770_v28 = vmul.f32 1.442695, %v2738_v35  ;;  %v2772_v59 = vmul.f32 1.442695, %v2739_v0 }
 0x747   : > { %v2695_v61 = vpop.xlane.xlu1 %2694 }
 0x748   : > { %10892 = vpow2.f32 %v2770_v28  ;;  %v2740_v45 = vsub.f32 %v13450_v21, %v2695_v61  ;;  %v2741_v20 = vsub.f32 %v13453_v54, %v2695_v61  ;;  %3130 = vrot.lane.b32.xlu1 %v13386_v46, %s11989_s19  ;;  %v10389_v54 = vunpack.i.h.bf16 %v13575_v40  ;;  %v2350_v28 = vld [vmem:[%s13433_s28 + $0xf0] sm:$0xff]  ;;  %v2314_v46 = vld [vmem:[%s12513_s8 + $0xf8] sm:$0xff] }
 0x749   : > { %10894 = vpow2.f32 %v2772_v59  ;;  %v10388_v61 = vunpack.i.l.bf16 %v13575_v40  ;;  %v2351_v59 = vld [vmem:[%s13433_s28 + $0xf8] sm:$0xff]  ;;  %v2654_v40 = vadd.f32 %v13565_v15, %v2350_v28 }
 0x74a   : > { %v2774_v23 = vmul.f32 1.442695, %v2740_v45  ;;  %v2776_v8 = vmul.f32 1.442695, %v2741_v20  ;;  %v10394_v20 = vunpack.i.h.bf16 %v13585_v44 }
 0x74b   : > { %v2698_v53 = vpop.xlane.xlu0 %2697 }
 0x74c   : > { %10896 = vpow2.f32 %v2774_v23  ;;  %v2742_v27 = vsub.f32 %v13460_v50, %v2698_v53  ;;  %v2743_v35 = vsub.f32 %v13463_v36, %v2698_v53  ;;  %3132 = vrot.lane.b32.xlu1 %v13393_v19, %s11989_s19  ;;  %v2656_v53 = vadd.f32 %v13567_v5, %v2351_v59 }
 0x74d   : > { %10898 = vpow2.f32 %v2776_v8  ;;  %v10393_v8 = vunpack.i.l.bf16 %v13585_v44  ;;  %v9713_v19 = vpack.c.bf16 %v10389_v54, %v10388_v61  ;;  %v10398_v59 = vunpack.i.l.bf16 %v13579_v48 }
 0x74e   : > { %v2778_v21 = vmul.f32 1.442695, %v2742_v27  ;;  %v2780_v0 = vmul.f32 1.442695, %v2743_v35  ;;  %v13701_v54 = vadd.f32 %v2656_v53, %v2314_v46 }
 0x74f   : > { %v2701_v45 = vpop.xlane.xlu1 %2700  ;;  %v9716_v15 = vpack.c.bf16 %v10394_v20, %v10393_v8  ;;  %v10403_v20 = vunpack.i.l.bf16 %v13599_v18 }
 0x750   : > { %10900 = vpow2.f32 %v2778_v21  ;;  %v2744_v50 = vsub.f32 %v13470_v6, %v2701_v45  ;;  %v2745_v36 = vsub.f32 %v13473_v14, %v2701_v45  ;;  %3134 = vrot.lane.b32.xlu1 %v13400_v62, %s11989_s19  ;;  %v2313_v6 = vld [vmem:[%s12513_s8 + $0xf0] sm:$0xff] }
 0x751   : > { %10902 = vpow2.f32 %v2780_v0  ;;  %v13699_v0 = vadd.f32 %v2654_v40, %v2313_v6 }
 0x752   : > { %v10893_v23 = vpop.eup %10892  ;;  %v2782_v27 = vmul.f32 1.442695, %v2744_v50  ;;  %v2784_v35 = vmul.f32 1.442695, %v2745_v36 }
 0x753   : > { %v10895_v21 = vpop.eup %10894  ;;  %v2704_v14 = vpop.xlane.xlu0 %2703 }
 0x754   : > { %10904 = vpow2.f32 %v2782_v27  ;;  %2946 = vmatprep.mubr.f32.mxu0 %v10895_v21  ;;  %v2746_v45 = vsub.f32 %v13480_v39, %v2704_v14  ;;  %v2747_v62 = vsub.f32 %v13483_v3, %v2704_v14  ;;  %3136 = vrot.lane.b32.xlu1 %v13407_v56, %s11989_s19  ;;  %v13697_v44 = vadd.f32 %v10895_v21, %v10893_v23 }
 0x755   : > { %10906 = vpow2.f32 %v2784_v35  ;;  %2947 = vmatmul.mubr.f32.vlgmr.msra.gmra.mrb[16].mxu0 %v10893_v23  ;;  %v10399_v3 = vunpack.i.h.bf16 %v13579_v48 }
 0x756   : > { %17675 = vst [vmem:[#allocation58_spill] sm:$0xff] %v13697_v44  ;;  %v10897_v5 = vpop.eup %10896  ;;  %v2786_v61 = vmul.f32 1.442695, %v2746_v45  ;;  %v2788_v28 = vmul.f32 1.442695, %v2747_v62  ;;  %9715 = vmatpush3.bf16.xpose.msk.msra.mxu0 %vm13141_vm1, %v9713_v19  ;;  %v10404_v19 = vunpack.i.h.bf16 %v13599_v18  ;;  %v11491_v44 = vld [vmem:[#allocation3 + $0x58] sm:$0xff] }
 0x757   : > { %v10899_v39 = vpop.eup %10898  ;;  %9718 = vmatprep.subr.msk.bf16.mxu0 %vm13141_vm1, %v9716_v15  ;;  %v2707_v50 = vpop.xlane.xlu1 %2706 }
 0x758   : > { %10908 = vpow2.f32 %v2786_v61  ;;  %v2748_v36 = vsub.f32 %v13490_v16, %v2707_v50  ;;  %v2749_v46 = vsub.f32 %v13493_v30, %v2707_v50  ;;  %2951 = vmatprep.mubr.f32.mxu0 %v10899_v39  ;;  %3138 = vrot.lane.b32.xlu1 %v13414_v29, %s11989_s19  ;;  %v13713_v62 = vadd.f32 %v10899_v39, %v10897_v5 }
 0x759   : > { %10910 = vpow2.f32 %v2788_v28  ;;  %2952 = vmatmul.mubr.f32.gmra.mrb[18].mxu0 %v10897_v5  ;;  %v2735_v16 = vmax.f32 %v13699_v0, %v13701_v54  ;;  %v9719_v30 = vpack.c.bf16 %v10399_v3, %v10398_v59  ;;  %v9722_v18 = vpack.c.bf16 %v10404_v19, %v10403_v20 }
 0x75a   : > { %17676 = vst [vmem:[#allocation59_spill] sm:$0xff] %v13713_v62  ;;  %v10901_v48 = vpop.eup %10900  ;;  %v2790_v8 = vmul.f32 1.442695, %v2748_v36  ;;  %v2792_v23 = vmul.f32 1.442695, %v2749_v46  ;;  %v10414_v3 = vunpack.i.h.bf16 %v13607_v11  ;;  %v10413_v59 = vunpack.i.l.bf16 %v13607_v11 }
 0x75b   : > { %v10903_v40 = vpop.eup %10902  ;;  %v2710_v53 = vpop.xlane.xlu0 %2709 }
 0x75c   : > { %10912 = vpow2.f32 %v2790_v8  ;;  %2956 = vmatprep.mubr.f32.mxu0 %v10903_v40  ;;  %v2750_v27 = vsub.f32 %v13500_v60, %v2710_v53  ;;  %v2751_v35 = vsub.f32 %v13503_v24, %v2710_v53  ;;  %2736 = vmax.xlane.f32.xlu0 %v2735_v16  ;;  %v13721_v21 = vadd.f32 %v10903_v40, %v10901_v48 }
 0x75d   : > { %10914 = vpow2.f32 %v2792_v23  ;;  %3140 = vrot.lane.b32.xlu1 %v13421_v26, %s11989_s19  ;;  %2957 = vmatmul.mubr.f32.gmra.mrb[20].mxu0 %v10901_v48  ;;  %v10409_v60 = vunpack.i.h.bf16 %v13593_v31  ;;  %v10408_v24 = vunpack.i.l.bf16 %v13593_v31  ;;  %v9728_v11 = vpack.c.bf16 %v10414_v3, %v10413_v59 }
 0x75e   : > { %17677 = vst [vmem:[#allocation60_spill] sm:$0xff] %v13721_v21  ;;  %v10905_v6 = vpop.eup %10904  ;;  %v2794_v14 = vmul.f32 1.442695, %v2750_v27  ;;  %v2796_v45 = vmul.f32 1.442695, %v2751_v35  ;;  %9721 = vmatpush3.bf16.xpose.msk.msra.mxu0 %vm13141_vm1, %v9719_v30 }
 0x75f   : > { %v10907_v15 = vpop.eup %10906  ;;  %9724 = vmatprep.subr.msk.bf16.mxu0 %vm13141_vm1, %v9722_v18  ;;  %v2713_v5 = vpop.xlane.xlu1 %2712  ;;  %v9725_v19 = vpack.c.bf16 %v10409_v60, %v10408_v24  ;;  %v10424_v18 = vunpack.i.h.bf16 %v13611_v41 }
 0x760   : > { %10916 = vpow2.f32 %v2794_v14  ;;  %v2752_v61 = vsub.f32 %v13510_v38, %v2713_v5  ;;  %v2753_v28 = vsub.f32 %v13513_v7, %v2713_v5  ;;  %2961 = vmatprep.mubr.f32.mxu0 %v10907_v15  ;;  %v13733_v39 = vadd.f32 %v10907_v15, %v10905_v6 }
 0x761   : > { %10918 = vpow2.f32 %v2796_v45  ;;  %4108 = vrot.lane.b32.xlu1 %v13300_v63, %s11990_s9  ;;  %2962 = vmatmul.mubr.f32.gmra.mrb[22].mxu0 %v10905_v6  ;;  %v10423_v6 = vunpack.i.l.bf16 %v13611_v41 }
 0x762   : > { %17678 = vst [vmem:[#allocation61_spill] sm:$0xff] %v13733_v39  ;;  %v10909_v31 = vpop.eup %10908  ;;  %v2798_v50 = vmul.f32 1.442695, %v2752_v61  ;;  %v2800_v36 = vmul.f32 1.442695, %v2753_v28  ;;  %v11490_v39 = vld [vmem:[#allocation3 + $0x50] sm:$0xff] }
 0x763   : > { %v10911_v46 = vpop.eup %10910  ;;  %v2716_v38 = vpop.xlane.xlu1 %2715  ;;  %v9734_v41 = vpack.c.bf16 %v10424_v18, %v10423_v6 }
 0x764   : > { %10920 = vpow2.f32 %v2798_v50  ;;  %v2754_v7 = vsub.f32 %v13520_v22, %v2716_v38  ;;  %v2755_v20 = vsub.f32 %v13523_v33, %v2716_v38  ;;  %2966 = vmatprep.mubr.f32.mxu0 %v10911_v46  ;;  %v13741_v48 = vadd.f32 %v10911_v46, %v10909_v31  ;;  %v11449_v50 = vld [vmem:[#allocation2 + $0x48] sm:$0xff] }
 0x765   : > { %10922 = vpow2.f32 %v2800_v36  ;;  %4110 = vrot.lane.b32.xlu1 %v13297_v34, %s11990_s9  ;;  %2967 = vmatmul.mubr.f32.gmra.mrb[24].mxu0 %v10909_v31  ;;  %v10419_v22 = vunpack.i.h.bf16 %v13603_v37  ;;  %v10418_v33 = vunpack.i.l.bf16 %v13603_v37  ;;  %v11448_v31 = vld [vmem:[#allocation2 + $0x40] sm:$0xff]  ;;  %v10429_v46 = vunpack.i.h.bf16 %v13609_v55 }
 0x766   : > { %17679 = vst [vmem:[#allocation62_spill] sm:$0xff] %v13741_v48  ;;  %v10913_v8 = vpop.eup %10912  ;;  %v2802_v23 = vmul.f32 1.442695, %v2754_v7  ;;  %v2804_v16 = vmul.f32 1.442695, %v2755_v20  ;;  %9727 = vmatpush3.bf16.xpose.msk.msra.mxu0 %vm13141_vm1, %v9725_v19  ;;  %v10428_v19 = vunpack.i.l.bf16 %v13609_v55  ;;  %v17683_v7 = vld [vmem:[#allocation39_spill] sm:$0xff] }
 0x767   : > { %v10915_v40 = vpop.eup %10914  ;;  %9730 = vmatprep.subr.msk.bf16.mxu0 %vm13141_vm1, %v9728_v11  ;;  %v2719_v30 = vpop.xlane.xlu0 %2718  ;;  %v9731_v60 = vpack.c.bf16 %v10419_v22, %v10418_v33  ;;  %v17684_v11 = vld [vmem:[#allocation40_spill] sm:$0xff] }
 0x768   : > { %10924 = vpow2.f32 %v2802_v23  ;;  %2971 = vmatprep.mubr.f32.mxu0 %v10915_v40  ;;  %v2756_v53 = vsub.f32 %v13530_v25, %v2719_v30  ;;  %v2757_v27 = vsub.f32 %v13533_v1, %v2719_v30  ;;  %v13753_v35 = vadd.f32 %v10915_v40, %v10913_v8  ;;  %v17681_v1 = vld [vmem:[#allocation38_spill] sm:$0xff]  ;;  %v11450_v30 = vld [vmem:[#allocation2 + $0xd0] sm:$0xff] }
 0x769   : > { %10926 = vpow2.f32 %v2804_v16  ;;  %4112 = vrot.lane.b32.xlu1 %v13319_v4, %s11990_s9  ;;  %2972 = vmatmul.mubr.f32.gmra.mrb[26].mxu0 %v10913_v8  ;;  %v10434_v16 = vunpack.i.h.bf16 %v13613_v42  ;;  %v10433_v40 = vunpack.i.l.bf16 %v13613_v42  ;;  %v17686_v42 = vld [vmem:[#allocation41_spill] sm:$0xff] }
 0x76a   : > { %17680 = vst [vmem:[#allocation63_spill] sm:$0xff] %v13753_v35  ;;  %v10917_v37 = vpop.eup %10916  ;;  %v2806_v14 = vmul.f32 1.442695, %v2756_v53  ;;  %v2808_v45 = vmul.f32 1.442695, %v2757_v27  ;;  %v11451_v53 = vld [vmem:[#allocation2 + $0xd8] sm:$0xff] }
 0x76b   : > { %v10919_v15 = vpop.eup %10918  ;;  %v2722_v24 = vpop.xlane.xlu1 %2721  ;;  %v13783_v27 = vpack.i.bf16 %v11451_v53, %v11450_v30  ;;  %v10449_v53 = vunpack.i.h.bf16 %v13631_v52  ;;  %v17712_v35 = vld [vmem:[#allocation57_spill] sm:$0xff] }
 0x76c   : > { %10928 = vpow2.f32 %v2806_v14  ;;  %v2758_v25 = vsub.f32 %v13540_v57, %v2722_v24  ;;  %v2759_v5 = vsub.f32 %v17681_v1, %v2722_v24  ;;  %2976 = vmatprep.mubr.f32.mxu0 %v10919_v15  ;;  %v13761_v61 = vadd.f32 %v10919_v15, %v10917_v37 }
 0x76d   : > { %10930 = vpow2.f32 %v2808_v45  ;;  %4114 = vrot.lane.b32.xlu1 %v13329_v49, %s11990_s9  ;;  %2977 = vmatmul.mubr.f32.gmra.mrb[28].mxu0 %v10917_v37  ;;  %v13767_v57 = vpack.i.bf16 %v11449_v50, %v11448_v31  ;;  %v9737_v37 = vpack.c.bf16 %v10429_v46, %v10428_v19  ;;  %v17687_v45 = vld [vmem:[#allocation42_spill] sm:$0xff]  ;;  %v10439_v31 = vunpack.i.h.bf16 %v13619_v13 }
 0x76e   : > { %17682 = vst [vmem:[#allocation38_spill] sm:$0xff] %v13761_v61  ;;  %v10921_v28 = vpop.eup %10920  ;;  %v2810_v3 = vmul.f32 1.442695, %v2758_v25  ;;  %v2812_v59 = vmul.f32 1.442695, %v2759_v5  ;;  %9733 = vmatpush3.bf16.xpose.msk.msra.mxu0 %vm13141_vm1, %v9731_v60  ;;  %v9740_v60 = vpack.c.bf16 %v10434_v16, %v10433_v40  ;;  %v10438_v50 = vunpack.i.l.bf16 %v13619_v13 }
 0x76f   : > { %v10923_v36 = vpop.eup %10922  ;;  %9736 = vmatprep.subr.msk.bf16.mxu0 %vm13141_vm1, %v9734_v41  ;;  %v2725_v38 = vpop.xlane.xlu0 %2724  ;;  %v11452_v41 = vld [vmem:[#allocation2 + $0x50] sm:$0xff]  ;;  %v10444_v46 = vunpack.i.h.bf16 %v13615_v32  ;;  %v10443_v19 = vunpack.i.l.bf16 %v13615_v32 }
 0x770   : > { %10932 = vpow2.f32 %v2810_v3  ;;  %2981 = vmatprep.mubr.f32.mxu0 %v10923_v36  ;;  %v2760_v20 = vsub.f32 %v17683_v7, %v2725_v38  ;;  %v2761_v8 = vsub.f32 %v17684_v11, %v2725_v38  ;;  %v13775_v23 = vadd.f32 %v10923_v36, %v10921_v28  ;;  %v11454_v7 = vld [vmem:[#allocation2 + $0xe0] sm:$0xff] }
 0x771   : > { %10934 = vpow2.f32 %v2812_v59  ;;  %4116 = vrot.lane.b32.xlu1 %v13339_v9, %s11990_s9  ;;  %2982 = vmatmul.mubr.f32.gmra.mrb[30].mxu0 %v10921_v28  ;;  %v11453_v28 = vld [vmem:[#allocation2 + $0x58] sm:$0xff]  ;;  %v9746_v40 = vpack.c.bf16 %v10444_v46, %v10443_v19 }
 0x772   : > { %17685 = vst [vmem:[#allocation39_spill] sm:$0xff] %v13775_v23  ;;  %v10925_v55 = vpop.eup %10924  ;;  %v2814_v22 = vmul.f32 1.442695, %v2760_v20  ;;  %v2816_v33 = vmul.f32 1.442695, %v2761_v8  ;;  %10506 = vrot.lane.b32.xlu0 %v13767_v57, %s11990_s9  ;;  %v13795_v3 = vpack.i.bf16 %v11453_v28, %v11452_v41  ;;  %v11455_v20 = vld [vmem:[#allocation2 + $0xe8] sm:$0xff]  ;;  %v9743_v8 = vpack.c.bf16 %v10439_v31, %v10438_v50 }
 0x773   : > { %v10927_v18 = vpop.eup %10926  ;;  %v2728_v6 = vpop.xlane.xlu1 %2727  ;;  %v13809_v13 = vpack.i.bf16 %v11455_v20, %v11454_v7  ;;  %v11461_v41 = vld [vmem:[#allocation2 + $0x78] sm:$0xff]  ;;  %v10458_v31 = vunpack.i.l.bf16 %v13645_v58  ;;  %v17693_v50 = vld [vmem:[#allocation51_spill] sm:$0xff]  ;;  %v11463_v20 = vld [vmem:[#allocation2 + $0x88] sm:$0xff] }
 0x774   : > { %10936 = vpow2.f32 %v2814_v22  ;;  %v2762_v14 = vsub.f32 %v17686_v42, %v2728_v6  ;;  %v2763_v15 = vsub.f32 %v17687_v45, %v2728_v6  ;;  %2986 = vmatprep.mubr.f32.mxu0 %v10927_v18  ;;  %v13789_v24 = vadd.f32 %v10927_v18, %v10925_v55  ;;  %v11457_v22 = vld [vmem:[#allocation2 + $0x68] sm:$0xff]  ;;  %v11458_v45 = vld [vmem:[#allocation2 + $0xf0] sm:$0xff]  ;;  %v11462_v7 = vld [vmem:[#allocation2 + $0x80] sm:$0xff] }
 0x775   : > { %10938 = vpow2.f32 %v2816_v33  ;;  %4118 = vrot.lane.b32.xlu1 %v13347_v12, %s11990_s9  ;;  %2987 = vmatmul.mubr.f32.gmra.mrb[32].mxu0 %v10925_v55  ;;  %v11456_v55 = vld [vmem:[#allocation2 + $0x60] sm:$0xff]  ;;  %v10448_v18 = vunpack.i.l.bf16 %v13631_v52  ;;  %v10453_v42 = vunpack.i.l.bf16 %v13623_v51  ;;  %v10464_v46 = vunpack.i.h.bf16 %v17693_v50  ;;  %v17711_v23 = vld [vmem:[#allocation56_spill] sm:$0xff] }
 0x776   : > { %17688 = vst [vmem:[#allocation40_spill] sm:$0xff] %v13789_v24  ;;  %v10929_v25 = vpop.eup %10928  ;;  %v2818_v1 = vmul.f32 1.442695, %v2762_v14  ;;  %v2820_v5 = vmul.f32 1.442695, %v2763_v15  ;;  %9739 = vmatpush3.bf16.xpose.msk.msra.mxu0 %vm13141_vm1, %v9737_v37  ;;  %10511 = vrot.lane.b32.xlu0 %v13783_v27, %s11990_s9  ;;  %v13819_v33 = vpack.i.bf16 %v11457_v22, %v11456_v55  ;;  %v10454_v37 = vunpack.i.h.bf16 %v13623_v51  ;;  %v11459_v15 = vld [vmem:[#allocation2 + $0xf8] sm:$0xff] }
 0x777   : > { %v10931_v59 = vpop.eup %10930  ;;  %9742 = vmatprep.subr.msk.bf16.mxu0 %vm13141_vm1, %v9740_v60  ;;  %v13833_v60 = vpack.i.bf16 %v11459_v15, %v11458_v45  ;;  %v11460_v51 = vld [vmem:[#allocation2 + $0x70] sm:$0xff]  ;;  %v10463_v19 = vunpack.i.l.bf16 %v17693_v50  ;;  %v11465_v55 = vld [vmem:[#allocation2 + $0x8] sm:$0xff]  ;;  %v13876_v45 = vpop.permute.xlu0 %10476 }
 0x778   : > { %10940 = vpow2.f32 %v2818_v1  ;;  %2991 = vmatprep.mubr.f32.mxu0 %v10931_v59  ;;  %v13801_v36 = vadd.f32 %v10931_v59, %v10929_v25  ;;  %v13843_v28 = vpack.i.bf16 %v11461_v41, %v11460_v51  ;;  %v10459_v59 = vunpack.i.h.bf16 %v13645_v58  ;;  %v11464_v58 = vld [vmem:[#allocation2] sm:$0xff]  ;;  %v17699_v15 = vld [vmem:[#allocation49_spill] sm:$0xff] }
 0x779   : > { %10942 = vpow2.f32 %v2820_v5  ;;  %4120 = vrot.lane.b32.xlu1 %v13355_v2, %s11990_s9  ;;  %2992 = vmatmul.mubr.f32.gmra.mrb[34].mxu0 %v10929_v25  ;;  %v9749_v25 = vpack.c.bf16 %v10449_v53, %v10448_v18  ;;  %v9752_v5 = vpack.c.bf16 %v10454_v37, %v10453_v42  ;;  %v10545_v22 = vpack.i.bf16 %v11465_v55, %v11464_v58  ;;  %v11466_v53 = vld [vmem:[#allocation2 + $0x90] sm:$0xff]  ;;  %v11467_v18 = vld [vmem:[#allocation2 + $0x98] sm:$0xff]  ;;  %v17697_v42 = vld [vmem:[#allocation43_spill] sm:$0xff] }
 0x77a   : > { %17689 = vst [vmem:[#allocation41_spill] sm:$0xff] %v13801_v36  ;;  %v10933_v38 = vpop.eup %10932  ;;  %10516 = vrot.lane.b32.xlu0 %v13795_v3, %s11990_s9  ;;  %v10550_v37 = vpack.i.bf16 %v11467_v18, %v11466_v53  ;;  %v17701_v41 = vld [vmem:[#allocation45_spill] sm:$0xff]  ;;  %v17706_v55 = vld [vmem:[#allocation54_spill] sm:$0xff] }
 0x77b   : > { %v10935_v11 = vpop.eup %10934 }
 0x77c   : > { %2996 = vmatprep.mubr.f32.mxu0 %v10935_v11  ;;  %v13811_v16 = vadd.f32 %v10935_v11, %v10933_v38  ;;  %v10540_v11 = vpack.i.bf16 %v11463_v20, %v11462_v7  ;;  %v17704_v20 = vld [vmem:[#allocation47_spill] sm:$0xff] }
 0x77d   : > { %4122 = vrot.lane.b32.xlu1 %v13364_v43, %s11990_s9  ;;  %2997 = vmatmul.mubr.f32.gmra.mrb[36].mxu0 %v10933_v38  ;;  %v17694_v38 = vld [vmem:[#allocation35_spill] sm:$0xff] }
 0x77e   : > { %17690 = vst [vmem:[#allocation42_spill] sm:$0xff] %v13811_v16  ;;  %v10937_v32 = vpop.eup %10936  ;;  %9745 = vmatpush3.bf16.xpose.msk.msra.mxu0 %vm13141_vm1, %v9743_v8  ;;  %10521 = vrot.lane.b32.xlu0 %v13809_v13, %s11990_s9  ;;  %v9755_v8 = vpack.c.bf16 %v10459_v59, %v10458_v31  ;;  %v17702_v31 = vld [vmem:[#allocation50_spill] sm:$0xff] }
 0x77f   : > { %v10939_v30 = vpop.eup %10938  ;;  %9748 = vmatprep.subr.msk.bf16.mxu0 %vm13141_vm1, %v9746_v40  ;;  %v9790_v40 = vpack.c.bf16 %v10464_v46, %v10463_v19 }
 0x780   : > { %3001 = vmatprep.mubr.f32.mxu0 %v10939_v30  ;;  %v13825_v6 = vadd.f32 %v10939_v30, %v10937_v32  ;;  %v17696_v30 = vld [vmem:[#allocation37_spill] sm:$0xff] }
 0x781   : > { %4124 = vrot.lane.b32.xlu1 %v13372_v17, %s11990_s9  ;;  %3002 = vmatmul.mubr.f32.gmra.mrb[38].mxu0 %v10937_v32  ;;  %v17695_v32 = vld [vmem:[#allocation36_spill] sm:$0xff] }
 0x782   : > { %17691 = vst [vmem:[#allocation64_spill] sm:$0xff] %v13825_v6  ;;  %v10941_v14 = vpop.eup %10940  ;;  %10526 = vrot.lane.b32.xlu0 %v13819_v33, %s11990_s9 }
 0x783   : > { %v10943_v52 = vpop.eup %10942 }
 0x784   : > { %3006 = vmatprep.mubr.f32.mxu0 %v10943_v52  ;;  %v13835_v1 = vadd.f32 %v10943_v52, %v10941_v14  ;;  %v13882_v52 = vpop.permute.xlu1 %3114 }
 0x785   : > { %4126 = vrot.lane.b32.xlu1 %v13379_v10, %s11990_s9  ;;  %3007 = vmatmul.mubr.f32.gmra.mrb[40].mxu0 %v10941_v14  ;;  %v17698_v14 = vld [vmem:[#allocation48_spill] sm:$0xff] }
 0x786   : > { %17692 = vst [vmem:[#allocation65_spill] sm:$0xff] %v13835_v1  ;;  %9751 = vmatpush3.bf16.xpose.msk.msra.mxu0 %vm13141_vm1, %v9749_v25  ;;  %10531 = vrot.lane.b32.xlu0 %v13833_v60, %s11990_s9 }
 0x787   : > { %9754 = vmatprep.subr.msk.bf16.mxu0 %vm13141_vm1, %v9752_v5  ;;  %v17700_v5 = vld [vmem:[#allocation44_spill] sm:$0xff] }
 0x789   : > { %4128 = vrot.lane.b32.xlu1 %v17694_v38, %s11990_s9 }
 0x78a   : > { %10536 = vrot.lane.b32.xlu0 %v13843_v28, %s11990_s9 }
 0x78d   : > { %4130 = vrot.lane.b32.xlu1 %v17695_v32, %s11990_s9 }
 0x78e   : > { %9757 = vmatpush3.bf16.xpose.msk.msra.mxu0 %vm13141_vm1, %v9755_v8  ;;  %10541 = vrot.lane.b32.xlu0 %v10540_v11, %s11991_s7 }
 0x78f   : > { %9792 = vmatprep.subr.msk.bf16.mxu0 %vm13141_vm1, %v9790_v40 }
 0x791   : > { %4132 = vrot.lane.b32.xlu1 %v17696_v30, %s11990_s9 }
 0x792   : > { %10546 = vrot.lane.b32.xlu0 %v10545_v22, %s11991_s7 }
 0x795   : > { %4134 = vrot.lane.b32.xlu1 %v13407_v56, %s11990_s9 }
 0x796   : > { %10551 = vrot.lane.b32.xlu0 %v10550_v37, %s11991_s7 }
 0x799   : > { %4136 = vrot.lane.b32.xlu1 %v13414_v29, %s11990_s9 }
 0x79a   : > { %10556 = vrot.lane.b32.xlu0 %v17697_v42, %s11991_s7 }
 0x79d   : > { %4138 = vrot.lane.b32.xlu1 %v13421_v26, %s11990_s9 }
 0x79e   : > { %10561 = vrot.lane.b32.xlu0 %v17698_v14, %s11991_s7 }
 0x7a1   : > { %5076 = vrot.lane.b32.xlu1 %v13297_v34, %s11991_s7  ;;  %v17703_v34 = vld [vmem:[#allocation46_spill] sm:$0xff] }
 0x7a2   : > { %10566 = vrot.lane.b32.xlu0 %v17699_v15, %s11991_s7 }
 0x7a4   : > { %v2731_v25 = vpop.xlane.xlu0 %2730 }
 0x7a5   : > { %5080 = vrot.lane.b32.xlu1 %v13329_v49, %s11991_s7  ;;  %v2764_v51 = vsub.f32 %v17700_v5, %v2731_v25  ;;  %v2765_v59 = vsub.f32 %v17701_v41, %v2731_v25  ;;  %v17705_v49 = vld [vmem:[#allocation52_spill] sm:$0xff]  ;;  %v11468_v5 = vld [vmem:[#allocation3] sm:$0xff] }
 0x7a6   : > { %10571 = vrot.lane.b32.xlu0 %v17702_v31, %s11991_s7  ;;  %v11471_v31 = vld [vmem:[#allocation3 + $0x98] sm:$0xff] }
 0x7a7   : > { %v2822_v50 = vmul.f32 1.442695, %v2764_v51  ;;  %v2824_v46 = vmul.f32 1.442695, %v2765_v59  ;;  %v11469_v51 = vld [vmem:[#allocation3 + $0x8] sm:$0xff] }
 0x7a8   : > { %v2734_v19 = vpop.xlane.xlu1 %2733  ;;  %v13976_v41 = vpack.i.bf16 %v11469_v51, %v11468_v5 }
 0x7a9   : > { %10944 = vpow2.f32 %v2822_v50  ;;  %5084 = vrot.lane.b32.xlu1 %v13347_v12, %s11991_s7  ;;  %v2766_v7 = vsub.f32 %v17703_v34, %v2734_v19  ;;  %v2767_v11 = vsub.f32 %v17704_v20, %v2734_v19  ;;  %v11472_v34 = vld [vmem:[#allocation3 + $0x80] sm:$0xff] }
 0x7aa   : > { %10946 = vpow2.f32 %v2824_v46  ;;  %10576 = vrot.lane.b32.xlu0 %v17705_v49, %s11991_s7 }
 0x7ab   : > { %v2826_v8 = vmul.f32 1.442695, %v2766_v7  ;;  %v2828_v40 = vmul.f32 1.442695, %v2767_v11  ;;  %v11473_v7 = vld [vmem:[#allocation3 + $0x88] sm:$0xff] }
 0x7ac   : > { %v13896_v58 = vpop.permute.xlu1 %3116 }
 0x7ad   : > { %10948 = vpow2.f32 %v2826_v8  ;;  %5088 = vrot.lane.b32.xlu1 %v13364_v43, %s11991_s7  ;;  %v11474_v8 = vld [vmem:[#allocation3 + $0x10] sm:$0xff] }
 0x7ae   : > { %10950 = vpow2.f32 %v2828_v40  ;;  %10581 = vrot.lane.b32.xlu0 %v17706_v55, %s11991_s7  ;;  %v11475_v40 = vld [vmem:[#allocation3 + $0x18] sm:$0xff] }
 0x7af   : > { %v13998_v55 = vpack.i.bf16 %v11475_v40, %v11474_v8  ;;  %v11485_v8 = vld [vmem:[#allocation3 + $0x48] sm:$0xff] }
 0x7b0   : > { %v13902_v12 = vpop.permute.xlu1 %3118 }
 0x7b1   : > { %5092 = vrot.lane.b32.xlu1 %v13379_v10, %s11991_s7 }
 0x7b2   : > { %10586 = vrot.lane.b32.xlu0 %v13767_v57, %s11991_s7 }
 0x7b3   : > { %v10945_v22 = vpop.eup %10944 }
 0x7b4   : > { %v10947_v53 = vpop.eup %10946  ;;  %v13908_v18 = vpop.permute.xlu1 %3120 }
 0x7b5   : > { %5096 = vrot.lane.b32.xlu1 %v17695_v32, %s11991_s7  ;;  %3011 = vmatprep.mubr.f32.mxu0 %v10947_v53  ;;  %v13912_v43 = vadd.f32 %v10947_v53, %v10945_v22 }
 0x7b6   : > { %3012 = vmatmul.mubr.f32.gmra.mrb[42].mxu0 %v10945_v22  ;;  %10591 = vrot.lane.b32.xlu0 %v13783_v27, %s11991_s7 }
 0x7b7   : > { %17707 = vst [vmem:[#allocation51_spill] sm:$0xff] %v13912_v43  ;;  %v10949_v37 = vpop.eup %10948  ;;  %v14054_v43 = vpack.i.bf16 %v11491_v44, %v11490_v39  ;;  %v17713_v44 = vld [vmem:[#allocation55_spill] sm:$0xff] }
 0x7b8   : > { %v10951_v42 = vpop.eup %10950  ;;  %v13916_v10 = vpop.permute.xlu1 %3122 }
 0x7b9   : > { %5100 = vrot.lane.b32.xlu1 %v13407_v56, %s11991_s7  ;;  %3016 = vmatprep.mubr.f32.mxu0 %v10951_v42  ;;  %v13920_v57 = vadd.f32 %v10951_v42, %v10949_v37  ;;  %v11479_v42 = vld [vmem:[#allocation3 + $0x28] sm:$0xff] }
 0x7ba   : > { %3017 = vmatmul.mubr.f32.gmra.mrb[44].mxu0 %v10949_v37  ;;  %10596 = vrot.lane.b32.xlu0 %v13795_v3, %s11991_s7  ;;  %v11478_v37 = vld [vmem:[#allocation3 + $0x20] sm:$0xff] }
 0x7bb   : > { %17708 = vst [vmem:[#allocation35_spill] sm:$0xff] %v13920_v57  ;;  %v14010_v5 = vpack.i.bf16 %v11479_v42, %v11478_v37  ;;  %v11486_v37 = vld [vmem:[#allocation3 + $0x30] sm:$0xff]  ;;  %v11487_v42 = vld [vmem:[#allocation3 + $0x38] sm:$0xff] }
 0x7bc   : > { %v13924_v32 = vpop.permute.xlu1 %3124 }
 0x7bd   : > { %5104 = vrot.lane.b32.xlu1 %v13421_v26, %s11991_s7  ;;  %v13944_v26 = vpop.permute.xlu0 %10481 }
 0x7be   : > { %10601 = vrot.lane.b32.xlu0 %v13809_v13, %s11991_s7  ;;  %v10484_v36 = vunpack.i.h.bf16 %v13944_v26 }
 0x7c0   : > { %v13930_v27 = vpop.permute.xlu1 %3126 }
 0x7c1   : > { %10626 = vrot.lane.b32.xlu1 %v13976_v41, %s11989_s19 }
 0x7c2   : > { %10606 = vrot.lane.b32.xlu0 %v13819_v33, %s11991_s7  ;;  %v13952_v33 = vpop.permute.xlu0 %10486 }
 0x7c4   : > { %v13934_v56 = vpop.permute.xlu1 %3128 }
 0x7c6   : > { %10611 = vrot.lane.b32.xlu0 %v13833_v60, %s11991_s7  ;;  %v13960_v15 = vpop.permute.xlu0 %10491 }
 0x7c8   : > { %v13938_v14 = vpop.permute.xlu1 %3130 }
 0x7ca   : > { %10616 = vrot.lane.b32.xlu0 %v13843_v28, %s11991_s7 }
 0x7cc   : > { %v13942_v3 = vpop.permute.xlu1 %3132 }
 0x7ce   : > { %5074 = vrot.lane.b32.xlu0 %v13300_v63, %s11991_s7 }
 0x7d0   : > { %v13948_v13 = vpop.permute.xlu1 %3134 }
 0x7d2   : > { %5078 = vrot.lane.b32.xlu0 %v13319_v4, %s11991_s7  ;;  %v13968_v4 = vpop.permute.xlu0 %10496 }
 0x7d4   : > { %v13954_v60 = vpop.permute.xlu1 %3136 }
 0x7d6   : > { %5082 = vrot.lane.b32.xlu0 %v13339_v9, %s11991_s7  ;;  %v13978_v59 = vpop.permute.xlu0 %10501 }
 0x7d8   : > { %v13958_v28 = vpop.permute.xlu1 %3138 }
 0x7da   : > { %5086 = vrot.lane.b32.xlu0 %v13355_v2, %s11991_s7 }
 0x7dc   : > { %v13964_v63 = vpop.permute.xlu1 %3140 }
 0x7de   : > { %5090 = vrot.lane.b32.xlu0 %v13372_v17, %s11991_s7  ;;  %v11470_v17 = vld [vmem:[#allocation3 + $0x90] sm:$0xff] }
 0x7df   : > { %v13986_v50 = vpack.i.bf16 %v11471_v31, %v11470_v17  ;;  %v11480_v17 = vld [vmem:[#allocation3 + $0xc0] sm:$0xff]  ;;  %v11481_v31 = vld [vmem:[#allocation3 + $0xc8] sm:$0xff] }
 0x7e0   : > { %v13970_v25 = vpop.permute.xlu1 %4108 }
 0x7e1   : > { %10631 = vrot.lane.b32.xlu1 %v13986_v50, %s11989_s19 }
 0x7e2   : > { %5094 = vrot.lane.b32.xlu0 %v17694_v38, %s11991_s7 }
 0x7e4   : > { %v13974_v9 = vpop.permute.xlu1 %4110 }
 0x7e5   : > { %10636 = vrot.lane.b32.xlu1 %v13998_v55, %s11989_s19 }
 0x7e6   : > { %5098 = vrot.lane.b32.xlu0 %v17696_v30, %s11991_s7  ;;  %v13992_v30 = vpack.i.bf16 %v11473_v7, %v11472_v34  ;;  %v11483_v34 = vld [vmem:[#allocation3 + $0xb8] sm:$0xff] }
 0x7e8   : > { %v13984_v2 = vpop.permute.xlu1 %4112 }
 0x7e9   : > { %v2737_v38 = vpop.xlane.xlu0 %2736  ;;  %10646 = vrot.lane.b32.xlu1 %v14010_v5, %s11989_s19 }
 0x7ea   : > { %v2768_v46 = vsub.f32 %v13699_v0, %v2737_v38  ;;  %v2769_v19 = vsub.f32 %v13701_v54, %v2737_v38  ;;  %5102 = vrot.lane.b32.xlu0 %v13414_v29, %s11991_s7  ;;  %v11476_v29 = vld [vmem:[#allocation3 + $0xa0] sm:$0xff]  ;;  %v11477_v54 = vld [vmem:[#allocation3 + $0xa8] sm:$0xff]  ;;  %v14016_v38 = vpack.i.bf16 %v11481_v31, %v11480_v17  ;;  %v14034_v17 = vpack.i.bf16 %v11487_v42, %v11486_v37 }
 0x7eb   : > { %v14004_v22 = vpack.i.bf16 %v11477_v54, %v11476_v29  ;;  %v10474_v37 = vunpack.i.h.bf16 %v17711_v23  ;;  %v10473_v42 = vunpack.i.l.bf16 %v17711_v23  ;;  %v11492_v23 = vld [vmem:[#allocation3 + $0xf0] sm:$0xff] }
 0x7ec   : > { %v2830_v20 = vmul.f32 1.442695, %v2768_v46  ;;  %v2832_v11 = vmul.f32 1.442695, %v2769_v19  ;;  %v13996_v49 = vpop.permute.xlu1 %4114  ;;  %v11482_v19 = vld [vmem:[#allocation3 + $0xb0] sm:$0xff] }
 0x7ed   : > { %v14000_v0 = vpop.permute.xlu0 %10506  ;;  %v14022_v7 = vpack.i.bf16 %v11483_v34, %v11482_v19  ;;  %v17709_v34 = vld [vmem:[#allocation53_spill] sm:$0xff] }
 0x7ee   : > { %10952 = vpow2.f32 %v2830_v20  ;;  %10621 = vrot.lane.b32.xlu0 %v13992_v30, %s11989_s19  ;;  %v10469_v57 = vunpack.i.h.bf16 %v17709_v34  ;;  %v10468_v1 = vunpack.i.l.bf16 %v17709_v34 }
 0x7ef   : > { %10954 = vpow2.f32 %v2832_v11  ;;  %v11484_v11 = vld [vmem:[#allocation3 + $0x40] sm:$0xff]  ;;  %10651 = vrot.lane.b32.xlu1 %v14022_v7, %s11989_s19 }
 0x7f0   : > { %v14008_v53 = vpop.permute.xlu1 %4116  ;;  %v14028_v40 = vpack.i.bf16 %v11485_v8, %v11484_v11  ;;  %v11488_v11 = vld [vmem:[#allocation3 + $0xd0] sm:$0xff]  ;;  %v11489_v8 = vld [vmem:[#allocation3 + $0xd8] sm:$0xff] }
 0x7f1   : > { %v14012_v51 = vpop.permute.xlu0 %10511  ;;  %v14042_v16 = vpack.i.bf16 %v11489_v8, %v11488_v11 }
 0x7f2   : > { %10641 = vrot.lane.b32.xlu0 %v14004_v22, %s11989_s19 }
 0x7f3   : > { %10656 = vrot.lane.b32.xlu1 %v14034_v17, %s11989_s19 }
 0x7f4   : > { %v14020_v46 = vpop.permute.xlu1 %4118 }
 0x7f5   : > { %v14024_v20 = vpop.permute.xlu0 %10516 }
 0x7f6   : > { %10661 = vrot.lane.b32.xlu0 %v14016_v38, %s11989_s19 }
 0x7f7   : > { %10676 = vrot.lane.b32.xlu1 %v14054_v43, %s11989_s19 }
 0x7f8   : > { %v10953_v29 = vpop.eup %10952  ;;  %v14032_v54 = vpop.permute.xlu1 %4120 }
 0x7f9   : > { %v10955_v31 = vpop.eup %10954  ;;  %v14036_v19 = vpop.permute.xlu0 %10521 }
 0x7fa   : > { %3021 = vmatprep.mubr.f32.mxu0 %v10955_v31  ;;  %10666 = vrot.lane.b32.xlu0 %v14028_v40, %s11989_s19  ;;  %v14044_v24 = vadd.f32 %v10955_v31, %v10953_v29  ;;  %v9793_v31 = vpack.c.bf16 %v10469_v57, %v10468_v1  ;;  %v11494_v1 = vld [vmem:[#allocation3 + $0xe0] sm:$0xff]  ;;  %v11495_v57 = vld [vmem:[#allocation3 + $0xe8] sm:$0xff] }
 0x7fb   : > { %3022 = vmatmul.mubr.f32.gmra.mrb[46].mxu0 %v10953_v29  ;;  %v11493_v29 = vld [vmem:[#allocation3 + $0xf8] sm:$0xff]  ;;  %v14072_v6 = vpack.i.bf16 %v11495_v57, %v11494_v1  ;;  %v10483_v1 = vunpack.i.l.bf16 %v13944_v26  ;;  %v11499_v57 = vld [vmem:[#allocation3 + $0x68] sm:$0xff] }
 0x7fc   : > { %17710 = vst [vmem:[#allocation36_spill] sm:$0xff] %v14044_v24  ;;  %8670 = vmatprep.mubr.msk.f32.mxu0 %vm2352_vm0, %v17712_v35  ;;  %v14052_v34 = vpop.permute.xlu1 %4122  ;;  %v14060_v8 = vpack.i.bf16 %v11493_v29, %v11492_v23  ;;  %v9796_v24 = vpack.c.bf16 %v10474_v37, %v10473_v42  ;;  %v10478_v42 = vunpack.i.l.bf16 %v13876_v45  ;;  %v11497_v23 = vld [vmem:[#allocation3 + $0x78] sm:$0xff] }
 0x7fd   : > { %v14056_v11 = vpop.permute.xlu0 %10526  ;;  %10681 = vrot.lane.b32.xlu1 %v14072_v6, %s11989_s19  ;;  %v9802_v26 = vpack.c.bf16 %v10484_v36, %v10483_v1  ;;  %v10489_v36 = vunpack.i.h.bf16 %v13952_v33  ;;  %v10493_v1 = vunpack.i.l.bf16 %v13960_v15 }
 0x7fe   : > { %10671 = vrot.lane.b32.xlu0 %v14042_v16, %s11989_s19 }
 0x7ff   : > { %8671 = vmatmul.mubr.msk.f32.vlgmr.msra.gmra.mrb[48].mxu0 %vm2352_vm0, %v17712_v35  ;;  %v10479_v35 = vunpack.i.h.bf16 %v13876_v45  ;;  %v11498_v45 = vld [vmem:[#allocation3 + $0x60] sm:$0xff] }
 0x800   : > { %9795 = vmatpush3.bf16.xpose.msk.msra.mxu0 %vm13141_vm1, %v9793_v31  ;;  %8672 = vmatprep.mubr.msk.f32.mxu0 %vm2352_vm0, %v17713_v44  ;;  %v14070_v39 = vpop.permute.xlu1 %4124  ;;  %v11496_v31 = vld [vmem:[#allocation3 + $0x70] sm:$0xff]  ;;  %v14094_v61 = vpack.i.bf16 %v11499_v57, %v11498_v45 }
 0x801   : > { %9798 = vmatprep.subr.msk.bf16.mxu0 %vm13141_vm1, %v9796_v24  ;;  %v14076_v37 = vpop.permute.xlu0 %10531  ;;  %v14082_v29 = vpack.i.bf16 %v11497_v23, %v11496_v31  ;;  %v9799_v23 = vpack.c.bf16 %v10479_v35, %v10478_v42  ;;  %v10494_v42 = vunpack.i.h.bf16 %v13960_v15  ;;  %v10499_v15 = vunpack.i.h.bf16 %v13968_v4 }
 0x802   : > { %10691 = vrot.lane.b32.xlu0 %v14060_v8, %s11989_s19  ;;  %10686 = vrot.lane.b32.xlu1 %v14094_v61, %s11989_s19 }
 0x803   : > { %8673 = vmatmul.mubr.msk.f32.gmra.mrb[50].mxu0 %vm2352_vm0, %v17713_v44 }
 0x804   : > { %8674 = vmatprep.mubr.msk.f32.mxu0 %vm2352_vm0, %v13882_v52  ;;  %v14092_v24 = vpop.permute.xlu1 %4126 }
 0x805   : > { %v14096_v31 = vpop.permute.xlu0 %10536 }
 0x806   : > { %10696 = vrot.lane.b32.xlu0 %v14082_v29, %s11989_s19  ;;  %10706 = vrot.lane.b32.xlu1 %v13976_v41, %s11990_s9 }
 0x807   : > { %8675 = vmatmul.mubr.msk.f32.gmra.mrb[52].mxu0 %vm2352_vm0, %v13882_v52  ;;  %v10488_v52 = vunpack.i.l.bf16 %v13952_v33  ;;  %v9808_v33 = vpack.c.bf16 %v10494_v42, %v10493_v1 }
 0x808   : > { %9801 = vmatpush3.bf16.xpose.msk.msra.mxu0 %vm13141_vm1, %v9799_v23  ;;  %8676 = vmatprep.mubr.msk.f32.mxu0 %vm2352_vm0, %v13896_v58  ;;  %v14108_v44 = vpop.permute.xlu1 %4128 }
 0x809   : > { %9804 = vmatprep.subr.msk.bf16.mxu0 %vm13141_vm1, %v9802_v26  ;;  %v14112_v35 = vpop.permute.xlu0 %10541  ;;  %v9805_v23 = vpack.c.bf16 %v10489_v36, %v10488_v52  ;;  %v10498_v26 = vunpack.i.l.bf16 %v13968_v4  ;;  %v10503_v52 = vunpack.i.l.bf16 %v13978_v59 }
 0x80a   : > { %10701 = vrot.lane.b32.xlu0 %v13992_v30, %s11990_s9  ;;  %10721 = vrot.lane.b32.xlu1 %v14004_v22, %s11990_s9 }
 0x80b   : > { %8677 = vmatmul.mubr.msk.f32.gmra.mrb[54].mxu0 %vm2352_vm0, %v13896_v58  ;;  %v9811_v1 = vpack.c.bf16 %v10499_v15, %v10498_v26  ;;  %v10513_v15 = vunpack.i.l.bf16 %v14012_v51 }
 0x80c   : > { %8678 = vmatprep.mubr.msk.f32.mxu0 %vm2352_vm0, %v13902_v12  ;;  %v14124_v45 = vpop.permute.xlu1 %4130 }
 0x80d   : > { %v14126_v57 = vpop.permute.xlu0 %10546 }
 0x80e   : > { %10711 = vrot.lane.b32.xlu0 %v13986_v50, %s11990_s9  ;;  %10741 = vrot.lane.b32.xlu1 %v14016_v38, %s11990_s9 }
 0x80f   : > { %8679 = vmatmul.mubr.msk.f32.gmra.mrb[56].mxu0 %vm2352_vm0, %v13902_v12  ;;  %v10504_v12 = vunpack.i.h.bf16 %v13978_v59  ;;  %v10508_v59 = vunpack.i.l.bf16 %v14000_v0 }
 0x810   : > { %9807 = vmatpush3.bf16.xpose.msk.msra.mxu0 %vm13141_vm1, %v9805_v23  ;;  %8680 = vmatprep.mubr.msk.f32.mxu0 %vm2352_vm0, %v13908_v18  ;;  %v14142_v36 = vpop.permute.xlu1 %4132  ;;  %v10509_v23 = vunpack.i.h.bf16 %v14000_v0 }
 0x811   : > { %9810 = vmatprep.subr.msk.bf16.mxu0 %vm13141_vm1, %v9808_v33  ;;  %v14138_v58 = vpop.permute.xlu0 %10551  ;;  %v9814_v4 = vpack.c.bf16 %v10504_v12, %v10503_v52  ;;  %v10518_v52 = vunpack.i.l.bf16 %v14024_v20 }
 0x812   : > { %10716 = vrot.lane.b32.xlu0 %v13998_v55, %s11990_s9  ;;  %v9817_v0 = vpack.c.bf16 %v10509_v23, %v10508_v59  ;;  %10761 = vrot.lane.b32.xlu1 %v14072_v6, %s11990_s9 }
 0x813   : > { %8681 = vmatmul.mubr.msk.f32.gmra.mrb[58].mxu0 %vm2352_vm0, %v13908_v18  ;;  %v10514_v18 = vunpack.i.h.bf16 %v14012_v51 }
 0x814   : > { %8682 = vmatprep.mubr.msk.f32.mxu0 %vm2352_vm0, %v13916_v10  ;;  %v14160_v33 = vpop.permute.xlu1 %4134 }
 0x815   : > { %v14152_v42 = vpop.permute.xlu0 %10556  ;;  %v9820_v26 = vpack.c.bf16 %v10514_v18, %v10513_v15  ;;  %v10528_v18 = vunpack.i.l.bf16 %v14056_v11 }
 0x816   : > { %10726 = vrot.lane.b32.xlu0 %v14010_v5, %s11990_s9  ;;  %10766 = vrot.lane.b32.xlu1 %v14094_v61, %s11990_s9  ;;  %v10539_v61 = vunpack.i.h.bf16 %v14096_v31 }
 0x817   : > { %8683 = vmatmul.mubr.msk.f32.gmra.mrb[60].mxu0 %vm2352_vm0, %v13916_v10 }
 0x818   : > { %9813 = vmatpush3.bf16.xpose.msk.msra.mxu0 %vm13141_vm1, %v9811_v1  ;;  %8684 = vmatprep.mubr.msk.f32.mxu0 %vm2352_vm0, %v13924_v32  ;;  %v14182_v12 = vpop.permute.xlu1 %4136  ;;  %v10524_v1 = vunpack.i.h.bf16 %v14036_v19 }
 0x819   : > { %9816 = vmatprep.subr.msk.bf16.mxu0 %vm13141_vm1, %v9814_v4  ;;  %v14170_v10 = vpop.permute.xlu0 %10561  ;;  %v10523_v4 = vunpack.i.l.bf16 %v14036_v19 }
 0x81a   : > { %10731 = vrot.lane.b32.xlu0 %v14022_v7, %s11990_s9  ;;  %10771 = vrot.lane.b32.xlu1 %v14060_v8, %s11990_s9  ;;  %v10543_v8 = vunpack.i.l.bf16 %v14112_v35 }
 0x81b   : > { %8685 = vmatmul.mubr.msk.f32.gmra.mrb[62].mxu0 %vm2352_vm0, %v13924_v32  ;;  %v10519_v32 = vunpack.i.h.bf16 %v14024_v20  ;;  %v9826_v19 = vpack.c.bf16 %v10524_v1, %v10523_v4 }
 0x81c   : > { %8686 = vmatprep.mubr.msk.f32.mxu0 %vm2352_vm0, %v13930_v27  ;;  %v14208_v20 = vpop.permute.xlu1 %4138 }
 0x81d   : > { %v14180_v51 = vpop.permute.xlu0 %10566 }
 0x81e   : > { %10736 = vrot.lane.b32.xlu0 %v14034_v17, %s11990_s9  ;;  %10786 = vrot.lane.b32.xlu1 %v13976_v41, %s11991_s7  ;;  %v10548_v41 = vunpack.i.l.bf16 %v14126_v57 }
 0x81f   : > { %8687 = vmatmul.mubr.msk.f32.gmra.mrb[64].mxu0 %vm2352_vm0, %v13930_v27  ;;  %v9823_v27 = vpack.c.bf16 %v10519_v32, %v10518_v52 }
 0x820   : > { %9819 = vmatpush3.bf16.xpose.msk.msra.mxu0 %vm13141_vm1, %v9817_v0  ;;  %8688 = vmatprep.mubr.msk.f32.mxu0 %vm2352_vm0, %v13934_v56  ;;  %v10534_v0 = vunpack.i.h.bf16 %v14076_v37 }
 0x821   : > { %v14198_v23 = vpop.permute.xlu0 %10571  ;;  %9822 = vmatprep.subr.msk.bf16.mxu0 %vm13141_vm1, %v9820_v26 }
 0x822   : > { %10746 = vrot.lane.b32.xlu0 %v14028_v40, %s11990_s9  ;;  %10801 = vrot.lane.b32.xlu1 %v14004_v22, %s11991_s7 }
 0x823   : > { %8689 = vmatmul.mubr.msk.f32.gmra.mrb[66].mxu0 %vm2352_vm0, %v13934_v56  ;;  %v10529_v56 = vunpack.i.h.bf16 %v14056_v11 }
 0x824   : > { %8690 = vmatprep.mubr.msk.f32.mxu0 %vm2352_vm0, %v13938_v14 }
 0x825   : > { %v14212_v59 = vpop.permute.xlu0 %10576 }
 0x826   : > { %10751 = vrot.lane.b32.xlu0 %v14042_v16, %s11990_s9  ;;  %v10533_v16 = vunpack.i.l.bf16 %v14076_v37  ;;  %v9829_v37 = vpack.c.bf16 %v10529_v56, %v10528_v18  ;;  %10821 = vrot.lane.b32.xlu1 %v14016_v38, %s11991_s7 }
 0x827   : > { %8691 = vmatmul.mubr.msk.f32.gmra.mrb[68].mxu0 %vm2352_vm0, %v13938_v14  ;;  %v14232_v14 = vpop.permute.xlu1 %5076 }
 0x828   : > { %9825 = vmatpush3.bf16.xpose.msk.msra.mxu0 %vm13141_vm1, %v9823_v27  ;;  %v8590_v15 = vpop.f32.mrb[16].mxu0  ;;  %8692 = vmatprep.mubr.msk.f32.mxu0 %vm2352_vm0, %v13942_v3  ;;  %v9832_v52 = vpack.c.bf16 %v10534_v0, %v10533_v16 }
 0x829   : > { %v8591_v26 = vpop.f32.mrb[17].mxu0  ;;  %v14228_v6 = vpop.permute.xlu0 %10581  ;;  %9828 = vmatprep.subr.msk.bf16.mxu0 %vm13141_vm1, %v9826_v19 }
 0x82a   : > { %v14234_v11 = vadd.f32 %v8591_v26, %v8590_v15  ;;  %10756 = vrot.lane.b32.xlu0 %v14054_v43, %s11990_s9  ;;  %v10538_v43 = vunpack.i.l.bf16 %v14096_v31 }
 0x82b   : > { %8693 = vmatmul.mubr.msk.f32.gmra.mrb[70].mxu0 %vm2352_vm0, %v13942_v3  ;;  %v14256_v3 = vpop.permute.xlu1 %5080 }
 0x82c   : > { %17714 = vst [vmem:[#allocation37_spill] sm:$0xff] %v14234_v11  ;;  %v8593_v32 = vpop.f32.mrb[18].mxu0  ;;  %8694 = vmatprep.mubr.msk.f32.mxu0 %vm2352_vm0, %v13948_v13  ;;  %v9835_v31 = vpack.c.bf16 %v10539_v61, %v10538_v43  ;;  %v14720_v11 = vld [vmem:[%s12513_s8 + $0xb8] sm:$0xff] }
 0x82d   : > { %v8594_v1 = vpop.f32.mrb[19].mxu0  ;;  %v14244_v4 = vpop.permute.xlu0 %10586 }
 0x82e   : > { %v14246_v27 = vadd.f32 %v8594_v1, %v8593_v32  ;;  %10776 = vrot.lane.b32.xlu0 %v14082_v29, %s11990_s9  ;;  %v10544_v29 = vunpack.i.h.bf16 %v14112_v35  ;;  %v10554_v32 = vunpack.i.h.bf16 %v14138_v58 }
 0x82f   : > { %8695 = vmatmul.mubr.msk.f32.gmra.mrb[72].mxu0 %vm2352_vm0, %v13948_v13  ;;  %v14280_v26 = vpop.permute.xlu1 %5084 }
 0x830   : > { %17715 = vst [vmem:[#allocation43_spill] sm:$0xff] %v14246_v27  ;;  %9831 = vmatpush3.bf16.xpose.msk.msra.mxu0 %vm13141_vm1, %v9829_v37  ;;  %v8596_v19 = vpop.f32.mrb[20].mxu0  ;;  %8696 = vmatprep.mubr.msk.f32.mxu0 %vm2352_vm0, %v13954_v60  ;;  %v9870_v35 = vpack.c.bf16 %v10544_v29, %v10543_v8  ;;  %v10564_v8 = vunpack.i.h.bf16 %v14170_v10  ;;  %v14748_v27 = vld [vmem:[%s12513_s8 + $0xd0] sm:$0xff] }
 0x831   : > { %v8597_v56 = vpop.f32.mrb[21].mxu0  ;;  %v14264_v18 = vpop.permute.xlu0 %10591  ;;  %9834 = vmatprep.subr.msk.bf16.mxu0 %vm13141_vm1, %v9832_v52  ;;  %17757 = vst [vmem:[#allocation94_spill] sm:$0xff] %v14748_v27 }
 0x832   : > { %v14268_v13 = vadd.f32 %v8597_v56, %v8596_v19  ;;  %10781 = vrot.lane.b32.xlu0 %v13992_v30, %s11991_s7  ;;  %v10563_v56 = vunpack.i.l.bf16 %v14170_v10 }
 0x833   : > { %8697 = vmatmul.mubr.msk.f32.gmra.mrb[74].mxu0 %vm2352_vm0, %v13954_v60  ;;  %v10549_v60 = vunpack.i.h.bf16 %v14126_v57  ;;  %v14310_v1 = vpop.permute.xlu1 %5088 }
 0x834   : > { %17716 = vst [vmem:[#allocation48_spill] sm:$0xff] %v14268_v13  ;;  %v8599_v15 = vpop.f32.mrb[22].mxu0  ;;  %8698 = vmatprep.mubr.msk.f32.mxu0 %vm2352_vm0, %v13958_v28  ;;  %v9882_v10 = vpack.c.bf16 %v10564_v8, %v10563_v56  ;;  %v10584_v8 = vunpack.i.h.bf16 %v14228_v6  ;;  %v10583_v56 = vunpack.i.l.bf16 %v14228_v6 }
 0x835   : > { %v8600_v0 = vpop.f32.mrb[23].mxu0  ;;  %v14278_v16 = vpop.permute.xlu0 %10596  ;;  %v9873_v57 = vpack.c.bf16 %v10549_v60, %v10548_v41 }
 0x836   : > { %v14282_v37 = vadd.f32 %v8600_v0, %v8599_v15  ;;  %10791 = vrot.lane.b32.xlu0 %v13986_v50, %s11991_s7  ;;  %v10553_v50 = vunpack.i.l.bf16 %v14138_v58 }
 0x837   : > { %8699 = vmatmul.mubr.msk.f32.gmra.mrb[76].mxu0 %vm2352_vm0, %v13958_v28 }
 0x838   : > { %17717 = vst [vmem:[#allocation49_spill] sm:$0xff] %v14282_v37  ;;  %9837 = vmatpush3.bf16.xpose.msk.msra.mxu0 %vm13141_vm1, %v9835_v31  ;;  %v8602_v30 = vpop.f32.mrb[24].mxu0  ;;  %8700 = vmatprep.mubr.msk.f32.mxu0 %vm2352_vm0, %v13964_v63  ;;  %v9876_v61 = vpack.c.bf16 %v10554_v32, %v10553_v50  ;;  %v10574_v50 = vunpack.i.h.bf16 %v14198_v23 }
 0x839   : > { %v8603_v52 = vpop.f32.mrb[25].mxu0  ;;  %v14298_v22 = vpop.permute.xlu0 %10601  ;;  %9872 = vmatprep.subr.msk.bf16.mxu0 %vm13141_vm1, %v9870_v35 }
 0x83a   : > { %v14302_v28 = vadd.f32 %v8603_v52, %v8602_v30  ;;  %10796 = vrot.lane.b32.xlu0 %v13998_v55, %s11991_s7  ;;  %v10558_v55 = vunpack.i.l.bf16 %v14152_v42 }
 0x83b   : > { %8701 = vmatmul.mubr.msk.f32.gmra.mrb[78].mxu0 %vm2352_vm0, %v13964_v63  ;;  %v10559_v63 = vunpack.i.h.bf16 %v14152_v42 }
 0x83c   : > { %17718 = vst [vmem:[#allocation44_spill] sm:$0xff] %v14302_v28  ;;  %v8605_v58 = vpop.f32.mrb[26].mxu0  ;;  %8814 = vmatprep.mubr.msk.f32.mxu0 %vm2352_vm0, %v13970_v25 }
 0x83d   : > { %v8606_v43 = vpop.f32.mrb[27].mxu0  ;;  %v14314_v19 = vpop.permute.xlu0 %10606  ;;  %v9879_v15 = vpack.c.bf16 %v10559_v63, %v10558_v55 }
 0x83e   : > { %v14316_v29 = vadd.f32 %v8606_v43, %v8605_v58  ;;  %10806 = vrot.lane.b32.xlu0 %v14010_v5, %s11991_s7 }
 0x83f   : > { %8815 = vmatmul.mubr.msk.f32.vlgmr.msra.gmra.mrb[80].mxu0 %vm2352_vm0, %v13970_v25  ;;  %v14334_v25 = vpop.permute.xlu1 %5092 }
 0x840   : > { %17719 = vst [vmem:[#allocation45_spill] sm:$0xff] %v14316_v29  ;;  %v8608_v38 = vpop.f32.mrb[28].mxu0  ;;  %8816 = vmatprep.mubr.msk.f32.mxu0 %vm2352_vm0, %v13974_v9  ;;  %9875 = vmatpush3.bf16.xpose.msk.msra.mxu0 %vm13141_vm1, %v9873_v57 }
 0x841   : > { %v8609_v31 = vpop.f32.mrb[29].mxu0  ;;  %v14330_v5 = vpop.permute.xlu0 %10611  ;;  %9878 = vmatprep.subr.msk.bf16.mxu0 %vm13141_vm1, %v9876_v61 }
 0x842   : > { %v14336_v42 = vadd.f32 %v8609_v31, %v8608_v38  ;;  %10811 = vrot.lane.b32.xlu0 %v14022_v7, %s11991_s7  ;;  %v10569_v7 = vunpack.i.h.bf16 %v14180_v51 }
 0x843   : > { %8817 = vmatmul.mubr.msk.f32.gmra.mrb[82].mxu0 %vm2352_vm0, %v13974_v9  ;;  %v10568_v9 = vunpack.i.l.bf16 %v14180_v51  ;;  %v14354_v30 = vpop.permute.xlu1 %5096 }
 0x844   : > { %17720 = vst [vmem:[#allocation50_spill] sm:$0xff] %v14336_v42  ;;  %v8611_v35 = vpop.f32.mrb[30].mxu0  ;;  %8818 = vmatprep.mubr.msk.f32.mxu0 %vm2352_vm0, %v13984_v2  ;;  %v8134_v42 = vld [vmem:[%s13433_s28 + $0x2e0] sm:$0xff] }
 0x845   : > { %v8612_v0 = vpop.f32.mrb[31].mxu0  ;;  %v14344_v60 = vpop.permute.xlu0 %10616  ;;  %v9885_v51 = vpack.c.bf16 %v10569_v7, %v10568_v9 }
 0x846   : > { %v14346_v41 = vadd.f32 %v8612_v0, %v8611_v35  ;;  %10816 = vrot.lane.b32.xlu0 %v14034_v17, %s11991_s7  ;;  %v10573_v17 = vunpack.i.l.bf16 %v14198_v23  ;;  %v9894_v0 = vpack.c.bf16 %v10584_v8, %v10583_v56  ;;  %v10604_v8 = vunpack.i.h.bf16 %v14298_v22 }
 0x847   : > { %8819 = vmatmul.mubr.msk.f32.gmra.mrb[84].mxu0 %vm2352_vm0, %v13984_v2  ;;  %v14376_v63 = vpop.permute.xlu1 %5100  ;;  %v10603_v56 = vunpack.i.l.bf16 %v14298_v22 }
 0x848   : > { %17721 = vst [vmem:[#allocation46_spill] sm:$0xff] %v14346_v41  ;;  %v8614_v32 = vpop.f32.mrb[32].mxu0  ;;  %8820 = vmatprep.mubr.msk.f32.mxu0 %vm2352_vm0, %v13996_v49  ;;  %9881 = vmatpush3.bf16.xpose.msk.msra.mxu0 %vm13141_vm1, %v9879_v15  ;;  %v9888_v23 = vpack.c.bf16 %v10574_v50, %v10573_v17  ;;  %v8130_v41 = vld [vmem:[%s13433_s28 + $0x2c0] sm:$0xff] }
 0x849   : > { %v8615_v52 = vpop.f32.mrb[33].mxu0  ;;  %v14362_v57 = vpop.permute.xlu0 %5074  ;;  %9884 = vmatprep.subr.msk.bf16.mxu0 %vm13141_vm1, %v9882_v10 }
 0x84a   : > { %v14366_v2 = vadd.f32 %v8615_v52, %v8614_v32  ;;  %10826 = vrot.lane.b32.xlu0 %v14028_v40, %s11991_s7  ;;  %v10579_v40 = vunpack.i.h.bf16 %v14212_v59  ;;  %v10589_v32 = vunpack.i.h.bf16 %v14244_v4  ;;  %v10594_v52 = vunpack.i.h.bf16 %v14264_v18 }
 0x84b   : > { %8821 = vmatmul.mubr.msk.f32.gmra.mrb[86].mxu0 %vm2352_vm0, %v13996_v49  ;;  %v10578_v49 = vunpack.i.l.bf16 %v14212_v59  ;;  %v14398_v35 = vpop.permute.xlu1 %5104 }
 0x84c   : > { %17722 = vst [vmem:[#allocation47_spill] sm:$0xff] %v14366_v2  ;;  %v8617_v58 = vpop.f32.mrb[34].mxu0  ;;  %8822 = vmatprep.mubr.msk.f32.mxu0 %vm2352_vm0, %v14008_v53  ;;  %v14704_v2 = vld [vmem:[%s12513_s8 + $0xa8] sm:$0xff] }
 0x84d   : > { %v8618_v61 = vpop.f32.mrb[35].mxu0  ;;  %v14374_v43 = vpop.permute.xlu0 %5078  ;;  %v9891_v59 = vpack.c.bf16 %v10579_v40, %v10578_v49 }
 0x84e   : > { %v14378_v55 = vadd.f32 %v8618_v61, %v8617_v58 }
 0x84f   : > { %8823 = vmatmul.mubr.msk.f32.gmra.mrb[88].mxu0 %vm2352_vm0, %v14008_v53  ;;  %v10627_v17 = vpop.permute.xlu1 %10626 }
 0x850   : > { %17723 = vst [vmem:[#allocation52_spill] sm:$0xff] %v14378_v55  ;;  %v8620_v38 = vpop.f32.mrb[36].mxu0  ;;  %8824 = vmatprep.mubr.msk.f32.mxu0 %vm2352_vm0, %v14020_v46  ;;  %9887 = vmatpush3.bf16.xpose.msk.msra.mxu0 %vm13141_vm1, %v9885_v51  ;;  %v10593_v51 = vunpack.i.l.bf16 %v14264_v18  ;;  %v10599_v18 = vunpack.i.h.bf16 %v14278_v16  ;;  %v10629_v22 = vunpack.i.h.bf16 %v10627_v17 }
 0x851   : > { %v8621_v31 = vpop.f32.mrb[37].mxu0  ;;  %v14390_v15 = vpop.permute.xlu0 %5082  ;;  %9890 = vmatprep.subr.msk.bf16.mxu0 %vm13141_vm1, %v9888_v23 }
 0x852   : > { %v14394_v53 = vadd.f32 %v8621_v31, %v8620_v38  ;;  %v9900_v40 = vpack.c.bf16 %v10594_v52, %v10593_v51  ;;  %v10598_v38 = vunpack.i.l.bf16 %v14278_v16 }
 0x853   : > { %8825 = vmatmul.mubr.msk.f32.gmra.mrb[90].mxu0 %vm2352_vm0, %v14020_v46  ;;  %v10588_v46 = vunpack.i.l.bf16 %v14244_v4  ;;  %v10632_v61 = vpop.permute.xlu1 %10631 }
 0x854   : > { %17724 = vst [vmem:[#allocation54_spill] sm:$0xff] %v14394_v53  ;;  %v8623_v10 = vpop.f32.mrb[38].mxu0  ;;  %8826 = vmatprep.mubr.msk.f32.mxu0 %vm2352_vm0, %v14032_v54 }
 0x855   : > { %v8624_v6 = vpop.f32.mrb[39].mxu0  ;;  %v14402_v7 = vpop.permute.xlu0 %5086  ;;  %v9897_v4 = vpack.c.bf16 %v10589_v32, %v10588_v46  ;;  %v10608_v32 = vunpack.i.l.bf16 %v14314_v19  ;;  %v10614_v46 = vunpack.i.h.bf16 %v14330_v5 }
 0x856   : > { %v14404_v9 = vadd.f32 %v8624_v6, %v8623_v10  ;;  %v10609_v6 = vunpack.i.h.bf16 %v14314_v19 }
 0x857   : > { %8827 = vmatmul.mubr.msk.f32.gmra.mrb[92].mxu0 %vm2352_vm0, %v14032_v54 }
 0x858   : > { %17725 = vst [vmem:[#allocation53_spill] sm:$0xff] %v14404_v9  ;;  %v8626_v50 = vpop.f32.mrb[40].mxu0  ;;  %8828 = vmatprep.mubr.msk.f32.mxu0 %vm2352_vm0, %v14052_v34  ;;  %9893 = vmatpush3.bf16.xpose.msk.msra.mxu0 %vm13141_vm1, %v9891_v59  ;;  %v9906_v59 = vpack.c.bf16 %v10604_v8, %v10603_v56 }
 0x859   : > { %v8627_v58 = vpop.f32.mrb[41].mxu0  ;;  %v14416_v23 = vpop.permute.xlu0 %5090  ;;  %9896 = vmatprep.subr.msk.bf16.mxu0 %vm13141_vm1, %v9894_v0  ;;  %v10628_v0 = vunpack.i.l.bf16 %v10627_v17  ;;  %v10633_v17 = vunpack.i.l.bf16 %v10632_v61 }
 0x85a   : > { %v14420_v54 = vadd.f32 %v8627_v58, %v8626_v50  ;;  %v10613_v50 = vunpack.i.l.bf16 %v14330_v5 }
 0x85b   : > { %8829 = vmatmul.mubr.msk.f32.gmra.mrb[94].mxu0 %vm2352_vm0, %v14052_v34  ;;  %v10637_v34 = vpop.permute.xlu1 %10636  ;;  %v9760_v19 = vpack.c.bf16 %v10629_v22, %v10628_v0  ;;  %v10618_v0 = vunpack.i.l.bf16 %v14344_v60 }
 0x85c   : > { %17726 = vst [vmem:[#allocation56_spill] sm:$0xff] %v14420_v54  ;;  %8830 = vmatprep.mubr.msk.f32.mxu0 %vm2352_vm0, %v14070_v39  ;;  %v9912_v5 = vpack.c.bf16 %v10614_v46, %v10613_v50 }
 0x85d   : > { %v14426_v49 = vpop.permute.xlu0 %5094 }
 0x85f   : > { %8831 = vmatmul.mubr.msk.f32.gmra.mrb[96].mxu0 %vm2352_vm0, %v14070_v39  ;;  %v9903_v39 = vpack.c.bf16 %v10599_v18, %v10598_v38  ;;  %v10647_v16 = vpop.permute.xlu1 %10646  ;;  %v9909_v18 = vpack.c.bf16 %v10609_v6, %v10608_v32 }
 0x860   : > { %8832 = vmatprep.mubr.msk.f32.mxu0 %vm2352_vm0, %v14092_v24  ;;  %9899 = vmatpush3.bf16.xpose.msk.msra.mxu0 %vm13141_vm1, %v9897_v4  ;;  %v10639_v4 = vunpack.i.h.bf16 %v10637_v34  ;;  %v10648_v22 = vunpack.i.l.bf16 %v10647_v16 }
 0x861   : > { %v14438_v31 = vpop.permute.xlu0 %5098  ;;  %9902 = vmatprep.subr.msk.bf16.mxu0 %vm13141_vm1, %v9900_v40  ;;  %v10638_v40 = vunpack.i.l.bf16 %v10637_v34  ;;  %v10619_v34 = vunpack.i.h.bf16 %v14344_v60 }
 0x863   : > { %8833 = vmatmul.mubr.msk.f32.gmra.mrb[98].mxu0 %vm2352_vm0, %v14092_v24  ;;  %v10652_v24 = vpop.permute.xlu1 %10651 }
 0x864   : > { %8834 = vmatprep.mubr.msk.f32.mxu0 %vm2352_vm0, %v14108_v44  ;;  %v10654_v32 = vunpack.i.h.bf16 %v10652_v24 }
 0x865   : > { %v14446_v10 = vpop.permute.xlu0 %5102 }
 0x867   : > { %8835 = vmatmul.mubr.msk.f32.gmra.mrb[100].mxu0 %vm2352_vm0, %v14108_v44  ;;  %v10634_v44 = vunpack.i.h.bf16 %v10632_v61 }
 0x868   : > { %8836 = vmatprep.mubr.msk.f32.mxu0 %vm2352_vm0, %v14124_v45  ;;  %9905 = vmatpush3.bf16.xpose.msk.msra.mxu0 %vm13141_vm1, %v9903_v39  ;;  %v10657_v39 = vpop.permute.xlu1 %10656 }
 0x869   : > { %9908 = vmatprep.subr.msk.bf16.mxu0 %vm13141_vm1, %v9906_v59  ;;  %v10622_v52 = vpop.permute.xlu0 %10621  ;;  %v9762_v56 = vpack.c.bf16 %v10634_v44, %v10633_v17  ;;  %v10659_v60 = vunpack.i.h.bf16 %v10657_v39  ;;  %v10658_v44 = vunpack.i.l.bf16 %v10657_v39  ;;  %v9915_v17 = vpack.c.bf16 %v10619_v34, %v10618_v0 }
 0x86a   : > { %v10624_v51 = vunpack.i.h.bf16 %v10622_v52  ;;  %v10623_v58 = vunpack.i.l.bf16 %v10622_v52  ;;  %v9764_v52 = vpack.c.bf16 %v10639_v4, %v10638_v40 }
 0x86b   : > { %8837 = vmatmul.mubr.msk.f32.gmra.mrb[102].mxu0 %vm2352_vm0, %v14124_v45  ;;  %v10649_v45 = vunpack.i.h.bf16 %v10647_v16  ;;  %v9772_v40 = vpack.c.bf16 %v10659_v60, %v10658_v44 }
 0x86c   : > { %8838 = vmatprep.mubr.msk.f32.mxu0 %vm2352_vm0, %v14142_v36  ;;  %v9758_v38 = vpack.c.bf16 %v10624_v51, %v10623_v58  ;;  %v10677_v16 = vpop.permute.xlu1 %10676 }
 0x86d   : > { %v10642_v8 = vpop.permute.xlu0 %10641  ;;  %v9768_v50 = vpack.c.bf16 %v10649_v45, %v10648_v22 }
 0x86e   : > { %9759 = vmatprep.subr.bf16.mxu1 %v9758_v38  ;;  %v10644_v61 = vunpack.i.h.bf16 %v10642_v8  ;;  %v10643_v59 = vunpack.i.l.bf16 %v10642_v8 }
 0x86f   : > { %8839 = vmatmul.mubr.msk.f32.gmra.mrb[104].mxu0 %vm2352_vm0, %v14142_v36  ;;  %9761 = vmatpush3.bf16.msra.mxu1 %v9760_v19  ;;  %v10653_v36 = vunpack.i.l.bf16 %v10652_v24 }
 0x870   : > { %8840 = vmatprep.mubr.msk.f32.mxu0 %vm2352_vm0, %v14160_v33  ;;  %9911 = vmatpush3.bf16.xpose.msk.msra.mxu0 %vm13141_vm1, %v9909_v18  ;;  %v9766_v6 = vpack.c.bf16 %v10644_v61, %v10643_v59  ;;  %v10682_v24 = vpop.permute.xlu1 %10681  ;;  %v10678_v61 = vunpack.i.l.bf16 %v10677_v16 }
 0x871   : > { %9914 = vmatprep.subr.msk.bf16.mxu0 %vm13141_vm1, %v9912_v5  ;;  %9763 = vmatprep.subr.bf16.mxu1 %v9762_v56  ;;  %v10662_v46 = vpop.permute.xlu0 %10661  ;;  %v9770_v4 = vpack.c.bf16 %v10654_v32, %v10653_v36  ;;  %v10684_v59 = vunpack.i.h.bf16 %v10682_v24 }
 0x872   : > { %v10664_v51 = vunpack.i.h.bf16 %v10662_v46  ;;  %v10663_v58 = vunpack.i.l.bf16 %v10662_v46 }
 0x873   : > { %8841 = vmatmul.mubr.msk.f32.gmra.mrb[106].mxu0 %vm2352_vm0, %v14160_v33  ;;  %9765 = vmatpush3.bf16.msra.mxu1 %v9764_v52  ;;  %v10683_v52 = vunpack.i.l.bf16 %v10682_v24 }
 0x874   : > { %8842 = vmatprep.mubr.msk.f32.mxu0 %vm2352_vm0, %v14182_v12  ;;  %9767 = vmatprep.subr.bf16.mxu1 %v9766_v6  ;;  %v9774_v38 = vpack.c.bf16 %v10664_v51, %v10663_v58  ;;  %v10687_v47 = vpop.permute.xlu1 %10686 }
 0x875   : > { %v10667_v19 = vpop.permute.xlu0 %10666  ;;  %v10689_v0 = vunpack.i.h.bf16 %v10687_v47  ;;  %v9782_v36 = vpack.c.bf16 %v10684_v59, %v10683_v52  ;;  %v14576_v59 = vld [vmem:[%s12513_s8 + $0x10] sm:$0xff] }
 0x876   : > { %v10669_v33 = vunpack.i.h.bf16 %v10667_v19  ;;  %v10668_v18 = vunpack.i.l.bf16 %v10667_v19 }
 0x877   : > { %8843 = vmatmul.mubr.msk.f32.gmra.mrb[108].mxu0 %vm2352_vm0, %v14182_v12  ;;  %9769 = vmatpush3.bf16.msra.mxu1 %v9768_v50  ;;  %v10679_v12 = vunpack.i.h.bf16 %v10677_v16 }
 0x878   : > { %8844 = vmatprep.mubr.msk.f32.mxu0 %vm2352_vm0, %v14208_v20  ;;  %9917 = vmatpush3.bf16.xpose.msk.msra.mxu0 %vm13141_vm1, %v9915_v17  ;;  %v9776_v39 = vpack.c.bf16 %v10669_v33, %v10668_v18  ;;  %v14567_v18 = vld [vmem:[%s12513_s8 + $0x8] sm:$0xff] }
 0x879   : > { %9771 = vmatprep.subr.bf16.mxu1 %v9770_v4  ;;  %v10672_v5 = vpop.permute.xlu0 %10671  ;;  %v9780_v34 = vpack.c.bf16 %v10679_v12, %v10678_v61  ;;  %17732 = vst [vmem:[#allocation69_spill] sm:$0xff] %v14567_v18  ;;  %v8110_v12 = vld [vmem:[%s13433_s28 + $0x220] sm:$0xff] }
 0x87a   : > { %v10674_v8 = vunpack.i.h.bf16 %v10672_v5  ;;  %v10673_v56 = vunpack.i.l.bf16 %v10672_v5 }
 0x87b   : > { %8845 = vmatmul.mubr.msk.f32.gmra.mrb[110].mxu0 %vm2352_vm0, %v14208_v20  ;;  %9773 = vmatpush3.bf16.msra.mxu1 %v9772_v40  ;;  %v10688_v20 = vunpack.i.l.bf16 %v10687_v47  ;;  %v8111_v47 = vld [vmem:[%s13433_s28 + $0x228] sm:$0xff] }
 0x87c   : > { %8958 = vmatprep.mubr.msk.f32.mxu0 %vm2352_vm0, %v14362_v57  ;;  %9775 = vmatprep.subr.bf16.mxu1 %v9774_v38  ;;  %v9778_v45 = vpack.c.bf16 %v10674_v8, %v10673_v56 }
 0x87d   : > { %v10692_v22 = vpop.permute.xlu0 %10691  ;;  %v9784_v16 = vpack.c.bf16 %v10689_v0, %v10688_v20 }
 0x87e   : > { %v10694_v6 = vunpack.i.h.bf16 %v10692_v22  ;;  %v10693_v32 = vunpack.i.l.bf16 %v10692_v22 }
 0x87f   : > { %8959 = vmatmul.mubr.msk.f32.vlgmr.msra.gmra.mrb[112].mxu0 %vm2352_vm0, %v14362_v57  ;;  %9777 = vmatpush3.bf16.msra.mxu1 %v9776_v39 }
 0x880   : > { %8960 = vmatprep.mubr.msk.f32.mxu0 %vm2352_vm0, %v14232_v14  ;;  %9779 = vmatprep.subr.bf16.mxu1 %v9778_v45  ;;  %v9786_v57 = vpack.c.bf16 %v10694_v6, %v10693_v32  ;;  %v14583_v45 = vld [vmem:[%s12513_s8 + $0x18] sm:$0xff]  ;;  %v8112_v32 = vld [vmem:[%s13433_s28 + $0x230] sm:$0xff] }
 0x881   : > { %v10697_v46 = vpop.permute.xlu0 %10696 }
 0x882   : > { %v10699_v50 = vunpack.i.h.bf16 %v10697_v46  ;;  %v10698_v60 = vunpack.i.l.bf16 %v10697_v46  ;;  %v14592_v46 = vld [vmem:[%s12513_s8 + $0x20] sm:$0xff] }
 0x883   : > { %8961 = vmatmul.mubr.msk.f32.gmra.mrb[114].mxu0 %vm2352_vm0, %v14232_v14  ;;  %9781 = vmatpush3.bf16.msra.mxu1 %v9780_v34 }
 0x884   : > { %8962 = vmatprep.mubr.msk.f32.mxu0 %vm2352_vm0, %v14374_v43  ;;  %9783 = vmatprep.subr.bf16.mxu1 %v9782_v36  ;;  %v9788_v58 = vpack.c.bf16 %v10699_v50, %v10698_v60  ;;  %v8113_v50 = vld [vmem:[%s13433_s28 + $0x238] sm:$0xff]  ;;  %v14599_v60 = vld [vmem:[%s12513_s8 + $0x28] sm:$0xff] }
 0x885   : > { %v10702_v44 = vpop.permute.xlu0 %10701 }
 0x886   : > { %v10704_v17 = vunpack.i.h.bf16 %v10702_v44  ;;  %v10703_v51 = vunpack.i.l.bf16 %v10702_v44 }
 0x887   : > { %8963 = vmatmul.mubr.msk.f32.gmra.mrb[116].mxu0 %vm2352_vm0, %v14374_v43  ;;  %9785 = vmatpush3.bf16.msra.mxu1 %v9784_v16 }
 0x888   : > { %8964 = vmatprep.mubr.msk.f32.mxu0 %vm2352_vm0, %v14256_v3  ;;  %9787 = vmatprep.subr.bf16.mxu1 %v9786_v57  ;;  %v9838_v14 = vpack.c.bf16 %v10704_v17, %v10703_v51 }
 0x889   : > { %v8629_v19 = vpop.f32.mrb[42].mxu0  ;;  %v14745_v13 = vpop.permute.xlu0 %10711 }
 0x88a   : > { %v8630_v4 = vpop.f32.mrb[43].mxu0  ;;  %17756 = vst [vmem:[#allocation93_spill] sm:$0xff] %v14745_v13 }
 0x88b   : > { %v14500_v24 = vadd.f32 %v8630_v4, %v8629_v19  ;;  %8965 = vmatmul.mubr.msk.f32.gmra.mrb[118].mxu0 %vm2352_vm0, %v14256_v3  ;;  %9789 = vmatpush3.bf16.msra.mxu1 %v9788_v58  ;;  %v14608_v4 = vld [vmem:[%s12513_s8 + $0x30] sm:$0xff] }
 0x88c   : > { %8966 = vmatprep.mubr.msk.f32.mxu0 %vm2352_vm0, %v14390_v15  ;;  %9839 = vmatprep.subr.bf16.mxu1 %v9838_v14  ;;  %v8114_v14 = vld [vmem:[%s13433_s28 + $0x240] sm:$0xff] }
 0x88d   : > { %17727 = vst [vmem:[#allocation57_spill] sm:$0xff] %v14500_v24  ;;  %v8632_v43 = vpop.f32.mrb[44].mxu0 }
 0x88e   : > { %v8633_v40 = vpop.f32.mrb[45].mxu0 }
 0x88f   : > { %v14506_v33 = vadd.f32 %v8633_v40, %v8632_v43  ;;  %8967 = vmatmul.mubr.msk.f32.gmra.mrb[120].mxu0 %vm2352_vm0, %v14390_v15  ;;  %v8115_v40 = vld [vmem:[%s13433_s28 + $0x248] sm:$0xff] }
 0x890   : > { %8968 = vmatprep.mubr.msk.f32.mxu0 %vm2352_vm0, %v14280_v26 }
 0x891   : > { %17728 = vst [vmem:[#allocation55_spill] sm:$0xff] %v14506_v33  ;;  %v8128_v33 = vld [vmem:[%s13433_s28 + $0x2b0] sm:$0xff] }
 0x893   : > { %8969 = vmatmul.mubr.msk.f32.gmra.mrb[122].mxu0 %vm2352_vm0, %v14280_v26 }
 0x894   : > { %8970 = vmatprep.mubr.msk.f32.mxu0 %vm2352_vm0, %v14402_v7 }
 0x897   : > { %8971 = vmatmul.mubr.msk.f32.gmra.mrb[124].mxu0 %vm2352_vm0, %v14402_v7 }
 0x898   : > { %8972 = vmatprep.mubr.msk.f32.mxu0 %vm2352_vm0, %v14310_v1 }
 0x89b   : > { %8973 = vmatmul.mubr.msk.f32.gmra.mrb[126].mxu0 %vm2352_vm0, %v14310_v1 }
 0x89c   : > { %8974 = vmatprep.mubr.msk.f32.mxu0 %vm2352_vm0, %v14416_v23 }
 0x89f   : > { %8975 = vmatmul.mubr.msk.f32.gmra.mrb[128].mxu0 %vm2352_vm0, %v14416_v23 }
 0x8a0   : > { %8976 = vmatprep.mubr.msk.f32.mxu0 %vm2352_vm0, %v14334_v25 }
 0x8a3   : > { %8977 = vmatmul.mubr.msk.f32.gmra.mrb[130].mxu0 %vm2352_vm0, %v14334_v25  ;;  %v8106_v25 = vld [vmem:[%s13433_s28 + $0x200] sm:$0xff] }
 0x8a4   : > { %8978 = vmatprep.mubr.msk.f32.mxu0 %vm2352_vm0, %v14426_v49 }
 0x8a7   : > { %8979 = vmatmul.mubr.msk.f32.gmra.mrb[132].mxu0 %vm2352_vm0, %v14426_v49  ;;  %v8108_v49 = vld [vmem:[%s13433_s28 + $0x210] sm:$0xff] }
 0x8a8   : > { %8980 = vmatprep.mubr.msk.f32.mxu0 %vm2352_vm0, %v14354_v30 }
 0x8ab   : > { %8981 = vmatmul.mubr.msk.f32.gmra.mrb[134].mxu0 %vm2352_vm0, %v14354_v30  ;;  %v8107_v30 = vld [vmem:[%s13433_s28 + $0x208] sm:$0xff] }
 0x8ac   : > { %8982 = vmatprep.mubr.msk.f32.mxu0 %vm2352_vm0, %v14438_v31 }
 0x8af   : > { %8983 = vmatmul.mubr.msk.f32.gmra.mrb[136].mxu0 %vm2352_vm0, %v14438_v31  ;;  %v14560_v31 = vld [vmem:[%s12513_s8] sm:$0xff] }
 0x8b0   : > { %8984 = vmatprep.mubr.msk.f32.mxu0 %vm2352_vm0, %v14376_v63  ;;  %17730 = vst [vmem:[#allocation67_spill] sm:$0xff] %v14560_v31 }
 0x8b3   : > { %8985 = vmatmul.mubr.msk.f32.gmra.mrb[138].mxu0 %vm2352_vm0, %v14376_v63 }
 0x8b4   : > { %8986 = vmatprep.mubr.msk.f32.mxu0 %vm2352_vm0, %v14446_v10 }
 0x8b7   : > { %8987 = vmatmul.mubr.msk.f32.gmra.mrb[140].mxu0 %vm2352_vm0, %v14446_v10 }
 0x8b8   : > { %8988 = vmatprep.mubr.msk.f32.mxu0 %vm2352_vm0, %v14398_v35 }
 0x8bb   : > { %8989 = vmatmul.mubr.msk.f32.gmra.mrb[142].mxu0 %vm2352_vm0, %v14398_v35  ;;  %v8109_v35 = vld [vmem:[%s13433_s28 + $0x218] sm:$0xff] }
 0x8ce   : > { %v8635_v3 = vpop.f32.mrb[46].mxu0 }
 0x8cf   : > { %v8636_v26 = vpop.f32.mrb[47].mxu0 }
 0x8d0   : > { %v14554_v1 = vadd.f32 %v8636_v26, %v8635_v3  ;;  %v14615_v3 = vld [vmem:[%s12513_s8 + $0x38] sm:$0xff] }
 0x8d2   : > { %17729 = vst [vmem:[#allocation66_spill] sm:$0xff] %v14554_v1  ;;  %v3368_v63 = vpop.f32.mrb[48].mxu0  ;;  %v8132_v1 = vld [vmem:[%s13433_s28 + $0x2d0] sm:$0xff] }
 0x8d3   : > { %v3369_v15 = vadd.f32 %v8106_v25, %v3368_v63  ;;  %v3370_v7 = vpop.f32.mrb[49].mxu0 }
 0x8d4   : > { %v3371_v23 = vadd.f32 %v8107_v30, %v3370_v7 }
 0x8d5   : > { %v14563_v10 = vadd.f32 %v14560_v31, %v3369_v15 }
 0x8d6   : > { %v14570_v38 = vadd.f32 %v14567_v18, %v3371_v23  ;;  %v3374_v5 = vpop.f32.mrb[50].mxu0  ;;  %v14623_v23 = vld [vmem:[%s12513_s8 + $0x40] sm:$0xff] }
 0x8d7   : > { %17731 = vst [vmem:[#allocation68_spill] sm:$0xff] %v14563_v10  ;;  %v3375_v8 = vadd.f32 %v8108_v49, %v3374_v5  ;;  %v3376_v56 = vpop.f32.mrb[51].mxu0 }
 0x8d8   : > { %17733 = vst [vmem:[#allocation70_spill] sm:$0xff] %v14570_v38  ;;  %v3377_v39 = vadd.f32 %v8109_v35, %v3376_v56  ;;  %v3495_v61 = vmax.f32 %v14563_v10, %v14570_v38  ;;  %v14629_v35 = vld [vmem:[%s12513_s8 + $0x48] sm:$0xff]  ;;  %v8196_v38 = vld [vmem:[%s13433_s28 + $0x440] sm:$0xff] }
 0x8d9   : > { %v14579_v52 = vadd.f32 %v14576_v59, %v3375_v8  ;;  %v8197_v10 = vld [vmem:[%s13433_s28 + $0x448] sm:$0xff] }
 0x8da   : > { %v14586_v22 = vadd.f32 %v14583_v45, %v3377_v39  ;;  %v3380_v34 = vpop.f32.mrb[52].mxu0  ;;  %3496 = vmax.xlane.f32.xlu0 %v3495_v61  ;;  %v8118_v39 = vld [vmem:[%s13433_s28 + $0x260] sm:$0xff]  ;;  %v8119_v61 = vld [vmem:[%s13433_s28 + $0x268] sm:$0xff] }
 0x8db   : > { %17734 = vst [vmem:[#allocation71_spill] sm:$0xff] %v14579_v52  ;;  %v3381_v0 = vadd.f32 %v8110_v12, %v3380_v34  ;;  %v3382_v20 = vpop.f32.mrb[53].mxu0 }
 0x8dc   : > { %17735 = vst [vmem:[#allocation72_spill] sm:$0xff] %v14586_v22  ;;  %v3383_v6 = vadd.f32 %v8111_v47, %v3382_v20  ;;  %v3498_v36 = vmax.f32 %v14579_v52, %v14586_v22 }
 0x8dd   : > { %v14595_v16 = vadd.f32 %v14592_v46, %v3381_v0 }
 0x8de   : > { %v14602_v57 = vadd.f32 %v14599_v60, %v3383_v6  ;;  %v3386_v44 = vpop.f32.mrb[54].mxu0  ;;  %3499 = vmax.xlane.f32.xlu1 %v3498_v36  ;;  %v14643_v6 = vld [vmem:[%s12513_s8 + $0x60] sm:$0xff]  ;;  %v14649_v36 = vld [vmem:[%s12513_s8 + $0x68] sm:$0xff] }
 0x8df   : > { %17736 = vst [vmem:[#allocation73_spill] sm:$0xff] %v14595_v16  ;;  %v3387_v17 = vadd.f32 %v8112_v32, %v3386_v44  ;;  %v3388_v51 = vpop.f32.mrb[55].mxu0 }
 0x8e0   : > { %17737 = vst [vmem:[#allocation74_spill] sm:$0xff] %v14602_v57  ;;  %v3389_v58 = vadd.f32 %v8113_v50, %v3388_v51  ;;  %v3501_v19 = vmax.f32 %v14595_v16, %v14602_v57  ;;  %v8122_v51 = vld [vmem:[%s13433_s28 + $0x280] sm:$0xff]  ;;  %v8194_v57 = vld [vmem:[%s13433_s28 + $0x430] sm:$0xff]  ;;  %v8195_v16 = vld [vmem:[%s13433_s28 + $0x438] sm:$0xff] }
 0x8e1   : > { %v14611_v43 = vadd.f32 %v14608_v4, %v3387_v17 }
 0x8e2   : > { %v14618_v26 = vadd.f32 %v14615_v3, %v3389_v58  ;;  %v3392_v25 = vpop.f32.mrb[56].mxu0  ;;  %3502 = vmax.xlane.f32.xlu0 %v3501_v19 }
 0x8e3   : > { %17738 = vst [vmem:[#allocation75_spill] sm:$0xff] %v14611_v43  ;;  %v3393_v30 = vadd.f32 %v8114_v14, %v3392_v25  ;;  %v3394_v63 = vpop.f32.mrb[57].mxu0  ;;  %v8123_v14 = vld [vmem:[%s13433_s28 + $0x288] sm:$0xff] }
 0x8e4   : > { %17739 = vst [vmem:[#allocation76_spill] sm:$0xff] %v14618_v26  ;;  %v3395_v15 = vadd.f32 %v8115_v40, %v3394_v63  ;;  %v3504_v7 = vmax.f32 %v14611_v43, %v14618_v26  ;;  %v8124_v63 = vld [vmem:[%s13433_s28 + $0x290] sm:$0xff] }
 0x8e5   : > { %v14626_v49 = vadd.f32 %v14623_v23, %v3393_v30 }
 0x8e6   : > { %v14632_v5 = vadd.f32 %v14629_v35, %v3395_v15  ;;  %v14634_v8 = vpop.f32.mrb[58].mxu0  ;;  %3505 = vmax.xlane.f32.xlu1 %v3504_v7  ;;  %v11512_v15 = vld [vmem:[#allocation3 + $0xd0] sm:$0xff]  ;;  %v11513_v7 = vld [vmem:[#allocation3 + $0xd8] sm:$0xff] }
 0x8e7   : > { %17740 = vst [vmem:[#allocation77_spill] sm:$0xff] %v14626_v49  ;;  %v14636_v56 = vpop.f32.mrb[59].mxu0 }
 0x8e8   : > { %17741 = vst [vmem:[#allocation78_spill] sm:$0xff] %v14632_v5  ;;  %v3507_v12 = vmax.f32 %v14626_v49, %v14632_v5  ;;  %v11539_v5 = vld [vmem:[#allocation3 + $0x58] sm:$0xff] }
 0x8ea   : > { %v3404_v47 = vpop.f32.mrb[60].mxu0  ;;  %3508 = vmax.xlane.f32.xlu1 %v3507_v12  ;;  %v14664_v12 = vld [vmem:[%s12513_s8 + $0x80] sm:$0xff] }
 0x8eb   : > { %v3405_v34 = vadd.f32 %v8118_v39, %v3404_v47  ;;  %v3406_v0 = vpop.f32.mrb[61].mxu0  ;;  %v10830_v39 = vpack.i.bf16 %v11513_v7, %v11512_v15  ;;  %v8125_v47 = vld [vmem:[%s13433_s28 + $0x298] sm:$0xff] }
 0x8ec   : > { %v3407_v20 = vadd.f32 %v8119_v61, %v3406_v0  ;;  %v14688_v7 = vld [vmem:[%s12513_s8 + $0x98] sm:$0xff] }
 0x8ed   : > { %v14646_v32 = vadd.f32 %v14643_v6, %v3405_v34  ;;  %v14671_v34 = vld [vmem:[%s12513_s8 + $0x88] sm:$0xff] }
 0x8ee   : > { %v14652_v50 = vadd.f32 %v14649_v36, %v3407_v20  ;;  %v14654_v44 = vpop.f32.mrb[62].mxu0 }
 0x8ef   : > { %17742 = vst [vmem:[#allocation79_spill] sm:$0xff] %v14646_v32  ;;  %v14656_v17 = vpop.f32.mrb[63].mxu0 }
 0x8f0   : > { %17743 = vst [vmem:[#allocation80_spill] sm:$0xff] %v14652_v50  ;;  %v3513_v58 = vmax.f32 %v14646_v32, %v14652_v50  ;;  %v14823_v32 = vld [vmem:[%s12513_s8 + $0x78] sm:$0xff] }
 0x8f2   : > { %v3416_v19 = vpop.f32.mrb[64].mxu0  ;;  %3514 = vmax.xlane.f32.xlu1 %v3513_v58 }
 0x8f3   : > { %v3417_v40 = vadd.f32 %v8122_v51, %v3416_v19  ;;  %v3418_v25 = vpop.f32.mrb[65].mxu0  ;;  %v8126_v19 = vld [vmem:[%s13433_s28 + $0x2a0] sm:$0xff] }
 0x8f4   : > { %v3419_v30 = vadd.f32 %v8123_v14, %v3418_v25  ;;  %v14681_v25 = vld [vmem:[%s12513_s8 + $0x90] sm:$0xff] }
 0x8f5   : > { %v14667_v61 = vadd.f32 %v14664_v12, %v3417_v40 }
 0x8f6   : > { %v14674_v0 = vadd.f32 %v14671_v34, %v3419_v30  ;;  %v3422_v20 = vpop.f32.mrb[66].mxu0  ;;  %v8127_v30 = vld [vmem:[%s13433_s28 + $0x2a8] sm:$0xff] }
 0x8f7   : > { %17744 = vst [vmem:[#allocation81_spill] sm:$0xff] %v14667_v61  ;;  %v3423_v51 = vadd.f32 %v8124_v63, %v3422_v20  ;;  %v3424_v58 = vpop.f32.mrb[67].mxu0 }
 0x8f8   : > { %17745 = vst [vmem:[#allocation82_spill] sm:$0xff] %v14674_v0  ;;  %v3425_v14 = vadd.f32 %v8125_v47, %v3424_v58  ;;  %10831 = vrot.lane.b32.xlu0 %v10830_v39, %s11991_s7  ;;  %v3519_v40 = vmax.f32 %v14667_v61, %v14674_v0  ;;  %v14801_v61 = vld [vmem:[%s12513_s8 + $0xf0] sm:$0xff] }
 0x8f9   : > { %v14684_v15 = vadd.f32 %v14681_v25, %v3423_v51  ;;  %v14697_v51 = vld [vmem:[%s12513_s8 + $0xa0] sm:$0xff]  ;;  %17766 = vst [vmem:[#allocation103_spill] sm:$0xff] %v14801_v61 }
 0x8fa   : > { %v14691_v63 = vadd.f32 %v14688_v7, %v3425_v14  ;;  %v3428_v47 = vpop.f32.mrb[68].mxu0  ;;  %3520 = vmax.xlane.f32.xlu1 %v3519_v40  ;;  %v8129_v14 = vld [vmem:[%s13433_s28 + $0x2b8] sm:$0xff] }
 0x8fb   : > { %17746 = vst [vmem:[#allocation83_spill] sm:$0xff] %v14684_v15  ;;  %v3429_v39 = vadd.f32 %v8126_v19, %v3428_v47  ;;  %v3430_v20 = vpop.f32.mrb[69].mxu0 }
 0x8fc   : > { %17747 = vst [vmem:[#allocation84_spill] sm:$0xff] %v14691_v63  ;;  %v3431_v58 = vadd.f32 %v8127_v30, %v3430_v20  ;;  %v3522_v54 = vmax.f32 %v14684_v15, %v14691_v63 }
 0x8fd   : > { %v14700_v53 = vadd.f32 %v14697_v51, %v3429_v39  ;;  %v14713_v39 = vld [vmem:[%s12513_s8 + $0xb0] sm:$0xff] }
 0x8fe   : > { %v14707_v40 = vadd.f32 %v14704_v2, %v3431_v58  ;;  %v3434_v19 = vpop.f32.mrb[70].mxu0  ;;  %3523 = vmax.xlane.f32.xlu1 %v3522_v54  ;;  %v8131_v58 = vld [vmem:[%s13433_s28 + $0x2c8] sm:$0xff] }
 0x8ff   : > { %17748 = vst [vmem:[#allocation85_spill] sm:$0xff] %v14700_v53  ;;  %v3435_v30 = vadd.f32 %v8128_v33, %v3434_v19  ;;  %v3436_v47 = vpop.f32.mrb[71].mxu0 }
 0x900   : > { %17749 = vst [vmem:[#allocation86_spill] sm:$0xff] %v14707_v40  ;;  %v3437_v20 = vadd.f32 %v8129_v14, %v3436_v47  ;;  %v3525_v29 = vmax.f32 %v14700_v53, %v14707_v40  ;;  %v14776_v53 = vld [vmem:[%s12513_s8 + $0xe8] sm:$0xff]  ;;  %v14793_v40 = vld [vmem:[%s12513_s8 + $0x58] sm:$0xff] }
 0x901   : > { %v14716_v37 = vadd.f32 %v14713_v39, %v3435_v30  ;;  %v14729_v30 = vld [vmem:[%s12513_s8 + $0xc0] sm:$0xff] }
 0x902   : > { %v14723_v54 = vadd.f32 %v14720_v11, %v3437_v20  ;;  %v3440_v33 = vpop.f32.mrb[72].mxu0  ;;  %3526 = vmax.xlane.f32.xlu1 %v3525_v29  ;;  %17752 = vst [vmem:[#allocation89_spill] sm:$0xff] %v14729_v30  ;;  %v8133_v20 = vld [vmem:[%s13433_s28 + $0x2d8] sm:$0xff]  ;;  %v14736_v29 = vld [vmem:[%s12513_s8 + $0xc8] sm:$0xff] }
 0x903   : > { %17750 = vst [vmem:[#allocation87_spill] sm:$0xff] %v14716_v37  ;;  %v3441_v14 = vadd.f32 %v8130_v41, %v3440_v33  ;;  %v3442_v19 = vpop.f32.mrb[73].mxu0  ;;  %17754 = vst [vmem:[#allocation91_spill] sm:$0xff] %v14736_v29 }
 0x904   : > { %17751 = vst [vmem:[#allocation88_spill] sm:$0xff] %v14723_v54  ;;  %v3443_v47 = vadd.f32 %v8131_v58, %v3442_v19  ;;  %v3528_v24 = vmax.f32 %v14716_v37, %v14723_v54  ;;  %v14767_v54 = vld [vmem:[%s12513_s8 + $0xe0] sm:$0xff] }
 0x905   : > { %v14732_v9 = vadd.f32 %v14729_v30, %v3441_v14  ;;  %v8116_v14 = vld [vmem:[%s13433_s28 + $0x250] sm:$0xff] }
 0x906   : > { %v14739_v41 = vadd.f32 %v14736_v29, %v3443_v47  ;;  %v3446_v58 = vpop.f32.mrb[74].mxu0  ;;  %3529 = vmax.xlane.f32.xlu1 %v3528_v24  ;;  %v8135_v47 = vld [vmem:[%s13433_s28 + $0x2e8] sm:$0xff]  ;;  %v8117_v24 = vld [vmem:[%s13433_s28 + $0x258] sm:$0xff]  ;;  %v3399_v62 = vadd.f32 %v8116_v14, %v14634_v8 }
 0x907   : > { %17753 = vst [vmem:[#allocation90_spill] sm:$0xff] %v14732_v9  ;;  %v3447_v33 = vadd.f32 %v8132_v1, %v3446_v58  ;;  %v3448_v19 = vpop.f32.mrb[75].mxu0  ;;  %v14756_v1 = vld [vmem:[%s12513_s8 + $0xd8] sm:$0xff]  ;;  %v3401_v37 = vadd.f32 %v8117_v24, %v14636_v56  ;;  %v14781_v56 = vpop.permute.xlu0 %10716  ;;  %v14784_v24 = vld [vmem:[%s12513_s8 + $0x50] sm:$0xff] }
 0x908   : > { %17755 = vst [vmem:[#allocation92_spill] sm:$0xff] %v14739_v41  ;;  %v3449_v55 = vadd.f32 %v8133_v20, %v3448_v19  ;;  %v3531_v28 = vmax.f32 %v14732_v9, %v14739_v41  ;;  %17759 = vst [vmem:[#allocation96_spill] sm:$0xff] %v14756_v1 }
 0x909   : > { %v14751_v48 = vadd.f32 %v14748_v27, %v3447_v33  ;;  %v8136_v33 = vld [vmem:[%s13433_s28 + $0x2f0] sm:$0xff]  ;;  %17763 = vst [vmem:[#allocation100_spill] sm:$0xff] %v14781_v56  ;;  %v8199_v27 = vld [vmem:[%s13433_s28 + $0x458] sm:$0xff] }
 0x90a   : > { %v14759_v20 = vadd.f32 %v14756_v1, %v3449_v55  ;;  %v3452_v58 = vpop.f32.mrb[76].mxu0  ;;  %3532 = vmax.xlane.f32.xlu1 %v3531_v28  ;;  %v8137_v28 = vld [vmem:[%s13433_s28 + $0x2f8] sm:$0xff] }
 0x90b   : > { %17758 = vst [vmem:[#allocation95_spill] sm:$0xff] %v14751_v48  ;;  %v3453_v19 = vadd.f32 %v8134_v42, %v3452_v58  ;;  %v3454_v21 = vpop.f32.mrb[77].mxu0  ;;  %v8120_v42 = vld [vmem:[%s13433_s28 + $0x270] sm:$0xff]  ;;  %v8121_v58 = vld [vmem:[%s13433_s28 + $0x278] sm:$0xff] }
 0x90c   : > { %17760 = vst [vmem:[#allocation97_spill] sm:$0xff] %v14759_v20  ;;  %v3455_v9 = vadd.f32 %v8135_v47, %v3454_v21  ;;  %v3534_v41 = vmax.f32 %v14751_v48, %v14759_v20  ;;  %v8188_v20 = vld [vmem:[%s13433_s28 + $0x400] sm:$0xff] }
 0x90d   : > { %v14770_v55 = vadd.f32 %v14767_v54, %v3453_v19  ;;  %v14787_v19 = vadd.f32 %v14784_v24, %v3399_v62 }
 0x90e   : > { %v14779_v21 = vadd.f32 %v14776_v53, %v3455_v9  ;;  %v3458_v8 = vpop.f32.mrb[78].mxu0  ;;  %3535 = vmax.xlane.f32.xlu1 %v3534_v41  ;;  %v14796_v41 = vadd.f32 %v14793_v40, %v3401_v37 }
 0x90f   : > { %17761 = vst [vmem:[#allocation98_spill] sm:$0xff] %v14770_v55  ;;  %v3459_v14 = vadd.f32 %v8136_v33, %v3458_v8  ;;  %v3460_v47 = vpop.f32.mrb[79].mxu0  ;;  %17764 = vst [vmem:[#allocation101_spill] sm:$0xff] %v14787_v19  ;;  %v3411_v33 = vadd.f32 %v8120_v42, %v14654_v44  ;;  %v3413_v8 = vadd.f32 %v8121_v58, %v14656_v17  ;;  %v8190_v42 = vld [vmem:[%s13433_s28 + $0x410] sm:$0xff] }
 0x910   : > { %17762 = vst [vmem:[#allocation99_spill] sm:$0xff] %v14779_v21  ;;  %v3461_v48 = vadd.f32 %v8137_v28, %v3460_v47  ;;  %v3537_v9 = vmax.f32 %v14770_v55, %v14779_v21  ;;  %17765 = vst [vmem:[#allocation102_spill] sm:$0xff] %v14796_v41  ;;  %v8189_v28 = vld [vmem:[%s13433_s28 + $0x408] sm:$0xff]  ;;  %v14808_v47 = vld [vmem:[%s12513_s8 + $0xf8] sm:$0xff] }
 0x911   : > { %v14804_v62 = vadd.f32 %v14801_v61, %v3459_v14  ;;  %17768 = vst [vmem:[#allocation105_spill] sm:$0xff] %v14808_v47  ;;  %v14817_v58 = vld [vmem:[%s12513_s8 + $0x70] sm:$0xff]  ;;  %v14826_v50 = vadd.f32 %v14823_v32, %v3413_v8 }
 0x912   : > { %v14811_v55 = vadd.f32 %v14808_v47, %v3461_v48  ;;  %v4366_v21 = vpop.f32.mrb[80].mxu0  ;;  %3538 = vmax.xlane.f32.xlu1 %v3537_v9  ;;  %v14820_v14 = vadd.f32 %v14817_v58, %v3411_v33  ;;  %v14828_v48 = vpop.permute.xlu0 %10726 }
 0x913   : > { %17767 = vst [vmem:[#allocation104_spill] sm:$0xff] %v14804_v62  ;;  %v4367_v37 = vadd.f32 %v8188_v20, %v4366_v21  ;;  %v4368_v0 = vpop.f32.mrb[81].mxu0  ;;  %17771 = vst [vmem:[#allocation108_spill] sm:$0xff] %v14826_v50  ;;  %v3510_v21 = vmax.f32 %v14787_v19, %v14796_v41 }
 0x914   : > { %17769 = vst [vmem:[#allocation106_spill] sm:$0xff] %v14811_v55  ;;  %v4369_v44 = vadd.f32 %v8189_v28, %v4368_v0  ;;  %v3540_v17 = vmax.f32 %v14804_v62, %v14811_v55  ;;  %17770 = vst [vmem:[#allocation107_spill] sm:$0xff] %v14820_v14  ;;  %v8191_v0 = vld [vmem:[%s13433_s28 + $0x418] sm:$0xff] }
 0x915   : > { %17772 = vst [vmem:[#allocation109_spill] sm:$0xff] %v14828_v48  ;;  %v14831_v20 = vadd.f32 %v14560_v31, %v4367_v37  ;;  %v3516_v37 = vmax.f32 %v14820_v14, %v14826_v50  ;;  %v11535_v14 = vld [vmem:[#allocation3 + $0xe8] sm:$0xff] }
 0x916   : > { %v14837_v9 = vadd.f32 %v14567_v18, %v4369_v44  ;;  %v4372_v28 = vpop.f32.mrb[82].mxu0  ;;  %3541 = vmax.xlane.f32.xlu1 %v3540_v17  ;;  %v14849_v19 = vpop.permute.xlu0 %10731 }
 0x917   : > { %17773 = vst [vmem:[#allocation110_spill] sm:$0xff] %v14831_v20  ;;  %v4373_v33 = vadd.f32 %v8190_v42, %v4372_v28  ;;  %v4374_v62 = vpop.f32.mrb[83].mxu0  ;;  %3511 = vmax.xlane.f32.xlu0 %v3510_v21  ;;  %17777 = vst [vmem:[#allocation114_spill] sm:$0xff] %v14849_v19 }
 0x918   : > { %17774 = vst [vmem:[#allocation111_spill] sm:$0xff] %v14837_v9  ;;  %v4375_v55 = vadd.f32 %v8191_v0, %v4374_v62  ;;  %v4493_v8 = vmax.f32 %v14831_v20, %v14837_v9 }
 0x919   : > { %v14842_v63 = vadd.f32 %v14576_v59, %v4373_v33 }
 0x91a   : > { %v14847_v41 = vadd.f32 %v14583_v45, %v4375_v55  ;;  %v4378_v44 = vpop.f32.mrb[84].mxu0  ;;  %4494 = vmax.xlane.f32.xlu1 %v4493_v8  ;;  %v14853_v21 = vpop.permute.xlu0 %10736  ;;  %v11534_v8 = vld [vmem:[#allocation3 + $0xe0] sm:$0xff] }
 0x91b   : > { %17775 = vst [vmem:[#allocation112_spill] sm:$0xff] %v14842_v63  ;;  %v4380_v42 = vpop.f32.mrb[85].mxu0  ;;  %3517 = vmax.xlane.f32.xlu0 %v3516_v37  ;;  %17778 = vst [vmem:[#allocation115_spill] sm:$0xff] %v14853_v21  ;;  %v10840_v50 = vpack.i.bf16 %v11535_v14, %v11534_v8 }
 0x91c   : > { %17776 = vst [vmem:[#allocation113_spill] sm:$0xff] %v14847_v41  ;;  %v4496_v62 = vmax.f32 %v14842_v63, %v14847_v41  ;;  %v11536_v63 = vld [vmem:[#allocation3 + $0x60] sm:$0xff] }
 0x91e   : > { %v4384_v17 = vpop.f32.mrb[86].mxu0  ;;  %v14857_v55 = vpop.permute.xlu0 %10746 }
 0x91f   : > { %v4386_v0 = vpop.f32.mrb[87].mxu0  ;;  %4497 = vmax.xlane.f32.xlu0 %v4496_v62  ;;  %17779 = vst [vmem:[#allocation116_spill] sm:$0xff] %v14857_v55  ;;  %v11537_v62 = vld [vmem:[#allocation3 + $0x68] sm:$0xff]  ;;  %v11538_v55 = vld [vmem:[#allocation3 + $0x50] sm:$0xff]  ;;  %v4385_v47 = vadd.f32 %v8194_v57, %v4384_v17 }
 0x920   : > { %v10845_v41 = vpack.i.bf16 %v11537_v62, %v11536_v63  ;;  %v10835_v49 = vpack.i.bf16 %v11539_v5, %v11538_v55  ;;  %v4387_v61 = vadd.f32 %v8195_v16, %v4386_v0  ;;  %v8202_v17 = vld [vmem:[%s13433_s28 + $0x470] sm:$0xff]  ;;  %v8203_v0 = vld [vmem:[%s13433_s28 + $0x478] sm:$0xff] }
 0x921   : > { %v14929_v16 = vadd.f32 %v14608_v4, %v4385_v47 }
 0x922   : > { %v4390_v28 = vpop.f32.mrb[88].mxu0  ;;  %v14864_v21 = vpop.permute.xlu0 %10751 }
 0x923   : > { %v4392_v33 = vpop.f32.mrb[89].mxu0  ;;  %17780 = vst [vmem:[#allocation117_spill] sm:$0xff] %v14864_v21  ;;  %17793 = vst [vmem:[#allocation130_spill] sm:$0xff] %v14929_v16 }
 0x926   : > { %v14855_v20 = vpop.f32.mrb[90].mxu0  ;;  %v14869_v14 = vpop.permute.xlu0 %10756 }
 0x927   : > { %v4398_v9 = vpop.f32.mrb[91].mxu0  ;;  %17781 = vst [vmem:[#allocation118_spill] sm:$0xff] %v14869_v14 }
 0x92a   : > { %v14859_v15 = vpop.f32.mrb[92].mxu0  ;;  %v14880_v62 = vpop.permute.xlu0 %10776 }
 0x92b   : > { %v14861_v37 = vpop.f32.mrb[93].mxu0  ;;  %10841 = vrot.lane.b32.xlu1 %v10840_v50, %s11991_s7  ;;  %v14874_v50 = vpop.permute.xlu1 %10706  ;;  %17783 = vst [vmem:[#allocation120_spill] sm:$0xff] %v14880_v62  ;;  %v8192_v62 = vld [vmem:[%s13433_s28 + $0x420] sm:$0xff] }
 0x92c   : > { %17782 = vst [vmem:[#allocation119_spill] sm:$0xff] %v14874_v50 }
 0x92e   : > { %v4408_v19 = vpop.f32.mrb[94].mxu0 }
 0x92f   : > { %v4410_v48 = vpop.f32.mrb[95].mxu0  ;;  %10846 = vrot.lane.b32.xlu1 %v10845_v41, %s11991_s7  ;;  %v14886_v14 = vpop.permute.xlu1 %10721 }
 0x930   : > { %17784 = vst [vmem:[#allocation121_spill] sm:$0xff] %v14886_v14  ;;  %v8193_v14 = vld [vmem:[%s13433_s28 + $0x428] sm:$0xff] }
 0x931   : > { %v4381_v52 = vadd.f32 %v8193_v14, %v4380_v42  ;;  %v14932_v42 = vadd.f32 %v14615_v3, %v4387_v61 }
 0x932   : > { %v14867_v56 = vpop.f32.mrb[96].mxu0 }
 0x933   : > { %v14871_v8 = vpop.f32.mrb[97].mxu0  ;;  %v14894_v43 = vpop.permute.xlu1 %10741  ;;  %v14926_v57 = vadd.f32 %v14599_v60, %v4381_v52  ;;  %17794 = vst [vmem:[#allocation131_spill] sm:$0xff] %v14932_v42  ;;  %v8201_v52 = vld [vmem:[%s13433_s28 + $0x468] sm:$0xff] }
 0x934   : > { %17786 = vst [vmem:[#allocation123_spill] sm:$0xff] %v14894_v43  ;;  %v4379_v43 = vadd.f32 %v8192_v62, %v4378_v44  ;;  %v4399_v62 = vadd.f32 %v8199_v27, %v4398_v9  ;;  %v8204_v27 = vld [vmem:[%s13433_s28 + $0x480] sm:$0xff] }
 0x935   : > { %10836 = vrot.lane.b32.xlu0 %v10835_v49, %s11991_s7  ;;  %v14890_v49 = vpop.permute.xlu0 %10781  ;;  %17792 = vst [vmem:[#allocation129_spill] sm:$0xff] %v14926_v57 }
 0x936   : > { %v14876_v63 = vpop.f32.mrb[98].mxu0  ;;  %17785 = vst [vmem:[#allocation122_spill] sm:$0xff] %v14890_v49  ;;  %v14923_v44 = vadd.f32 %v14592_v46, %v4379_v43  ;;  %v8200_v43 = vld [vmem:[%s13433_s28 + $0x460] sm:$0xff] }
 0x937   : > { %v14878_v41 = vpop.f32.mrb[99].mxu0  ;;  %v14910_v22 = vpop.permute.xlu1 %10761 }
 0x938   : > { %17789 = vst [vmem:[#allocation126_spill] sm:$0xff] %v14910_v22  ;;  %v4393_v22 = vadd.f32 %v8197_v10, %v4392_v33  ;;  %17791 = vst [vmem:[#allocation128_spill] sm:$0xff] %v14923_v44  ;;  %v4409_v33 = vadd.f32 %v8202_v17, %v4408_v19  ;;  %v4499_v9 = vmax.f32 %v14923_v44, %v14926_v57  ;;  %v8206_v17 = vld [vmem:[%s13433_s28 + $0x490] sm:$0xff]  ;;  %v8209_v44 = vld [vmem:[%s13433_s28 + $0x4a8] sm:$0xff] }
 0x939   : > { %v14901_v31 = vpop.permute.xlu0 %10791  ;;  %v4405_v19 = vadd.f32 %v8201_v52, %v14861_v37  ;;  %v4421_v52 = vadd.f32 %v8206_v17, %v14876_v63  ;;  %v8217_v63 = vld [vmem:[%s13433_s28 + $0x4e8] sm:$0xff] }
 0x93a   : > { %v14882_v5 = vpop.f32.mrb[100].mxu0  ;;  %17787 = vst [vmem:[#allocation124_spill] sm:$0xff] %v14901_v31  ;;  %v8198_v31 = vld [vmem:[%s13433_s28 + $0x450] sm:$0xff]  ;;  %v14949_v61 = vadd.f32 %v14629_v35, %v4393_v22  ;;  %v4403_v22 = vadd.f32 %v8200_v43, %v14859_v15 }
 0x93b   : > { %v14884_v55 = vpop.f32.mrb[101].mxu0  ;;  %v4397_v14 = vadd.f32 %v8198_v31, %v14855_v20  ;;  %v4411_v31 = vadd.f32 %v8203_v0, %v4410_v48  ;;  %v8205_v48 = vld [vmem:[%s13433_s28 + $0x488] sm:$0xff]  ;;  %v8207_v0 = vld [vmem:[%s13433_s28 + $0x498] sm:$0xff] }
 0x93c   : > { %v4417_v43 = vadd.f32 %v8205_v48, %v14871_v8  ;;  %v8216_v8 = vld [vmem:[%s13433_s28 + $0x4e0] sm:$0xff] }
 0x93d   : > { %v14918_v29 = vpop.permute.xlu0 %10796  ;;  %v14979_v15 = vadd.f32 %v14823_v32, %v4411_v31  ;;  %v14993_v31 = vadd.f32 %v14649_v36, %v4405_v19 }
 0x93e   : > { %v14888_v21 = vpop.f32.mrb[102].mxu0  ;;  %17790 = vst [vmem:[#allocation127_spill] sm:$0xff] %v14918_v29  ;;  %v4502_v29 = vmax.f32 %v14929_v16, %v14932_v42  ;;  %v8208_v42 = vld [vmem:[%s13433_s28 + $0x4a0] sm:$0xff] }
 0x93f   : > { %v14892_v26 = vpop.f32.mrb[103].mxu0  ;;  %17799 = vst [vmem:[#allocation136_spill] sm:$0xff] %v14979_v15 }
 0x941   : > { %v14952_v20 = vpop.permute.xlu0 %10806 }
 0x942   : > { %v14896_v50 = vpop.f32.mrb[104].mxu0  ;;  %17796 = vst [vmem:[#allocation133_spill] sm:$0xff] %v14952_v20 }
 0x943   : > { %v14898_v18 = vpop.f32.mrb[105].mxu0 }
 0x946   : > { %v14906_v13 = vpop.f32.mrb[106].mxu0 }
 0x947   : > { %v14908_v49 = vpop.f32.mrb[107].mxu0 }
 0x948   : > { %17788 = vst [vmem:[#allocation125_spill] sm:$0xff] %v14908_v49  ;;  %v4391_v49 = vadd.f32 %v8196_v38, %v4390_v28  ;;  %v14937_v38 = vpop.permute.xlu1 %10766 }
 0x949   : > { %17795 = vst [vmem:[#allocation132_spill] sm:$0xff] %v14937_v38  ;;  %v14959_v38 = vadd.f32 %v14784_v24, %v4397_v14  ;;  %v14976_v14 = vadd.f32 %v14817_v58, %v4409_v33  ;;  %v14990_v33 = vadd.f32 %v14643_v6, %v4403_v22  ;;  %v4429_v22 = vadd.f32 %v8209_v44, %v14884_v55 }
 0x94a   : > { %v14914_v1 = vpop.f32.mrb[108].mxu0  ;;  %v14946_v47 = vadd.f32 %v14623_v23, %v4391_v49  ;;  %v14962_v49 = vadd.f32 %v14793_v40, %v4399_v62  ;;  %v4415_v62 = vadd.f32 %v8204_v27, %v14867_v56  ;;  %v14997_v27 = vpop.permute.xlu0 %10811 }
 0x94b   : > { %v14920_v30 = vpop.f32.mrb[109].mxu0  ;;  %17797 = vst [vmem:[#allocation134_spill] sm:$0xff] %v14959_v38  ;;  %17798 = vst [vmem:[#allocation135_spill] sm:$0xff] %v14976_v14  ;;  %v4514_v19 = vmax.f32 %v14976_v14, %v14979_v15  ;;  %v4451_v44 = vadd.f32 %v8216_v8, %v14914_v1  ;;  %v15035_v1 = vadd.f32 %v14704_v2, %v4429_v22  ;;  %v8212_v8 = vld [vmem:[%s13433_s28 + $0x4c0] sm:$0xff] }
 0x94c   : > { %v14973_v16 = vpop.permute.xlu1 %10771  ;;  %v4505_v37 = vmax.f32 %v14946_v47, %v14949_v61  ;;  %v4508_v56 = vmax.f32 %v14959_v38, %v14962_v49  ;;  %v15006_v17 = vadd.f32 %v14664_v12, %v4415_v62  ;;  %v15012_v38 = vadd.f32 %v14681_v25, %v4421_v52  ;;  %v8272_v25 = vld [vmem:[%s13433_s28 + $0x610] sm:$0xff]  ;;  %v8273_v62 = vld [vmem:[%s13433_s28 + $0x618] sm:$0xff] }
 0x94d   : > { %17804 = vst [vmem:[#allocation141_spill] sm:$0xff] %v15035_v1  ;;  %v15048_v2 = vadd.f32 %v14767_v54, %v4451_v44  ;;  %v8215_v44 = vld [vmem:[%s13433_s28 + $0x4d8] sm:$0xff] }
 0x94e   : > { %v14939_v10 = vpop.f32.mrb[110].mxu0  ;;  %17801 = vst [vmem:[#allocation138_spill] sm:$0xff] %v15012_v38 }
 0x94f   : > { %v14943_v28 = vpop.f32.mrb[111].mxu0  ;;  %17805 = vst [vmem:[#allocation142_spill] sm:$0xff] %v15048_v2 }
 0x950   : > { %v15019_v55 = vpop.permute.xlu1 %10786 }
 0x952   : > { %v14969_v20 = vpop.f32.mrb[112].mxu0 }
 0x953   : > { %v14971_v57 = vpop.f32.mrb[113].mxu0  ;;  %4500 = vmax.xlane.f32.xlu1 %v4499_v9  ;;  %v4423_v9 = vadd.f32 %v8207_v0, %v14878_v41  ;;  %v4427_v41 = vadd.f32 %v8208_v42, %v14882_v5  ;;  %v15009_v0 = vadd.f32 %v14671_v34, %v4417_v43  ;;  %v8210_v5 = vld [vmem:[%s13433_s28 + $0x4b0] sm:$0xff]  ;;  %v8211_v42 = vld [vmem:[%s13433_s28 + $0x4b8] sm:$0xff]  ;;  %v4511_v34 = vmax.f32 %v14990_v33, %v14993_v31 }
 0x954   : > { %4503 = vmax.xlane.f32.xlu0 %v4502_v29  ;;  %v4435_v52 = vadd.f32 %v8211_v42, %v14892_v26  ;;  %v8277_v42 = vld [vmem:[%s13433_s28 + $0x638] sm:$0xff] }
 0x955   : > { %17800 = vst [vmem:[#allocation137_spill] sm:$0xff] %v15009_v0 }
 0x956   : > { %v5338_v29 = vpop.f32.mrb[114].mxu0  ;;  %v15062_v15 = vadd.f32 %v14720_v11, %v4435_v52 }
 0x957   : > { %v5340_v48 = vpop.f32.mrb[115].mxu0  ;;  %4506 = vmax.xlane.f32.xlu1 %v4505_v37  ;;  %v15015_v37 = vadd.f32 %v14688_v7, %v4423_v9  ;;  %v15032_v7 = vadd.f32 %v14697_v51, %v4427_v41  ;;  %v15039_v9 = vpop.permute.xlu0 %10816  ;;  %v4517_v51 = vmax.f32 %v15006_v17, %v15009_v0  ;;  %v8213_v41 = vld [vmem:[%s13433_s28 + $0x4c8] sm:$0xff]  ;;  %v17870_v0 = vld [vmem:[#allocation79_spill] sm:$0xff] }
 0x958   : > { %4509 = vmax.xlane.f32.xlu0 %v4508_v56  ;;  %v4453_v56 = vadd.f32 %v8217_v63, %v14920_v30  ;;  %v4433_v30 = vadd.f32 %v8210_v5, %v14888_v21  ;;  %v5339_v21 = vadd.f32 %v8272_v25, %v5338_v29  ;;  %v5341_v26 = vadd.f32 %v8273_v62, %v5340_v48 }
 0x959   : > { %17802 = vst [vmem:[#allocation139_spill] sm:$0xff] %v15015_v37  ;;  %17803 = vst [vmem:[#allocation140_spill] sm:$0xff] %v15032_v7  ;;  %v4520_v63 = vmax.f32 %v15012_v38, %v15015_v37  ;;  %v15056_v38 = vpop.permute.xlu1 %10801  ;;  %v4523_v29 = vmax.f32 %v15032_v7, %v15035_v1  ;;  %v4439_v48 = vadd.f32 %v8212_v8, %v14896_v50  ;;  %v17811_v8 = vld [vmem:[#allocation125_spill] sm:$0xff]  ;;  %v11543_v1 = vld [vmem:[#allocation3 + $0xf8] sm:$0xff] }
 0x95a   : > { %v15023_v12 = vpop.f32.mrb[116].mxu0  ;;  %v15051_v22 = vadd.f32 %v14776_v53, %v4453_v56  ;;  %v15059_v37 = vadd.f32 %v14713_v39, %v4433_v30  ;;  %17808 = vst [vmem:[#allocation145_spill] sm:$0xff] %v15062_v15  ;;  %v4441_v56 = vadd.f32 %v8213_v41, %v14898_v18  ;;  %v15071_v30 = vadd.f32 %v14576_v59, %v5339_v21  ;;  %v8280_v59 = vld [vmem:[%s13433_s28 + $0x650] sm:$0xff] }
 0x95b   : > { %v15029_v43 = vpop.f32.mrb[117].mxu0  ;;  %4515 = vmax.xlane.f32.xlu1 %v4514_v19  ;;  %v8276_v19 = vld [vmem:[%s13433_s28 + $0x630] sm:$0xff]  ;;  %v15074_v11 = vadd.f32 %v14583_v45, %v5341_v26  ;;  %v15080_v50 = vpop.permute.xlu0 %10826  ;;  %v4447_v18 = vadd.f32 %v8215_v44, %v17811_v8  ;;  %v17814_v26 = vld [vmem:[#allocation91_spill] sm:$0xff]  ;;  %v17820_v8 = vld [vmem:[#allocation96_spill] sm:$0xff] }
 0x95c   : > { %4512 = vmax.xlane.f32.xlu0 %v4511_v34  ;;  %17806 = vst [vmem:[#allocation143_spill] sm:$0xff] %v15051_v22  ;;  %v8214_v34 = vld [vmem:[%s13433_s28 + $0x4d0] sm:$0xff]  ;;  %17807 = vst [vmem:[#allocation144_spill] sm:$0xff] %v15059_v37  ;;  %v4526_v45 = vmax.f32 %v15059_v37, %v15062_v15  ;;  %v8282_v15 = vld [vmem:[%s13433_s28 + $0x660] sm:$0xff] }
 0x95d   : > { %v4445_v39 = vadd.f32 %v8214_v34, %v14906_v13  ;;  %17809 = vst [vmem:[#allocation146_spill] sm:$0xff] %v15071_v30  ;;  %17810 = vst [vmem:[#allocation147_spill] sm:$0xff] %v15074_v11  ;;  %v8218_v13 = vld [vmem:[%s13433_s28 + $0x4f0] sm:$0xff]  ;;  %v8281_v34 = vld [vmem:[%s13433_s28 + $0x658] sm:$0xff]  ;;  %v15103_v44 = vpop.permute.xlu1 %10821 }
 0x95e   : > { %v5350_v5 = vpop.f32.mrb[118].mxu0  ;;  %v17812_v41 = vld [vmem:[#allocation89_spill] sm:$0xff] }
 0x95f   : > { %v5352_v14 = vpop.f32.mrb[119].mxu0  ;;  %4521 = vmax.xlane.f32.xlu1 %v4520_v63  ;;  %v5351_v25 = vadd.f32 %v8276_v19, %v5350_v5  ;;  %v4535_v63 = vmax.f32 %v15048_v2, %v15051_v22  ;;  %v15091_v21 = vadd.f32 %v17812_v41, %v4439_v48  ;;  %v15094_v19 = vadd.f32 %v17814_v26, %v4441_v56  ;;  %v17823_v22 = vld [vmem:[#allocation70_spill] sm:$0xff] }
 0x960   : > { %4518 = vmax.xlane.f32.xlu0 %v4517_v51  ;;  %v5353_v62 = vadd.f32 %v8277_v42, %v5352_v14  ;;  %v8219_v14 = vld [vmem:[%s13433_s28 + $0x4f8] sm:$0xff]  ;;  %v5462_v56 = vmax.f32 %v15071_v30, %v15074_v11  ;;  %v15111_v41 = vadd.f32 %v17820_v8, %v4447_v18  ;;  %v8270_v30 = vld [vmem:[%s13433_s28 + $0x600] sm:$0xff]  ;;  %v8283_v11 = vld [vmem:[%s13433_s28 + $0x668] sm:$0xff] }
 0x961   : > { %17813 = vst [vmem:[#allocation125_spill] sm:$0xff] %v15091_v21  ;;  %17815 = vst [vmem:[#allocation89_spill] sm:$0xff] %v15094_v19  ;;  %v15097_v5 = vadd.f32 %v14608_v4, %v5351_v25  ;;  %v4457_v4 = vadd.f32 %v8218_v13, %v14939_v10  ;;  %v4529_v18 = vmax.f32 %v15091_v21, %v15094_v19  ;;  %v17862_v19 = vld [vmem:[#allocation84_spill] sm:$0xff] }
 0x962   : > { %v15076_v52 = vpop.f32.mrb[120].mxu0  ;;  %v15100_v42 = vadd.f32 %v14615_v3, %v5353_v62  ;;  %17821 = vst [vmem:[#allocation96_spill] sm:$0xff] %v15111_v41  ;;  %v4459_v3 = vadd.f32 %v8219_v14, %v14943_v28  ;;  %v8271_v28 = vld [vmem:[%s13433_s28 + $0x608] sm:$0xff] }
 0x963   : > { %v15083_v51 = vpop.f32.mrb[121].mxu0  ;;  %4524 = vmax.xlane.f32.xlu1 %v4523_v29  ;;  %17816 = vst [vmem:[#allocation91_spill] sm:$0xff] %v15097_v5  ;;  %v17818_v29 = vld [vmem:[#allocation94_spill] sm:$0xff] }
 0x964   : > { %4536 = vmax.xlane.f32.xlu0 %v4535_v63  ;;  %17817 = vst [vmem:[#allocation148_spill] sm:$0xff] %v15100_v42  ;;  %v15106_v63 = vadd.f32 %v17818_v29, %v4445_v39  ;;  %v17822_v39 = vld [vmem:[#allocation68_spill] sm:$0xff]  ;;  %v5468_v10 = vmax.f32 %v15097_v5, %v15100_v42 }
 0x966   : > { %17819 = vst [vmem:[#allocation94_spill] sm:$0xff] %v15106_v63  ;;  %v5362_v48 = vpop.f32.mrb[122].mxu0 }
 0x967   : > { %v5363_v25 = vadd.f32 %v8280_v59, %v5362_v48  ;;  %v5364_v62 = vpop.f32.mrb[123].mxu0  ;;  %4527 = vmax.xlane.f32.xlu1 %v4526_v45  ;;  %v3497_v26 = vpop.xlane.xlu0 %3496 }
 0x968   : > { %v5365_v2 = vadd.f32 %v8281_v34, %v5364_v62  ;;  %v3543_v29 = vsub.f32 %v17822_v39, %v3497_v26  ;;  %v3544_v37 = vsub.f32 %v17823_v22, %v3497_v26  ;;  %5463 = vmax.xlane.f32.xlu0 %v5462_v56  ;;  %v17826_v34 = vld [vmem:[#allocation103_spill] sm:$0xff]  ;;  %v17828_v56 = vld [vmem:[#allocation105_spill] sm:$0xff] }
 0x969   : > { %v15126_v13 = vadd.f32 %v14784_v24, %v5363_v25  ;;  %v15132_v48 = vadd.f32 %v17826_v34, %v4457_v4  ;;  %v15135_v8 = vadd.f32 %v17828_v56, %v4459_v3  ;;  %v4532_v24 = vmax.f32 %v15106_v63, %v15111_v41  ;;  %v8274_v25 = vld [vmem:[%s13433_s28 + $0x620] sm:$0xff]  ;;  %v8275_v34 = vld [vmem:[%s13433_s28 + $0x628] sm:$0xff]  ;;  %v17834_v56 = vld [vmem:[#allocation93_spill] sm:$0xff] }
 0x96a   : > { %v15129_v14 = vadd.f32 %v14793_v40, %v5365_v2  ;;  %v3575_v59 = vmul.f32 1.442695, %v3543_v29  ;;  %v3577_v22 = vmul.f32 1.442695, %v3544_v37  ;;  %v5368_v45 = vpop.f32.mrb[124].mxu0  ;;  %v17830_v2 = vld [vmem:[#allocation71_spill] sm:$0xff]  ;;  %v5333_v4 = vadd.f32 %v8270_v30, %v14969_v20 }
 0x96b   : > { %17824 = vst [vmem:[#allocation68_spill] sm:$0xff] %v15126_v13  ;;  %17827 = vst [vmem:[#allocation103_spill] sm:$0xff] %v15132_v48  ;;  %v5369_v62 = vadd.f32 %v8282_v15, %v5368_v45  ;;  %v5370_v26 = vpop.f32.mrb[125].mxu0  ;;  %4530 = vmax.xlane.f32.xlu1 %v4529_v18  ;;  %v3500_v39 = vpop.xlane.xlu1 %3499  ;;  %v17831_v29 = vld [vmem:[#allocation72_spill] sm:$0xff]  ;;  %v5335_v3 = vadd.f32 %v8271_v28, %v14971_v57  ;;  %v10714_v20 = vunpack.i.h.bf16 %v17834_v56  ;;  %v17835_v28 = vld [vmem:[#allocation73_spill] sm:$0xff] }
 0x96c   : > { %17825 = vst [vmem:[#allocation70_spill] sm:$0xff] %v15129_v14  ;;  %17829 = vst [vmem:[#allocation105_spill] sm:$0xff] %v15135_v8  ;;  %10956 = vpow2.f32 %v3575_v59  ;;  %v5371_v40 = vadd.f32 %v8283_v11, %v5370_v26  ;;  %v3545_v37 = vsub.f32 %v17830_v2, %v3500_v39  ;;  %v3546_v42 = vsub.f32 %v17831_v29, %v3500_v39  ;;  %v17837_v26 = vld [vmem:[#allocation67_spill] sm:$0xff] }
 0x96d   : > { %5469 = vmax.xlane.f32.xlu0 %v5468_v10  ;;  %10958 = vpow2.f32 %v3577_v22  ;;  %v15146_v15 = vadd.f32 %v14643_v6, %v5369_v62  ;;  %v5474_v10 = vmax.f32 %v15126_v13, %v15129_v14  ;;  %v5345_v57 = vadd.f32 %v8274_v25, %v15023_v12 }
 0x96e   : > { %v15149_v18 = vadd.f32 %v14649_v36, %v5371_v40  ;;  %v3579_v45 = vmul.f32 1.442695, %v3545_v37  ;;  %v3581_v11 = vmul.f32 1.442695, %v3546_v42  ;;  %v15151_v59 = vpop.f32.mrb[126].mxu0  ;;  %v5347_v36 = vadd.f32 %v8275_v34, %v15029_v43  ;;  %v17836_v42 = vld [vmem:[#allocation74_spill] sm:$0xff] }
 0x96f   : > { %17832 = vst [vmem:[#allocation71_spill] sm:$0xff] %v15146_v15  ;;  %v15157_v30 = vpop.f32.mrb[127].mxu0  ;;  %4533 = vmax.xlane.f32.xlu1 %v4532_v24  ;;  %v3503_v6 = vpop.xlane.xlu0 %3502  ;;  %v15163_v39 = vadd.f32 %v17837_v26, %v5333_v4  ;;  %v17839_v40 = vld [vmem:[#allocation69_spill] sm:$0xff]  ;;  %v8278_v37 = vld [vmem:[%s13433_s28 + $0x640] sm:$0xff]  ;;  %v4538_v12 = vmax.f32 %v15132_v48, %v15135_v8  ;;  %v10713_v24 = vunpack.i.l.bf16 %v17834_v56  ;;  %v8279_v43 = vld [vmem:[%s13433_s28 + $0x648] sm:$0xff] }
 0x970   : > { %17833 = vst [vmem:[#allocation72_spill] sm:$0xff] %v15149_v18  ;;  %10960 = vpow2.f32 %v3579_v45  ;;  %v3547_v22 = vsub.f32 %v17835_v28, %v3503_v6  ;;  %v3548_v62 = vsub.f32 %v17836_v42, %v3503_v6  ;;  %v15166_v2 = vadd.f32 %v17839_v40, %v5335_v3  ;;  %v17841_v4 = vld [vmem:[#allocation119_spill] sm:$0xff] }
 0x971   : > { %5475 = vmax.xlane.f32.xlu0 %v5474_v10  ;;  %17838 = vst [vmem:[#allocation93_spill] sm:$0xff] %v15163_v39  ;;  %10962 = vpow2.f32 %v3581_v11  ;;  %v5477_v45 = vmax.f32 %v15146_v15, %v15149_v18  ;;  %v10709_v10 = vunpack.i.h.bf16 %v17841_v4  ;;  %v10708_v3 = vunpack.i.l.bf16 %v17841_v4  ;;  %v11540_v18 = vld [vmem:[#allocation3 + $0x70] sm:$0xff] }
 0x972   : > { %17840 = vst [vmem:[#allocation73_spill] sm:$0xff] %v15166_v2  ;;  %v3583_v25 = vmul.f32 1.442695, %v3547_v22  ;;  %v3585_v29 = vmul.f32 1.442695, %v3548_v62  ;;  %v15173_v34 = vpop.f32.mrb[128].mxu0  ;;  %v15180_v6 = vadd.f32 %v14592_v46, %v5345_v57  ;;  %v15185_v56 = vadd.f32 %v14599_v60, %v5347_v36 }
 0x973   : > { %v15182_v11 = vpop.f32.mrb[129].mxu0  ;;  %4539 = vmax.xlane.f32.xlu1 %v4538_v12  ;;  %v3506_v28 = vpop.xlane.xlu1 %3505  ;;  %v17844_v22 = vld [vmem:[#allocation75_spill] sm:$0xff]  ;;  %v17845_v62 = vld [vmem:[#allocation76_spill] sm:$0xff]  ;;  %v5357_v40 = vadd.f32 %v8278_v37, %v15076_v52  ;;  %v5359_v4 = vadd.f32 %v8279_v43, %v15083_v51  ;;  %v5459_v46 = vmax.f32 %v15163_v39, %v15166_v2 }
 0x974   : > { %17842 = vst [vmem:[#allocation74_spill] sm:$0xff] %v15180_v6  ;;  %17843 = vst [vmem:[#allocation67_spill] sm:$0xff] %v15185_v56  ;;  %10964 = vpow2.f32 %v3583_v25  ;;  %v3549_v42 = vsub.f32 %v17844_v22, %v3506_v28  ;;  %v3550_v26 = vsub.f32 %v17845_v62, %v3506_v28  ;;  %v17846_v12 = vld [vmem:[#allocation100_spill] sm:$0xff]  ;;  %v9842_v25 = vpack.c.bf16 %v10714_v20, %v10713_v24  ;;  %v17847_v62 = vld [vmem:[#allocation121_spill] sm:$0xff] }
 0x975   : > { %5478 = vmax.xlane.f32.xlu0 %v5477_v45  ;;  %10966 = vpow2.f32 %v3585_v29  ;;  %v10719_v14 = vunpack.i.h.bf16 %v17846_v12  ;;  %v10718_v28 = vunpack.i.l.bf16 %v17846_v12  ;;  %v9840_v45 = vpack.c.bf16 %v10709_v10, %v10708_v3  ;;  %v17848_v29 = vld [vmem:[#allocation77_spill] sm:$0xff] }
 0x976   : > { %v10957_v57 = vpop.eup %10956  ;;  %v3587_v13 = vmul.f32 1.442695, %v3549_v42  ;;  %v3589_v60 = vmul.f32 1.442695, %v3550_v26  ;;  %v15194_v36 = vpop.f32.mrb[130].mxu0  ;;  %v10724_v52 = vunpack.i.h.bf16 %v17847_v62  ;;  %v10723_v51 = vunpack.i.l.bf16 %v17847_v62  ;;  %v17849_v42 = vld [vmem:[#allocation78_spill] sm:$0xff] }
 0x977   : > { %v10959_v22 = vpop.eup %10958  ;;  %v15199_v37 = vpop.f32.mrb[131].mxu0  ;;  %5460 = vmax.xlane.f32.xlu1 %v5459_v46  ;;  %v5465_v20 = vmax.f32 %v15180_v6, %v15185_v56  ;;  %v15206_v24 = vadd.f32 %v14623_v23, %v5357_v40  ;;  %v15209_v10 = vadd.f32 %v14629_v35, %v5359_v4  ;;  %v17853_v40 = vld [vmem:[#allocation114_spill] sm:$0xff] }
 0x978   : > { %v3509_v43 = vpop.xlane.xlu1 %3508  ;;  %10968 = vpow2.f32 %v3587_v13  ;;  %3879 = vmatprep.mubr.f32.mxu1 %v10959_v22  ;;  %v15211_v3 = vadd.f32 %v10959_v22, %v10957_v57  ;;  %v10734_v4 = vunpack.i.h.bf16 %v17853_v40 }
 0x979   : > { %v3551_v5 = vsub.f32 %v17848_v29, %v3509_v43  ;;  %v3552_v26 = vsub.f32 %v17849_v42, %v3509_v43  ;;  %17850 = vst [vmem:[#allocation69_spill] sm:$0xff] %v15206_v24  ;;  %17851 = vst [vmem:[#allocation119_spill] sm:$0xff] %v15209_v10  ;;  %10970 = vpow2.f32 %v3589_v60  ;;  %3880 = vmatmul.mubr.f32.vlgmr.msra.gmra.mrb[32].mxu1 %v10957_v57  ;;  %v17852_v42 = vld [vmem:[#allocation109_spill] sm:$0xff] }
 0x97a   : > { %v10961_v46 = vpop.eup %10960  ;;  %9841 = vmatpush3.bf16.msra.mxu1 %v9840_v45  ;;  %v15213_v62 = vpop.f32.mrb[132].mxu0  ;;  %v9844_v29 = vpack.c.bf16 %v10719_v14, %v10718_v28  ;;  %v10729_v48 = vunpack.i.h.bf16 %v17852_v42  ;;  %v10728_v35 = vunpack.i.l.bf16 %v17852_v42  ;;  %v9846_v60 = vpack.c.bf16 %v10724_v52, %v10723_v51  ;;  %v17855_v52 = vld [vmem:[#allocation123_spill] sm:$0xff] }
 0x97b   : > { %v3591_v13 = vmul.f32 1.442695, %v3551_v5  ;;  %v3593_v12 = vmul.f32 1.442695, %v3552_v26  ;;  %v10963_v43 = vpop.eup %10962  ;;  %9843 = vmatprep.subr.bf16.mxu1 %v9842_v25  ;;  %v15216_v23 = vpop.f32.mrb[133].mxu0  ;;  %5466 = vmax.xlane.f32.xlu1 %v5465_v20  ;;  %v10733_v5 = vunpack.i.l.bf16 %v17853_v40  ;;  %v5471_v14 = vmax.f32 %v15206_v24, %v15209_v10  ;;  %v17854_v20 = vld [vmem:[#allocation115_spill] sm:$0xff] }
 0x97c   : > { %3884 = vmatprep.mubr.f32.mxu1 %v10963_v43  ;;  %v15220_v57 = vadd.f32 %v10963_v43, %v10961_v46  ;;  %v9848_v26 = vpack.c.bf16 %v10729_v48, %v10728_v35  ;;  %v10744_v51 = vunpack.i.h.bf16 %v17855_v52  ;;  %v17857_v10 = vld [vmem:[#allocation117_spill] sm:$0xff] }
 0x97d   : > { %10972 = vpow2.f32 %v3591_v13  ;;  %3885 = vmatmul.mubr.f32.gmra.mrb[34].mxu1 %v10961_v46  ;;  %v10739_v13 = vunpack.i.h.bf16 %v17854_v20  ;;  %v10738_v46 = vunpack.i.l.bf16 %v17854_v20  ;;  %v9850_v43 = vpack.c.bf16 %v10734_v4, %v10733_v5 }
 0x97e   : > { %10974 = vpow2.f32 %v3593_v12  ;;  %v15225_v25 = vpop.eup %10964  ;;  %9845 = vmatpush3.bf16.msra.mxu1 %v9844_v29  ;;  %v15227_v22 = vpop.f32.mrb[134].mxu0  ;;  %v10743_v12 = vunpack.i.l.bf16 %v17855_v52  ;;  %v10754_v4 = vunpack.i.h.bf16 %v17857_v10  ;;  %v10753_v5 = vunpack.i.l.bf16 %v17857_v10 }
 0x97f   : > { %v15229_v28 = vpop.eup %10966  ;;  %9847 = vmatprep.subr.bf16.mxu1 %v9846_v60  ;;  %v15231_v45 = vpop.f32.mrb[135].mxu0  ;;  %5472 = vmax.xlane.f32.xlu1 %v5471_v14  ;;  %v9852_v35 = vpack.c.bf16 %v10739_v13, %v10738_v46  ;;  %v17856_v14 = vld [vmem:[#allocation116_spill] sm:$0xff]  ;;  %v11541_v13 = vld [vmem:[#allocation3 + $0x78] sm:$0xff] }
 0x980   : > { %3889 = vmatprep.mubr.f32.mxu1 %v15229_v28  ;;  %v15241_v60 = vpop.xlane.xlu1 %3514  ;;  %v10749_v20 = vunpack.i.h.bf16 %v17856_v14  ;;  %v10748_v8 = vunpack.i.l.bf16 %v17856_v14  ;;  %v10855_v46 = vpack.i.bf16 %v11541_v13, %v11540_v18  ;;  %v17858_v14 = vld [vmem:[#allocation118_spill] sm:$0xff]  ;;  %v9858_v18 = vpack.c.bf16 %v10754_v4, %v10753_v5 }
 0x981   : > { %3890 = vmatmul.mubr.f32.gmra.mrb[36].mxu1 %v15225_v25  ;;  %v10759_v56 = vunpack.i.h.bf16 %v17858_v14  ;;  %v10774_v4 = vunpack.i.h.bf16 %v14973_v16  ;;  %v10773_v5 = vunpack.i.l.bf16 %v14973_v16  ;;  %v17864_v16 = vld [vmem:[#allocation122_spill] sm:$0xff] }
 0x982   : > { %v10969_v29 = vpop.eup %10968  ;;  %9849 = vmatpush3.bf16.msra.mxu1 %v9848_v26  ;;  %v15239_v42 = vpop.f32.mrb[136].mxu0  ;;  %v9854_v26 = vpack.c.bf16 %v10744_v51, %v10743_v12  ;;  %v9856_v51 = vpack.c.bf16 %v10749_v20, %v10748_v8  ;;  %v17859_v12 = vld [vmem:[#allocation126_spill] sm:$0xff]  ;;  %v17861_v20 = vld [vmem:[#allocation83_spill] sm:$0xff] }
 0x983   : > { %v10971_v40 = vpop.eup %10970  ;;  %9851 = vmatprep.subr.bf16.mxu1 %v9850_v43  ;;  %v15243_v48 = vpop.f32.mrb[137].mxu0 }
 0x984   : > { %3894 = vmatprep.mubr.f32.mxu1 %v10971_v40  ;;  %v15247_v52 = vadd.f32 %v10971_v40, %v10969_v29  ;;  %v10758_v40 = vunpack.i.l.bf16 %v17858_v14 }
 0x985   : > { %3895 = vmatmul.mubr.f32.gmra.mrb[38].mxu1 %v10969_v29  ;;  %v10764_v29 = vunpack.i.h.bf16 %v17859_v12 }
 0x986   : > { %9853 = vmatpush3.bf16.msra.mxu1 %v9852_v35  ;;  %v15253_v43 = vpop.f32.mrb[138].mxu0  ;;  %v10763_v35 = vunpack.i.l.bf16 %v17859_v12  ;;  %v9860_v14 = vpack.c.bf16 %v10759_v56, %v10758_v40  ;;  %v11542_v12 = vld [vmem:[#allocation3 + $0xf0] sm:$0xff] }
 0x987   : > { %v15251_v24 = vpop.eup %10972  ;;  %9855 = vmatprep.subr.bf16.mxu1 %v9854_v26  ;;  %v15259_v6 = vpop.f32.mrb[139].mxu0  ;;  %v17860_v26 = vld [vmem:[#allocation132_spill] sm:$0xff]  ;;  %v10850_v7 = vpack.i.bf16 %v11543_v1, %v11542_v12  ;;  %v10784_v1 = vunpack.i.h.bf16 %v17864_v16 }
 0x988   : > { %v15255_v15 = vpop.eup %10974  ;;  %v15261_v10 = vpop.xlane.xlu1 %3520  ;;  %v10769_v41 = vunpack.i.h.bf16 %v17860_v26  ;;  %v10768_v8 = vunpack.i.l.bf16 %v17860_v26  ;;  %v17863_v26 = vld [vmem:[#allocation120_spill] sm:$0xff] }
 0x989   : > { %3899 = vmatprep.mubr.f32.mxu1 %v15255_v15 }
 0x98a   : > { %3900 = vmatmul.mubr.f32.gmra.mrb[40].mxu1 %v15251_v24  ;;  %v5416_v13 = vpop.f32.mrb[140].mxu0 }
 0x98b   : > { %9857 = vmatpush3.bf16.msra.mxu1 %v9856_v51  ;;  %10856 = vrot.lane.b32.xlu0 %v10855_v46, %s11991_s7  ;;  %v5418_v63 = vpop.f32.mrb[141].mxu0  ;;  %v9862_v46 = vpack.c.bf16 %v10764_v29, %v10763_v35 }
 0x98c   : > { %9859 = vmatprep.subr.bf16.mxu1 %v9858_v18  ;;  %v3524_v2 = vpop.xlane.xlu1 %3523 }
 0x98d   : > { %v3561_v39 = vsub.f32 %v17861_v20, %v3524_v2  ;;  %v3562_v21 = vsub.f32 %v17862_v19, %v3524_v2  ;;  %v10779_v20 = vunpack.i.h.bf16 %v17863_v26  ;;  %v10778_v19 = vunpack.i.l.bf16 %v17863_v26  ;;  %v11544_v26 = vld [vmem:[%s12513_s8 + $0x80] sm:$0xff] }
 0x98e   : > { %v15274_v51 = vpop.f32.mrb[142].mxu0  ;;  %v9864_v2 = vpack.c.bf16 %v10769_v41, %v10768_v8  ;;  %v8287_v8 = vld [vmem:[%s13433_s28 + $0x688] sm:$0xff] }
 0x98f   : > { %v3611_v56 = vmul.f32 1.442695, %v3561_v39  ;;  %v3613_v40 = vmul.f32 1.442695, %v3562_v21  ;;  %9861 = vmatpush3.bf16.msra.mxu1 %v9860_v14  ;;  %v15276_v18 = vpop.f32.mrb[143].mxu0  ;;  %v10783_v21 = vunpack.i.l.bf16 %v17864_v16  ;;  %v9866_v39 = vpack.c.bf16 %v10774_v4, %v10773_v5 }
 0x990   : > { %9863 = vmatprep.subr.bf16.mxu1 %v9862_v46  ;;  %10851 = vrot.lane.b32.xlu1 %v10850_v7, %s11991_s7  ;;  %v9868_v29 = vpack.c.bf16 %v10779_v20, %v10778_v19  ;;  %v8286_v7 = vld [vmem:[%s13433_s28 + $0x680] sm:$0xff]  ;;  %v5383_v5 = vadd.f32 %v8287_v8, %v15182_v11  ;;  %v15295_v46 = vpop.permute.xlu0 %10831  ;;  %v11545_v19 = vld [vmem:[%s12513_s8 + $0x88] sm:$0xff]  ;;  %v17869_v11 = vld [vmem:[#allocation102_spill] sm:$0xff] }
 0x991   : > { %10976 = vpow2.f32 %v3611_v56  ;;  %v9918_v35 = vpack.c.bf16 %v10784_v1, %v10783_v21  ;;  %v5381_v4 = vadd.f32 %v8286_v7, %v15173_v34  ;;  %v8298_v56 = vld [vmem:[%s13433_s28 + $0x6e0] sm:$0xff] }
 0x992   : > { %10978 = vpow2.f32 %v3613_v40  ;;  %v8299_v40 = vld [vmem:[%s13433_s28 + $0x6e8] sm:$0xff]  ;;  %v5417_v16 = vadd.f32 %v8298_v56, %v5416_v13 }
 0x993   : > { %9865 = vmatpush3.bf16.msra.mxu1 %v9864_v2  ;;  %v15300_v20 = vadd.f32 %v11544_v26, %v5381_v4  ;;  %v15303_v2 = vadd.f32 %v11545_v19, %v5383_v5  ;;  %v5419_v1 = vadd.f32 %v8299_v40, %v5418_v63  ;;  %v3555_v4 = vsub.f32 %v17870_v0, %v15241_v60  ;;  %v15313_v26 = vpop.xlane.xlu1 %3526 }
 0x994   : > { %9867 = vmatprep.subr.bf16.mxu1 %v9866_v39  ;;  %v8284_v39 = vld [vmem:[%s13433_s28 + $0x670] sm:$0xff]  ;;  %v15318_v13 = vadd.f32 %v14767_v54, %v5417_v16  ;;  %v8289_v54 = vld [vmem:[%s13433_s28 + $0x698] sm:$0xff] }
 0x995   : > { %17866 = vst [vmem:[#allocation76_spill] sm:$0xff] %v15303_v2  ;;  %v5483_v63 = vmax.f32 %v15300_v20, %v15303_v2  ;;  %v15321_v5 = vadd.f32 %v14776_v53, %v5419_v1  ;;  %v5375_v19 = vadd.f32 %v8284_v39, %v15151_v59  ;;  %v8288_v2 = vld [vmem:[%s13433_s28 + $0x690] sm:$0xff]  ;;  %v17873_v39 = vld [vmem:[#allocation82_spill] sm:$0xff] }
 0x997   : > { %9869 = vmatpush3.bf16.msra.mxu1 %v9868_v29  ;;  %v17867_v29 = vld [vmem:[#allocation80_spill] sm:$0xff]  ;;  %v5501_v53 = vmax.f32 %v15318_v13, %v15321_v5  ;;  %v15331_v16 = vadd.f32 %v14817_v58, %v5375_v19  ;;  %v15333_v59 = vpop.xlane.xlu1 %3529  ;;  %v5389_v58 = vadd.f32 %v8289_v54, %v15199_v37  ;;  %v11547_v37 = vld [vmem:[%s12513_s8 + $0x98] sm:$0xff] }
 0x998   : > { %9919 = vmatprep.subr.bf16.mxu1 %v9918_v35  ;;  %v3556_v34 = vsub.f32 %v17867_v29, %v15241_v60  ;;  %v17868_v35 = vld [vmem:[#allocation101_spill] sm:$0xff]  ;;  %v17871_v60 = vld [vmem:[#allocation108_spill] sm:$0xff] }
 0x99a   : > { %v3601_v0 = vmul.f32 1.442695, %v3556_v34  ;;  %v3560_v34 = vsub.f32 %v17873_v39, %v15261_v10  ;;  %v11548_v39 = vld [vmem:[%s12513_s8 + $0xa0] sm:$0xff] }
 0x99b   : > { %v15283_v41 = vpop.eup %10976 }
 0x99c   : > { %v15285_v14 = vpop.eup %10978  ;;  %v3609_v19 = vmul.f32 1.442695, %v3560_v34 }
 0x99d   : > { %v15291_v12 = vadd.f32 %v15285_v14, %v15283_v41 }
 0x99f   : > { %17865 = vst [vmem:[#allocation75_spill] sm:$0xff] %v15291_v12  ;;  %v8285_v12 = vld [vmem:[%s13433_s28 + $0x678] sm:$0xff] }
 0x9a0   : > { %v5377_v29 = vadd.f32 %v8285_v12, %v15157_v30  ;;  %v17872_v30 = vld [vmem:[#allocation107_spill] sm:$0xff] }
 0x9a2   : > { %v15337_v1 = vadd.f32 %v14823_v32, %v5377_v29  ;;  %v17874_v32 = vld [vmem:[#allocation81_spill] sm:$0xff] }
 0x9a3   : > { %v11546_v29 = vld [vmem:[%s12513_s8 + $0x90] sm:$0xff] }
 0x9a4   : > { %v3512_v21 = vpop.xlane.xlu0 %3511 }
 0x9a5   : > { %v3553_v7 = vsub.f32 %v17868_v35, %v3512_v21  ;;  %v3554_v8 = vsub.f32 %v17869_v11, %v3512_v21  ;;  %v3599_v11 = vmul.f32 1.442695, %v3555_v4  ;;  %v8290_v4 = vld [vmem:[%s13433_s28 + $0x6a0] sm:$0xff] }
 0x9a7   : > { %v3595_v56 = vmul.f32 1.442695, %v3553_v7  ;;  %v3597_v40 = vmul.f32 1.442695, %v3554_v8  ;;  %v5387_v8 = vadd.f32 %v8288_v2, %v15194_v36  ;;  %v15354_v2 = vadd.f32 %v11547_v37, %v5389_v58  ;;  %v8294_v58 = vld [vmem:[%s13433_s28 + $0x6c0] sm:$0xff]  ;;  %v17877_v37 = vld [vmem:[#allocation88_spill] sm:$0xff] }
 0x9a8   : > { %v3518_v21 = vpop.xlane.xlu0 %3517 }
 0x9a9   : > { %v3558_v35 = vsub.f32 %v17871_v60, %v3518_v21  ;;  %10980 = vpow2.f32 %v3595_v56  ;;  %v3557_v12 = vsub.f32 %v17872_v30, %v3518_v21  ;;  %v3559_v56 = vsub.f32 %v17874_v32, %v15261_v10  ;;  %v8292_v10 = vld [vmem:[%s13433_s28 + $0x6b0] sm:$0xff] }
 0x9aa   : > { %5484 = vmax.xlane.f32.xlu0 %v5483_v63  ;;  %10982 = vpow2.f32 %v3597_v40  ;;  %v8291_v63 = vld [vmem:[%s13433_s28 + $0x6a8] sm:$0xff]  ;;  %v5480_v21 = vmax.f32 %v15331_v16, %v15337_v1  ;;  %v15351_v36 = vadd.f32 %v11546_v29, %v5387_v8 }
 0x9ab   : > { %10984 = vpow2.f32 %v3601_v0  ;;  %v3605_v7 = vmul.f32 1.442695, %v3558_v35  ;;  %v3603_v40 = vmul.f32 1.442695, %v3557_v12  ;;  %v5393_v0 = vadd.f32 %v8290_v4, %v15213_v62  ;;  %v15359_v35 = vpop.xlane.xlu1 %3532  ;;  %v8295_v4 = vld [vmem:[%s13433_s28 + $0x6c8] sm:$0xff] }
 0x9ac   : > { %10986 = vpow2.f32 %v3599_v11  ;;  %v5395_v60 = vadd.f32 %v8291_v63, %v15216_v23  ;;  %v8293_v11 = vld [vmem:[%s13433_s28 + $0x6b8] sm:$0xff]  ;;  %v5399_v62 = vadd.f32 %v8292_v10, %v15227_v22  ;;  %v5486_v8 = vmax.f32 %v15351_v36, %v15354_v2  ;;  %v8296_v10 = vld [vmem:[%s13433_s28 + $0x6d0] sm:$0xff] }
 0x9ad   : > { %10988 = vpow2.f32 %v3605_v7  ;;  %v17875_v23 = vld [vmem:[#allocation86_spill] sm:$0xff]  ;;  %v15372_v34 = vadd.f32 %v11548_v39, %v5393_v0  ;;  %v5401_v7 = vadd.f32 %v8293_v11, %v15231_v45  ;;  %v3651_v63 = vadd.f32 %v15255_v15, %v15251_v24 }
 0x9ae   : > { %5502 = vmax.xlane.f32.xlu0 %v5501_v53  ;;  %v3607_v53 = vmul.f32 1.442695, %v3559_v56  ;;  %10990 = vpow2.f32 %v3603_v40  ;;  %v3564_v12 = vsub.f32 %v17875_v23, %v15313_v26  ;;  %v17876_v56 = vld [vmem:[#allocation85_spill] sm:$0xff]  ;;  %v3566_v0 = vsub.f32 %v17877_v37, %v15333_v59  ;;  %v11551_v15 = vld [vmem:[%s12513_s8 + $0xb8] sm:$0xff] }
 0x9af   : > { %10992 = vpow2.f32 %v3609_v19  ;;  %v3563_v45 = vsub.f32 %v17876_v56, %v15313_v26  ;;  %v15388_v40 = vpop.xlane.xlu1 %3535  ;;  %v11550_v19 = vld [vmem:[%s12513_s8 + $0xb0] sm:$0xff]  ;;  %v15396_v24 = vadd.f32 %v11551_v15, %v5401_v7  ;;  %v5407_v26 = vadd.f32 %v8295_v4, %v15243_v48  ;;  %v17880_v37 = vld [vmem:[#allocation90_spill] sm:$0xff] }
 0x9b0   : > { %10994 = vpow2.f32 %v3607_v53  ;;  %v3617_v29 = vmul.f32 1.442695, %v3564_v12  ;;  %v8297_v53 = vld [vmem:[%s13433_s28 + $0x6d8] sm:$0xff]  ;;  %v17878_v12 = vld [vmem:[#allocation87_spill] sm:$0xff]  ;;  %v3621_v48 = vmul.f32 1.442695, %v3566_v0  ;;  %v3567_v0 = vsub.f32 %v17880_v37, %v15359_v35 }
 0x9b1   : > { %v3615_v23 = vmul.f32 1.442695, %v3563_v45  ;;  %v3565_v39 = vsub.f32 %v17878_v12, %v15333_v59  ;;  %v11553_v59 = vld [vmem:[%s12513_s8 + $0xc8] sm:$0xff]  ;;  %v8300_v45 = vld [vmem:[%s13433_s28 + $0x6f0] sm:$0xff]  ;;  %v17890_v37 = vld [vmem:[#allocation98_spill] sm:$0xff] }
 0x9b2   : > { %3640 = vadd.xlane.f32.xlu0 %v15211_v3  ;;  %v3645_v3 = vadd.f32 %v15229_v28, %v15225_v25  ;;  %v11549_v25 = vld [vmem:[%s12513_s8 + $0xa8] sm:$0xff]  ;;  %10996 = vpow2.f32 %v3617_v29  ;;  %v15418_v4 = vadd.f32 %v11553_v59, %v5407_v26  ;;  %v17882_v26 = vld [vmem:[#allocation97_spill] sm:$0xff] }
 0x9b3   : > { %v15364_v54 = vpop.eup %10980  ;;  %v15375_v28 = vadd.f32 %v11549_v25, %v5395_v60  ;;  %v5405_v60 = vadd.f32 %v8294_v58, %v15239_v42  ;;  %v5411_v42 = vadd.f32 %v8296_v10, %v15253_v43  ;;  %v17879_v25 = vld [vmem:[#allocation92_spill] sm:$0xff]  ;;  %10998 = vpow2.f32 %v3615_v23 }
 0x9b4   : > { %5481 = vmax.xlane.f32.xlu1 %v5480_v21  ;;  %v15366_v30 = vpop.eup %10982  ;;  %v15391_v21 = vadd.f32 %v11550_v19, %v5399_v62  ;;  %v3568_v7 = vsub.f32 %v17879_v25, %v15359_v35  ;;  %v8301_v19 = vld [vmem:[%s13433_s28 + $0x6f8] sm:$0xff]  ;;  %v3619_v29 = vmul.f32 1.442695, %v3565_v39  ;;  %11000 = vpow2.f32 %v3621_v48  ;;  %v17885_v48 = vld [vmem:[#allocation95_spill] sm:$0xff]  ;;  %s18125_s28 = sld [smem:[#allocation30_spill]] }
 0x9b5   : > { %3904 = vmatprep.mubr.f32.mxu1 %v15366_v30  ;;  %v10985_v22 = vpop.eup %10984  ;;  %v5489_v11 = vmax.f32 %v15372_v34, %v15375_v28  ;;  %v3570_v10 = vsub.f32 %v17882_v26, %v15388_v40  ;;  %v5423_v35 = vadd.f32 %v8300_v45, %v15274_v51  ;;  %v5425_v12 = vadd.f32 %v8301_v19, %v15276_v18  ;;  %v17886_v51 = vld [vmem:[#allocation99_spill] sm:$0xff]  ;;  %v11556_v18 = vld [vmem:[%s12513_s8 + $0xf0] sm:$0xff]  ;;  %v11557_v45 = vld [vmem:[%s12513_s8 + $0xf8] sm:$0xff] }
 0x9b6   : > { %3646 = vadd.xlane.f32.xlu0 %v3645_v3  ;;  %3905 = vmatmul.mubr.f32.gmra.mrb[42].mxu1 %v15364_v54  ;;  %v10987_v32 = vpop.eup %10986  ;;  %v5492_v43 = vmax.f32 %v15391_v21, %v15396_v24  ;;  %11002 = vpow2.f32 %v3619_v29  ;;  %v3569_v25 = vsub.f32 %v17885_v48, %v15388_v40  ;;  %v17894_v48 = vld [vmem:[#allocation111_spill] sm:$0xff] }
 0x9b7   : > { %3909 = vmatprep.mubr.f32.mxu1 %v10985_v22  ;;  %v15403_v3 = vpop.eup %10988  ;;  %v3657_v62 = vadd.f32 %v10987_v32, %v10985_v22  ;;  %v11552_v22 = vld [vmem:[%s12513_s8 + $0xc0] sm:$0xff]  ;;  %v15456_v19 = vadd.f32 %v11557_v45, %v5425_v12  ;;  %v17893_v12 = vld [vmem:[#allocation104_spill] sm:$0xff]  ;;  %v17896_v45 = vld [vmem:[#allocation110_spill] sm:$0xff] }
 0x9b8   : > { %5487 = vmax.xlane.f32.xlu1 %v5486_v8  ;;  %v15412_v8 = vpop.eup %10990  ;;  %v15415_v58 = vadd.f32 %v11552_v22, %v5405_v60  ;;  %v3625_v60 = vmul.f32 1.442695, %v3568_v7  ;;  %v3629_v22 = vmul.f32 1.442695, %v3570_v10  ;;  %v17892_v10 = vld [vmem:[#allocation62_spill] sm:$0xff] }
 0x9b9   : > { %v15423_v56 = vpop.eup %10992  ;;  %17889 = vst [vmem:[#allocation78_spill] sm:$0xff] %v15456_v19 }
 0x9ba   : > { %3652 = vadd.xlane.f32.xlu0 %v3651_v63  ;;  %3910 = vmatmul.mubr.f32.gmra.mrb[44].mxu1 %v10987_v32  ;;  %v5413_v63 = vadd.f32 %v8297_v53, %v15259_v6  ;;  %v3539_v32 = vpop.xlane.xlu1 %3538  ;;  %v11554_v6 = vld [vmem:[%s12513_s8 + $0xd0] sm:$0xff]  ;;  %v15437_v53 = vpop.eup %10994  ;;  %v5495_v39 = vmax.f32 %v15415_v58, %v15418_v4  ;;  %11004 = vpow2.f32 %v3625_v60  ;;  %v17891_v60 = vld [vmem:[#allocation106_spill] sm:$0xff] }
 0x9bb   : > { %3914 = vmatprep.mubr.f32.mxu1 %v15403_v3  ;;  %v15432_v15 = vadd.f32 %v11554_v6, %v5411_v42  ;;  %v3623_v42 = vmul.f32 1.442695, %v3567_v0  ;;  %v3572_v59 = vsub.f32 %v17886_v51, %v3539_v32  ;;  %v3571_v0 = vsub.f32 %v17890_v37, %v3539_v32 }
 0x9bc   : > { %5490 = vmax.xlane.f32.xlu1 %v5489_v11  ;;  %v17883_v11 = vld [vmem:[#allocation59_spill] sm:$0xff]  ;;  %v15460_v40 = vpop.eup %10996 }
 0x9bd   : > { %17881 = vst [vmem:[#allocation100_spill] sm:$0xff] %v15432_v15  ;;  %11006 = vpow2.f32 %v3623_v42  ;;  %v3633_v6 = vmul.f32 1.442695, %v3572_v59  ;;  %v3631_v32 = vmul.f32 1.442695, %v3571_v0  ;;  %v4498_v59 = vpop.xlane.xlu0 %4497  ;;  %v17898_v0 = vld [vmem:[#allocation41_spill] sm:$0xff] }
 0x9be   : > { %3658 = vadd.xlane.f32.xlu0 %v3657_v62  ;;  %3915 = vmatmul.mubr.f32.gmra.mrb[46].mxu1 %v15412_v8  ;;  %v11555_v62 = vld [vmem:[%s12513_s8 + $0xd8] sm:$0xff]  ;;  %v3542_v7 = vpop.xlane.xlu1 %3541  ;;  %11008 = vpow2.f32 %v3629_v22  ;;  %s8356_s8 = sshll.u32 %s18125_s28, 5 }
 0x9bf   : > { %3919 = vmatprep.mubr.f32.mxu1 %v15423_v56  ;;  %v15440_v23 = vadd.f32 %v11555_v62, %v5413_v63  ;;  %v17887_v63 = vld [vmem:[#allocation60_spill] sm:$0xff]  ;;  %v3574_v26 = vsub.f32 %v17891_v60, %v3542_v7  ;;  %v17895_v22 = vld [vmem:[#allocation38_spill] sm:$0xff] }
 0x9c0   : > { %5493 = vmax.xlane.f32.xlu1 %v5492_v43  ;;  %v15453_v43 = vadd.f32 %v11556_v18, %v5423_v35 }
 0x9c1   : > { %17884 = vst [vmem:[#allocation121_spill] sm:$0xff] %v15440_v23  ;;  %v5498_v29 = vmax.f32 %v15432_v15, %v15440_v23  ;;  %v3637_v42 = vmul.f32 1.442695, %v3574_v26  ;;  %v10813_v15 = vunpack.i.l.bf16 %v14997_v27 }
 0x9c2   : > { %2838 = vadd.xlane.f32.xlu0 %v17883_v11  ;;  %3920 = vmatmul.mubr.f32.gmra.mrb[48].mxu1 %v15437_v53  ;;  %17888 = vst [vmem:[#allocation77_spill] sm:$0xff] %v15453_v43  ;;  %v15467_v11 = vpop.eup %10998  ;;  %v4495_v62 = vpop.xlane.xlu1 %4494  ;;  %v5504_v35 = vmax.f32 %v15453_v43, %v15456_v19 }
 0x9c3   : > { %3924 = vmatprep.mubr.f32.mxu1 %v15285_v14  ;;  %v3627_v14 = vmul.f32 1.442695, %v3569_v25  ;;  %v4542_v25 = vsub.f32 %v17894_v48, %v4495_v62 }
 0x9c4   : > { %5496 = vmax.xlane.f32.xlu1 %v5495_v39  ;;  %v3573_v39 = vsub.f32 %v17893_v12, %v3542_v7  ;;  %v4541_v7 = vsub.f32 %v17896_v45, %v4495_v62 }
 0x9c5   : > { %11010 = vpow2.f32 %v3627_v14  ;;  %v17897_v14 = vld [vmem:[#allocation113_spill] sm:$0xff] }
 0x9c6   : > { %2841 = vadd.xlane.f32.xlu0 %v17887_v63  ;;  %3925 = vmatmul.mubr.f32.gmra.mrb[50].mxu1 %v15283_v41  ;;  %v15471_v41 = vpop.eup %11000  ;;  %11012 = vpow2.f32 %v3633_v6  ;;  %v3635_v18 = vmul.f32 1.442695, %v3573_v39  ;;  %v4544_v37 = vsub.f32 %v17897_v14, %v4498_v59  ;;  %v4573_v26 = vmul.f32 1.442695, %v4541_v7  ;;  %v15499_v12 = vpop.permute.xlu1 %10841 }
 0x9c7   : > { %3929 = vmatprep.mubr.f32.mxu1 %v15460_v40  ;;  %v15478_v51 = vpop.eup %11002  ;;  %11014 = vpow2.f32 %v3631_v32  ;;  %v3654_v39 = vadd.f32 %v15366_v30, %v15364_v54  ;;  %v17902_v30 = vld [vmem:[#allocation124_spill] sm:$0xff]  ;;  %v10789_v7 = vunpack.i.h.bf16 %v15019_v55  ;;  %v15522_v14 = vpop.permute.xlu0 %10836 }
 0x9c8   : > { %5499 = vmax.xlane.f32.xlu1 %v5498_v29  ;;  %v15480_v63 = vpop.eup %11004  ;;  %11016 = vpow2.f32 %v3637_v42  ;;  %v4575_v29 = vmul.f32 1.442695, %v4542_v25  ;;  %v10793_v45 = vunpack.i.l.bf16 %v17902_v30 }
 0x9c9   : > { %v15488_v6 = vpop.eup %11006  ;;  %11018 = vpow2.f32 %v3635_v18  ;;  %v10794_v18 = vunpack.i.h.bf16 %v17902_v30  ;;  %v17907_v30 = vld [vmem:[#allocation127_spill] sm:$0xff] }
 0x9ca   : > { %2847 = vadd.xlane.f32.xlu0 %v17892_v10  ;;  %3930 = vmatmul.mubr.f32.gmra.mrb[52].mxu1 %v15467_v11  ;;  %v15490_v60 = vpop.eup %11008  ;;  %v17899_v10 = vld [vmem:[#allocation112_spill] sm:$0xff]  ;;  %11020 = vpow2.f32 %v4575_v29  ;;  %v15515_v54 = vpop.permute.xlu1 %10846  ;;  %v10788_v29 = vunpack.i.l.bf16 %v15019_v55  ;;  %v10798_v19 = vunpack.i.l.bf16 %v17907_v30 }
 0x9cb   : > { %3934 = vmatprep.mubr.f32.mxu1 %v15471_v41  ;;  %v4543_v62 = vsub.f32 %v17899_v10, %v4498_v59  ;;  %11022 = vpow2.f32 %v4573_v26  ;;  %v17904_v10 = vld [vmem:[#allocation58_spill] sm:$0xff]  ;;  %v17905_v55 = vld [vmem:[#allocation128_spill] sm:$0xff] }
 0x9cc   : > { %5505 = vmax.xlane.f32.xlu1 %v5504_v35  ;;  %v17900_v35 = vld [vmem:[#allocation64_spill] sm:$0xff] }
 0x9cd   : > { %v4577_v48 = vmul.f32 1.442695, %v4543_v62  ;;  %v9920_v62 = vpack.c.bf16 %v10789_v7, %v10788_v29  ;;  %v10803_v7 = vunpack.i.l.bf16 %v15056_v38  ;;  %v17909_v29 = vld [vmem:[#allocation133_spill] sm:$0xff] }
 0x9ce   : > { %2853 = vadd.xlane.f32.xlu0 %v17895_v22  ;;  %3935 = vmatmul.mubr.f32.gmra.mrb[54].mxu1 %v15478_v51  ;;  %v3660_v22 = vadd.f32 %v15412_v8, %v15403_v3  ;;  %v17903_v3 = vld [vmem:[#allocation36_spill] sm:$0xff] }
 0x9cf   : > { %3939 = vmatprep.mubr.f32.mxu1 %v15480_v63  ;;  %v15497_v32 = vpop.eup %11010 }
 0x9d0   : > { %3643 = vadd.xlane.f32.xlu1 %v15220_v57  ;;  %v4579_v57 = vmul.f32 1.442695, %v4544_v37  ;;  %v15503_v42 = vpop.eup %11012 }
 0x9d1   : > { %v15508_v25 = vpop.eup %11014 }
 0x9d2   : > { %2862 = vadd.xlane.f32.xlu0 %v17898_v0  ;;  %3940 = vmatmul.mubr.f32.gmra.mrb[56].mxu1 %v15488_v6  ;;  %11024 = vpow2.f32 %v4579_v57  ;;  %v15512_v59 = vpop.eup %11016  ;;  %v3663_v0 = vadd.f32 %v15437_v53, %v15423_v56  ;;  %v10804_v56 = vunpack.i.h.bf16 %v15056_v38  ;;  %v17908_v53 = vld [vmem:[#allocation131_spill] sm:$0xff]  ;;  %v10814_v38 = vunpack.i.h.bf16 %v14997_v27 }
 0x9d3   : > { %3944 = vmatprep.mubr.f32.mxu1 %v15490_v60  ;;  %11026 = vpow2.f32 %v4577_v48  ;;  %v15525_v8 = vpop.eup %11018  ;;  %v10823_v27 = vunpack.i.l.bf16 %v15103_v44 }
 0x9d4   : > { %3649 = vadd.xlane.f32.xlu1 %v15247_v52  ;;  %v17901_v52 = vld [vmem:[#allocation51_spill] sm:$0xff]  ;;  %v15527_v37 = vpop.eup %11020 }
 0x9d6   : > { %2868 = vadd.xlane.f32.xlu0 %v17900_v35  ;;  %3945 = vmatmul.mubr.f32.gmra.mrb[58].mxu1 %v15497_v32  ;;  %v17906_v35 = vld [vmem:[#allocation129_spill] sm:$0xff] }
 0x9d7   : > { %3949 = vmatprep.mubr.f32.mxu1 %v15503_v42 }
 0x9d8   : > { %3655 = vadd.xlane.f32.xlu1 %v3654_v39 }
 0x9da   : > { %2874 = vadd.xlane.f32.xlu0 %v17901_v52  ;;  %3950 = vmatmul.mubr.f32.gmra.mrb[60].mxu1 %v15508_v25  ;;  %v9922_v52 = vpack.c.bf16 %v10794_v18, %v10793_v45  ;;  %v10808_v18 = vunpack.i.l.bf16 %v17909_v29  ;;  %v17910_v45 = vld [vmem:[#allocation130_spill] sm:$0xff] }
 0x9db   : > { %3954 = vmatprep.mubr.f32.mxu1 %v15512_v59 }
 0x9dc   : > { %3661 = vadd.xlane.f32.xlu1 %v3660_v22  ;;  %v15536_v22 = vpop.eup %11022 }
 0x9dd   : > { %v15542_v23 = vpop.eup %11024 }
 0x9de   : > { %2880 = vadd.xlane.f32.xlu0 %v17903_v3  ;;  %3955 = vmatmul.mubr.f32.gmra.mrb[62].mxu1 %v15525_v8  ;;  %v10799_v3 = vunpack.i.h.bf16 %v17907_v30 }
 0x9df   : > { %4845 = vmatprep.mubr.f32.mxu1 %v15527_v37 }
 0x9e0   : > { %v4501_v26 = vpop.xlane.xlu1 %4500  ;;  %2835 = vadd.xlane.f32.xlu1 %v17904_v10  ;;  %v10809_v10 = vunpack.i.h.bf16 %v17909_v29  ;;  %v15556_v29 = vpop.eup %11026 }
 0x9e1   : > { %v4545_v57 = vsub.f32 %v17905_v55, %v4501_v26  ;;  %v4546_v39 = vsub.f32 %v17906_v35, %v4501_v26  ;;  %v4504_v48 = vpop.xlane.xlu0 %4503 }
 0x9e2   : > { %3664 = vadd.xlane.f32.xlu0 %v3663_v0  ;;  %v4548_v43 = vsub.f32 %v17908_v53, %v4504_v48  ;;  %4846 = vmatmul.mubr.f32.vlgmr.msra.gmra.mrb[64].mxu1 %v15536_v22  ;;  %v4547_v55 = vsub.f32 %v17910_v45, %v4504_v48  ;;  %v3669_v53 = vadd.f32 %v15467_v11, %v15460_v40  ;;  %v10824_v48 = vunpack.i.h.bf16 %v15103_v44  ;;  %v17912_v45 = vld [vmem:[#allocation63_spill] sm:$0xff] }
 0x9e3   : > { %v4581_v26 = vmul.f32 1.442695, %v4545_v57  ;;  %v4583_v0 = vmul.f32 1.442695, %v4546_v39  ;;  %9921 = vmatpush3.bf16.msra.mxu1 %v9920_v62  ;;  %4850 = vmatprep.mubr.f32.mxu1 %v15542_v23  ;;  %v17911_v39 = vld [vmem:[#allocation61_spill] sm:$0xff]  ;;  %v9926_v11 = vpack.c.bf16 %v10804_v56, %v10803_v7  ;;  %v10819_v56 = vunpack.i.h.bf16 %v15039_v9 }
 0x9e4   : > { %v4587_v35 = vmul.f32 1.442695, %v4548_v43  ;;  %v4507_v30 = vpop.xlane.xlu1 %4506  ;;  %9923 = vmatprep.subr.bf16.mxu1 %v9922_v52  ;;  %2844 = vadd.xlane.f32.xlu1 %v17911_v39  ;;  %v9924_v43 = vpack.c.bf16 %v10799_v3, %v10798_v19  ;;  %v4585_v52 = vmul.f32 1.442695, %v4547_v55  ;;  %v9928_v19 = vpack.c.bf16 %v10809_v10, %v10808_v18 }
 0x9e5   : > { %11028 = vpow2.f32 %v4581_v26  ;;  %v4550_v57 = vsub.f32 %v14949_v61, %v4507_v30  ;;  %v4510_v62 = vpop.xlane.xlu0 %4509  ;;  %v4549_v40 = vsub.f32 %v14946_v47, %v4507_v30  ;;  %v3675_v26 = vadd.f32 %v15488_v6, %v15480_v63 }
 0x9e6   : > { %11030 = vpow2.f32 %v4583_v0  ;;  %3670 = vadd.xlane.f32.xlu0 %v3669_v53  ;;  %4851 = vmatmul.mubr.f32.gmra.mrb[66].mxu1 %v15556_v29  ;;  %v4552_v0 = vsub.f32 %v14962_v49, %v4510_v62  ;;  %v9930_v30 = vpack.c.bf16 %v10814_v38, %v10813_v15  ;;  %v10818_v44 = vunpack.i.l.bf16 %v15039_v9  ;;  %v17913_v15 = vld [vmem:[#allocation134_spill] sm:$0xff] }
 0x9e7   : > { %11032 = vpow2.f32 %v4587_v35  ;;  %9925 = vmatpush3.bf16.msra.mxu1 %v9924_v43  ;;  %v4591_v3 = vmul.f32 1.442695, %v4550_v57  ;;  %v10829_v7 = vunpack.i.h.bf16 %v15080_v50  ;;  %v10828_v63 = vunpack.i.l.bf16 %v15080_v50  ;;  %v17914_v50 = vld [vmem:[#allocation39_spill] sm:$0xff]  ;;  %v17915_v43 = vld [vmem:[#allocation137_spill] sm:$0xff] }
 0x9e8   : > { %v15562_v61 = vpop.xlane.xlu1 %4515  ;;  %9927 = vmatprep.subr.bf16.mxu1 %v9926_v11  ;;  %2850 = vadd.xlane.f32.xlu1 %v17912_v45  ;;  %v10834_v6 = vunpack.i.h.bf16 %v15295_v46  ;;  %v4589_v10 = vmul.f32 1.442695, %v4549_v40  ;;  %v10833_v18 = vunpack.i.l.bf16 %v15295_v46  ;;  %11034 = vpow2.f32 %v4585_v52 }
 0x9e9   : > { %v4513_v47 = vpop.xlane.xlu0 %4512  ;;  %v4551_v35 = vsub.f32 %v17913_v15, %v4510_v62  ;;  %v3681_v9 = vadd.f32 %v15508_v25, %v15503_v42  ;;  %11036 = vpow2.f32 %v4591_v3  ;;  %v9932_v57 = vpack.c.bf16 %v10819_v56, %v10818_v44 }
 0x9ea   : > { %3676 = vadd.xlane.f32.xlu0 %v3675_v26  ;;  %v4553_v55 = vsub.f32 %v14990_v33, %v4513_v47  ;;  %v4554_v49 = vsub.f32 %v14993_v31, %v4513_v47  ;;  %v4595_v33 = vmul.f32 1.442695, %v4552_v0  ;;  %11038 = vpow2.f32 %v4589_v10  ;;  %v17920_v10 = vld [vmem:[#allocation135_spill] sm:$0xff] }
 0x9eb   : > { %9929 = vmatpush3.bf16.msra.mxu1 %v9928_v19  ;;  %v9934_v11 = vpack.c.bf16 %v10824_v48, %v10823_v27  ;;  %v9936_v26 = vpack.c.bf16 %v10829_v7, %v10828_v63  ;;  %v4593_v42 = vmul.f32 1.442695, %v4551_v35  ;;  %v3684_v19 = vadd.f32 %v15525_v8, %v15512_v59  ;;  %v17918_v8 = vld [vmem:[#allocation140_spill] sm:$0xff]  ;;  %v17919_v63 = vld [vmem:[#allocation141_spill] sm:$0xff]  ;;  %v17921_v35 = vld [vmem:[#allocation42_spill] sm:$0xff] }
 0x9ec   : > { %v15577_v53 = vpop.xlane.xlu1 %4521  ;;  %9931 = vmatprep.subr.bf16.mxu1 %v9930_v30  ;;  %2856 = vadd.xlane.f32.xlu1 %v17914_v50  ;;  %v4597_v39 = vmul.f32 1.442695, %v4553_v55  ;;  %v4599_v62 = vmul.f32 1.442695, %v4554_v49  ;;  %v9938_v3 = vpack.c.bf16 %v10834_v6, %v10833_v18  ;;  %v10844_v0 = vunpack.i.h.bf16 %v15499_v12  ;;  %v17917_v30 = vld [vmem:[#allocation40_spill] sm:$0xff] }
 0x9ed   : > { %v4519_v38 = vpop.xlane.xlu0 %4518  ;;  %v10839_v45 = vunpack.i.h.bf16 %v15522_v14  ;;  %11040 = vpow2.f32 %v4595_v33  ;;  %v10838_v56 = vunpack.i.l.bf16 %v15522_v14  ;;  %v10843_v7 = vunpack.i.l.bf16 %v15499_v12 }
 0x9ee   : > { %3682 = vadd.xlane.f32.xlu0 %v3681_v9  ;;  %v4557_v31 = vsub.f32 %v15006_v17, %v4519_v38  ;;  %v4558_v40 = vsub.f32 %v17915_v43, %v4519_v38  ;;  %v17916_v17 = vld [vmem:[#allocation136_spill] sm:$0xff]  ;;  %11042 = vpow2.f32 %v4597_v39  ;;  %v4555_v49 = vsub.f32 %v17920_v10, %v15562_v61 }
 0x9ef   : > { %v11029_v46 = vpop.eup %11028  ;;  %9933 = vmatpush3.bf16.msra.mxu1 %v9932_v57  ;;  %v4556_v47 = vsub.f32 %v17916_v17, %v15562_v61  ;;  %11044 = vpow2.f32 %v4599_v62  ;;  %v4637_v18 = vadd.f32 %v15536_v22, %v15527_v37  ;;  %v10849_v15 = vunpack.i.h.bf16 %v15515_v54  ;;  %v17926_v17 = vld [vmem:[#allocation138_spill] sm:$0xff] }
 0x9f0   : > { %v11031_v52 = vpop.eup %11030  ;;  %v4525_v25 = vpop.xlane.xlu1 %4524  ;;  %9935 = vmatprep.subr.bf16.mxu1 %v9934_v11  ;;  %2859 = vadd.xlane.f32.xlu1 %v17917_v30  ;;  %v4605_v59 = vmul.f32 1.442695, %v4557_v31  ;;  %v4607_v55 = vmul.f32 1.442695, %v4558_v40  ;;  %11046 = vpow2.f32 %v4593_v42  ;;  %v10848_v33 = vunpack.i.l.bf16 %v15515_v54  ;;  %v17922_v54 = vld [vmem:[#allocation139_spill] sm:$0xff]  ;;  %v17923_v11 = vld [vmem:[#allocation125_spill] sm:$0xff] }
 0x9f1   : > { %v15591_v48 = vpop.xlane.xlu0 %4536  ;;  %v15593_v27 = vpop.eup %11032  ;;  %v4561_v44 = vsub.f32 %v17918_v8, %v4525_v25  ;;  %4855 = vmatprep.mubr.f32.mxu1 %v11031_v52  ;;  %v4562_v6 = vsub.f32 %v17919_v63, %v4525_v25  ;;  %v4603_v12 = vmul.f32 1.442695, %v4556_v47  ;;  %v9940_v50 = vpack.c.bf16 %v10839_v45, %v10838_v56  ;;  %v17924_v42 = vld [vmem:[#allocation89_spill] sm:$0xff] }
 0x9f2   : > { %3685 = vadd.xlane.f32.xlu0 %v3684_v19  ;;  %4856 = vmatmul.mubr.f32.gmra.mrb[68].mxu1 %v11029_v46  ;;  %v15608_v9 = vpop.eup %11034  ;;  %11048 = vpow2.f32 %v4605_v59  ;;  %v9942_v37 = vpack.c.bf16 %v10844_v0, %v10843_v7  ;;  %v4601_v22 = vmul.f32 1.442695, %v4555_v49  ;;  %v4643_v62 = vadd.f32 %v11031_v52, %v11029_v46  ;;  %v17925_v19 = vld [vmem:[#allocation65_spill] sm:$0xff]  ;;  %v17927_v7 = vld [vmem:[#allocation35_spill] sm:$0xff] }
 0x9f3   : > { %9937 = vmatpush3.bf16.msra.mxu1 %v9936_v26  ;;  %4860 = vmatprep.mubr.f32.mxu1 %v15593_v27  ;;  %v4613_v61 = vmul.f32 1.442695, %v4561_v44  ;;  %v11037_v57 = vpop.eup %11036  ;;  %11050 = vpow2.f32 %v4607_v55  ;;  %v4615_v39 = vmul.f32 1.442695, %v4562_v6  ;;  %v4560_v40 = vsub.f32 %v17922_v54, %v15577_v53  ;;  %v17928_v6 = vld [vmem:[#allocation145_spill] sm:$0xff] }
 0x9f4   : > { %v15602_v14 = vpop.xlane.xlu1 %4527  ;;  %9939 = vmatprep.subr.bf16.mxu1 %v9938_v3  ;;  %2865 = vadd.xlane.f32.xlu1 %v17921_v35  ;;  %v11039_v43 = vpop.eup %11038  ;;  %11052 = vpow2.f32 %v4603_v12  ;;  %v9944_v3 = vpack.c.bf16 %v10849_v15, %v10848_v33  ;;  %v4559_v47 = vsub.f32 %v17926_v17, %v15577_v53  ;;  %v17929_v12 = vld [vmem:[#allocation75_spill] sm:$0xff] }
 0x9f5   : > { %v15611_v38 = vpop.xlane.xlu0 %5463  ;;  %11054 = vpow2.f32 %v4613_v61  ;;  %v4649_v59 = vadd.f32 %v11039_v43, %v11037_v57  ;;  %v4611_v44 = vmul.f32 1.442695, %v4560_v40  ;;  %v4564_v10 = vsub.f32 %v17928_v6, %v15602_v14  ;;  %v17932_v40 = vld [vmem:[#allocation73_spill] sm:$0xff] }
 0x9f6   : > { %4638 = vadd.xlane.f32.xlu0 %v4637_v18  ;;  %4861 = vmatmul.mubr.f32.gmra.mrb[70].mxu1 %v15608_v9  ;;  %11056 = vpow2.f32 %v4615_v39  ;;  %v4609_v63 = vmul.f32 1.442695, %v4559_v47 }
 0x9f7   : > { %9941 = vmatpush3.bf16.msra.mxu1 %v9940_v50  ;;  %4865 = vmatprep.mubr.f32.mxu1 %v11037_v57  ;;  %v15619_v0 = vpop.eup %11040  ;;  %11058 = vpow2.f32 %v4601_v22  ;;  %v3672_v50 = vadd.f32 %v15478_v51, %v15471_v41  ;;  %v17930_v57 = vld [vmem:[#allocation144_spill] sm:$0xff]  ;;  %v17933_v41 = vld [vmem:[#allocation94_spill] sm:$0xff] }
 0x9f8   : > { %v4531_v31 = vpop.xlane.xlu1 %4530  ;;  %9943 = vmatprep.subr.bf16.mxu1 %v9942_v37  ;;  %2871 = vadd.xlane.f32.xlu1 %v17925_v19  ;;  %v11043_v52 = vpop.eup %11042  ;;  %v4563_v39 = vsub.f32 %v17930_v57, %v15602_v14  ;;  %v4619_v37 = vmul.f32 1.442695, %v4564_v10  ;;  %v3678_v14 = vadd.f32 %v15497_v32, %v15490_v60  ;;  %v17937_v60 = vld [vmem:[#allocation143_spill] sm:$0xff] }
 0x9f9   : > { %v4565_v26 = vsub.f32 %v17923_v11, %v4531_v31  ;;  %v4566_v25 = vsub.f32 %v17924_v42, %v4531_v31  ;;  %v11045_v8 = vpop.eup %11044  ;;  %v4570_v32 = vsub.f32 %v17937_v60, %v15591_v48 }
 0x9fa   : > { %4644 = vadd.xlane.f32.xlu0 %v4643_v62  ;;  %4866 = vmatmul.mubr.f32.gmra.mrb[72].mxu1 %v11039_v43  ;;  %v15623_v30 = vpop.xlane.xlu0 %5469  ;;  %v15629_v55 = vpop.eup %11046  ;;  %v4655_v18 = vadd.f32 %v11045_v8, %v11043_v52  ;;  %v17931_v43 = vld [vmem:[#allocation93_spill] sm:$0xff] }
 0x9fb   : > { %v4621_v45 = vmul.f32 1.442695, %v4565_v26  ;;  %v4623_v46 = vmul.f32 1.442695, %v4566_v25  ;;  %9945 = vmatpush3.bf16.msra.mxu1 %v9944_v3  ;;  %4870 = vmatprep.mubr.f32.mxu1 %v15619_v0  ;;  %v4617_v3 = vmul.f32 1.442695, %v4563_v39 }
 0x9fc   : > { %v15626_v56 = vpop.xlane.xlu1 %4533  ;;  %2877 = vadd.xlane.f32.xlu1 %v17927_v7  ;;  %v11049_v53 = vpop.eup %11048  ;;  %v17936_v7 = vld [vmem:[#allocation67_spill] sm:$0xff]  ;;  %v17939_v39 = vld [vmem:[#allocation72_spill] sm:$0xff] }
 0x9fd   : > { %11060 = vpow2.f32 %v4621_v45  ;;  %v11051_v15 = vpop.eup %11050  ;;  %v4567_v51 = vsub.f32 %v17933_v41, %v15626_v56  ;;  %v17934_v45 = vld [vmem:[#allocation96_spill] sm:$0xff] }
 0x9fe   : > { %4650 = vadd.xlane.f32.xlu0 %v4649_v59  ;;  %11062 = vpow2.f32 %v4623_v46  ;;  %4871 = vmatmul.mubr.f32.gmra.mrb[74].mxu1 %v15629_v55  ;;  %v15637_v35 = vpop.xlane.xlu0 %5475  ;;  %v15639_v33 = vpop.eup %11052  ;;  %v4661_v31 = vadd.f32 %v11051_v15, %v11049_v53  ;;  %v4568_v46 = vsub.f32 %v17934_v45, %v15626_v56  ;;  %v4640_v56 = vadd.f32 %v15556_v29, %v15542_v23  ;;  %v17940_v29 = vld [vmem:[#allocation69_spill] sm:$0xff] }
 0x9ff   : > { %4875 = vmatprep.mubr.f32.mxu1 %v11045_v8  ;;  %11064 = vpow2.f32 %v4611_v44  ;;  %v15643_v61 = vpop.eup %11054  ;;  %v17935_v8 = vld [vmem:[#allocation74_spill] sm:$0xff]  ;;  %v4625_v10 = vmul.f32 1.442695, %v4567_v51  ;;  %v4631_v51 = vmul.f32 1.442695, %v4570_v32  ;;  %v17944_v32 = vld [vmem:[#allocation103_spill] sm:$0xff] }
 0xa00   : > { %v15634_v49 = vpop.xlane.xlu1 %4539  ;;  %3667 = vadd.xlane.f32.xlu1 %v17929_v12  ;;  %11066 = vpow2.f32 %v4609_v63  ;;  %v11057_v62 = vpop.eup %11056  ;;  %v4627_v57 = vmul.f32 1.442695, %v4568_v46 }
 0xa01   : > { %v15650_v26 = vpop.eup %11058  ;;  %11068 = vpow2.f32 %v4619_v37  ;;  %v4667_v47 = vadd.f32 %v11057_v62, %v15643_v61 }
 0xa02   : > { %4656 = vadd.xlane.f32.xlu0 %v4655_v18  ;;  %4876 = vmatmul.mubr.f32.gmra.mrb[76].mxu1 %v11043_v52  ;;  %v5479_v52 = vpop.xlane.xlu0 %5478  ;;  %v17938_v18 = vld [vmem:[#allocation71_spill] sm:$0xff] }
 0xa03   : > { %4880 = vmatprep.mubr.f32.mxu1 %v15639_v33  ;;  %v5520_v37 = vsub.f32 %v17939_v39, %v5479_v52 }
 0xa04   : > { %v5461_v22 = vpop.xlane.xlu1 %5460  ;;  %3673 = vadd.xlane.f32.xlu1 %v3672_v50 }
 0xa05   : > { %v5507_v54 = vsub.f32 %v17931_v43, %v5461_v22  ;;  %v5508_v11 = vsub.f32 %v17932_v40, %v5461_v22  ;;  %v5565_v45 = vmul.f32 1.442695, %v5520_v37 }
 0xa06   : > { %4662 = vadd.xlane.f32.xlu0 %v4661_v31  ;;  %4881 = vmatmul.mubr.f32.gmra.mrb[78].mxu1 %v15650_v26  ;;  %v10857_v23 = vpop.permute.xlu0 %10856 }
 0xa07   : > { %v5539_v42 = vmul.f32 1.442695, %v5507_v54  ;;  %v5541_v25 = vmul.f32 1.442695, %v5508_v11  ;;  %v15657_v19 = vpop.eup %11060  ;;  %4885 = vmatprep.mubr.f32.mxu1 %v11051_v15  ;;  %v5519_v15 = vsub.f32 %v17938_v18, %v5479_v52  ;;  %v17941_v54 = vld [vmem:[#allocation119_spill] sm:$0xff]  ;;  %v10859_v46 = vunpack.i.h.bf16 %v10857_v23 }
 0xa08   : > { %v5467_v17 = vpop.xlane.xlu1 %5466  ;;  %v15662_v59 = vpop.eup %11062  ;;  %3679 = vadd.xlane.f32.xlu1 %v3678_v14  ;;  %v10858_v52 = vunpack.i.l.bf16 %v10857_v23 }
 0xa09   : > { %11070 = vpow2.f32 %v5539_v42  ;;  %v5511_v44 = vsub.f32 %v17935_v8, %v5467_v17  ;;  %v5512_v63 = vsub.f32 %v17936_v7, %v5467_v17  ;;  %v15670_v6 = vpop.eup %11064  ;;  %v4673_v31 = vadd.f32 %v15662_v59, %v15657_v19 }
 0xa0a   : > { %11072 = vpow2.f32 %v5541_v25  ;;  %4668 = vadd.xlane.f32.xlu0 %v4667_v47  ;;  %4886 = vmatmul.mubr.f32.gmra.mrb[80].mxu1 %v11049_v53  ;;  %v11067_v11 = vpop.eup %11066  ;;  %v17942_v53 = vld [vmem:[#allocation142_spill] sm:$0xff]  ;;  %v4646_v42 = vadd.f32 %v15608_v9, %v15593_v27  ;;  %v5563_v25 = vmul.f32 1.442695, %v5519_v15  ;;  %v17943_v47 = vld [vmem:[#allocation105_spill] sm:$0xff]  ;;  %v4652_v9 = vadd.f32 %v15629_v55, %v15619_v0 }
 0xa0b   : > { %v5547_v12 = vmul.f32 1.442695, %v5511_v44  ;;  %v5549_v50 = vmul.f32 1.442695, %v5512_v63  ;;  %11074 = vpow2.f32 %v4617_v3  ;;  %4890 = vmatprep.mubr.f32.mxu1 %v15670_v6  ;;  %v4569_v41 = vsub.f32 %v17942_v53, %v15591_v48  ;;  %v11069_v7 = vpop.eup %11068 }
 0xa0c   : > { %v5473_v22 = vpop.xlane.xlu1 %5472  ;;  %4641 = vadd.xlane.f32.xlu1 %v4640_v56  ;;  %v4572_v48 = vsub.f32 %v17943_v47, %v15634_v49  ;;  %v4571_v56 = vsub.f32 %v17944_v32, %v15634_v49  ;;  %v4658_v55 = vadd.f32 %v15650_v26, %v15639_v33  ;;  %v4664_v26 = vadd.f32 %v11067_v11, %v15670_v6 }
 0xa0d   : > { %11076 = vpow2.f32 %v5547_v12  ;;  %v5515_v43 = vsub.f32 %v17940_v29, %v5473_v22  ;;  %v5516_v40 = vsub.f32 %v17941_v54, %v5473_v22  ;;  %v4629_v60 = vmul.f32 1.442695, %v4569_v41  ;;  %v17947_v54 = vld [vmem:[#allocation91_spill] sm:$0xff]  ;;  %v17948_v41 = vld [vmem:[#allocation148_spill] sm:$0xff] }
 0xa0e   : > { %11078 = vpow2.f32 %v5549_v50  ;;  %4674 = vadd.xlane.f32.xlu0 %v4673_v31  ;;  %4891 = vmatmul.mubr.f32.gmra.mrb[82].mxu1 %v11067_v11  ;;  %v4635_v18 = vmul.f32 1.442695, %v4572_v48  ;;  %v4633_v12 = vmul.f32 1.442695, %v4571_v56  ;;  %v17946_v31 = vld [vmem:[#allocation146_spill] sm:$0xff]  ;;  %v5514_v6 = vsub.f32 %v17948_v41, %v15623_v30 }
 0xa0f   : > { %11080 = vpow2.f32 %v4625_v10  ;;  %v5555_v14 = vmul.f32 1.442695, %v5515_v43  ;;  %v5557_v3 = vmul.f32 1.442695, %v5516_v40  ;;  %4895 = vmatprep.mubr.f32.mxu1 %v11057_v62  ;;  %v9948_v10 = vpack.c.bf16 %v10859_v46, %v10858_v52  ;;  %v17950_v52 = vld [vmem:[#allocation70_spill] sm:$0xff] }
 0xa10   : > { %11082 = vpow2.f32 %v4627_v57  ;;  %v10852_v17 = vpop.permute.xlu1 %10851  ;;  %4647 = vadd.xlane.f32.xlu1 %v4646_v42  ;;  %v17945_v57 = vld [vmem:[#allocation147_spill] sm:$0xff]  ;;  %v5509_v23 = vsub.f32 %v17946_v31, %v15611_v38  ;;  %v5513_v40 = vsub.f32 %v17947_v54, %v15623_v30  ;;  %v5553_v46 = vmul.f32 1.442695, %v5514_v6 }
 0xa11   : > { %11084 = vpow2.f32 %v5555_v14  ;;  %v10854_v8 = vunpack.i.h.bf16 %v10852_v17  ;;  %v10853_v44 = vunpack.i.l.bf16 %v10852_v17  ;;  %v5510_v39 = vsub.f32 %v17945_v57, %v15611_v38 }
 0xa12   : > { %11086 = vpow2.f32 %v5557_v3  ;;  %4896 = vmatmul.mubr.f32.gmra.mrb[84].mxu1 %v15643_v61  ;;  %v5551_v42 = vmul.f32 1.442695, %v5513_v40  ;;  %v5518_v30 = vsub.f32 %v17950_v52, %v15637_v35 }
 0xa13   : > { %v15685_v27 = vpop.eup %11070  ;;  %11088 = vpow2.f32 %v5563_v25  ;;  %v9946_v63 = vpack.c.bf16 %v10854_v8, %v10853_v44  ;;  %4900 = vmatprep.mubr.f32.mxu1 %v11069_v7  ;;  %v5545_v43 = vmul.f32 1.442695, %v5510_v39  ;;  %v17949_v25 = vld [vmem:[#allocation68_spill] sm:$0xff] }
 0xa14   : > { %v15690_v62 = vpop.eup %11072  ;;  %11090 = vpow2.f32 %v5565_v45  ;;  %4653 = vadd.xlane.f32.xlu1 %v4652_v9  ;;  %v5517_v14 = vsub.f32 %v17949_v25, %v15637_v35  ;;  %v5561_v44 = vmul.f32 1.442695, %v5518_v30 }
 0xa15   : > { %11092 = vpow2.f32 %v4631_v51  ;;  %9947 = vmatprep.subr.bf16.mxu1 %v9946_v63  ;;  %v5603_v61 = vadd.f32 %v15690_v62, %v15685_v27  ;;  %v11075_v15 = vpop.eup %11074 }
 0xa16   : > { %9949 = vmatpush3.bf16.msra.mxu1 %v9948_v10  ;;  %11094 = vpow2.f32 %v4629_v60  ;;  %v4670_v51 = vadd.f32 %v11075_v15, %v11069_v7  ;;  %v5559_v48 = vmul.f32 1.442695, %v5517_v14 }
 0xa17   : > { %v15696_v0 = vpop.eup %11076  ;;  %4901 = vmatmul.mubr.f32.gmra.mrb[86].mxu1 %v11075_v15  ;;  %5604 = vadd.xlane.f32.xlu0 %v5603_v61  ;;  %11096 = vpow2.f32 %v4635_v18  ;;  %v17951_v15 = vld [vmem:[#allocation76_spill] sm:$0xff] }
 0xa18   : > { %v15700_v49 = vpop.eup %11078  ;;  %4905 = vmatprep.mubr.f32.mxu1 %v15662_v59  ;;  %4659 = vadd.xlane.f32.xlu1 %v4658_v55  ;;  %11098 = vpow2.f32 %v4633_v12 }
 0xa19   : > { %v11081_v50 = vpop.eup %11080  ;;  %v5609_v37 = vadd.f32 %v15700_v49, %v15696_v0  ;;  %11100 = vpow2.f32 %v5545_v43 }
 0xa1a   : > { %v11083_v22 = vpop.eup %11082 }
 0xa1b   : > { %v15709_v33 = vpop.eup %11084  ;;  %4906 = vmatmul.mubr.f32.gmra.mrb[88].mxu1 %v15657_v19  ;;  %5610 = vadd.xlane.f32.xlu0 %v5609_v37  ;;  %v5543_v19 = vmul.f32 1.442695, %v5509_v23  ;;  %v4676_v47 = vadd.f32 %v11083_v22, %v11081_v50 }
 0xa1c   : > { %v15713_v59 = vpop.eup %11086  ;;  %4910 = vmatprep.mubr.f32.mxu1 %v11083_v22  ;;  %4665 = vadd.xlane.f32.xlu1 %v4664_v26 }
 0xa1d   : > { %v15715_v29 = vpop.eup %11088  ;;  %v5615_v38 = vadd.f32 %v15713_v59, %v15709_v33  ;;  %11102 = vpow2.f32 %v5543_v19 }
 0xa1e   : > { %v15721_v53 = vpop.eup %11090  ;;  %11104 = vpow2.f32 %v5551_v42 }
 0xa1f   : > { %v11093_v11 = vpop.eup %11092  ;;  %4911 = vmatmul.mubr.f32.gmra.mrb[90].mxu1 %v11081_v50  ;;  %5616 = vadd.xlane.f32.xlu0 %v5615_v38  ;;  %v5621_v3 = vadd.f32 %v15721_v53, %v15715_v29  ;;  %11106 = vpow2.f32 %v5553_v46 }
 0xa20   : > { %4915 = vmatprep.mubr.f32.mxu1 %v11093_v11  ;;  %4671 = vadd.xlane.f32.xlu1 %v4670_v51  ;;  %v11095_v45 = vpop.eup %11094  ;;  %11108 = vpow2.f32 %v5559_v48 }
 0xa21   : > { %v11097_v17 = vpop.eup %11096  ;;  %v4679_v7 = vadd.f32 %v11095_v45, %v11093_v11  ;;  %11110 = vpow2.f32 %v5561_v44 }
 0xa22   : > { %v11099_v8 = vpop.eup %11098 }
 0xa23   : > { %4916 = vmatmul.mubr.f32.gmra.mrb[92].mxu1 %v11095_v45  ;;  %5622 = vadd.xlane.f32.xlu0 %v5621_v3  ;;  %v11101_v9 = vpop.eup %11100  ;;  %v4682_v35 = vadd.f32 %v11099_v8, %v11097_v17 }
 0xa24   : > { %4920 = vmatprep.mubr.f32.mxu1 %v11097_v17  ;;  %4677 = vadd.xlane.f32.xlu1 %v4676_v47 }
 0xa27   : > { %4921 = vmatmul.mubr.f32.gmra.mrb[94].mxu1 %v11099_v8  ;;  %v11103_v63 = vpop.eup %11102 }
 0xa28   : > { %5811 = vmatprep.mubr.f32.mxu1 %v15690_v62  ;;  %4680 = vadd.xlane.f32.xlu1 %v4679_v7  ;;  %v11105_v60 = vpop.eup %11104  ;;  %v5606_v32 = vadd.f32 %v11103_v63, %v11101_v9 }
 0xa29   : > { %v11107_v56 = vpop.eup %11106 }
 0xa2a   : > { %v11109_v10 = vpop.eup %11108  ;;  %v5612_v62 = vadd.f32 %v11107_v56, %v11105_v60 }
 0xa2b   : > { %5812 = vmatmul.mubr.f32.vlgmr.msra.gmra.mrb[96].mxu1 %v15685_v27  ;;  %v11111_v18 = vpop.eup %11110 }
 0xa2c   : > { %5816 = vmatprep.mubr.f32.mxu1 %v11101_v9  ;;  %4683 = vadd.xlane.f32.xlu1 %v4682_v35  ;;  %v5618_v12 = vadd.f32 %v11111_v18, %v11109_v10 }
 0xa2f   : > { %5817 = vmatmul.mubr.f32.gmra.mrb[98].mxu1 %v11103_v63 }
 0xa30   : > { %5821 = vmatprep.mubr.f32.mxu1 %v15700_v49  ;;  %5607 = vadd.xlane.f32.xlu1 %v5606_v32 }
 0xa33   : > { %5822 = vmatmul.mubr.f32.gmra.mrb[100].mxu1 %v15696_v0 }
 0xa34   : > { %5826 = vmatprep.mubr.f32.mxu1 %v11107_v56  ;;  %5613 = vadd.xlane.f32.xlu1 %v5612_v62 }
 0xa37   : > { %v5485_v61 = vpop.xlane.xlu0 %5484  ;;  %5827 = vmatmul.mubr.f32.gmra.mrb[102].mxu1 %v11105_v60 }
 0xa38   : > { %v5523_v27 = vsub.f32 %v15300_v20, %v5485_v61  ;;  %v5524_v55 = vsub.f32 %v17951_v15, %v5485_v61  ;;  %5831 = vmatprep.mubr.f32.mxu1 %v15713_v59  ;;  %5619 = vadd.xlane.f32.xlu1 %v5618_v12 }
 0xa3a   : > { %v5571_v50 = vmul.f32 1.442695, %v5523_v27  ;;  %v5573_v57 = vmul.f32 1.442695, %v5524_v55 }
 0xa3b   : > { %v15738_v49 = vpop.xlane.xlu0 %5502  ;;  %5832 = vmatmul.mubr.f32.gmra.mrb[104].mxu1 %v15709_v33 }
 0xa3c   : > { %11112 = vpow2.f32 %v5571_v50  ;;  %5836 = vmatprep.mubr.f32.mxu1 %v11111_v18  ;;  %v5535_v11 = vsub.f32 %v15318_v13, %v15738_v49  ;;  %v5536_v13 = vsub.f32 %v15321_v5, %v15738_v49  ;;  %v17953_v18 = vld [vmem:[#allocation121_spill] sm:$0xff] }
 0xa3d   : > { %11114 = vpow2.f32 %v5573_v57 }
 0xa3e   : > { %v5595_v17 = vmul.f32 1.442695, %v5535_v11  ;;  %v5597_v32 = vmul.f32 1.442695, %v5536_v13 }
 0xa3f   : > { %v15741_v0 = vpop.xlane.xlu0 %3640  ;;  %5837 = vmatmul.mubr.f32.gmra.mrb[106].mxu1 %v11109_v10 }
 0xa40   : > { %5841 = vmatprep.mubr.f32.mxu1 %v15721_v53 }
 0xa41   : > { %v5482_v20 = vpop.xlane.xlu1 %5481 }
 0xa42   : > { %v5521_v39 = vsub.f32 %v15331_v16, %v5482_v20  ;;  %v5522_v37 = vsub.f32 %v15337_v1, %v5482_v20 }
 0xa43   : > { %v15746_v22 = vpop.xlane.xlu0 %3646  ;;  %5842 = vmatmul.mubr.f32.gmra.mrb[108].mxu1 %v15715_v29 }
 0xa44   : > { %v5567_v31 = vmul.f32 1.442695, %v5521_v39  ;;  %v5569_v23 = vmul.f32 1.442695, %v5522_v37 }
 0xa45   : > { %v5488_v33 = vpop.xlane.xlu1 %5487 }
 0xa46   : > { %v15749_v26 = vpop.eup %11112  ;;  %11116 = vpow2.f32 %v5567_v31  ;;  %v5525_v43 = vsub.f32 %v15351_v36, %v5488_v33  ;;  %v5526_v54 = vsub.f32 %v15354_v2, %v5488_v33 }
 0xa47   : > { %v11115_v59 = vpop.eup %11114  ;;  %v15753_v40 = vpop.xlane.xlu0 %3652  ;;  %11118 = vpow2.f32 %v5569_v23  ;;  %v17954_v23 = vld [vmem:[#allocation77_spill] sm:$0xff] }
 0xa48   : > { %v5627_v16 = vadd.f32 %v11115_v59, %v15749_v26  ;;  %v5575_v1 = vmul.f32 1.442695, %v5525_v43  ;;  %v5577_v38 = vmul.f32 1.442695, %v5526_v54 }
 0xa49   : > { %v5491_v29 = vpop.xlane.xlu1 %5490 }
 0xa4a   : > { %5628 = vadd.xlane.f32.xlu0 %v5627_v16  ;;  %11120 = vpow2.f32 %v5575_v1  ;;  %v5527_v53 = vsub.f32 %v15372_v34, %v5491_v29  ;;  %v5528_v19 = vsub.f32 %v15375_v28, %v5491_v29  ;;  %v17956_v16 = vld [vmem:[#allocation43_spill] sm:$0xff] }
 0xa4b   : > { %v15758_v41 = vpop.xlane.xlu0 %3658  ;;  %11122 = vpow2.f32 %v5577_v38 }
 0xa4c   : > { %v5579_v36 = vmul.f32 1.442695, %v5527_v53  ;;  %v5581_v6 = vmul.f32 1.442695, %v5528_v19  ;;  %v8734_v2 = vpop.f32.mrb[32].mxu1 }
 0xa4d   : > { %v8735_v51 = vpop.f32.mrb[33].mxu1  ;;  %v5494_v42 = vpop.xlane.xlu1 %5493 }
 0xa4e   : > { %11124 = vpow2.f32 %v5579_v36  ;;  %v15762_v25 = vadd.f32 %v8735_v51, %v8734_v2  ;;  %v5529_v14 = vsub.f32 %v15391_v21, %v5494_v42  ;;  %v5530_v34 = vsub.f32 %v15396_v24, %v5494_v42 }
 0xa4f   : > { %v2839_v3 = vpop.xlane.xlu0 %2838  ;;  %11126 = vpow2.f32 %v5581_v6 }
 0xa50   : > { %v11117_v28 = vpop.eup %11116  ;;  %v5583_v45 = vmul.f32 1.442695, %v5529_v14  ;;  %v5585_v46 = vmul.f32 1.442695, %v5530_v34  ;;  %11128 = vrcp.f32 %v2839_v3  ;;  %v8737_v52 = vpop.f32.mrb[34].mxu1  ;;  %v17957_v3 = vld [vmem:[#allocation48_spill] sm:$0xff] }
 0xa51   : > { %v11119_v30 = vpop.eup %11118  ;;  %v8738_v47 = vpop.f32.mrb[35].mxu1 }
 0xa52   : > { %v5497_v48 = vpop.xlane.xlu1 %5496  ;;  %11130 = vpow2.f32 %v5583_v45  ;;  %v15768_v8 = vadd.f32 %v8738_v47, %v8737_v52  ;;  %5846 = vmatprep.mubr.f32.mxu1 %v11119_v30  ;;  %v5624_v7 = vadd.f32 %v11119_v30, %v11117_v28 }
 0xa53   : > { %v5531_v21 = vsub.f32 %v15415_v58, %v5497_v48  ;;  %v5532_v24 = vsub.f32 %v15418_v4, %v5497_v48  ;;  %v2842_v44 = vpop.xlane.xlu0 %2841  ;;  %11132 = vpow2.f32 %v5585_v46  ;;  %5847 = vmatmul.mubr.f32.gmra.mrb[110].mxu1 %v11117_v28  ;;  %v17952_v4 = vld [vmem:[#allocation100_spill] sm:$0xff] }
 0xa54   : > { %v11121_v9 = vpop.eup %11120  ;;  %11134 = vrcp.f32 %v2842_v44  ;;  %v8740_v5 = vpop.f32.mrb[36].mxu1  ;;  %5851 = vmatprep.mubr.f32.mxu1 %v11115_v59  ;;  %5625 = vadd.xlane.f32.xlu1 %v5624_v7  ;;  %v17955_v59 = vld [vmem:[#allocation78_spill] sm:$0xff]  ;;  %v17958_v48 = vld [vmem:[#allocation44_spill] sm:$0xff] }
 0xa55   : > { %v5587_v35 = vmul.f32 1.442695, %v5531_v21  ;;  %v5589_v63 = vmul.f32 1.442695, %v5532_v24  ;;  %v11123_v60 = vpop.eup %11122  ;;  %11136 = vpow2.f32 %v5595_v17  ;;  %v8741_v56 = vpop.f32.mrb[37].mxu1 }
 0xa56   : > { %v5500_v10 = vpop.xlane.xlu1 %5499  ;;  %v15772_v58 = vadd.f32 %v8741_v56, %v8740_v5  ;;  %v5630_v15 = vadd.f32 %v11123_v60, %v11121_v9 }
 0xa57   : > { %11138 = vpow2.f32 %v5587_v35  ;;  %v5533_v62 = vsub.f32 %v17952_v4, %v5500_v10  ;;  %v5534_v61 = vsub.f32 %v17953_v18, %v5500_v10  ;;  %v2848_v27 = vpop.xlane.xlu0 %2847  ;;  %5852 = vmatmul.mubr.f32.gmra.mrb[112].mxu1 %v15749_v26 }
 0xa58   : > { %11140 = vpow2.f32 %v5589_v63  ;;  %v11125_v55 = vpop.eup %11124  ;;  %v8743_v57 = vpop.f32.mrb[38].mxu1  ;;  %5856 = vmatprep.mubr.f32.mxu1 %v11123_v60  ;;  %5631 = vadd.xlane.f32.xlu1 %v5630_v15  ;;  %v17959_v60 = vld [vmem:[#allocation50_spill] sm:$0xff] }
 0xa59   : > { %v5591_v12 = vmul.f32 1.442695, %v5533_v62  ;;  %v5593_v50 = vmul.f32 1.442695, %v5534_v61  ;;  %11142 = vrcp.f32 %v2848_v27  ;;  %v11127_v49 = vpop.eup %11126  ;;  %v8744_v20 = vpop.f32.mrb[39].mxu1  ;;  %v17960_v27 = vld [vmem:[#allocation52_spill] sm:$0xff] }
 0xa5a   : > { %11144 = vpow2.f32 %v5597_v32  ;;  %v5506_v39 = vpop.xlane.xlu1 %5505  ;;  %v11129_v37 = vpop.eup %11128  ;;  %v15777_v31 = vadd.f32 %v8744_v20, %v8743_v57  ;;  %v5633_v54 = vadd.f32 %v11127_v49, %v11125_v55 }
 0xa5b   : > { %11146 = vpow2.f32 %v5591_v12  ;;  %v5537_v33 = vsub.f32 %v17954_v23, %v5506_v39  ;;  %v5538_v26 = vsub.f32 %v17955_v59, %v5506_v39  ;;  %v2854_v43 = vpop.xlane.xlu0 %2853  ;;  %5857 = vmatmul.mubr.f32.gmra.mrb[114].mxu1 %v11121_v9  ;;  %v3044_v1 = vmul.f32 %v11129_v37, %v17956_v16  ;;  %v17962_v39 = vld [vmem:[#allocation57_spill] sm:$0xff]  ;;  %v17963_v59 = vld [vmem:[#allocation66_spill] sm:$0xff] }
 0xa5c   : > { %11148 = vpow2.f32 %v5593_v50  ;;  %v11131_v38 = vpop.eup %11130  ;;  %5861 = vmatprep.mubr.f32.mxu1 %v11127_v49  ;;  %5634 = vadd.xlane.f32.xlu0 %v5633_v54  ;;  %v17961_v50 = vld [vmem:[#allocation53_spill] sm:$0xff] }
 0xa5d   : > { %v5599_v29 = vmul.f32 1.442695, %v5537_v33  ;;  %v5601_v53 = vmul.f32 1.442695, %v5538_v26  ;;  %11150 = vrcp.f32 %v2854_v43  ;;  %v8746_v19 = vpop.f32.mrb[40].mxu1  ;;  %v11133_v36 = vpop.eup %11132  ;;  %3060 = vst.msk [vmem:[#allocation4 + $0x8] sm:$0xff] %vm2352_vm0, %v3044_v1 }
 0xa5e   : > { %v8747_v6 = vpop.f32.mrb[41].mxu1  ;;  %v3644_v2 = vpop.xlane.xlu1 %3643  ;;  %v5636_v14 = vadd.f32 %v11133_v36, %v11131_v38 }
 0xa5f   : > { %v11135_v11 = vpop.eup %11134  ;;  %11152 = vpow2.f32 %v5599_v29  ;;  %v15783_v51 = vadd.f32 %v8747_v6, %v8746_v19  ;;  %v2863_v42 = vpop.xlane.xlu0 %2862  ;;  %5862 = vmatmul.mubr.f32.gmra.mrb[116].mxu1 %v11125_v55  ;;  %v17965_v6 = vld [vmem:[#allocation49_spill] sm:$0xff] }
 0xa60   : > { %v11137_v34 = vpop.eup %11136  ;;  %11154 = vpow2.f32 %v5601_v53  ;;  %v3045_v28 = vmul.f32 %v11135_v11, %v17957_v3  ;;  %5637 = vadd.xlane.f32.xlu1 %v5636_v14  ;;  %5866 = vmatprep.mubr.f32.mxu1 %v11133_v36  ;;  %v17966_v14 = vld [vmem:[#allocation45_spill] sm:$0xff] }
 0xa61   : > { %v11139_v45 = vpop.eup %11138  ;;  %11156 = vrcp.f32 %v2863_v42 }
 0xa62   : > { %v11141_v46 = vpop.eup %11140  ;;  %v3650_v52 = vpop.xlane.xlu1 %3649  ;;  %3061 = vst.msk [vmem:[#allocation4 + $0x10] sm:$0xff] %vm2352_vm0, %v3045_v28 }
 0xa63   : > { %v11143_v30 = vpop.eup %11142  ;;  %v2869_v13 = vpop.xlane.xlu0 %2868  ;;  %v5639_v17 = vadd.f32 %v11141_v46, %v11139_v45  ;;  %5867 = vmatmul.mubr.f32.gmra.mrb[118].mxu1 %v11131_v38 }
 0xa64   : > { %v11145_v47 = vpop.eup %11144  ;;  %11158 = vrcp.f32 %v2869_v13  ;;  %v3047_v21 = vmul.f32 %v11143_v30, %v17958_v48  ;;  %5871 = vmatprep.mubr.f32.mxu1 %v11141_v46 }
 0xa65   : > { %v11147_v24 = vpop.eup %11146  ;;  %5640 = vadd.xlane.f32.xlu0 %v5639_v17  ;;  %v5645_v5 = vadd.f32 %v11145_v47, %v11137_v34  ;;  %v17968_v17 = vld [vmem:[#allocation47_spill] sm:$0xff] }
 0xa66   : > { %v11149_v44 = vpop.eup %11148  ;;  %v15788_v7 = vpop.xlane.xlu1 %3655  ;;  %3063 = vst.msk [vmem:[#allocation4 + $0x20] sm:$0xff] %vm2352_vm0, %v3047_v21 }
 0xa67   : > { %v11151_v9 = vpop.eup %11150  ;;  %v2875_v35 = vpop.xlane.xlu0 %2874  ;;  %v5642_v63 = vadd.f32 %v11149_v44, %v11147_v24  ;;  %5872 = vmatmul.mubr.f32.gmra.mrb[120].mxu1 %v11139_v45  ;;  %v17967_v45 = vld [vmem:[#allocation46_spill] sm:$0xff] }
 0xa68   : > { %11160 = vrcp.f32 %v2875_v35  ;;  %v3049_v32 = vmul.f32 %v11151_v9, %v17959_v60  ;;  %5876 = vmatprep.mubr.f32.mxu1 %v11149_v44  ;;  %v17969_v9 = vld [vmem:[#allocation54_spill] sm:$0xff] }
 0xa69   : > { %v11153_v56 = vpop.eup %11152  ;;  %5643 = vadd.xlane.f32.xlu1 %v5642_v63  ;;  %5646 = vadd.xlane.f32.xlu0 %v5645_v5 }
 0xa6a   : > { %v11155_v10 = vpop.eup %11154  ;;  %v15792_v4 = vpop.xlane.xlu1 %3661  ;;  %3065 = vst.msk [vmem:[#allocation4 + $0x30] sm:$0xff] %vm2352_vm0, %v3049_v32 }
 0xa6b   : > { %v2881_v62 = vpop.xlane.xlu0 %2880  ;;  %v5648_v18 = vadd.f32 %v11155_v10, %v11153_v56  ;;  %v11157_v61 = vpop.eup %11156  ;;  %5877 = vmatmul.mubr.f32.gmra.mrb[122].mxu1 %v11147_v24 }
 0xa6c   : > { %11162 = vrcp.f32 %v2881_v62  ;;  %5881 = vmatprep.mubr.f32.mxu1 %v11145_v47  ;;  %v3052_v15 = vmul.f32 %v11157_v61, %v17960_v27  ;;  %v17970_v62 = vld [vmem:[#allocation56_spill] sm:$0xff] }
 0xa6d   : > { %5649 = vadd.xlane.f32.xlu1 %v5648_v18  ;;  %11164 = vrcp.f32 %v3644_v2 }
 0xa6e   : > { %v11159_v55 = vpop.eup %11158  ;;  %v2836_v12 = vpop.xlane.xlu1 %2835  ;;  %3068 = vst.msk [vmem:[#allocation4 + $0x48] sm:$0xff] %vm2352_vm0, %v3052_v15 }
 0xa6f   : > { %11166 = vrcp.f32 %v2836_v12  ;;  %v3054_v57 = vmul.f32 %v11159_v55, %v17961_v50  ;;  %5882 = vmatmul.mubr.f32.gmra.mrb[124].mxu1 %v11137_v34  ;;  %v3665_v21 = vpop.xlane.xlu0 %3664 }
 0xa70   : > { %5886 = vmatprep.mubr.f32.mxu1 %v11155_v10  ;;  %11168 = vrcp.f32 %v15741_v0  ;;  %v17964_v0 = vld [vmem:[#allocation37_spill] sm:$0xff] }
 0xa71   : > { %3070 = vst.msk [vmem:[#allocation4 + $0x58] sm:$0xff] %vm2352_vm0, %v3054_v57  ;;  %11170 = vrcp.f32 %v3650_v52 }
 0xa72   : > { %v11161_v49 = vpop.eup %11160  ;;  %v2845_v20 = vpop.xlane.xlu1 %2844 }
 0xa73   : > { %v3056_v37 = vmul.f32 %v11161_v49, %v17962_v39  ;;  %11172 = vrcp.f32 %v2845_v20  ;;  %5887 = vmatmul.mubr.f32.gmra.mrb[126].mxu1 %v11153_v56  ;;  %v15833_v61 = vpop.xlane.xlu0 %3670  ;;  %v17971_v20 = vld [vmem:[#allocation55_spill] sm:$0xff] }
 0xa74   : > { %11174 = vrcp.f32 %v15746_v22 }
 0xa75   : > { %3072 = vst.msk [vmem:[#allocation4 + $0x68] sm:$0xff] %vm2352_vm0, %v3056_v37 }
 0xa76   : > { %v11163_v23 = vpop.eup %11162  ;;  %v2851_v33 = vpop.xlane.xlu1 %2850 }
 0xa77   : > { %v3058_v26 = vmul.f32 %v11163_v23, %v17963_v59  ;;  %v11165_v43 = vpop.eup %11164  ;;  %11176 = vrcp.f32 %v2851_v33  ;;  %v15842_v59 = vpop.xlane.xlu0 %3676 }
 0xa78   : > { %11178 = vrcp.f32 %v15753_v40  ;;  %v3977_v29 = vmul.f32 %v11165_v43, %v15768_v8 }
 0xa79   : > { %v11167_v54 = vpop.eup %11166  ;;  %3074 = vst.msk [vmem:[#allocation4 + $0x78] sm:$0xff] %vm2352_vm0, %v3058_v26 }
 0xa7a   : > { %v3043_v16 = vmul.f32 %v11167_v54, %v17964_v0  ;;  %v2857_v1 = vpop.xlane.xlu1 %2856  ;;  %v11169_v38 = vpop.eup %11168 }
 0xa7b   : > { %11180 = vrcp.f32 %v2857_v1  ;;  %v11171_v22 = vpop.eup %11170  ;;  %v3976_v53 = vmul.f32 %v11169_v38, %v15762_v25 }
 0xa7c   : > { %3059 = vst.msk [vmem:[#allocation4] sm:$0xff] %vm2352_vm0, %v3043_v16  ;;  %v3979_v11 = vmul.f32 %v11171_v22, %v15777_v31  ;;  %v15847_v22 = vpop.xlane.xlu0 %3682 }
 0xa7d   : > { %v11173_v19 = vpop.eup %11172 }
 0xa7e   : > { %4010 = vrot.lane.b32.xlu1 %v3977_v29, %s11991_s7  ;;  %v2860_v36 = vpop.xlane.xlu1 %2859  ;;  %v3046_v40 = vmul.f32 %v11173_v19, %v17965_v6  ;;  %v11175_v2 = vpop.eup %11174 }
 0xa7f   : > { %4008 = vrot.lane.b32.xlu0 %v3976_v53, %s11991_s7  ;;  %11182 = vrcp.f32 %v2860_v36  ;;  %v3978_v42 = vmul.f32 %v11175_v2, %v15772_v58 }
 0xa80   : > { %3062 = vst.msk [vmem:[#allocation4 + $0x18] sm:$0xff] %vm2352_vm0, %v3046_v40  ;;  %11184 = vrcp.f32 %v15788_v7 }
 0xa81   : > { %v11177_v8 = vpop.eup %11176 }
 0xa82   : > { %4014 = vrot.lane.b32.xlu1 %v3979_v11, %s11991_s7  ;;  %v2866_v25 = vpop.xlane.xlu1 %2865  ;;  %v3048_v34 = vmul.f32 %v11177_v8, %v17966_v14  ;;  %v11179_v3 = vpop.eup %11178 }
 0xa83   : > { %4012 = vrot.lane.b32.xlu0 %v3978_v42, %s11991_s7  ;;  %11186 = vrcp.f32 %v2866_v25  ;;  %v3980_v28 = vmul.f32 %v11179_v3, %v15783_v51  ;;  %v15854_v11 = vpop.xlane.xlu0 %3685 }
 0xa84   : > { %3064 = vst.msk [vmem:[#allocation4 + $0x28] sm:$0xff] %vm2352_vm0, %v3048_v34  ;;  %11188 = vrcp.f32 %v15758_v41 }
 0xa85   : > { %v11181_v31 = vpop.eup %11180 }
 0xa86   : > { %v2872_v58 = vpop.xlane.xlu1 %2871  ;;  %v3050_v46 = vmul.f32 %v11181_v31, %v17967_v45 }
 0xa87   : > { %4016 = vrot.lane.b32.xlu0 %v3980_v28, %s11991_s7  ;;  %11190 = vrcp.f32 %v2872_v58  ;;  %v4639_v3 = vpop.xlane.xlu0 %4638 }
 0xa88   : > { %3066 = vst.msk [vmem:[#allocation4 + $0x38] sm:$0xff] %vm2352_vm0, %v3050_v46  ;;  %11192 = vrcp.f32 %v15792_v4 }
 0xa89   : > { %v11183_v52 = vpop.eup %11182  ;;  %v8749_v30 = vpop.f32.mrb[42].mxu1 }
 0xa8a   : > { %v2878_v13 = vpop.xlane.xlu1 %2877  ;;  %v3051_v51 = vmul.f32 %v11183_v52, %v17968_v17  ;;  %v8750_v47 = vpop.f32.mrb[43].mxu1 }
 0xa8b   : > { %11194 = vrcp.f32 %v2878_v13  ;;  %v11185_v48 = vpop.eup %11184  ;;  %v8751_v41 = vadd.f32 %v8750_v47, %v8749_v30  ;;  %v4645_v30 = vpop.xlane.xlu0 %4644 }
 0xa8c   : > { %3067 = vst.msk [vmem:[#allocation4 + $0x40] sm:$0xff] %vm2352_vm0, %v3051_v51  ;;  %11196 = vrcp.f32 %v3665_v21 }
 0xa8d   : > { %v11187_v24 = vpop.eup %11186  ;;  %v3981_v44 = vmul.f32 %v11185_v48, %v8751_v41  ;;  %v8752_v7 = vpop.f32.mrb[44].mxu1 }
 0xa8e   : > { %v3053_v35 = vmul.f32 %v11187_v24, %v17969_v9  ;;  %v8753_v63 = vpop.f32.mrb[45].mxu1  ;;  %v3668_v5 = vpop.xlane.xlu1 %3667 }
 0xa8f   : > { %v11189_v60 = vpop.eup %11188  ;;  %v8754_v32 = vadd.f32 %v8753_v63, %v8752_v7  ;;  %4018 = vrot.lane.b32.xlu1 %v3981_v44, %s11991_s7  ;;  %11198 = vrcp.f32 %v3668_v5  ;;  %v4651_v21 = vpop.xlane.xlu0 %4650 }
 0xa90   : > { %3069 = vst.msk [vmem:[#allocation4 + $0x50] sm:$0xff] %vm2352_vm0, %v3053_v35  ;;  %11200 = vrcp.f32 %v4639_v3  ;;  %v6025_v3 = vld [vmem:[#allocation16 + $0x20] sm:$0xff] }
 0xa91   : > { %v11191_v56 = vpop.eup %11190  ;;  %v3982_v10 = vmul.f32 %v11189_v60, %v8754_v32  ;;  %v8755_v4 = vpop.f32.mrb[46].mxu1 }
 0xa92   : > { %v3055_v18 = vmul.f32 %v11191_v56, %v17970_v62  ;;  %v8756_v27 = vpop.f32.mrb[47].mxu1  ;;  %v11193_v15 = vpop.eup %11192 }
 0xa93   : > { %v8757_v55 = vadd.f32 %v8756_v27, %v8755_v4  ;;  %4020 = vrot.lane.b32.xlu0 %v3982_v10, %s11991_s7  ;;  %v15837_v50 = vpop.xlane.xlu1 %3673  ;;  %v4657_v32 = vpop.xlane.xlu0 %4656 }
 0xa94   : > { %3071 = vst.msk [vmem:[#allocation4 + $0x60] sm:$0xff] %vm2352_vm0, %v3055_v18 }
 0xa95   : > { %v11195_v12 = vpop.eup %11194  ;;  %v3983_v57 = vmul.f32 %v11193_v15, %v8757_v55  ;;  %v8758_v49 = vpop.f32.mrb[48].mxu1 }
 0xa96   : > { %v3057_v39 = vmul.f32 %v11195_v12, %v17971_v20  ;;  %v8759_v37 = vpop.f32.mrb[49].mxu1  ;;  %v11197_v33 = vpop.eup %11196 }
 0xa97   : > { %v8760_v23 = vadd.f32 %v8759_v37, %v8758_v49  ;;  %4022 = vrot.lane.b32.xlu1 %v3983_v57, %s11991_s7  ;;  %v15844_v54 = vpop.xlane.xlu1 %3679  ;;  %v15870_v4 = vpop.xlane.xlu0 %4662 }
 0xa98   : > { %3073 = vst.msk [vmem:[#allocation4 + $0x70] sm:$0xff] %vm2352_vm0, %v3057_v39 }
 0xa99   : > { %v3984_v26 = vmul.f32 %v11197_v33, %v8760_v23  ;;  %v8761_v43 = vpop.f32.mrb[50].mxu1  ;;  %v11199_v1 = vpop.eup %11198 }
 0xa9a   : > { %v8762_v0 = vpop.f32.mrb[51].mxu1  ;;  %v11201_v44 = vpop.eup %11200 }
 0xa9b   : > { %v8763_v16 = vadd.f32 %v8762_v0, %v8761_v43  ;;  %4024 = vrot.lane.b32.xlu0 %v3984_v26, %s11991_s7  ;;  %v4642_v36 = vpop.xlane.xlu1 %4641  ;;  %v15874_v12 = vpop.xlane.xlu0 %4668 }
 0xa9c   : > { %11202 = vrcp.f32 %v4642_v36 }
 0xa9d   : > { %v3985_v38 = vmul.f32 %v11199_v1, %v8763_v16  ;;  %v8764_v29 = vpop.f32.mrb[52].mxu1  ;;  %11204 = vrcp.f32 %v4645_v30  ;;  %v6021_v16 = vld [vmem:[#allocation16] sm:$0xff]  ;;  %v6022_v1 = vld [vmem:[#allocation16 + $0x8] sm:$0xff] }
 0xa9e   : > { %v8765_v53 = vpop.f32.mrb[53].mxu1 }
 0xa9f   : > { %v15849_v19 = vadd.f32 %v8765_v53, %v8764_v29  ;;  %4026 = vrot.lane.b32.xlu1 %v3985_v38, %s11991_s7  ;;  %v4648_v8 = vpop.xlane.xlu1 %4647  ;;  %v15879_v43 = vpop.xlane.xlu0 %4674  ;;  %v9950_v29 = vpack.c.bf16 %v6022_v1, %v6021_v16 }
 0xaa0   : > { %11206 = vrcp.f32 %v4648_v8 }
 0xaa1   : > { %v8767_v6 = vpop.f32.mrb[54].mxu1  ;;  %11208 = vrcp.f32 %v4651_v21  ;;  %9951 = vmatprep.subr.bf16.mxu0 %v9950_v29 }
 0xaa2   : > { %v8768_v40 = vpop.f32.mrb[55].mxu1  ;;  %9953 = vmatpush3.bf16.msra.mxu0 %v9950_v29 }
 0xaa3   : > { %v15852_v2 = vadd.f32 %v8768_v40, %v8767_v6  ;;  %v4654_v58 = vpop.xlane.xlu1 %4653 }
 0xaa4   : > { %11210 = vrcp.f32 %v4654_v58 }
 0xaa5   : > { %v8770_v42 = vpop.f32.mrb[56].mxu1  ;;  %11212 = vrcp.f32 %v4657_v32 }
 0xaa6   : > { %v8771_v25 = vpop.f32.mrb[57].mxu1  ;;  %v11203_v60 = vpop.eup %11202 }
 0xaa7   : > { %v15856_v14 = vadd.f32 %v8771_v25, %v8770_v42  ;;  %v4660_v17 = vpop.xlane.xlu1 %4659  ;;  %v11205_v55 = vpop.eup %11204  ;;  %v6023_v25 = vld [vmem:[#allocation16 + $0x10] sm:$0xff] }
 0xaa8   : > { %v15884_v42 = vpop.xlane.xlu0 %5604  ;;  %11214 = vrcp.f32 %v4660_v17 }
 0xaa9   : > { %v8773_v34 = vpop.f32.mrb[58].mxu1  ;;  %11216 = vrcp.f32 %v15879_v43 }
 0xaaa   : > { %v8774_v28 = vpop.f32.mrb[59].mxu1  ;;  %v11207_v23 = vpop.eup %11206 }
 0xaab   : > { %v15858_v31 = vadd.f32 %v8774_v28, %v8773_v34  ;;  %v15864_v7 = vpop.xlane.xlu1 %4665  ;;  %v11209_v53 = vpop.eup %11208  ;;  %v6024_v34 = vld [vmem:[#allocation16 + $0x18] sm:$0xff] }
 0xaac   : > { %v9954_v58 = vpack.c.bf16 %v6024_v34, %v6023_v25 }
 0xaad   : > { %v8776_v45 = vpop.f32.mrb[60].mxu1 }
 0xaae   : > { %v8777_v46 = vpop.f32.mrb[61].mxu1  ;;  %9955 = vmatprep.subr.bf16.mxu0 %v9954_v58 }
 0xaaf   : > { %v15860_v52 = vadd.f32 %v8777_v46, %v8776_v45  ;;  %v15867_v10 = vpop.xlane.xlu1 %4671  ;;  %v6026_v45 = vld [vmem:[#allocation16 + $0x28] sm:$0xff]  ;;  %v11211_v46 = vpop.eup %11210  ;;  %9957 = vmatpush3.bf16.msra.mxu0 %v9954_v58 }
 0xab0   : > { %v9958_v30 = vpack.c.bf16 %v6026_v45, %v6025_v3 }
 0xab1   : > { %v8779_v13 = vpop.f32.mrb[62].mxu1 }
 0xab2   : > { %v8780_v51 = vpop.f32.mrb[63].mxu1  ;;  %9959 = vmatprep.subr.bf16.mxu0 %v9958_v30 }
 0xab3   : > { %v15862_v47 = vadd.f32 %v8780_v51, %v8779_v13  ;;  %v15872_v62 = vpop.xlane.xlu1 %4677  ;;  %v6027_v13 = vld [vmem:[#allocation16 + $0x30] sm:$0xff]  ;;  %v6028_v51 = vld [vmem:[#allocation16 + $0x38] sm:$0xff]  ;;  %9961 = vmatpush3.bf16.msra.mxu0 %v9958_v30 }
 0xab5   : > { %v8878_v48 = vpop.f32.mrb[64].mxu1 }
 0xab6   : > { %v8879_v41 = vpop.f32.mrb[65].mxu1 }
 0xab7   : > { %v8880_v24 = vadd.f32 %v8879_v41, %v8878_v48  ;;  %v15876_v20 = vpop.xlane.xlu1 %4680 }
 0xab9   : > { %v4942_v9 = vmul.f32 %v11201_v44, %v8880_v24  ;;  %v8881_v35 = vpop.f32.mrb[66].mxu1  ;;  %v9962_v44 = vpack.c.bf16 %v6028_v51, %v6027_v13 }
 0xaba   : > { %v8882_v63 = vpop.f32.mrb[67].mxu1 }
 0xabb   : > { %v8883_v5 = vadd.f32 %v8882_v63, %v8881_v35  ;;  %4974 = vrot.lane.b32.xlu1 %v4942_v9, %s11990_s9  ;;  %v15882_v36 = vpop.xlane.xlu1 %4683  ;;  %v11213_v9 = vpop.eup %11212  ;;  %v6029_v63 = vld [vmem:[#allocation16 + $0x40] sm:$0xff]  ;;  %9963 = vmatprep.subr.bf16.mxu0 %v9962_v44 }
 0xabc   : > { %v15890_v35 = vpop.xlane.xlu0 %5610  ;;  %9965 = vmatpush3.bf16.msra.mxu0 %v9962_v44  ;;  %11218 = vrcp.f32 %v15882_v36 }
 0xabd   : > { %v4943_v56 = vmul.f32 %v11203_v60, %v8883_v5  ;;  %v6030_v5 = vld [vmem:[#allocation16 + $0x48] sm:$0xff]  ;;  %11220 = vrcp.f32 %v15884_v42 }
 0xabe   : > { %11222 = vrcp.f32 %v15870_v4 }
 0xabf   : > { %4976 = vrot.lane.b32.xlu0 %v4943_v56, %s11990_s9  ;;  %v15887_v41 = vpop.xlane.xlu1 %5607 }
 0xac0   : > { %11224 = vrcp.f32 %v15887_v41 }
 0xac1   : > { %11226 = vrcp.f32 %v15890_v35 }
 0xac2   : > { %11228 = vrcp.f32 %v15864_v7 }
 0xac3   : > { %11230 = vrcp.f32 %v15833_v61 }
 0xac5   : > { %v8884_v18 = vpop.f32.mrb[68].mxu1 }
 0xac6   : > { %v8885_v27 = vpop.f32.mrb[69].mxu1 }
 0xac7   : > { %v8886_v15 = vadd.f32 %v8885_v27, %v8884_v18  ;;  %v9966_v27 = vpack.c.bf16 %v6030_v5, %v6029_v63  ;;  %v6032_v63 = vld [vmem:[#allocation16 + $0x58] sm:$0xff] }
 0xac9   : > { %v4944_v57 = vmul.f32 %v11205_v55, %v8886_v15  ;;  %v8887_v49 = vpop.f32.mrb[70].mxu1  ;;  %v11215_v15 = vpop.eup %11214  ;;  %9967 = vmatprep.subr.bf16.mxu0 %v9966_v27 }
 0xaca   : > { %v8888_v39 = vpop.f32.mrb[71].mxu1  ;;  %v15893_v55 = vpop.xlane.xlu1 %5613  ;;  %9969 = vmatpush3.bf16.msra.mxu0 %v9966_v27  ;;  %v6033_v27 = vld [vmem:[#allocation16 + $0x60] sm:$0xff] }
 0xacb   : > { %v8889_v37 = vadd.f32 %v8888_v39, %v8887_v49  ;;  %4978 = vrot.lane.b32.xlu1 %v4944_v57, %s11990_s9  ;;  %v15895_v39 = vpop.xlane.xlu0 %5616  ;;  %v11217_v30 = vpop.eup %11216  ;;  %11232 = vrcp.f32 %v15893_v55 }
 0xacc   : > { %11234 = vrcp.f32 %v15837_v50 }
 0xacd   : > { %v4945_v33 = vmul.f32 %v11207_v23, %v8889_v37  ;;  %v8890_v26 = vpop.f32.mrb[72].mxu1  ;;  %11236 = vrcp.f32 %v15895_v39 }
 0xace   : > { %v8891_v0 = vpop.f32.mrb[73].mxu1  ;;  %11238 = vrcp.f32 %v15874_v12 }
 0xacf   : > { %v8892_v38 = vadd.f32 %v8891_v0, %v8890_v26  ;;  %4980 = vrot.lane.b32.xlu0 %v4945_v33, %s11990_s9  ;;  %v15900_v26 = vpop.xlane.xlu1 %5619  ;;  %v15904_v1 = vpop.xlane.xlu0 %5622 }
 0xad0   : > { %11240 = vrcp.f32 %v15900_v26 }
 0xad1   : > { %v4946_v6 = vmul.f32 %v11209_v53, %v8892_v38  ;;  %v8893_v40 = vpop.f32.mrb[74].mxu1  ;;  %11242 = vrcp.f32 %v15867_v10 }
 0xad2   : > { %v8894_v8 = vpop.f32.mrb[75].mxu1  ;;  %11244 = vrcp.f32 %v15904_v1 }
 0xad3   : > { %v8895_v28 = vadd.f32 %v8894_v8, %v8893_v40  ;;  %4982 = vrot.lane.b32.xlu1 %v4946_v6, %s11990_s9  ;;  %11246 = vrcp.f32 %v15842_v59 }
 0xad5   : > { %v4947_v48 = vmul.f32 %v11211_v46, %v8895_v28  ;;  %v8896_v21 = vpop.f32.mrb[76].mxu1 }
 0xad6   : > { %v8897_v17 = vpop.f32.mrb[77].mxu1 }
 0xad7   : > { %v8898_v24 = vadd.f32 %v8897_v17, %v8896_v21  ;;  %4984 = vrot.lane.b32.xlu0 %v4947_v48, %s11990_s9  ;;  %v15911_v40 = vpop.xlane.xlu0 %5628 }
 0xad9   : > { %v4948_v60 = vmul.f32 %v11213_v9, %v8898_v24  ;;  %v8899_v32 = vpop.f32.mrb[78].mxu1  ;;  %v6031_v9 = vld [vmem:[#allocation16 + $0x50] sm:$0xff] }
 0xada   : > { %v8900_v56 = vpop.f32.mrb[79].mxu1 }
 0xadb   : > { %v8901_v18 = vadd.f32 %v8900_v56, %v8899_v32  ;;  %4986 = vrot.lane.b32.xlu1 %v4948_v60, %s11990_s9  ;;  %v9970_v60 = vpack.c.bf16 %v6032_v63, %v6031_v9 }
 0xadd   : > { %v4949_v57 = vmul.f32 %v11215_v15, %v8901_v18  ;;  %v8902_v49 = vpop.f32.mrb[80].mxu1  ;;  %9971 = vmatprep.subr.bf16.mxu0 %v9970_v60  ;;  %v6034_v15 = vld [vmem:[#allocation16 + $0x68] sm:$0xff] }
 0xade   : > { %v8903_v37 = vpop.f32.mrb[81].mxu1  ;;  %9973 = vmatpush3.bf16.msra.mxu0 %v9970_v60 }
 0xadf   : > { %v15897_v23 = vadd.f32 %v8903_v37, %v8902_v49  ;;  %4988 = vrot.lane.b32.xlu0 %v4949_v57, %s11990_s9  ;;  %v9974_v49 = vpack.c.bf16 %v6034_v15, %v6033_v27 }
 0xae1   : > { %v8905_v33 = vpop.f32.mrb[82].mxu1  ;;  %v15907_v29 = vpop.xlane.xlu1 %5625  ;;  %9975 = vmatprep.subr.bf16.mxu0 %v9974_v49 }
 0xae2   : > { %v8906_v0 = vpop.f32.mrb[83].mxu1  ;;  %9977 = vmatpush3.bf16.msra.mxu0 %v9974_v49  ;;  %11248 = vrcp.f32 %v15907_v29 }
 0xae3   : > { %v15902_v16 = vadd.f32 %v8906_v0, %v8905_v33  ;;  %v11219_v33 = vpop.eup %11218  ;;  %11250 = vrcp.f32 %v15844_v54 }
 0xae5   : > { %v8908_v38 = vpop.f32.mrb[84].mxu1  ;;  %v15915_v3 = vpop.xlane.xlu1 %5631 }
 0xae6   : > { %v8909_v53 = vpop.f32.mrb[85].mxu1 }
 0xae7   : > { %v15909_v6 = vadd.f32 %v8909_v53, %v8908_v38  ;;  %v6035_v53 = vld [vmem:[#allocation16 + $0x70] sm:$0xff] }
 0xae9   : > { %v15917_v28 = vpop.xlane.xlu0 %5634 }
 0xaea   : > { %v8911_v8 = vpop.f32.mrb[86].mxu1 }
 0xaeb   : > { %v8912_v25 = vpop.f32.mrb[87].mxu1 }
 0xaec   : > { %v15913_v34 = vadd.f32 %v8912_v25, %v8911_v8  ;;  %v6036_v8 = vld [vmem:[#allocation16 + $0x78] sm:$0xff] }
 0xaed   : > { %v15919_v43 = vpop.xlane.xlu1 %5637 }
 0xaee   : > { %v8914_v58 = vpop.f32.mrb[88].mxu1 }
 0xaef   : > { %v8915_v45 = vpop.f32.mrb[89].mxu1 }
 0xaf0   : > { %v8916_v46 = vadd.f32 %v8915_v45, %v8914_v58  ;;  %v9978_v58 = vpack.c.bf16 %v6036_v8, %v6035_v53 }
 0xaf2   : > { %v15921_v13 = vpop.xlane.xlu0 %5640  ;;  %v15923_v51 = vmul.f32 %v11217_v30, %v8916_v46  ;;  %v8917_v48 = vpop.f32.mrb[90].mxu1  ;;  %9979 = vmatprep.subr.bf16.mxu0 %v9978_v58 }
 0xaf3   : > { %v8918_v21 = vpop.f32.mrb[91].mxu1  ;;  %v11221_v46 = vpop.eup %11220  ;;  %9981 = vmatpush3.bf16.msra.mxu0 %v9978_v58  ;;  %11252 = vrcp.f32 %v15911_v40 }
 0xaf4   : > { %v15926_v17 = vadd.f32 %v8918_v21, %v8917_v48  ;;  %v11223_v63 = vpop.eup %11222  ;;  %11254 = vrcp.f32 %v15915_v3 }
 0xaf6   : > { %v15928_v24 = vpop.xlane.xlu1 %5643  ;;  %v15930_v44 = vpop.xlane.xlu0 %5646 }
 0xaf7   : > { %v8920_v5 = vpop.f32.mrb[92].mxu1 }
 0xaf8   : > { %v8921_v32 = vpop.f32.mrb[93].mxu1 }
 0xaf9   : > { %v15933_v56 = vadd.f32 %v8921_v32, %v8920_v5  ;;  %v11225_v5 = vpop.eup %11224  ;;  %v4950_v32 = vmul.f32 %v11223_v63, %v15897_v23  ;;  %11256 = vrcp.f32 %v15872_v62 }
 0xafa   : > { %v15935_v18 = vpop.xlane.xlu1 %5649  ;;  %v4009_v36 = vpop.permute.xlu0 %4008 }
 0xafb   : > { %v8923_v57 = vpop.f32.mrb[94].mxu1  ;;  %4057 = vst.msk [vmem:[#allocation4] sm:$0xff] %vm4056_vm2, %v4009_v36  ;;  %v11227_v15 = vpop.eup %11226  ;;  %11258 = vrcp.f32 %v15917_v28 }
 0xafc   : > { %v8924_v42 = vpop.f32.mrb[95].mxu1  ;;  %v11229_v49 = vpop.eup %11228  ;;  %11260 = vrcp.f32 %v15847_v22 }
 0xafd   : > { %v8925_v37 = vadd.f32 %v8924_v42, %v8923_v57  ;;  %v4951_v50 = vmul.f32 %v11229_v49, %v15902_v16 }
 0xafe   : > { %v4011_v0 = vpop.permute.xlu1 %4010  ;;  %v4013_v38 = vpop.permute.xlu0 %4012 }
 0xaff   : > { %v15941_v25 = vmul.f32 %v11219_v33, %v8925_v37  ;;  %4058 = vst.msk [vmem:[#allocation4 + $0x8] sm:$0xff] %vm4056_vm2, %v4011_v0  ;;  %4059 = vst.msk [vmem:[#allocation4 + $0x10] sm:$0xff] %vm4056_vm2, %v4013_v38  ;;  %v9022_v4 = vpop.f32.mrb[96].mxu1  ;;  %v11231_v33 = vpop.eup %11230  ;;  %11262 = vrcp.f32 %v15919_v43 }
 0xb00   : > { %v9023_v41 = vpop.f32.mrb[97].mxu1  ;;  %v11233_v38 = vpop.eup %11232  ;;  %v3986_v53 = vmul.f32 %v11231_v33, %v15849_v19  ;;  %11264 = vrcp.f32 %v15854_v11 }
 0xb01   : > { %v9024_v45 = vadd.f32 %v9023_v41, %v9022_v4  ;;  %v11235_v4 = vpop.eup %11234  ;;  %11266 = vrcp.f32 %v15921_v13 }
 0xb02   : > { %v4015_v30 = vpop.permute.xlu1 %4014  ;;  %v4017_v48 = vpop.permute.xlu0 %4016 }
 0xb03   : > { %v5908_v35 = vmul.f32 %v11221_v46, %v9024_v45  ;;  %4060 = vst.msk [vmem:[#allocation4 + $0x18] sm:$0xff] %vm4056_vm2, %v4015_v30  ;;  %4061 = vst.msk [vmem:[#allocation4 + $0x20] sm:$0xff] %vm4056_vm2, %v4017_v48  ;;  %v9025_v21 = vpop.f32.mrb[98].mxu1  ;;  %v11237_v41 = vpop.eup %11236  ;;  %v3987_v45 = vmul.f32 %v11235_v4, %v15852_v2  ;;  %11268 = vrcp.f32 %v15876_v20 }
 0xb04   : > { %v9026_v9 = vpop.f32.mrb[99].mxu1  ;;  %v11239_v30 = vpop.eup %11238  ;;  %11270 = vrcp.f32 %v15928_v24 }
 0xb05   : > { %v9027_v7 = vadd.f32 %v9026_v9, %v9025_v21  ;;  %5940 = vrot.lane.b32.xlu1 %v5908_v35, %s11989_s19  ;;  %v11241_v35 = vpop.eup %11240  ;;  %v4952_v21 = vmul.f32 %v11239_v30, %v15909_v6  ;;  %11272 = vrcp.f32 %v15930_v44 }
 0xb06   : > { %v4019_v60 = vpop.permute.xlu1 %4018  ;;  %v4021_v36 = vpop.permute.xlu0 %4020 }
 0xb07   : > { %v5909_v61 = vmul.f32 %v11225_v5, %v9027_v7  ;;  %4062 = vst.msk [vmem:[#allocation4 + $0x28] sm:$0xff] %vm4056_vm2, %v4019_v60  ;;  %v9028_v27 = vpop.f32.mrb[100].mxu1  ;;  %4063 = vst.msk [vmem:[#allocation4 + $0x30] sm:$0xff] %vm4056_vm2, %v4021_v36  ;;  %v11243_v7 = vpop.eup %11242  ;;  %11274 = vrcp.f32 %v15935_v18 }
 0xb08   : > { %v9029_v55 = vpop.f32.mrb[101].mxu1  ;;  %v11245_v59 = vpop.eup %11244  ;;  %v4953_v60 = vmul.f32 %v11243_v7, %v15913_v34 }
 0xb09   : > { %v9030_v57 = vadd.f32 %v9029_v55, %v9028_v27  ;;  %5942 = vrot.lane.b32.xlu0 %v5909_v61, %s11989_s19  ;;  %4990 = vrot.lane.b32.xlu1 %v4950_v32, %s11990_s9  ;;  %v11247_v61 = vpop.eup %11246 }
 0xb0a   : > { %v4023_v42 = vpop.permute.xlu1 %4022  ;;  %v9031_v37 = vpop.f32.mrb[102].mxu1  ;;  %v3988_v6 = vmul.f32 %v11247_v61, %v15856_v14 }
 0xb0b   : > { %v5910_v23 = vmul.f32 %v11227_v15, %v9030_v57  ;;  %4064 = vst.msk [vmem:[#allocation4 + $0x38] sm:$0xff] %vm4056_vm2, %v4023_v42  ;;  %v9032_v39 = vpop.f32.mrb[103].mxu1  ;;  %v11249_v55 = vpop.eup %11248 }
 0xb0c   : > { %v9033_v0 = vadd.f32 %v9032_v39, %v9031_v37  ;;  %v11251_v29 = vpop.eup %11250 }
 0xb0d   : > { %4992 = vrot.lane.b32.xlu0 %v4951_v50, %s11990_s9  ;;  %5944 = vrot.lane.b32.xlu1 %v5910_v23, %s11989_s19  ;;  %v4025_v16 = vpop.permute.xlu0 %4024  ;;  %v11253_v54 = vpop.eup %11252  ;;  %v3989_v40 = vmul.f32 %v11251_v29, %v15858_v31 }
 0xb0e   : > { %v5911_v12 = vmul.f32 %v11233_v38, %v9033_v0  ;;  %v9034_v8 = vpop.f32.mrb[104].mxu1  ;;  %4065 = vst.msk [vmem:[#allocation4 + $0x40] sm:$0xff] %vm4056_vm2, %v4025_v16  ;;  %v11255_v42 = vpop.eup %11254 }
 0xb0f   : > { %v9035_v26 = vpop.f32.mrb[105].mxu1  ;;  %v11257_v43 = vpop.eup %11256 }
 0xb10   : > { %v9036_v58 = vadd.f32 %v9035_v26, %v9034_v8  ;;  %v11259_v0 = vpop.eup %11258  ;;  %v4955_v11 = vmul.f32 %v11257_v43, %v15926_v17 }
 0xb11   : > { %5946 = vrot.lane.b32.xlu0 %v5911_v12, %s11989_s19  ;;  %4028 = vrot.lane.b32.xlu1 %v3986_v53, %s11991_s7  ;;  %v4027_v46 = vpop.permute.xlu1 %4026  ;;  %v11261_v12 = vpop.eup %11260 }
 0xb12   : > { %v5912_v19 = vmul.f32 %v11237_v41, %v9036_v58  ;;  %v9037_v10 = vpop.f32.mrb[106].mxu1  ;;  %4066 = vst.msk [vmem:[#allocation4 + $0x48] sm:$0xff] %vm4056_vm2, %v4027_v46  ;;  %v11263_v8 = vpop.eup %11262  ;;  %v3990_v26 = vmul.f32 %v11261_v12, %v15860_v52 }
 0xb13   : > { %v9038_v1 = vpop.f32.mrb[107].mxu1  ;;  %v11265_v17 = vpop.eup %11264 }
 0xb14   : > { %v9039_v48 = vadd.f32 %v9038_v1, %v9037_v10  ;;  %v11267_v24 = vpop.eup %11266  ;;  %v3991_v41 = vmul.f32 %v11265_v17, %v15862_v47 }
 0xb15   : > { %4030 = vrot.lane.b32.xlu0 %v3987_v45, %s11991_s7  ;;  %5948 = vrot.lane.b32.xlu1 %v5912_v19, %s11989_s19  ;;  %v11269_v10 = vpop.eup %11268 }
 0xb16   : > { %v5913_v9 = vmul.f32 %v11241_v35, %v9039_v48  ;;  %v9040_v63 = vpop.f32.mrb[108].mxu1  ;;  %v11271_v1 = vpop.eup %11270  ;;  %v4956_v30 = vmul.f32 %v11269_v10, %v15933_v56 }
 0xb17   : > { %v9041_v2 = vpop.f32.mrb[109].mxu1  ;;  %v11273_v18 = vpop.eup %11272 }
 0xb18   : > { %v9042_v5 = vadd.f32 %v9041_v2, %v9040_v63  ;;  %v11275_v56 = vpop.eup %11274 }
 0xb19   : > { %5950 = vrot.lane.b32.xlu0 %v5913_v9, %s11989_s19  ;;  %4994 = vrot.lane.b32.xlu1 %v4952_v21, %s11990_s9 }
 0xb1a   : > { %v5914_v32 = vmul.f32 %v11245_v59, %v9042_v5 }
 0xb1d   : > { %4996 = vrot.lane.b32.xlu0 %v4953_v60, %s11990_s9  ;;  %5952 = vrot.lane.b32.xlu1 %v5914_v32, %s11989_s19 }
 0xb21   : > { %4032 = vrot.lane.b32.xlu1 %v3988_v6, %s11991_s7 }
 0xb26   : > { %v9043_v36 = vpop.f32.mrb[110].mxu1 }
 0xb27   : > { %v9044_v34 = vpop.f32.mrb[111].mxu1 }
 0xb28   : > { %v9045_v27 = vadd.f32 %v9044_v34, %v9043_v36 }
 0xb2a   : > { %v5915_v15 = vmul.f32 %v11249_v55, %v9045_v27  ;;  %v9046_v57 = vpop.f32.mrb[112].mxu1 }
 0xb2b   : > { %v9047_v14 = vpop.f32.mrb[113].mxu1 }
 0xb2c   : > { %v9048_v49 = vadd.f32 %v9047_v14, %v9046_v57  ;;  %5954 = vrot.lane.b32.xlu0 %v5915_v15, %s11989_s19 }
 0xb2d   : > { %v4975_v50 = vpop.permute.xlu1 %4974 }
 0xb2e   : > { %v5916_v3 = vmul.f32 %v11253_v54, %v9048_v49  ;;  %v9049_v23 = vpop.f32.mrb[114].mxu1  ;;  %5023 = vst.msk [vmem:[#allocation4] sm:$0xff] %vm5022_vm3, %v4975_v50 }
 0xb2f   : > { %v9050_v62 = vpop.f32.mrb[115].mxu1 }
 0xb30   : > { %v9051_v28 = vadd.f32 %v9050_v62, %v9049_v23  ;;  %4034 = vrot.lane.b32.xlu0 %v3989_v40, %s11991_s7  ;;  %5956 = vrot.lane.b32.xlu1 %v5916_v3, %s11989_s19 }
 0xb31   : > { %v4977_v22 = vpop.permute.xlu0 %4976 }
 0xb32   : > { %v5917_v37 = vmul.f32 %v11255_v42, %v9051_v28  ;;  %v9052_v39 = vpop.f32.mrb[116].mxu1  ;;  %5024 = vst.msk [vmem:[#allocation4 + $0x8] sm:$0xff] %vm5022_vm3, %v4977_v22 }
 0xb33   : > { %v9053_v31 = vpop.f32.mrb[117].mxu1 }
 0xb34   : > { %v9054_v33 = vadd.f32 %v9053_v31, %v9052_v39  ;;  %5958 = vrot.lane.b32.xlu0 %v5917_v37, %s11989_s19  ;;  %4998 = vrot.lane.b32.xlu1 %v15923_v51, %s11990_s9 }
 0xb36   : > { %v5918_v38 = vmul.f32 %v11259_v0, %v9054_v33  ;;  %v9055_v53 = vpop.f32.mrb[118].mxu1 }
 0xb37   : > { %v9056_v13 = vpop.f32.mrb[119].mxu1 }
 0xb38   : > { %v9057_v16 = vadd.f32 %v9056_v13, %v9055_v53  ;;  %5000 = vrot.lane.b32.xlu0 %v4955_v11, %s11990_s9  ;;  %5960 = vrot.lane.b32.xlu1 %v5918_v38, %s11989_s19 }
 0xb3a   : > { %v5919_v51 = vmul.f32 %v11263_v8, %v9057_v16  ;;  %v9058_v4 = vpop.f32.mrb[120].mxu1 }
 0xb3b   : > { %v9059_v20 = vpop.f32.mrb[121].mxu1 }
 0xb3c   : > { %v9060_v58 = vadd.f32 %v9059_v20, %v9058_v4  ;;  %5962 = vrot.lane.b32.xlu0 %v5919_v51, %s11989_s19  ;;  %4036 = vrot.lane.b32.xlu1 %v3990_v26, %s11991_s7 }
 0xb3d   : > { %v4979_v19 = vpop.permute.xlu1 %4978 }
 0xb3e   : > { %v5920_v45 = vmul.f32 %v11267_v24, %v9060_v58  ;;  %v9061_v46 = vpop.f32.mrb[122].mxu1  ;;  %5025 = vst.msk [vmem:[#allocation4 + $0x10] sm:$0xff] %vm5022_vm3, %v4979_v19 }
 0xb3f   : > { %v9062_v52 = vpop.f32.mrb[123].mxu1 }
 0xb40   : > { %v9063_v44 = vadd.f32 %v9062_v52, %v9061_v46  ;;  %4038 = vrot.lane.b32.xlu0 %v3991_v41, %s11991_s7  ;;  %5964 = vrot.lane.b32.xlu1 %v5920_v45, %s11989_s19  ;;  %s8355_s7 = sshll.u32 %s17646_s10, 4  ;;  %s7820_s10 = sshll.u32 %s12536_s4, 4  ;;  %s17275_s10 = int_to_ptr.vmem [resolvable:$true] %s7820_s10 }
 0xb41   : > { %v4981_v35 = vpop.permute.xlu0 %4980  ;;  %s11830_s18 = scalar_lea.vmem %s17275_s10, 2048 }
 0xb42   : > { %v5921_v48 = vmul.f32 %v11271_v1, %v9063_v44  ;;  %v9064_v47 = vpop.f32.mrb[124].mxu1  ;;  %5026 = vst.msk [vmem:[#allocation4 + $0x18] sm:$0xff] %vm5022_vm3, %v4981_v35  ;;  %v16061_v1 = vld [vmem:[%s17972_s12] ss:$0 sm:$0xff]  ;;  %p11831_p3 = scmp.ne.s32.totalorder %s17275_s10, %s11830_s18 }
 0xb43   : > { %v9065_v21 = vpop.f32.mrb[125].mxu1 }
 0xb44   : > { %v9066_v9 = vadd.f32 %v9065_v21, %v9064_v47  ;;  %5966 = vrot.lane.b32.xlu0 %v5921_v48, %s11989_s19  ;;  %5002 = vrot.lane.b32.xlu1 %v4956_v30, %s11990_s9  ;;  %v11558_v21 = vld [vmem:[%s13011_s14 + $0x8] sm:$0xff]  ;;  %p11832_p7 = pnand %p11831_p3, %p18132_p2 }
 0xb45   : > { %v4983_v2 = vpop.permute.xlu1 %4982 }
 0xb46   : > { %v5922_v63 = vmul.f32 %v11273_v18, %v9066_v9  ;;  %v9067_v7 = vpop.f32.mrb[126].mxu1  ;;  %5027 = vst.msk [vmem:[#allocation4 + $0x20] sm:$0xff] %vm5022_vm3, %v4983_v2  ;;  %v11559_v18 = vld [vmem:[%s13011_s14] sm:$0xff]  ;;  %p11833_p4 = pneg %p11832_p7 }
 0xb47   : > { %v9068_v5 = vpop.f32.mrb[127].mxu1 }
 0xb48   : > { %v9069_v59 = vadd.f32 %v9068_v5, %v9067_v7  ;;  %5004 = vrot.lane.b32.xlu0 %v15941_v25, %s11990_s9  ;;  %5968 = vrot.lane.b32.xlu1 %v5922_v63, %s11989_s19 }
 0xb49   : > { %v4985_v32 = vpop.permute.xlu0 %4984 }
 0xb4a   : > { %v5923_v60 = vmul.f32 %v11275_v56, %v9069_v59  ;;  %5028 = vst.msk [vmem:[#allocation4 + $0x28] sm:$0xff] %vm5022_vm3, %v4985_v32  ;;  %v11560_v56 = vld [vmem:[%s13011_s14 + $0x18] sm:$0xff]  ;;  %v11561_v32 = vld [vmem:[%s13011_s14 + $0x10] sm:$0xff] }
 0xb4c   : > { %5970 = vrot.lane.b32.xlu0 %v5923_v60, %s11989_s19  ;;  %s7817_s19 = sadd.s32 %s8356_s8, %s8355_s7 }
 0xb4d   : > { %v4987_v61 = vpop.permute.xlu1 %4986  ;;  %s8357_s12 = sshll.u32 %s7817_s19, 7 }
 0xb4e   : > { %5029 = vst.msk [vmem:[#allocation4 + $0x30] sm:$0xff] %vm5022_vm3, %v4987_v61 }
 0xb51   : > { %v4989_v6 = vpop.permute.xlu0 %4988 }
 0xb52   : > { %5030 = vst.msk [vmem:[#allocation4 + $0x38] sm:$0xff] %vm5022_vm3, %v4989_v6 }
 0xb77   : > { %v5941_v36 = vpop.permute.xlu1 %5940 }
 0xb78   : > { %5989 = vst.msk [vmem:[#allocation4] sm:$0xff] %vm5988_vm4, %v5941_v36 }
 0xb7b   : > { %v5943_v25 = vpop.permute.xlu0 %5942  ;;  %v4991_v34 = vpop.permute.xlu1 %4990 }
 0xb7c   : > { %5990 = vst.msk [vmem:[#allocation4 + $0x8] sm:$0xff] %vm5988_vm4, %v5943_v25 }
 0xb7d   : > { %5031 = vst.msk [vmem:[#allocation4 + $0x40] sm:$0xff] %vm5022_vm3, %v4991_v34 }
 0xb7f   : > { %v4993_v27 = vpop.permute.xlu0 %4992  ;;  %v5945_v55 = vpop.permute.xlu1 %5944  ;;  %v6005_v15 = vld [vmem:[#allocation4] sm:$0xff] }
 0xb80   : > { %5032 = vst.msk [vmem:[#allocation4 + $0x48] sm:$0xff] %vm5022_vm3, %v4993_v27  ;;  %9510 = vmatprep.mubr.f32.mxu0 %v6005_v15  ;;  %v11562_v27 = vld [vmem:[%s13011_s14 + $0x28] sm:$0xff]  ;;  %v11563_v15 = vld [vmem:[%s13011_s14 + $0x20] sm:$0xff] }
 0xb81   : > { %5991 = vst.msk [vmem:[#allocation4 + $0x10] sm:$0xff] %vm5988_vm4, %v5945_v55 }
 0xb83   : > { %v5947_v57 = vpop.permute.xlu0 %5946  ;;  %v4029_v14 = vpop.permute.xlu1 %4028  ;;  %v6006_v29 = vld [vmem:[#allocation4 + $0x8] sm:$0xff] }
 0xb84   : > { %5992 = vst.msk [vmem:[#allocation4 + $0x18] sm:$0xff] %vm5988_vm4, %v5947_v57  ;;  %9511 = vmatmul.mubr.f32.vlgmr.msra.gmra.mrb[144].mxu0 %v6006_v29 }
 0xb85   : > { %4067 = vst.msk [vmem:[#allocation4 + $0x50] sm:$0xff] %vm4056_vm2, %v4029_v14 }
 0xb87   : > { %v4031_v49 = vpop.permute.xlu0 %4030  ;;  %v5949_v54 = vpop.permute.xlu1 %5948 }
 0xb88   : > { %v6007_v40 = vld [vmem:[#allocation4 + $0x10] sm:$0xff]  ;;  %4068 = vst.msk [vmem:[#allocation4 + $0x58] sm:$0xff] %vm4056_vm2, %v4031_v49 }
 0xb89   : > { %5993 = vst.msk [vmem:[#allocation4 + $0x20] sm:$0xff] %vm5988_vm4, %v5949_v54  ;;  %9513 = vmatprep.mubr.f32.mxu0 %v6007_v40  ;;  %v11564_v40 = vld [vmem:[%s13011_s14 + $0x38] sm:$0xff] }
 0xb8b   : > { %v5951_v3 = vpop.permute.xlu0 %5950  ;;  %v4995_v50 = vpop.permute.xlu1 %4994  ;;  %v6008_v23 = vld [vmem:[#allocation4 + $0x18] sm:$0xff] }
 0xb8c   : > { %5994 = vst.msk [vmem:[#allocation4 + $0x28] sm:$0xff] %vm5988_vm4, %v5951_v3  ;;  %9514 = vmatmul.mubr.f32.gmra.mrb[146].mxu0 %v6008_v23 }
 0xb8d   : > { %5033 = vst.msk [vmem:[#allocation4 + $0x50] sm:$0xff] %vm5022_vm3, %v4995_v50  ;;  %v11565_v50 = vld [vmem:[%s13011_s14 + $0x30] sm:$0xff] }
 0xb8f   : > { %v4997_v62 = vpop.permute.xlu0 %4996  ;;  %v5953_v28 = vpop.permute.xlu1 %5952 }
 0xb90   : > { %v6009_v42 = vld [vmem:[#allocation4 + $0x20] sm:$0xff]  ;;  %5034 = vst.msk [vmem:[#allocation4 + $0x58] sm:$0xff] %vm5022_vm3, %v4997_v62 }
 0xb91   : > { %5995 = vst.msk [vmem:[#allocation4 + $0x30] sm:$0xff] %vm5988_vm4, %v5953_v28  ;;  %9516 = vmatprep.mubr.f32.mxu0 %v6009_v42 }
 0xb93   : > { %v4033_v37 = vpop.permute.xlu1 %4032  ;;  %v6010_v22 = vld [vmem:[#allocation4 + $0x28] sm:$0xff] }
 0xb94   : > { %4069 = vst.msk [vmem:[#allocation4 + $0x60] sm:$0xff] %vm4056_vm2, %v4033_v37  ;;  %9517 = vmatmul.mubr.f32.gmra.mrb[148].mxu0 %v6010_v22  ;;  %v11566_v22 = vld [vmem:[%s13011_s14 + $0x48] sm:$0xff] }
 0xb98   : > { %v6011_v39 = vld [vmem:[#allocation4 + $0x30] sm:$0xff] }
 0xb99   : > { %9519 = vmatprep.mubr.f32.mxu0 %v6011_v39 }
 0xb9e   : > { %v5955_v31 = vpop.permute.xlu0 %5954 }
 0xb9f   : > { %5996 = vst.msk [vmem:[#allocation4 + $0x38] sm:$0xff] %vm5988_vm4, %v5955_v31  ;;  %v11567_v31 = vld [vmem:[%s13011_s14 + $0x40] sm:$0xff] }
 0xba2   : > { %v4035_v43 = vpop.permute.xlu0 %4034  ;;  %v5957_v33 = vpop.permute.xlu1 %5956 }
 0xba3   : > { %4070 = vst.msk [vmem:[#allocation4 + $0x68] sm:$0xff] %vm4056_vm2, %v4035_v43 }
 0xba4   : > { %5997 = vst.msk [vmem:[#allocation4 + $0x40] sm:$0xff] %vm5988_vm4, %v5957_v33 }
 0xba6   : > { %v5959_v0 = vpop.permute.xlu0 %5958  ;;  %v4999_v11 = vpop.permute.xlu1 %4998  ;;  %v6012_v38 = vld [vmem:[#allocation4 + $0x38] sm:$0xff] }
 0xba7   : > { %5998 = vst.msk [vmem:[#allocation4 + $0x48] sm:$0xff] %vm5988_vm4, %v5959_v0  ;;  %9520 = vmatmul.mubr.f32.gmra.mrb[150].mxu0 %v6012_v38 }
 0xba8   : > { %5035 = vst.msk [vmem:[#allocation4 + $0x60] sm:$0xff] %vm5022_vm3, %v4999_v11 }
 0xbaa   : > { %v5001_v53 = vpop.permute.xlu0 %5000  ;;  %v5961_v13 = vpop.permute.xlu1 %5960 }
 0xbab   : > { %v6013_v12 = vld [vmem:[#allocation4 + $0x40] sm:$0xff]  ;;  %5036 = vst.msk [vmem:[#allocation4 + $0x68] sm:$0xff] %vm5022_vm3, %v5001_v53  ;;  %v11568_v53 = vld [vmem:[%s13011_s14 + $0x58] sm:$0xff] }
 0xbac   : > { %5999 = vst.msk [vmem:[#allocation4 + $0x50] sm:$0xff] %vm5988_vm4, %v5961_v13  ;;  %9522 = vmatprep.mubr.f32.mxu0 %v6013_v12  ;;  %v11569_v12 = vld [vmem:[%s13011_s14 + $0x50] sm:$0xff] }
 0xbae   : > { %v5963_v16 = vpop.permute.xlu0 %5962  ;;  %v4037_v8 = vpop.permute.xlu1 %4036  ;;  %v6014_v26 = vld [vmem:[#allocation4 + $0x48] sm:$0xff] }
 0xbaf   : > { %6000 = vst.msk [vmem:[#allocation4 + $0x58] sm:$0xff] %vm5988_vm4, %v5963_v16  ;;  %9523 = vmatmul.mubr.f32.gmra.mrb[152].mxu0 %v6014_v26 }
 0xbb0   : > { %4071 = vst.msk [vmem:[#allocation4 + $0x70] sm:$0xff] %vm4056_vm2, %v4037_v8 }
 0xbb2   : > { %v4039_v51 = vpop.permute.xlu0 %4038  ;;  %v5965_v4 = vpop.permute.xlu1 %5964 }
 0xbb3   : > { %v6015_v20 = vld [vmem:[#allocation4 + $0x50] sm:$0xff]  ;;  %4072 = vst.msk [vmem:[#allocation4 + $0x78] sm:$0xff] %vm4056_vm2, %v4039_v51 }
 0xbb4   : > { %6001 = vst.msk [vmem:[#allocation4 + $0x60] sm:$0xff] %vm5988_vm4, %v5965_v4  ;;  %9525 = vmatprep.mubr.f32.mxu0 %v6015_v20  ;;  %v11570_v20 = vld [vmem:[%s13011_s14 + $0x68] sm:$0xff] }
 0xbb6   : > { %v5967_v17 = vpop.permute.xlu0 %5966  ;;  %v5003_v58 = vpop.permute.xlu1 %5002  ;;  %v6016_v24 = vld [vmem:[#allocation4 + $0x58] sm:$0xff] }
 0xbb7   : > { %6002 = vst.msk [vmem:[#allocation4 + $0x68] sm:$0xff] %vm5988_vm4, %v5967_v17  ;;  %9526 = vmatmul.mubr.f32.gmra.mrb[154].mxu0 %v6016_v24 }
 0xbb8   : > { %5037 = vst.msk [vmem:[#allocation4 + $0x70] sm:$0xff] %vm5022_vm3, %v5003_v58  ;;  %v11571_v58 = vld [vmem:[%s13011_s14 + $0x60] sm:$0xff] }
 0xbba   : > { %v5005_v41 = vpop.permute.xlu0 %5004  ;;  %v5969_v45 = vpop.permute.xlu1 %5968 }
 0xbbb   : > { %v6017_v19 = vld [vmem:[#allocation4 + $0x60] sm:$0xff]  ;;  %5038 = vst.msk [vmem:[#allocation4 + $0x78] sm:$0xff] %vm5022_vm3, %v5005_v41 }
 0xbbc   : > { %6003 = vst.msk [vmem:[#allocation4 + $0x70] sm:$0xff] %vm5988_vm4, %v5969_v45  ;;  %9528 = vmatprep.mubr.f32.mxu0 %v6017_v19 }
 0xbbe   : > { %v5971_v46 = vpop.permute.xlu0 %5970  ;;  %v6018_v52 = vld [vmem:[#allocation4 + $0x68] sm:$0xff] }
 0xbbf   : > { %6004 = vst.msk [vmem:[#allocation4 + $0x78] sm:$0xff] %vm5988_vm4, %v5971_v46  ;;  %9529 = vmatmul.mubr.f32.gmra.mrb[156].mxu0 %v6018_v52  ;;  %v11572_v52 = vld [vmem:[%s13011_s14 + $0x78] sm:$0xff] }
 0xbc3   : > { %v6019_v10 = vld [vmem:[#allocation4 + $0x70] sm:$0xff] }
 0xbc4   : > { %9531 = vmatprep.mubr.f32.mxu0 %v6019_v10 }
 0xbc6   : > { %v6020_v44 = vld [vmem:[#allocation4 + $0x78] sm:$0xff] }
 0xbc7   : > { %9532 = vmatmul.mubr.f32.gmra.mrb[158].mxu0 %v6020_v44  ;;  %v11573_v44 = vld [vmem:[%s13011_s14 + $0x70] sm:$0xff] }
 0xc57   : > { %v9512_v30 = vpop.f32.mrb[144].mxu0 }
 0xc58   : > { %v6116_v48 = vadd.f32 %v9512_v30, %v16061_v1  ;;  %v6110_v35 = vpop.f32.mrb[145].mxu0 }
 0xc59   : > { %v6111_v47 = vadd.f32 %v16061_v1, %v6110_v35  ;;  %v6432_v35 = vld [vmem:[#allocation17 + $0x28] sm:$0xff] }
 0xc5a   : > { %v16066_v9 = vadd.f32 %v11558_v21, %v6116_v48  ;;  %v6428_v48 = vld [vmem:[#allocation17 + $0x8] sm:$0xff] }
 0xc5b   : > { %v16069_v63 = vadd.f32 %v11559_v18, %v6111_v47  ;;  %v6427_v47 = vld [vmem:[#allocation17] sm:$0xff]  ;;  %v9982_v21 = vpack.c.bf16 %v6432_v35, %v6428_v48 }
 0xc5c   : > { %17973 = vst [vmem:[#allocation109_spill] sm:$0xff] %v16066_v9  ;;  %6209 = vadd.xlane.f32.xlu0 %v16066_v9  ;;  %v6431_v18 = vld [vmem:[#allocation17 + $0x20] sm:$0xff] }
 0xc5d   : > { %17974 = vst [vmem:[#allocation114_spill] sm:$0xff] %v16069_v63  ;;  %6207 = vadd.xlane.f32.xlu1 %v16069_v63  ;;  %9983 = vmatprep.subr.bf16.mxu1 %v9982_v21 }
 0xc5f   : > { %v9515_v2 = vpop.f32.mrb[146].mxu0 }
 0xc60   : > { %v6126_v7 = vadd.f32 %v9515_v2, %v16061_v1  ;;  %v6120_v5 = vpop.f32.mrb[147].mxu0  ;;  %v6436_v2 = vld [vmem:[#allocation17 + $0x48] sm:$0xff] }
 0xc61   : > { %v6121_v59 = vadd.f32 %v16061_v1, %v6120_v5  ;;  %v9984_v5 = vpack.c.bf16 %v6431_v18, %v6427_v47 }
 0xc62   : > { %v16076_v60 = vadd.f32 %v11560_v56, %v6126_v7  ;;  %v6440_v7 = vld [vmem:[#allocation17 + $0x68] sm:$0xff]  ;;  %v6439_v56 = vld [vmem:[#allocation17 + $0x60] sm:$0xff] }
 0xc63   : > { %v16079_v61 = vadd.f32 %v11561_v32, %v6121_v59  ;;  %v9986_v59 = vpack.c.bf16 %v6440_v7, %v6436_v2  ;;  %v6444_v32 = vld [vmem:[#allocation17 + $0x88] sm:$0xff]  ;;  %9985 = vmatpush1.bf16.msra.mxu1 %v9984_v5 }
 0xc64   : > { %17975 = vst [vmem:[#allocation115_spill] sm:$0xff] %v16076_v60  ;;  %6213 = vadd.xlane.f32.xlu1 %v16076_v60 }
 0xc65   : > { %17976 = vst [vmem:[#allocation123_spill] sm:$0xff] %v16079_v61  ;;  %6211 = vadd.xlane.f32.xlu0 %v16079_v61  ;;  %9987 = vmatprep.subr.bf16.mxu1 %v9986_v59 }
 0xc67   : > { %v9518_v6 = vpop.f32.mrb[148].mxu0 }
 0xc68   : > { %v6136_v36 = vadd.f32 %v9518_v6, %v16061_v1  ;;  %v6130_v25 = vpop.f32.mrb[149].mxu0  ;;  %v6448_v6 = vld [vmem:[#allocation17 + $0xa8] sm:$0xff] }
 0xc69   : > { %v6131_v34 = vadd.f32 %v16061_v1, %v6130_v25 }
 0xc6a   : > { %v16086_v55 = vadd.f32 %v11562_v27, %v6136_v36  ;;  %v6443_v36 = vld [vmem:[#allocation17 + $0x80] sm:$0xff]  ;;  %v6434_v27 = vld [vmem:[#allocation17 + $0x38] sm:$0xff] }
 0xc6b   : > { %v16089_v57 = vadd.f32 %v11563_v15, %v6131_v34  ;;  %v6430_v34 = vld [vmem:[#allocation17 + $0x18] sm:$0xff]  ;;  %v6429_v15 = vld [vmem:[#allocation17 + $0x10] sm:$0xff] }
 0xc6c   : > { %17977 = vst [vmem:[#allocation116_spill] sm:$0xff] %v16086_v55  ;;  %6217 = vadd.xlane.f32.xlu1 %v16086_v55 }
 0xc6d   : > { %17978 = vst [vmem:[#allocation117_spill] sm:$0xff] %v16089_v57  ;;  %6215 = vadd.xlane.f32.xlu0 %v16089_v57 }
 0xc7a   : > { %v9521_v14 = vpop.f32.mrb[150].mxu0 }
 0xc7b   : > { %v6146_v29 = vadd.f32 %v9521_v14, %v16061_v1  ;;  %v6140_v49 = vpop.f32.mrb[151].mxu0  ;;  %v9990_v14 = vpack.c.bf16 %v6448_v6, %v6444_v32 }
 0xc7c   : > { %v6141_v54 = vadd.f32 %v16061_v1, %v6140_v49  ;;  %v10014_v49 = vpack.c.bf16 %v6434_v27, %v6430_v34 }
 0xc7d   : > { %v16096_v3 = vadd.f32 %v11564_v40, %v6146_v29  ;;  %v6447_v29 = vld [vmem:[#allocation17 + $0xa0] sm:$0xff]  ;;  %v6452_v40 = vld [vmem:[#allocation17 + $0xc8] sm:$0xff] }
 0xc7e   : > { %v16099_v23 = vadd.f32 %v11565_v50, %v6141_v54  ;;  %v6433_v54 = vld [vmem:[#allocation17 + $0x30] sm:$0xff]  ;;  %10015 = vmatprep.subr.bf16.mxu0 %v10014_v49 }
 0xc7f   : > { %17979 = vst [vmem:[#allocation118_spill] sm:$0xff] %v16096_v3  ;;  %6221 = vadd.xlane.f32.xlu1 %v16096_v3  ;;  %v10016_v50 = vpack.c.bf16 %v6433_v54, %v6429_v15  ;;  %v6454_v15 = vld [vmem:[#allocation17 + $0xd8] sm:$0xff]  ;;  %v6453_v54 = vld [vmem:[#allocation17 + $0xd0] sm:$0xff] }
 0xc80   : > { %17980 = vst [vmem:[#allocation126_spill] sm:$0xff] %v16099_v23  ;;  %6219 = vadd.xlane.f32.xlu0 %v16099_v23 }
 0xc81   : > { %10017 = vmatpush1.bf16.msra.mxu0 %v10016_v50 }
 0xc82   : > { %v9524_v62 = vpop.f32.mrb[152].mxu0 }
 0xc83   : > { %v6156_v28 = vadd.f32 %v9524_v62, %v16061_v1  ;;  %v6150_v42 = vpop.f32.mrb[153].mxu0  ;;  %v6456_v62 = vld [vmem:[#allocation17 + $0xe8] sm:$0xff] }
 0xc84   : > { %v6151_v37 = vadd.f32 %v16061_v1, %v6150_v42  ;;  %v6442_v42 = vld [vmem:[#allocation17 + $0x78] sm:$0xff] }
 0xc85   : > { %v16106_v39 = vadd.f32 %v11566_v22, %v6156_v28  ;;  %v6438_v28 = vld [vmem:[#allocation17 + $0x58] sm:$0xff]  ;;  %v6437_v22 = vld [vmem:[#allocation17 + $0x50] sm:$0xff] }
 0xc86   : > { %v16109_v43 = vadd.f32 %v11567_v31, %v6151_v37  ;;  %v10018_v37 = vpack.c.bf16 %v6442_v42, %v6438_v28  ;;  %v6441_v31 = vld [vmem:[#allocation17 + $0x70] sm:$0xff]  ;;  %v6464_v28 = vld [vmem:[#allocation17 + $0x128] sm:$0xff]  ;;  %v6462_v42 = vld [vmem:[#allocation17 + $0x118] sm:$0xff] }
 0xc87   : > { %17981 = vst [vmem:[#allocation132_spill] sm:$0xff] %v16106_v39  ;;  %6225 = vadd.xlane.f32.xlu1 %v16106_v39 }
 0xc88   : > { %17982 = vst [vmem:[#allocation83_spill] sm:$0xff] %v16109_v43  ;;  %6223 = vadd.xlane.f32.xlu0 %v16109_v43  ;;  %10019 = vmatprep.subr.bf16.mxu0 %v10018_v37 }
 0xc8a   : > { %v9527_v33 = vpop.f32.mrb[154].mxu0 }
 0xc8b   : > { %v6166_v0 = vadd.f32 %v9527_v33, %v16061_v1  ;;  %v6160_v11 = vpop.f32.mrb[155].mxu0  ;;  %v9992_v33 = vpack.c.bf16 %v6447_v29, %v6443_v36 }
 0xc8c   : > { %v6161_v38 = vadd.f32 %v16061_v1, %v6160_v11  ;;  %v10020_v11 = vpack.c.bf16 %v6441_v31, %v6437_v22  ;;  %v6459_v22 = vld [vmem:[#allocation17 + $0x100] sm:$0xff] }
 0xc8d   : > { %v16116_v13 = vadd.f32 %v11568_v53, %v6166_v0  ;;  %v6451_v0 = vld [vmem:[#allocation17 + $0xc0] sm:$0xff]  ;;  %v6450_v53 = vld [vmem:[#allocation17 + $0xb8] sm:$0xff] }
 0xc8e   : > { %v16119_v16 = vadd.f32 %v11569_v12, %v6161_v38  ;;  %v6446_v38 = vld [vmem:[#allocation17 + $0x98] sm:$0xff]  ;;  %v9994_v12 = vpack.c.bf16 %v6456_v62, %v6452_v40  ;;  %10021 = vmatpush1.bf16.msra.mxu0 %v10020_v11  ;;  %v6457_v40 = vld [vmem:[#allocation17 + $0xf0] sm:$0xff]  ;;  %v6460_v62 = vld [vmem:[#allocation17 + $0x108] sm:$0xff] }
 0xc8f   : > { %17983 = vst [vmem:[#allocation84_spill] sm:$0xff] %v16116_v13  ;;  %6229 = vadd.xlane.f32.xlu1 %v16116_v13  ;;  %v10028_v50 = vpack.c.bf16 %v6457_v40, %v6453_v54  ;;  %v9998_v37 = vpack.c.bf16 %v6464_v28, %v6460_v62  ;;  %v6463_v31 = vld [vmem:[#allocation17 + $0x120] sm:$0xff]  ;;  %v6484_v54 = vld [vmem:[#allocation17 + $0x1c8] sm:$0xff] }
 0xc90   : > { %17984 = vst [vmem:[#allocation120_spill] sm:$0xff] %v16119_v16  ;;  %6227 = vadd.xlane.f32.xlu0 %v16119_v16  ;;  %v6488_v40 = vld [vmem:[#allocation17 + $0x1e8] sm:$0xff] }
 0xc91   : > { %v10010_v28 = vpack.c.bf16 %v6488_v40, %v6484_v54 }
 0xc92   : > { %v9530_v8 = vpop.f32.mrb[156].mxu0 }
 0xc93   : > { %v6176_v26 = vadd.f32 %v9530_v8, %v16061_v1  ;;  %v6170_v51 = vpop.f32.mrb[157].mxu0  ;;  %v6455_v8 = vld [vmem:[#allocation17 + $0xe0] sm:$0xff] }
 0xc94   : > { %v6171_v4 = vadd.f32 %v16061_v1, %v6170_v51  ;;  %v6445_v51 = vld [vmem:[#allocation17 + $0x90] sm:$0xff] }
 0xc95   : > { %v16126_v17 = vadd.f32 %v11570_v20, %v6176_v26  ;;  %v10022_v26 = vpack.c.bf16 %v6450_v53, %v6446_v38  ;;  %v9996_v20 = vpack.c.bf16 %v6455_v8, %v6451_v0  ;;  %v10000_v0 = vpack.c.bf16 %v6463_v31, %v6459_v22  ;;  %v6461_v38 = vld [vmem:[#allocation17 + $0x110] sm:$0xff]  ;;  %v6468_v8 = vld [vmem:[#allocation17 + $0x148] sm:$0xff]  ;;  %v6487_v22 = vld [vmem:[#allocation17 + $0x1e0] sm:$0xff] }
 0xc96   : > { %v16129_v24 = vadd.f32 %v11571_v58, %v6171_v4  ;;  %v6449_v4 = vld [vmem:[#allocation17 + $0xb0] sm:$0xff] }
 0xc97   : > { %17985 = vst [vmem:[#allocation122_spill] sm:$0xff] %v16126_v17  ;;  %6233 = vadd.xlane.f32.xlu1 %v16126_v17  ;;  %v10024_v58 = vpack.c.bf16 %v6449_v4, %v6445_v51  ;;  %10023 = vmatprep.subr.bf16.mxu0 %v10022_v26  ;;  %v6465_v53 = vld [vmem:[#allocation17 + $0x130] sm:$0xff]  ;;  %v6472_v26 = vld [vmem:[#allocation17 + $0x168] sm:$0xff]  ;;  %v6470_v51 = vld [vmem:[#allocation17 + $0x158] sm:$0xff] }
 0xc98   : > { %17986 = vst [vmem:[#allocation80_spill] sm:$0xff] %v16129_v24  ;;  %6231 = vadd.xlane.f32.xlu0 %v16129_v24  ;;  %v10002_v4 = vpack.c.bf16 %v6472_v26, %v6468_v8 }
 0xc99   : > { %10025 = vmatpush1.bf16.msra.mxu0 %v10024_v58  ;;  %v6467_v58 = vld [vmem:[#allocation17 + $0x140] sm:$0xff] }
 0xc9a   : > { %v9533_v41 = vpop.f32.mrb[158].mxu0 }
 0xc9b   : > { %v6186_v45 = vadd.f32 %v9533_v41, %v16061_v1  ;;  %v6180_v19 = vpop.f32.mrb[159].mxu0 }
 0xc9c   : > { %v6181_v46 = vadd.f32 %v16061_v1, %v6180_v19  ;;  %v6435_v1 = vld [vmem:[#allocation17 + $0x40] sm:$0xff] }
 0xc9d   : > { %v16136_v10 = vadd.f32 %v11572_v52, %v6186_v45  ;;  %v9988_v25 = vpack.c.bf16 %v6439_v56, %v6435_v1 }
 0xc9e   : > { %v16139_v30 = vadd.f32 %v11573_v44, %v6181_v46 }
 0xc9f   : > { %17987 = vst [vmem:[#allocation101_spill] sm:$0xff] %v16136_v10  ;;  %6237 = vadd.xlane.f32.xlu1 %v16136_v10  ;;  %9989 = vmatpush1.bf16.msra.mxu1 %v9988_v25 }
 0xca0   : > { %17988 = vst [vmem:[#allocation102_spill] sm:$0xff] %v16139_v30  ;;  %6235 = vadd.xlane.f32.xlu0 %v16139_v30  ;;  %9991 = vmatprep.subr.bf16.mxu1 %v9990_v14  ;;  %v6458_v14 = vld [vmem:[#allocation17 + $0xf8] sm:$0xff] }
 0xca1   : > { %v10026_v49 = vpack.c.bf16 %v6458_v14, %v6454_v15 }
 0xca3   : > { %9993 = vmatpush1.bf16.msra.mxu1 %v9992_v33  ;;  %10027 = vmatprep.subr.bf16.mxu0 %v10026_v49  ;;  %v6466_v33 = vld [vmem:[#allocation17 + $0x138] sm:$0xff] }
 0xca4   : > { %9995 = vmatprep.subr.bf16.mxu1 %v9994_v12  ;;  %10029 = vmatpush1.bf16.msra.mxu0 %v10028_v50  ;;  %v10030_v11 = vpack.c.bf16 %v6466_v33, %v6462_v42  ;;  %v10032_v12 = vpack.c.bf16 %v6465_v53, %v6461_v38  ;;  %v6486_v50 = vld [vmem:[#allocation17 + $0x1d8] sm:$0xff]  ;;  %v6489_v38 = vld [vmem:[#allocation17 + $0x1f0] sm:$0xff] }
 0xca5   : > { %v6490_v42 = vld [vmem:[#allocation17 + $0x1f8] sm:$0xff] }
 0xca6   : > { %10031 = vmatprep.subr.bf16.mxu0 %v10030_v11  ;;  %v10042_v33 = vpack.c.bf16 %v6490_v42, %v6486_v50  ;;  %v6485_v11 = vld [vmem:[#allocation17 + $0x1d0] sm:$0xff] }
 0xca7   : > { %9997 = vmatpush1.bf16.msra.mxu1 %v9996_v20  ;;  %v6474_v20 = vld [vmem:[#allocation17 + $0x178] sm:$0xff] }
 0xca8   : > { %9999 = vmatprep.subr.bf16.mxu1 %v9998_v37  ;;  %10033 = vmatpush1.bf16.msra.mxu0 %v10032_v12  ;;  %v6483_v37 = vld [vmem:[#allocation17 + $0x1c0] sm:$0xff]  ;;  %v10044_v12 = vpack.c.bf16 %v6489_v38, %v6485_v11 }
 0xcab   : > { %10001 = vmatpush1.bf16.msra.mxu1 %v10000_v0  ;;  %v10012_v0 = vpack.c.bf16 %v6487_v22, %v6483_v37 }
 0xcac   : > { %10003 = vmatprep.subr.bf16.mxu1 %v10002_v4 }
 0xce9   : > { %v6210_v41 = vpop.xlane.xlu0 %6209 }
 0xcea   : > { %v6240_v45 = vmul.f32 0.0078125, %v6210_v41  ;;  %v6208_v19 = vpop.xlane.xlu1 %6207  ;;  %v6471_v41 = vld [vmem:[#allocation17 + $0x160] sm:$0xff] }
 0xceb   : > { %v6239_v46 = vmul.f32 0.0078125, %v6208_v19  ;;  %v10004_v19 = vpack.c.bf16 %v6471_v41, %v6467_v58 }
 0xcec   : > { %v16144_v52 = vsub.f32 %v16066_v9, %v6240_v45  ;;  %v10034_v45 = vpack.c.bf16 %v6474_v20, %v6470_v51  ;;  %v11992_v51 = vmov 0.0  }
 0xced   : > { %v16147_v44 = vsub.f32 %v16069_v63, %v6239_v46  ;;  %v6469_v46 = vld [vmem:[#allocation17 + $0x150] sm:$0xff]  ;;  %10005 = vmatpush1.bf16.msra.mxu1 %v10004_v19  ;;  %6577 = vmatprep.mubr.f32.mxu1 %v11992_v51 }
 0xcee   : > { %v6272_v48 = vmul.f32 %v16144_v52, %v16144_v52  ;;  %10035 = vmatprep.subr.bf16.mxu0 %v10034_v45  ;;  %6738 = vmatprep.mubr.f32.mxu0 %v11992_v51 }
 0xcef   : > { %v6271_v35 = vmul.f32 %v16147_v44, %v16147_v44 }
 0xcf0   : > { %6289 = vadd.xlane.f32.xlu1 %v6272_v48  ;;  %v6473_v48 = vld [vmem:[#allocation17 + $0x170] sm:$0xff] }
 0xcf1   : > { %6287 = vadd.xlane.f32.xlu0 %v6271_v35  ;;  %v6214_v47 = vpop.xlane.xlu1 %6213  ;;  %v10036_v35 = vpack.c.bf16 %v6473_v48, %v6469_v46 }
 0xcf2   : > { %v6242_v21 = vmul.f32 0.0078125, %v6214_v47  ;;  %v6212_v18 = vpop.xlane.xlu0 %6211  ;;  %v6476_v47 = vld [vmem:[#allocation17 + $0x188] sm:$0xff] }
 0xcf3   : > { %v6241_v2 = vmul.f32 0.0078125, %v6212_v18  ;;  %v6478_v18 = vld [vmem:[#allocation17 + $0x198] sm:$0xff]  ;;  %10037 = vmatpush1.bf16.msra.mxu0 %v10036_v35 }
 0xcf4   : > { %v16154_v7 = vsub.f32 %v16076_v60, %v6242_v21  ;;  %v6480_v21 = vld [vmem:[#allocation17 + $0x1a8] sm:$0xff] }
 0xcf5   : > { %v16157_v5 = vsub.f32 %v16079_v61, %v6241_v2  ;;  %v10006_v2 = vpack.c.bf16 %v6480_v21, %v6476_v47 }
 0xcf6   : > { %v6274_v59 = vmul.f32 %v16154_v7, %v16154_v7 }
 0xcf7   : > { %v6273_v1 = vmul.f32 %v16157_v5, %v16157_v5  ;;  %10007 = vmatprep.subr.bf16.mxu1 %v10006_v2 }
 0xcf8   : > { %6293 = vadd.xlane.f32.xlu1 %v6274_v59  ;;  %v6482_v59 = vld [vmem:[#allocation17 + $0x1b8] sm:$0xff] }
 0xcf9   : > { %6291 = vadd.xlane.f32.xlu0 %v6273_v1  ;;  %v6218_v56 = vpop.xlane.xlu1 %6217  ;;  %v6475_v1 = vld [vmem:[#allocation17 + $0x180] sm:$0xff] }
 0xcfa   : > { %v6244_v32 = vmul.f32 0.0078125, %v6218_v56  ;;  %v6216_v6 = vpop.xlane.xlu0 %6215  ;;  %v6479_v56 = vld [vmem:[#allocation17 + $0x1a0] sm:$0xff] }
 0xcfb   : > { %v6243_v36 = vmul.f32 0.0078125, %v6216_v6  ;;  %v10008_v6 = vpack.c.bf16 %v6479_v56, %v6475_v1 }
 0xcfc   : > { %v16164_v25 = vsub.f32 %v16086_v55, %v6244_v32  ;;  %v10038_v32 = vpack.c.bf16 %v6482_v59, %v6478_v18 }
 0xcfd   : > { %v16167_v34 = vsub.f32 %v16089_v57, %v6243_v36  ;;  %v6477_v36 = vld [vmem:[#allocation17 + $0x190] sm:$0xff]  ;;  %10009 = vmatpush1.bf16.msra.mxu1 %v10008_v6 }
 0xcfe   : > { %v6276_v27 = vmul.f32 %v16164_v25, %v16164_v25  ;;  %10039 = vmatprep.subr.bf16.mxu0 %v10038_v32  ;;  %10011 = vmatprep.subr.bf16.mxu1 %v10010_v28 }
 0xcff   : > { %v6275_v29 = vmul.f32 %v16167_v34, %v16167_v34 }
 0xd00   : > { %6297 = vadd.xlane.f32.xlu1 %v6276_v27  ;;  %v6481_v27 = vld [vmem:[#allocation17 + $0x1b0] sm:$0xff] }
 0xd01   : > { %6295 = vadd.xlane.f32.xlu0 %v6275_v29  ;;  %v10040_v14 = vpack.c.bf16 %v6481_v27, %v6477_v36  ;;  %10013 = vmatpush1.bf16.msra.mxu1 %v10012_v0  ;;  %v7428_v0 = vld [vmem:[#allocation19 + $0x88] sm:$0xff] }
 0xd03   : > { %10041 = vmatpush1.bf16.msra.mxu0 %v10040_v14 }
 0xd04   : > { %10043 = vmatprep.subr.bf16.mxu0 %v10042_v33  ;;  %v7427_v33 = vld [vmem:[#allocation19 + $0x80] sm:$0xff] }
 0xd05   : > { %v10046_v11 = vpack.c.bf16 %v7428_v0, %v7427_v33 }
 0xd07   : > { %10045 = vmatpush1.bf16.msra.mxu0 %v10044_v12  ;;  %10047 = vmatprep.subr.bf16.mxu1 %v10046_v11 }
 0xd0c   : > { %v6222_v15 = vpop.xlane.xlu1 %6221 }
 0xd0d   : > { %v6246_v29 = vmul.f32 0.0078125, %v6222_v15  ;;  %v6220_v49 = vpop.xlane.xlu0 %6219 }
 0xd0e   : > { %v6245_v62 = vmul.f32 0.0078125, %v6220_v49 }
 0xd0f   : > { %v16174_v31 = vsub.f32 %v16096_v3, %v6246_v29 }
 0xd10   : > { %v16177_v53 = vsub.f32 %v16099_v23, %v6245_v62 }
 0xd11   : > { %v6278_v8 = vmul.f32 %v16174_v31, %v16174_v31 }
 0xd12   : > { %v6277_v26 = vmul.f32 %v16177_v53, %v16177_v53 }
 0xd13   : > { %6301 = vadd.xlane.f32.xlu1 %v6278_v8 }
 0xd14   : > { %6299 = vadd.xlane.f32.xlu0 %v6277_v26  ;;  %v6226_v4 = vpop.xlane.xlu1 %6225 }
 0xd15   : > { %v6248_v20 = vmul.f32 0.0078125, %v6226_v4  ;;  %v6224_v58 = vpop.xlane.xlu0 %6223 }
 0xd16   : > { %v6247_v41 = vmul.f32 0.0078125, %v6224_v58 }
 0xd17   : > { %v16186_v45 = vsub.f32 %v16106_v39, %v6248_v20 }
 0xd18   : > { %v16189_v19 = vsub.f32 %v16109_v43, %v6247_v41 }
 0xd19   : > { %v6280_v46 = vmul.f32 %v16186_v45, %v16186_v45 }
 0xd1a   : > { %v6279_v48 = vmul.f32 %v16189_v19, %v16189_v19 }
 0xd1b   : > { %6305 = vadd.xlane.f32.xlu1 %v6280_v46 }
 0xd1c   : > { %6303 = vadd.xlane.f32.xlu0 %v6279_v48  ;;  %v6230_v35 = vpop.xlane.xlu1 %6229 }
 0xd1d   : > { %v6250_v47 = vmul.f32 0.0078125, %v6230_v35  ;;  %v6228_v21 = vpop.xlane.xlu0 %6227 }
 0xd1e   : > { %v6249_v18 = vmul.f32 0.0078125, %v6228_v21 }
 0xd1f   : > { %v16196_v2 = vsub.f32 %v16116_v13, %v6250_v47 }
 0xd20   : > { %v16199_v59 = vsub.f32 %v16119_v16, %v6249_v18 }
 0xd21   : > { %v6282_v1 = vmul.f32 %v16196_v2, %v16196_v2 }
 0xd22   : > { %v6281_v56 = vmul.f32 %v16199_v59, %v16199_v59 }
 0xd23   : > { %6309 = vadd.xlane.f32.xlu1 %v6282_v1 }
 0xd24   : > { %6307 = vadd.xlane.f32.xlu0 %v6281_v56  ;;  %v6234_v32 = vpop.xlane.xlu1 %6233  ;;  %v16228_v56 = vld [vmem:[%s17989_s21] ss:$0 sm:$0xff]  ;;  %s18130_s21 = sld [smem:[#allocation168_spill]] }
 0xd25   : > { %v6252_v6 = vmul.f32 0.0078125, %v6234_v32  ;;  %v6232_v36 = vpop.xlane.xlu0 %6231 }
 0xd26   : > { %v6251_v27 = vmul.f32 0.0078125, %v6232_v36 }
 0xd27   : > { %v16206_v15 = vsub.f32 %v16126_v17, %v6252_v6 }
 0xd28   : > { %v16209_v14 = vsub.f32 %v16129_v24, %v6251_v27 }
 0xd29   : > { %v6284_v29 = vmul.f32 %v16206_v15, %v16206_v15 }
 0xd2a   : > { %v6283_v49 = vmul.f32 %v16209_v14, %v16209_v14  ;;  %s18131_s27 = smov %s18130_s21  ;;  %s17281_s2 = scalar_lea.hbm %s18130_s21, %s8357_s12 }
 0xd2b   : > { %6313 = vadd.xlane.f32.xlu1 %v6284_v29 }
 0xd2c   : > { %6311 = vadd.xlane.f32.xlu0 %v6283_v49  ;;  %v6238_v54 = vpop.xlane.xlu1 %6237  ;;  %v16235_v49 = vld [vmem:[%s17990_s0] ss:$0 sm:$0xff]  ;;  %s7805_s0 = scalar_lea.sflag [#allocation7], %s12510_s15 }
 0xd2d   : > { %v6254_v40 = vmul.f32 0.0078125, %v6238_v54  ;;  %v6236_v50 = vpop.xlane.xlu0 %6235  ;;  %v7411_v54 = vld [vmem:[#allocation19] sm:$0xff] }
 0xd2e   : > { %v6253_v62 = vmul.f32 0.0078125, %v6236_v50 }
 0xd2f   : > { %v16216_v28 = vsub.f32 %v16136_v10, %v6254_v40  ;;  %v7412_v40 = vld [vmem:[#allocation19 + $0x8] sm:$0xff] }
 0xd30   : > { %v16219_v42 = vsub.f32 %v16139_v30, %v6253_v62 }
 0xd31   : > { %v6286_v37 = vmul.f32 %v16216_v28, %v16216_v28 }
 0xd32   : > { %v6285_v22 = vmul.f32 %v16219_v42, %v16219_v42 }
 0xd33   : > { %6317 = vadd.xlane.f32.xlu1 %v6286_v37  ;;  %v7429_v37 = vld [vmem:[#allocation19 + $0x90] sm:$0xff] }
 0xd34   : > { %6315 = vadd.xlane.f32.xlu0 %v6285_v22  ;;  %v7430_v22 = vld [vmem:[#allocation19 + $0x98] sm:$0xff] }
 0xd35   : > { %v10050_v11 = vpack.c.bf16 %v7430_v22, %v7429_v37 }
 0xd7d   : > { %v6290_v38 = vpop.xlane.xlu1 %6289 }
 0xd7e   : > { %v6320_v12 = vmul.f32 0.0078125, %v6290_v38  ;;  %v6288_v8 = vpop.xlane.xlu0 %6287  ;;  %v7413_v38 = vld [vmem:[#allocation19 + $0x10] sm:$0xff] }
 0xd7f   : > { %v6319_v26 = vmul.f32 0.0078125, %v6288_v8 }
 0xd80   : > { %v6336_v4 = vadd.f32 1e-06, %v6320_v12  ;;  %v7414_v12 = vld [vmem:[#allocation19 + $0x18] sm:$0xff] }
 0xd81   : > { %v6335_v20 = vadd.f32 1e-06, %v6319_v26  ;;  %v7431_v26 = vld [vmem:[#allocation19 + $0xa0] sm:$0xff] }
 0xd82   : > { %11276 = vrsqrt.f32 %v6336_v4  ;;  %v7432_v4 = vld [vmem:[#allocation19 + $0xa8] sm:$0xff] }
 0xd83   : > { %11278 = vrsqrt.f32 %v6335_v20 }
 0xd85   : > { %v6294_v58 = vpop.xlane.xlu1 %6293 }
 0xd86   : > { %v6322_v41 = vmul.f32 0.0078125, %v6294_v58  ;;  %v6292_v46 = vpop.xlane.xlu0 %6291 }
 0xd87   : > { %v6321_v48 = vmul.f32 0.0078125, %v6292_v46 }
 0xd88   : > { %v6338_v35 = vadd.f32 1e-06, %v6322_v41 }
 0xd89   : > { %v6337_v47 = vadd.f32 1e-06, %v6321_v48  ;;  %v10052_v48 = vpack.c.bf16 %v7414_v12, %v7413_v38 }
 0xd8a   : > { %11280 = vrsqrt.f32 %v6338_v35  ;;  %v10054_v35 = vpack.c.bf16 %v7432_v4, %v7431_v26 }
 0xd8b   : > { %11282 = vrsqrt.f32 %v6337_v47  ;;  %v7415_v47 = vld [vmem:[#allocation19 + $0x20] sm:$0xff] }
 0xd8c   : > { %v11277_v21 = vpop.eup %11276 }
 0xd8d   : > { %v11279_v18 = vpop.eup %11278  ;;  %v6298_v1 = vpop.xlane.xlu1 %6297  ;;  %v6368_v27 = vmul.f32 %v11277_v21, %v16144_v52  ;;  %v10048_v52 = vpack.c.bf16 %v7412_v40, %v7411_v54  ;;  %v7416_v21 = vld [vmem:[#allocation19 + $0x28] sm:$0xff] }
 0xd8e   : > { %v6367_v32 = vmul.f32 %v11279_v18, %v16147_v44  ;;  %v6324_v6 = vmul.f32 0.0078125, %v6298_v1  ;;  %v6296_v36 = vpop.xlane.xlu0 %6295 }
 0xd8f   : > { %v6323_v29 = vmul.f32 0.0078125, %v6296_v36  ;;  %v6390_v0 = vmul.f32 %v16228_v56, %v6368_v27 }
 0xd90   : > { %v6340_v50 = vadd.f32 1e-06, %v6324_v6  ;;  %v6389_v62 = vmul.f32 %v16228_v56, %v6367_v32 }
 0xd91   : > { %v6339_v33 = vadd.f32 1e-06, %v6323_v29  ;;  %v6412_v58 = vadd.f32 %v16235_v49, %v6390_v0 }
 0xd92   : > { %11284 = vrsqrt.f32 %v6340_v50  ;;  %v6411_v44 = vadd.f32 %v16235_v49, %v6389_v62 }
 0xd93   : > { %11286 = vrsqrt.f32 %v6339_v33 }
 0xd94   : > { %v11281_v8 = vpop.eup %11280  ;;  %6578 = vmatmul.mubr.f32.vlgmr.msra.gmra.mrb[128].mxu1 %v6411_v44  ;;  %6739 = vmatmul.mubr.f32.vlgmr.msra.gmra.mrb[160].mxu0 %v6411_v44 }
 0xd95   : > { %v11283_v20 = vpop.eup %11282  ;;  %6583 = vmatprep.mubr.f32.mxu1 %v11992_v51  ;;  %6744 = vmatprep.mubr.f32.mxu0 %v11992_v51  ;;  %v6370_v46 = vmul.f32 %v11281_v8, %v16154_v7  ;;  %v10056_v7 = vpack.c.bf16 %v7416_v21, %v7415_v47 }
 0xd96   : > { %v6369_v41 = vmul.f32 %v11283_v20, %v16157_v5  ;;  %10049 = vmatpush3.bf16.msra.mxu1 %v10048_v52 }
 0xd97   : > { %10051 = vmatprep.subr.bf16.mxu1 %v10050_v11  ;;  %v6392_v5 = vmul.f32 %v16228_v56, %v6370_v46 }
 0xd98   : > { %6584 = vmatmul.mubr.f32.gmra.mrb[130].mxu1 %v6412_v58  ;;  %6745 = vmatmul.mubr.f32.gmra.mrb[162].mxu0 %v6412_v58  ;;  %v6391_v18 = vmul.f32 %v16228_v56, %v6369_v41 }
 0xd99   : > { %6589 = vmatprep.mubr.f32.mxu1 %v11992_v51  ;;  %6750 = vmatprep.mubr.f32.mxu0 %v11992_v51  ;;  %v6414_v36 = vadd.f32 %v16235_v49, %v6392_v5 }
 0xd9a   : > { %v6413_v1 = vadd.f32 %v16235_v49, %v6391_v18  ;;  %10053 = vmatpush3.bf16.msra.mxu1 %v10052_v48 }
 0xd9b   : > { %10055 = vmatprep.subr.bf16.mxu1 %v10054_v35 }
 0xd9c   : > { %v11285_v32 = vpop.eup %11284  ;;  %6590 = vmatmul.mubr.f32.gmra.mrb[132].mxu1 %v6413_v1  ;;  %6751 = vmatmul.mubr.f32.gmra.mrb[164].mxu0 %v6413_v1 }
 0xd9d   : > { %v11287_v6 = vpop.eup %11286  ;;  %6595 = vmatprep.mubr.f32.mxu1 %v11992_v51  ;;  %6756 = vmatprep.mubr.f32.mxu0 %v11992_v51  ;;  %v6372_v29 = vmul.f32 %v11285_v32, %v16164_v25 }
 0xd9e   : > { %v6371_v27 = vmul.f32 %v11287_v6, %v16167_v34  ;;  %10057 = vmatpush3.bf16.msra.mxu1 %v10056_v7 }
 0xd9f   : > { %v6394_v22 = vmul.f32 %v16228_v56, %v6372_v29 }
 0xda0   : > { %6596 = vmatmul.mubr.f32.gmra.mrb[134].mxu1 %v6414_v36  ;;  %6757 = vmatmul.mubr.f32.gmra.mrb[166].mxu0 %v6414_v36  ;;  %v6393_v54 = vmul.f32 %v16228_v56, %v6371_v27  ;;  %v6302_v40 = vpop.xlane.xlu1 %6301 }
 0xda1   : > { %6601 = vmatprep.mubr.f32.mxu1 %v11992_v51  ;;  %6762 = vmatprep.mubr.f32.mxu0 %v11992_v51  ;;  %v6326_v50 = vmul.f32 0.0078125, %v6302_v40  ;;  %v6300_v62 = vpop.xlane.xlu0 %6299  ;;  %v6416_v44 = vadd.f32 %v16235_v49, %v6394_v22 }
 0xda2   : > { %v6415_v37 = vadd.f32 %v16235_v49, %v6393_v54  ;;  %v6325_v33 = vmul.f32 0.0078125, %v6300_v62 }
 0xda3   : > { %v6342_v34 = vadd.f32 1e-06, %v6326_v50 }
 0xda4   : > { %6602 = vmatmul.mubr.f32.gmra.mrb[136].mxu1 %v6415_v37  ;;  %6763 = vmatmul.mubr.f32.gmra.mrb[168].mxu0 %v6415_v37  ;;  %v6341_v25 = vadd.f32 1e-06, %v6325_v33 }
 0xda5   : > { %6607 = vmatprep.mubr.f32.mxu1 %v11992_v51  ;;  %6768 = vmatprep.mubr.f32.mxu0 %v11992_v51  ;;  %11288 = vrsqrt.f32 %v6342_v34 }
 0xda6   : > { %11290 = vrsqrt.f32 %v6341_v25 }
 0xda8   : > { %6608 = vmatmul.mubr.f32.gmra.mrb[138].mxu1 %v6416_v44  ;;  %6769 = vmatmul.mubr.f32.gmra.mrb[170].mxu0 %v6416_v44  ;;  %v6306_v0 = vpop.xlane.xlu1 %6305 }
 0xda9   : > { %6613 = vmatprep.mubr.f32.mxu1 %v11992_v51  ;;  %6774 = vmatprep.mubr.f32.mxu0 %v11992_v51  ;;  %v6328_v52 = vmul.f32 0.0078125, %v6306_v0  ;;  %v6304_v11 = vpop.xlane.xlu0 %6303 }
 0xdaa   : > { %v6327_v38 = vmul.f32 0.0078125, %v6304_v11 }
 0xdab   : > { %v6344_v12 = vadd.f32 1e-06, %v6328_v52 }
 0xdac   : > { %v6343_v8 = vadd.f32 1e-06, %v6327_v38 }
 0xdad   : > { %11292 = vrsqrt.f32 %v6344_v12 }
 0xdae   : > { %11294 = vrsqrt.f32 %v6343_v8 }
 0xdaf   : > { %v11289_v26 = vpop.eup %11288 }
 0xdb0   : > { %v11291_v4 = vpop.eup %11290  ;;  %v6310_v20 = vpop.xlane.xlu1 %6309  ;;  %v6374_v48 = vmul.f32 %v11289_v26, %v16174_v31 }
 0xdb1   : > { %v6330_v58 = vmul.f32 0.0078125, %v6310_v20  ;;  %v6308_v41 = vpop.xlane.xlu0 %6307  ;;  %v6373_v46 = vmul.f32 %v11291_v4, %v16177_v53 }
 0xdb2   : > { %v6329_v35 = vmul.f32 0.0078125, %v6308_v41  ;;  %v6396_v5 = vmul.f32 %v16228_v56, %v6374_v48 }
 0xdb3   : > { %v6346_v47 = vadd.f32 1e-06, %v6330_v58  ;;  %v6395_v21 = vmul.f32 %v16228_v56, %v6373_v46 }
 0xdb4   : > { %v6345_v18 = vadd.f32 1e-06, %v6329_v35  ;;  %v6418_v36 = vadd.f32 %v16235_v49, %v6396_v5 }
 0xdb5   : > { %11296 = vrsqrt.f32 %v6346_v47  ;;  %v6417_v1 = vadd.f32 %v16235_v49, %v6395_v21 }
 0xdb6   : > { %11298 = vrsqrt.f32 %v6345_v18 }
 0xdb7   : > { %v11293_v7 = vpop.eup %11292  ;;  %6614 = vmatmul.mubr.f32.gmra.mrb[140].mxu1 %v6417_v1  ;;  %6775 = vmatmul.mubr.f32.gmra.mrb[172].mxu0 %v6417_v1 }
 0xdb8   : > { %v11295_v32 = vpop.eup %11294  ;;  %v6314_v6 = vpop.xlane.xlu1 %6313  ;;  %6619 = vmatprep.mubr.f32.mxu1 %v11992_v51  ;;  %6780 = vmatprep.mubr.f32.mxu0 %v11992_v51  ;;  %v6376_v29 = vmul.f32 %v11293_v7, %v16186_v45 }
 0xdb9   : > { %v6332_v31 = vmul.f32 0.0078125, %v6314_v6  ;;  %v6312_v53 = vpop.xlane.xlu0 %6311  ;;  %v6375_v27 = vmul.f32 %v11295_v32, %v16189_v19  ;;  %v7460_v32 = vld [vmem:[#allocation19 + $0x188] sm:$0xff] }
 0xdba   : > { %v6331_v54 = vmul.f32 0.0078125, %v6312_v53  ;;  %v6398_v22 = vmul.f32 %v16228_v56, %v6376_v29  ;;  %v7444_v53 = vld [vmem:[#allocation19 + $0x108] sm:$0xff] }
 0xdbb   : > { %v6348_v40 = vadd.f32 1e-06, %v6332_v31  ;;  %6620 = vmatmul.mubr.f32.gmra.mrb[142].mxu1 %v6418_v36  ;;  %6781 = vmatmul.mubr.f32.gmra.mrb[174].mxu0 %v6418_v36  ;;  %v6397_v50 = vmul.f32 %v16228_v56, %v6375_v27  ;;  %v7443_v31 = vld [vmem:[#allocation19 + $0x100] sm:$0xff]  ;;  %v7462_v27 = vld [vmem:[#allocation19 + $0x198] sm:$0xff] }
 0xdbc   : > { %v6347_v62 = vadd.f32 1e-06, %v6331_v54  ;;  %6625 = vmatprep.mubr.f32.mxu1 %v11992_v51  ;;  %6786 = vmatprep.mubr.f32.mxu0 %v11992_v51  ;;  %v6420_v44 = vadd.f32 %v16235_v49, %v6398_v22  ;;  %v16315_v36 = vpack.c.bf16 %v7444_v53, %v7443_v31  ;;  %v7434_v22 = vld [vmem:[#allocation19 + $0xb8] sm:$0xff]  ;;  %v7453_v53 = vld [vmem:[#allocation19 + $0x150] sm:$0xff] }
 0xdbd   : > { %11300 = vrsqrt.f32 %v6348_v40  ;;  %v6419_v37 = vadd.f32 %v16235_v49, %v6397_v50  ;;  %v7463_v40 = vld [vmem:[#allocation19 + $0x1a0] sm:$0xff]  ;;  %v7464_v50 = vld [vmem:[#allocation19 + $0x1a8] sm:$0xff] }
 0xdbe   : > { %11302 = vrsqrt.f32 %v6347_v62  ;;  %v16325_v62 = vpack.c.bf16 %v7464_v50, %v7463_v40  ;;  %v7471_v40 = vld [vmem:[#allocation19 + $0x1e0] sm:$0xff] }
 0xdbf   : > { %v11297_v19 = vpop.eup %11296  ;;  %6626 = vmatmul.mubr.f32.gmra.mrb[144].mxu1 %v6419_v37  ;;  %6787 = vmatmul.mubr.f32.gmra.mrb[176].mxu0 %v6419_v37  ;;  %v7433_v37 = vld [vmem:[#allocation19 + $0xb0] sm:$0xff] }
 0xdc0   : > { %v11299_v45 = vpop.eup %11298  ;;  %v6318_v33 = vpop.xlane.xlu1 %6317  ;;  %6631 = vmatprep.mubr.f32.mxu1 %v11992_v51  ;;  %6792 = vmatprep.mubr.f32.mxu0 %v11992_v51  ;;  %v6378_v52 = vmul.f32 %v11297_v19, %v16196_v2  ;;  %17991 = vst [vmem:[#allocation79_spill] sm:$0xff] %v16325_v62  ;;  %v10058_v19 = vpack.c.bf16 %v7434_v22, %v7433_v37  ;;  %v7472_v37 = vld [vmem:[#allocation19 + $0x1e8] sm:$0xff]  ;;  %v7423_v22 = vld [vmem:[#allocation19 + $0x60] sm:$0xff] }
 0xdc1   : > { %v6334_v34 = vmul.f32 0.0078125, %v6318_v33  ;;  %v6316_v25 = vpop.xlane.xlu0 %6315  ;;  %v6377_v0 = vmul.f32 %v11299_v45, %v16199_v59  ;;  %v7417_v45 = vld [vmem:[#allocation19 + $0x30] sm:$0xff]  ;;  %v7418_v33 = vld [vmem:[#allocation19 + $0x38] sm:$0xff] }
 0xdc2   : > { %v6333_v11 = vmul.f32 0.0078125, %v6316_v25  ;;  %v6400_v4 = vmul.f32 %v16228_v56, %v6378_v52  ;;  %v7447_v25 = vld [vmem:[#allocation19 + $0x120] sm:$0xff]  ;;  %10059 = vmatprep.subr.bf16.mxu1 %v10058_v19  ;;  %v7465_v52 = vld [vmem:[#allocation19 + $0x1b0] sm:$0xff]  ;;  %v7424_v19 = vld [vmem:[#allocation19 + $0x68] sm:$0xff] }
 0xdc3   : > { %v6350_v38 = vadd.f32 1e-06, %v6334_v34  ;;  %6632 = vmatmul.mubr.f32.gmra.mrb[146].mxu1 %v6420_v44  ;;  %6793 = vmatmul.mubr.f32.gmra.mrb[178].mxu0 %v6420_v44  ;;  %v6399_v12 = vmul.f32 %v16228_v56, %v6377_v0  ;;  %v10060_v34 = vpack.c.bf16 %v7418_v33, %v7417_v45  ;;  %v7448_v44 = vld [vmem:[#allocation19 + $0x128] sm:$0xff]  ;;  %v16349_v45 = vpack.c.bf16 %v7472_v37, %v7471_v40 }
 0xdc4   : > { %v6349_v8 = vadd.f32 1e-06, %v6333_v11  ;;  %6637 = vmatprep.mubr.f32.mxu1 %v11992_v51  ;;  %6798 = vmatprep.mubr.f32.mxu0 %v11992_v51  ;;  %v6422_v20 = vadd.f32 %v16235_v49, %v6400_v4  ;;  %v16328_v0 = vpack.c.bf16 %v7448_v44, %v7447_v25  ;;  %v7466_v11 = vld [vmem:[#allocation19 + $0x1b8] sm:$0xff]  ;;  %v7435_v4 = vld [vmem:[#allocation19 + $0xc0] sm:$0xff]  ;;  %v10072_v33 = vpack.c.bf16 %v7424_v19, %v7423_v22  ;;  %v7456_v25 = vld [vmem:[#allocation19 + $0x168] sm:$0xff] }
 0xdc5   : > { %11304 = vrsqrt.f32 %v6350_v38  ;;  %v6421_v26 = vadd.f32 %v16235_v49, %v6399_v12  ;;  %10061 = vmatpush3.bf16.msra.mxu1 %v10060_v34  ;;  %v16331_v38 = vpack.c.bf16 %v7466_v11, %v7465_v52  ;;  %v7449_v12 = vld [vmem:[#allocation19 + $0x130] sm:$0xff]  ;;  %17999 = vst [vmem:[#allocation87_spill] sm:$0xff] %v16349_v45  ;;  %v7455_v34 = vld [vmem:[#allocation19 + $0x160] sm:$0xff]  ;;  %v7442_v11 = vld [vmem:[#allocation19 + $0xf8] sm:$0xff] }
 0xdc6   : > { %11306 = vrsqrt.f32 %v6349_v8  ;;  %17992 = vst [vmem:[#allocation108_spill] sm:$0xff] %v16328_v0  ;;  %v7450_v8 = vld [vmem:[#allocation19 + $0x138] sm:$0xff]  ;;  %v16351_v44 = vpack.c.bf16 %v7456_v25, %v7455_v34  ;;  %v7441_v52 = vld [vmem:[#allocation19 + $0xf0] sm:$0xff] }
 0xdc7   : > { %v11301_v59 = vpop.eup %11300  ;;  %6638 = vmatmul.mubr.f32.gmra.mrb[148].mxu1 %v6421_v26  ;;  %6799 = vmatmul.mubr.f32.gmra.mrb[180].mxu0 %v6421_v26  ;;  %17993 = vst [vmem:[#allocation107_spill] sm:$0xff] %v16331_v38  ;;  %v16333_v26 = vpack.c.bf16 %v7450_v8, %v7449_v12  ;;  %v7473_v12 = vld [vmem:[#allocation19 + $0x1f0] sm:$0xff]  ;;  %v10074_v8 = vpack.c.bf16 %v7442_v11, %v7441_v52 }
 0xdc8   : > { %v11303_v2 = vpop.eup %11302  ;;  %6643 = vmatprep.mubr.f32.mxu1 %v11992_v51  ;;  %6804 = vmatprep.mubr.f32.mxu0 %v11992_v51  ;;  %v6380_v41 = vmul.f32 %v11301_v59, %v16206_v15  ;;  %v7436_v59 = vld [vmem:[#allocation19 + $0xc8] sm:$0xff]  ;;  %18000 = vst [vmem:[#allocation92_spill] sm:$0xff] %v16351_v44 }
 0xdc9   : > { %v6379_v58 = vmul.f32 %v11303_v2, %v16209_v14  ;;  %17994 = vst [vmem:[#allocation82_spill] sm:$0xff] %v16333_v26  ;;  %v10062_v2 = vpack.c.bf16 %v7436_v59, %v7435_v4  ;;  %v7474_v4 = vld [vmem:[#allocation19 + $0x1f8] sm:$0xff]  ;;  %v7425_v59 = vld [vmem:[#allocation19 + $0x70] sm:$0xff] }
 0xdca   : > { %v6402_v35 = vmul.f32 %v16228_v56, %v6380_v41 }
 0xdcb   : > { %6644 = vmatmul.mubr.f32.gmra.mrb[150].mxu1 %v6422_v20  ;;  %6805 = vmatmul.mubr.f32.gmra.mrb[182].mxu0 %v6422_v20  ;;  %v6401_v46 = vmul.f32 %v16228_v56, %v6379_v58  ;;  %v7419_v20 = vld [vmem:[#allocation19 + $0x40] sm:$0xff]  ;;  %v7420_v58 = vld [vmem:[#allocation19 + $0x48] sm:$0xff] }
 0xdcc   : > { %6649 = vmatprep.mubr.f32.mxu1 %v11992_v51  ;;  %6810 = vmatprep.mubr.f32.mxu0 %v11992_v51  ;;  %v6424_v15 = vadd.f32 %v16235_v49, %v6402_v35  ;;  %v10064_v41 = vpack.c.bf16 %v7420_v58, %v7419_v20  ;;  %v16355_v20 = vpack.c.bf16 %v7474_v4, %v7473_v12 }
 0xdcd   : > { %v6423_v48 = vadd.f32 %v16235_v49, %v6401_v46  ;;  %10063 = vmatprep.subr.bf16.mxu1 %v10062_v2  ;;  %v7467_v46 = vld [vmem:[#allocation19 + $0x1c0] sm:$0xff]  ;;  %v7426_v2 = vld [vmem:[#allocation19 + $0x78] sm:$0xff] }
 0xdce   : > { %10065 = vmatpush3.bf16.msra.mxu1 %v10064_v41  ;;  %18001 = vst [vmem:[#allocation90_spill] sm:$0xff] %v16355_v20  ;;  %v10076_v58 = vpack.c.bf16 %v7426_v2, %v7425_v59  ;;  %v7457_v41 = vld [vmem:[#allocation19 + $0x170] sm:$0xff] }
 0xdcf   : > { %v11305_v47 = vpop.eup %11304  ;;  %6650 = vmatmul.mubr.f32.gmra.mrb[152].mxu1 %v6423_v48  ;;  %6811 = vmatmul.mubr.f32.gmra.mrb[184].mxu0 %v6423_v48  ;;  %v7468_v48 = vld [vmem:[#allocation19 + $0x1c8] sm:$0xff] }
 0xdd0   : > { %v11307_v21 = vpop.eup %11306  ;;  %6655 = vmatprep.mubr.f32.mxu1 %v11992_v51  ;;  %6816 = vmatprep.mubr.f32.mxu0 %v11992_v51  ;;  %v6382_v18 = vmul.f32 %v11305_v47, %v16216_v28  ;;  %v16337_v35 = vpack.c.bf16 %v7468_v48, %v7467_v46  ;;  %v7451_v47 = vld [vmem:[#allocation19 + $0x140] sm:$0xff]  ;;  %v7458_v46 = vld [vmem:[#allocation19 + $0x178] sm:$0xff] }
 0xdd1   : > { %v6381_v14 = vmul.f32 %v11307_v21, %v16219_v42  ;;  %v7459_v42 = vld [vmem:[#allocation19 + $0x180] sm:$0xff]  ;;  %v7452_v21 = vld [vmem:[#allocation19 + $0x148] sm:$0xff]  ;;  %v16357_v48 = vpack.c.bf16 %v7458_v46, %v7457_v41 }
 0xdd2   : > { %v6404_v7 = vmul.f32 %v16228_v56, %v6382_v18  ;;  %v16313_v6 = vpack.c.bf16 %v7460_v32, %v7459_v42  ;;  %17995 = vst [vmem:[#allocation81_spill] sm:$0xff] %v16337_v35  ;;  %v7438_v18 = vld [vmem:[#allocation19 + $0xd8] sm:$0xff] }
 0xdd3   : > { %6656 = vmatmul.mubr.f32.gmra.mrb[154].mxu1 %v6424_v15  ;;  %6817 = vmatmul.mubr.f32.gmra.mrb[186].mxu0 %v6424_v15  ;;  %v6403_v1 = vmul.f32 %v16228_v56, %v6381_v14  ;;  %v7461_v56 = vld [vmem:[#allocation19 + $0x190] sm:$0xff]  ;;  %v16340_v15 = vpack.c.bf16 %v7452_v21, %v7451_v47  ;;  %v7422_v42 = vld [vmem:[#allocation19 + $0x58] sm:$0xff]  ;;  %18002 = vst [vmem:[#allocation97_spill] sm:$0xff] %v16357_v48  ;;  %v6493_v47 = vlaneseq }
 0xdd4   : > { %6661 = vmatprep.mubr.f32.mxu1 %v11992_v51  ;;  %6822 = vmatprep.mubr.f32.mxu0 %v11992_v51  ;;  %v6426_v28 = vadd.f32 %v16235_v49, %v6404_v7  ;;  %v16319_v29 = vpack.c.bf16 %v7462_v27, %v7461_v56  ;;  %v7437_v14 = vld [vmem:[#allocation19 + $0xd0] sm:$0xff]  ;;  %v7470_v7 = vld [vmem:[#allocation19 + $0x1d8] sm:$0xff] }
 0xdd5   : > { %v6425_v5 = vadd.f32 %v16235_v49, %v6403_v1  ;;  %10079 = vmatprep.subr.bf16.mxu0 %v16313_v6  ;;  %v7446_v49 = vld [vmem:[#allocation19 + $0x118] sm:$0xff]  ;;  %17996 = vst [vmem:[#allocation86_spill] sm:$0xff] %v16340_v15  ;;  %v7469_v1 = vld [vmem:[#allocation19 + $0x1d0] sm:$0xff]  ;;  %v6494_v21 = vshrl.u32 %v6493_v47, 7 }
 0xdd6   : > { %10081 = vmatpush3.bf16.msra.mxu0 %v16315_v36  ;;  %v16343_v32 = vpack.c.bf16 %v7470_v7, %v7469_v1  ;;  %v7454_v56 = vld [vmem:[#allocation19 + $0x158] sm:$0xff]  ;;  %v6491_v1 = vld [vmem:[%s18003_s29] sm:$0xf]  ;;  %s11834_s29 = sshll.u32 %s11993_s6, 4  ;;  %s11835_s29 = int_to_ptr.vmem [resolvable:$false] %s11834_s29 }
 0xdd7   : > { %6662 = vmatmul.mubr.f32.gmra.mrb[156].mxu1 %v6425_v5  ;;  %6823 = vmatmul.mubr.f32.gmra.mrb[188].mxu0 %v6425_v5  ;;  %v10066_v5 = vpack.c.bf16 %v7438_v18, %v7437_v14  ;;  %v16345_v27 = vpack.c.bf16 %v7454_v56, %v7453_v53  ;;  %v6495_v14 = vsub.s32 0, %v6494_v21  ;;  %v6503_v18 = vsub.s32 2, %v6494_v21  ;;  %s11836_s9 = scalar_lea.vmem %s11835_s29, 4096  ;;  %p11837_p11 = scmp.lt.s32.totalorder %s17275_s10, %s11835_s29 }
 0xdd8   : > { %6667 = vmatprep.mubr.f32.mxu1 %v11992_v51  ;;  %6828 = vmatprep.mubr.f32.mxu0 %v11992_v51  ;;  %v7445_v51 = vld [vmem:[#allocation19 + $0x110] sm:$0xff]  ;;  %17997 = vst [vmem:[#allocation85_spill] sm:$0xff] %v16343_v32  ;;  %p11838_p13 = scmp.lt.s32.totalorder %s11836_s9, %s11830_s18 }
 0xdd9   : > { %v16321_v54 = vpack.c.bf16 %v7446_v49, %v7445_v51  ;;  %10083 = vmatprep.subr.bf16.mxu0 %v16319_v29  ;;  %10067 = vmatprep.subr.bf16.mxu1 %v10066_v5  ;;  %17998 = vst [vmem:[#allocation88_spill] sm:$0xff] %v16345_v27  ;;  %v7439_v51 = vld [vmem:[#allocation19 + $0xe0] sm:$0xff]  ;;  %v7440_v49 = vld [vmem:[#allocation19 + $0xe8] sm:$0xff]  ;;  %v16365_v5 = vrot.slane %v6491_v1, %v6495_v14 }
 0xdda   : > { %v10070_v50 = vpack.c.bf16 %v7440_v49, %v7439_v51  ;;  %v16367_v7 = vrot.slane %v6491_v1, %v6503_v18  ;;  %p11839_p10 = por %p11838_p13, %p11837_p11 }
 0xddb   : > { %6668 = vmatmul.mubr.f32.gmra.mrb[158].mxu1 %v6426_v28  ;;  %6829 = vmatmul.mubr.f32.gmra.mrb[190].mxu0 %v6426_v28  ;;  %v7421_v28 = vld [vmem:[#allocation19 + $0x50] sm:$0xff] }
 0xddc   : > { %10085 = vmatpush3.bf16.msra.mxu0 %v16321_v54  ;;  %v10068_v31 = vpack.c.bf16 %v7422_v42, %v7421_v28  ;;  %v6499_v28 = vsub.s32 1, %v6494_v21  ;;  %v6507_v42 = vsub.s32 3, %v6494_v21  ;;  %p11840_p12 = pnand %p11839_p10, %p11833_p4 }
 0xddd   : > { %10087 = vmatprep.subr.bf16.mxu0 %v16325_v62 }
 0xdde   : > { %10069 = vmatpush3.bf16.msra.mxu1 %v10068_v31  ;;  %v16375_v40 = vrot.slane %v6491_v1, %v6499_v28  ;;  %v16381_v22 = vrot.slane %v6491_v1, %v6507_v42 }
 0xddf   : > { %10071 = vmatprep.subr.bf16.mxu1 %v10070_v50 }
 0xde0   : > { %10089 = vmatpush3.bf16.msra.mxu0 %v16328_v0 }
 0xde1   : > { %10091 = vmatprep.subr.bf16.mxu0 %v16331_v38 }
 0xde2   : > { %10073 = vmatpush3.bf16.msra.mxu1 %v10072_v33 }
 0xde3   : > { %10075 = vmatprep.subr.bf16.mxu1 %v10074_v8 }
 0xde4   : > { %10093 = vmatpush3.bf16.msra.mxu0 %v16333_v26 }
 0xde5   : > { %10095 = vmatprep.subr.bf16.mxu0 %v16337_v35 }
 0xde6   : > { %10077 = vmatpush3.bf16.msra.mxu1 %v10076_v58 }
 0xde7   : > { %10110 = vmatprep.subr.bf16.mxu1 %v16313_v6 }
 0xde8   : > { %10097 = vmatpush3.bf16.msra.mxu0 %v16340_v15 }
 0xde9   : > { %10099 = vmatprep.subr.bf16.mxu0 %v16343_v32 }
 0xdec   : > { %10101 = vmatpush3.bf16.msra.mxu0 %v16345_v27 }
 0xded   : > { %10103 = vmatprep.subr.bf16.mxu0 %v16349_v45 }
 0xdf0   : > { %10105 = vmatpush3.bf16.msra.mxu0 %v16351_v44 }
 0xdf1   : > { %10107 = vmatprep.subr.bf16.mxu0 %v16355_v20 }
 0xdf4   : > { %10109 = vmatpush3.bf16.msra.mxu0 %v16357_v48 }
 0xe67   : > { %v6579_v31 = vpop.f32.mrb[128].mxu1  ;;  %v6740_v53 = vpop.f32.mrb[160].mxu0 }
 0xe68   : > { %v16370_v56 = vadd.f32 %v6579_v31, %v16365_v5  ;;  %v16373_v6 = vadd.f32 %v6740_v53, %v16367_v7  ;;  %v6581_v51 = vpop.f32.mrb[129].mxu1  ;;  %v6742_v49 = vpop.f32.mrb[161].mxu0 }
 0xe69   : > { %v16385_v11 = vadd.f32 %v6581_v51, %v16375_v40  ;;  %v16389_v8 = vadd.f32 %v6742_v49, %v16381_v22 }
 0xe6a   : > { %v6835_v50 = vmul.f32 %v16370_v56, %v16370_v56  ;;  %v6837_v37 = vmul.f32 %v16373_v6, %v16373_v6 }
 0xe6b   : > { %v6585_v19 = vpop.f32.mrb[130].mxu1  ;;  %v6746_v33 = vpop.f32.mrb[162].mxu0  ;;  %v6836_v46 = vmul.f32 %v16385_v11, %v16385_v11  ;;  %v6838_v18 = vmul.f32 %v16389_v8, %v16389_v8 }
 0xe6c   : > { %v6899_v34 = vmul.f32 %v6835_v50, %v16370_v56  ;;  %v6587_v25 = vpop.f32.mrb[131].mxu1  ;;  %v6748_v52 = vpop.f32.mrb[163].mxu0  ;;  %v6901_v12 = vmul.f32 %v6837_v37, %v16373_v6  ;;  %v16394_v47 = vadd.f32 %v6585_v19, %v16365_v5  ;;  %v16397_v21 = vadd.f32 %v6746_v33, %v16367_v7 }
 0xe6d   : > { %v16402_v1 = vadd.f32 %v6587_v25, %v16375_v40  ;;  %v16405_v28 = vadd.f32 %v6748_v52, %v16381_v22  ;;  %v6900_v50 = vmul.f32 %v6836_v46, %v16385_v11  ;;  %v6902_v52 = vmul.f32 %v6838_v18, %v16389_v8 }
 0xe6e   : > { %v6963_v2 = vmul.f32 0.044715, %v6899_v34  ;;  %v6965_v14 = vmul.f32 0.044715, %v6901_v12  ;;  %v6839_v37 = vmul.f32 %v16394_v47, %v16394_v47  ;;  %v6841_v19 = vmul.f32 %v16397_v21, %v16397_v21 }
 0xe6f   : > { %v6591_v4 = vpop.f32.mrb[132].mxu1  ;;  %v6752_v59 = vpop.f32.mrb[164].mxu0  ;;  %v6840_v12 = vmul.f32 %v16402_v1, %v16402_v1  ;;  %v6964_v24 = vmul.f32 0.044715, %v6900_v50  ;;  %v6966_v43 = vmul.f32 0.044715, %v6902_v52 }
 0xe70   : > { %v6593_v58 = vpop.f32.mrb[133].mxu1  ;;  %v6754_v41 = vpop.f32.mrb[165].mxu0  ;;  %v7027_v42 = vadd.f32 %v6963_v2, %v16370_v56  ;;  %v16409_v31 = vadd.f32 %v6591_v4, %v16365_v5  ;;  %v16412_v53 = vadd.f32 %v6752_v59, %v16367_v7  ;;  %v7029_v25 = vadd.f32 %v6965_v14, %v16373_v6 }
 0xe71   : > { %v6842_v4 = vmul.f32 %v16405_v28, %v16405_v28  ;;  %v16426_v59 = vadd.f32 %v6593_v58, %v16375_v40  ;;  %v6903_v13 = vmul.f32 %v6839_v37, %v16394_v47  ;;  %v6905_v16 = vmul.f32 %v6841_v19, %v16397_v21 }
 0xe72   : > { %18004 = vst [vmem:[#allocation59_spill] sm:$0xff] %v16412_v53  ;;  %v7091_v10 = vmul.f32 0.7978846, %v7027_v42  ;;  %v6843_v30 = vmul.f32 %v16409_v31, %v16409_v31  ;;  %v6845_v14 = vmul.f32 %v16412_v53, %v16412_v53  ;;  %v16437_v58 = vadd.f32 %v6754_v41, %v16381_v22 }
 0xe73   : > { %v6597_v51 = vpop.f32.mrb[134].mxu1  ;;  %v6758_v49 = vpop.f32.mrb[166].mxu0  ;;  %v7093_v39 = vmul.f32 0.7978846, %v7029_v25  ;;  %v6904_v42 = vmul.f32 %v6840_v12, %v16402_v1  ;;  %v6906_v3 = vmul.f32 %v6842_v4, %v16405_v28  ;;  %v6844_v23 = vmul.f32 %v16426_v59, %v16426_v59 }
 0xe74   : > { %v6599_v33 = vpop.f32.mrb[135].mxu1  ;;  %v6760_v34 = vpop.f32.mrb[167].mxu0  ;;  %v16444_v55 = vadd.f32 %v6597_v51, %v16365_v5  ;;  %11308 = vtanh.f32 %v7091_v10  ;;  %v6907_v37 = vmul.f32 %v6843_v30, %v16409_v31  ;;  %v6909_v41 = vmul.f32 %v6845_v14, %v16412_v53 }
 0xe75   : > { %v7028_v52 = vadd.f32 %v6964_v24, %v16385_v11  ;;  %v6967_v12 = vmul.f32 0.044715, %v6903_v13  ;;  %v6969_v4 = vmul.f32 0.044715, %v6905_v16  ;;  %v6846_v60 = vmul.f32 %v16437_v58, %v16437_v58 }
 0xe76   : > { %18005 = vst [vmem:[#allocation95_spill] sm:$0xff] %v16444_v55  ;;  %11310 = vtanh.f32 %v7093_v39  ;;  %v7030_v51 = vadd.f32 %v6966_v43, %v16389_v8  ;;  %v6968_v61 = vmul.f32 0.044715, %v6904_v42  ;;  %v16457_v10 = vadd.f32 %v6758_v49, %v16367_v7 }
 0xe77   : > { %v6603_v2 = vpop.f32.mrb[136].mxu1  ;;  %v6764_v46 = vpop.f32.mrb[168].mxu0  ;;  %v6970_v30 = vmul.f32 0.044715, %v6906_v3  ;;  %v6908_v14 = vmul.f32 %v6844_v23, %v16426_v59  ;;  %v6847_v9 = vmul.f32 %v16444_v55, %v16444_v55  ;;  %v6971_v63 = vmul.f32 0.044715, %v6907_v37 }
 0xe78   : > { %v6605_v17 = vpop.f32.mrb[137].mxu1  ;;  %v16432_v18 = vpop.f32.mrb[169].mxu0  ;;  %18006 = vst [vmem:[#allocation99_spill] sm:$0xff] %v16457_v10  ;;  %v6973_v24 = vmul.f32 0.044715, %v6909_v41  ;;  %v16463_v13 = vadd.f32 %v6599_v33, %v16375_v40  ;;  %v7031_v39 = vadd.f32 %v6967_v12, %v16394_v47  ;;  %v7033_v43 = vadd.f32 %v6969_v4, %v16397_v21 }
 0xe79   : > { %v7092_v16 = vmul.f32 0.7978846, %v7028_v52  ;;  %v6910_v42 = vmul.f32 %v6846_v60, %v16437_v58  ;;  %v7094_v49 = vmul.f32 0.7978846, %v7030_v51  ;;  %v7032_v3 = vadd.f32 %v6968_v61, %v16402_v1 }
 0xe7a   : > { %v6849_v23 = vmul.f32 %v16457_v10, %v16457_v10  ;;  %v16472_v48 = vadd.f32 %v6760_v34, %v16381_v22  ;;  %v7034_v37 = vadd.f32 %v6970_v30, %v16405_v28  ;;  %v6972_v33 = vmul.f32 0.044715, %v6908_v14 }
 0xe7b   : > { %v6609_v50 = vpop.f32.mrb[138].mxu1  ;;  %v6770_v57 = vpop.f32.mrb[170].mxu0  ;;  %v6911_v41 = vmul.f32 %v6847_v9, %v16444_v55  ;;  %v16477_v52 = vadd.f32 %v6603_v2, %v16365_v5  ;;  %v7035_v12 = vadd.f32 %v6971_v63, %v16409_v31  ;;  %v7037_v60 = vadd.f32 %v6973_v24, %v16412_v53 }
 0xe7c   : > { %v16448_v19 = vpop.f32.mrb[139].mxu1  ;;  %v16450_v25 = vpop.f32.mrb[171].mxu0  ;;  %18007 = vst [vmem:[#allocation60_spill] sm:$0xff] %v16472_v48  ;;  %v6848_v61 = vmul.f32 %v16463_v13, %v16463_v13  ;;  %v16484_v4 = vadd.f32 %v6764_v46, %v16367_v7  ;;  %v7095_v34 = vmul.f32 0.7978846, %v7031_v39  ;;  %v6913_v9 = vmul.f32 %v6849_v23, %v16457_v10 }
 0xe7d   : > { %18008 = vst [vmem:[#allocation98_spill] sm:$0xff] %v16477_v52  ;;  %v16486_v51 = vmul.f32 0.7978846, %v7033_v43  ;;  %v6974_v30 = vmul.f32 0.044715, %v6910_v42  ;;  %v6850_v2 = vmul.f32 %v16472_v48, %v16472_v48  ;;  %v16492_v63 = vadd.f32 %v6605_v17, %v16375_v40 }
 0xe7e   : > { %18009 = vst [vmem:[#allocation106_spill] sm:$0xff] %v16484_v4  ;;  %v11309_v14 = vpop.eup %11308  ;;  %v7096_v20 = vmul.f32 0.7978846, %v7032_v3  ;;  %v7098_v24 = vmul.f32 0.7978846, %v7034_v37  ;;  %v7036_v44 = vadd.f32 %v6972_v33, %v16426_v59  ;;  %v6851_v46 = vmul.f32 %v16477_v52, %v16477_v52 }
 0xe7f   : > { %18010 = vst [vmem:[#allocation62_spill] sm:$0xff] %v16492_v63  ;;  %v6975_v45 = vmul.f32 0.044715, %v6911_v41  ;;  %v16497_v43 = vmul.f32 0.7978846, %v7035_v12  ;;  %v6912_v3 = vmul.f32 %v6848_v61, %v16463_v13  ;;  %v6853_v23 = vmul.f32 %v16484_v4, %v16484_v4 }
 0xe80   : > { %v11311_v39 = vpop.eup %11310  ;;  %v16499_v42 = vmul.f32 0.7978846, %v7037_v60  ;;  %v7219_v27 = vadd.f32 1.0, %v11309_v14  ;;  %v7038_v17 = vadd.f32 %v6974_v30, %v16437_v58  ;;  %v16507_v37 = vadd.f32 %v16432_v18, %v16381_v22 }
 0xe81   : > { %v16510_v33 = vadd.f32 %v6609_v50, %v16365_v5  ;;  %v6977_v41 = vmul.f32 0.044715, %v6913_v9  ;;  %v6914_v12 = vmul.f32 %v6850_v2, %v16472_v48  ;;  %v6852_v60 = vmul.f32 %v16492_v63, %v16492_v63 }
 0xe82   : > { %18011 = vst [vmem:[#allocation104_spill] sm:$0xff] %v16507_v37  ;;  %v16516_v61 = vadd.f32 %v6770_v57, %v16367_v7  ;;  %v7221_v32 = vadd.f32 1.0, %v11311_v39  ;;  %v7100_v14 = vmul.f32 0.7978846, %v7036_v44  ;;  %v7039_v30 = vadd.f32 %v6975_v45, %v16444_v55 }
 0xe83   : > { %18012 = vst [vmem:[#allocation111_spill] sm:$0xff] %v16510_v33  ;;  %v6915_v15 = vmul.f32 %v6851_v46, %v16477_v52  ;;  %v6976_v50 = vmul.f32 0.044715, %v6912_v3  ;;  %v6917_v9 = vmul.f32 %v6853_v23, %v16484_v4  ;;  %v16527_v2 = vadd.f32 %v16448_v19, %v16375_v40 }
 0xe84   : > { %18013 = vst [vmem:[#allocation38_spill] sm:$0xff] %v16516_v61  ;;  %11312 = vtanh.f32 %v7092_v16  ;;  %v7283_v44 = vmul.f32 0.5, %v7219_v27  ;;  %v7102_v45 = vmul.f32 0.7978846, %v7038_v17  ;;  %v6854_v46 = vmul.f32 %v16507_v37, %v16507_v37 }
 0xe85   : > { %v6855_v55 = vmul.f32 %v16510_v33, %v16510_v33  ;;  %v6916_v3 = vmul.f32 %v6852_v60, %v16492_v63  ;;  %v6857_v23 = vmul.f32 %v16516_v61, %v16516_v61  ;;  %v16542_v19 = vadd.f32 %v16450_v25, %v16381_v22 }
 0xe86   : > { %11314 = vtanh.f32 %v7094_v49  ;;  %v7041_v16 = vadd.f32 %v6977_v41, %v16457_v10  ;;  %v6978_v27 = vmul.f32 0.044715, %v6914_v12  ;;  %v6979_v17 = vmul.f32 0.044715, %v6915_v15 }
 0xe87   : > { %11316 = vtanh.f32 %v7096_v20  ;;  %v7285_v0 = vmul.f32 0.5, %v7221_v32  ;;  %v6981_v53 = vmul.f32 0.044715, %v6917_v9  ;;  %v6856_v60 = vmul.f32 %v16527_v2, %v16527_v2 }
 0xe88   : > { %11318 = vtanh.f32 %v7098_v24  ;;  %v7040_v49 = vadd.f32 %v6976_v50, %v16463_v13  ;;  %v6918_v41 = vmul.f32 %v6854_v46, %v16507_v37  ;;  %v6919_v15 = vmul.f32 %v6855_v55, %v16510_v33 }
 0xe89   : > { %11320 = vtanh.f32 %v7095_v34  ;;  %v6980_v20 = vmul.f32 0.044715, %v6916_v3  ;;  %v6921_v12 = vmul.f32 %v6857_v23, %v16516_v61  ;;  %v6858_v32 = vmul.f32 %v16542_v19, %v16542_v19 }
 0xe8a   : > { %v16520_v18 = vpop.f32.mrb[140].mxu1  ;;  %v16522_v35 = vpop.f32.mrb[172].mxu0  ;;  %11322 = vtanh.f32 %v16486_v51  ;;  %v16562_v24 = vmul.f32 0.7978846, %v7039_v30  ;;  %v7042_v9 = vadd.f32 %v6978_v27, %v16472_v48  ;;  %v7043_v10 = vadd.f32 %v6979_v17, %v16477_v52 }
 0xe8b   : > { %v16529_v57 = vpop.f32.mrb[141].mxu1  ;;  %v16531_v39 = vpop.f32.mrb[173].mxu0  ;;  %11324 = vtanh.f32 %v7100_v14  ;;  %v16570_v55 = vmul.f32 0.7978846, %v7041_v16  ;;  %v7045_v34 = vadd.f32 %v6981_v53, %v16484_v4  ;;  %v6920_v3 = vmul.f32 %v6856_v60, %v16527_v2 }
 0xe8c   : > { %11326 = vtanh.f32 %v7102_v45  ;;  %v16578_v30 = vmul.f32 0.7978846, %v7040_v49  ;;  %v6982_v27 = vmul.f32 0.044715, %v6918_v41  ;;  %v6983_v17 = vmul.f32 0.044715, %v6919_v15 }
 0xe8d   : > { %11328 = vtanh.f32 %v16497_v43  ;;  %v7044_v52 = vadd.f32 %v6980_v20, %v16492_v63  ;;  %v6985_v16 = vmul.f32 0.044715, %v6921_v12  ;;  %v6922_v48 = vmul.f32 %v6858_v32, %v16542_v19 }
 0xe8e   : > { %v16545_v26 = vpop.f32.mrb[142].mxu1  ;;  %v16547_v38 = vpop.f32.mrb[174].mxu0  ;;  %11330 = vtanh.f32 %v16499_v42  ;;  %v7347_v53 = vmul.f32 %v7283_v44, %v16370_v56  ;;  %v16585_v45 = vmul.f32 0.7978846, %v7042_v9  ;;  %v16587_v60 = vmul.f32 0.7978846, %v7043_v10 }
 0xe8f   : > { %v16551_v62 = vpop.f32.mrb[143].mxu1  ;;  %v16553_v25 = vpop.f32.mrb[175].mxu0  ;;  %v7349_v43 = vmul.f32 %v7285_v0, %v16373_v6  ;;  %v16592_v15 = vmul.f32 0.7978846, %v7045_v34  ;;  %v16594_v20 = vmul.f32 0.044715, %v6920_v3  ;;  %v16598_v12 = vadd.f32 %v16520_v18, %v16365_v5 }
 0xe90   : > { %v11313_v14 = vpop.eup %11312  ;;  %v16605_v44 = vadd.f32 %v6982_v27, %v16507_v37  ;;  %v16608_v32 = vadd.f32 %v6983_v17, %v16510_v33  ;;  %v16612_v3 = vmul.f32 0.7978846, %v7044_v52  ;;  %v16615_v18 = vadd.f32 %v6985_v16, %v16516_v61 }
 0xe91   : > { %v7220_v49 = vadd.f32 1.0, %v11313_v14  ;;  %v11315_v41 = vpop.eup %11314  ;;  %18014 = vst [vmem:[#allocation110_spill] sm:$0xff] %v16598_v12  ;;  %v16617_v14 = vmul.f32 0.044715, %v6922_v48  ;;  %v16622_v17 = vadd.f32 %v16522_v35, %v16367_v7  ;;  %v6859_v48 = vmul.f32 %v16598_v12, %v16598_v12 }
 0xe92   : > { %v16566_v50 = vpop.f32.mrb[144].mxu1  ;;  %v16568_v46 = vpop.f32.mrb[176].mxu0  ;;  %v7222_v6 = vadd.f32 1.0, %v11315_v41  ;;  %11332 = vtanh.f32 %v16578_v30 }
 0xe93   : > { %v16574_v23 = vpop.f32.mrb[145].mxu1  ;;  %v16576_v51 = vpop.f32.mrb[177].mxu0  ;;  %v7284_v0 = vmul.f32 0.5, %v7220_v49  ;;  %18017 = vst [vmem:[#allocation112_spill] sm:$0xff] %v16622_v17  ;;  %11334 = vtanh.f32 %v16585_v45  ;;  %v18023_v45 = vld [vmem:[#allocation59_spill] sm:$0xff] }
 0xe94   : > { %v11317_v10 = vpop.eup %11316  ;;  %v7286_v37 = vmul.f32 0.5, %v7222_v6  ;;  %11336 = vtanh.f32 %v16562_v24  ;;  %v18024_v24 = vld [vmem:[#allocation108_spill] sm:$0xff] }
 0xe95   : > { %v11319_v34 = vpop.eup %11318  ;;  %v7348_v27 = vmul.f32 %v7284_v0, %v16385_v11  ;;  %11338 = vtanh.f32 %v16570_v55  ;;  %v7050_v55 = vadd.f32 %v16617_v14, %v16542_v19 }
 0xe96   : > { %v16589_v4 = vpop.f32.mrb[146].mxu1  ;;  %v16600_v42 = vpop.f32.mrb[178].mxu0  ;;  %v7350_v0 = vmul.f32 %v7286_v37, %v16389_v8  ;;  %11340 = vtanh.f32 %v16612_v3 }
 0xe97   : > { %18015 = vst [vmem:[#allocation113_spill] sm:$0xff] %v16600_v42  ;;  %v16602_v56 = vpop.f32.mrb[147].mxu1  ;;  %v16610_v9 = vpop.f32.mrb[179].mxu0  ;;  %v7226_v42 = vadd.f32 1.0, %v11319_v34  ;;  %7546 = vmatprep.mubr.f32.mxu1 %v7348_v27  ;;  %v16637_v34 = vadd.f32 %v16531_v39, %v16381_v22  ;;  %v16646_v27 = vadd.f32 %v16545_v26, %v16365_v5 }
 0xe98   : > { %18016 = vst [vmem:[#allocation41_spill] sm:$0xff] %v16602_v56  ;;  %v7224_v56 = vadd.f32 1.0, %v11317_v10  ;;  %v11321_v63 = vpop.eup %11320  ;;  %v16632_v10 = vadd.f32 %v16529_v57, %v16375_v40  ;;  %7547 = vmatmul.mubr.f32.vlgmr.msra.gmra.mrb[160].mxu1 %v7347_v53  ;;  %7691 = vmatprep.mubr.f32.mxu0 %v7350_v0 }
 0xe99   : > { %v11323_v52 = vpop.eup %11322  ;;  %v7223_v16 = vadd.f32 1.0, %v11321_v63  ;;  %v7290_v35 = vmul.f32 0.5, %v7226_v42  ;;  %18021 = vst [vmem:[#allocation36_spill] sm:$0xff] %v16637_v34  ;;  %v6861_v42 = vmul.f32 %v16622_v17, %v16622_v17  ;;  %10118 = vmatpush3.bf16.msra.mxu1 %v16315_v36  ;;  %7692 = vmatmul.mubr.f32.vlgmr.msra.gmra.mrb[192].mxu0 %v7349_v43  ;;  %v6923_v36 = vmul.f32 %v6859_v48, %v16598_v12 }
 0xe9a   : > { %v16624_v49 = vpop.f32.mrb[148].mxu1  ;;  %v16626_v41 = vpop.f32.mrb[180].mxu0  ;;  %v7288_v33 = vmul.f32 0.5, %v7224_v56  ;;  %18020 = vst [vmem:[#allocation124_spill] sm:$0xff] %v16632_v10  ;;  %v7225_v6 = vadd.f32 1.0, %v11323_v52  ;;  %v16666_v43 = vadd.f32 %v16547_v38, %v16367_v7  ;;  %10111 = vmatprep.subr.bf16.mxu1 %v16319_v29 }
 0xe9b   : > { %18018 = vst [vmem:[#allocation64_spill] sm:$0xff] %v16624_v49  ;;  %18019 = vst [vmem:[#allocation51_spill] sm:$0xff] %v16626_v41  ;;  %v11325_v11 = vpop.eup %11324  ;;  %v16639_v61 = vpop.f32.mrb[149].mxu1  ;;  %v7287_v57 = vmul.f32 0.5, %v7223_v16  ;;  %v7354_v37 = vmul.f32 %v7290_v35, %v16405_v28  ;;  %v6860_v16 = vmul.f32 %v16632_v10, %v16632_v10 }
 0xe9c   : > { %v16641_v63 = vpop.f32.mrb[181].mxu0  ;;  %v11327_v56 = vpop.eup %11326  ;;  %v7352_v41 = vmul.f32 %v7288_v33, %v16402_v1  ;;  %v7228_v49 = vadd.f32 1.0, %v11325_v11  ;;  %v7289_v39 = vmul.f32 0.5, %v7225_v6 }
 0xe9d   : > { %v11329_v8 = vpop.eup %11328  ;;  %v7230_v52 = vadd.f32 1.0, %v11327_v56  ;;  %v7351_v26 = vmul.f32 %v7287_v57, %v16394_v47  ;;  %7696 = vmatprep.mubr.f32.mxu0 %v7354_v37  ;;  %v16676_v37 = vadd.f32 %v16551_v62, %v16375_v40  ;;  %10119 = vmatpush3.bf16.msra.mxu1 %v16321_v54  ;;  %v6925_v54 = vmul.f32 %v6861_v42, %v16622_v17 }
 0xe9e   : > { %v16652_v53 = vpop.f32.mrb[150].mxu1  ;;  %v16654_v1 = vpop.f32.mrb[182].mxu0  ;;  %7551 = vmatprep.mubr.f32.mxu1 %v7352_v41  ;;  %v7292_v28 = vmul.f32 0.5, %v7228_v49  ;;  %v7227_v11 = vadd.f32 1.0, %v11329_v8  ;;  %v7353_v47 = vmul.f32 %v7289_v39, %v16397_v21  ;;  %v6862_v49 = vmul.f32 %v16637_v34, %v16637_v34 }
 0xe9f   : > { %v11331_v33 = vpop.eup %11330  ;;  %v16659_v0 = vpop.f32.mrb[151].mxu1  ;;  %v7294_v6 = vmul.f32 0.5, %v7230_v52  ;;  %7552 = vmatmul.mubr.f32.gmra.mrb[162].mxu1 %v7351_v26  ;;  %v7110_v21 = vmul.f32 0.7978846, %v16605_v44  ;;  %v6924_v39 = vmul.f32 %v6860_v16, %v16632_v10  ;;  %v6863_v44 = vmul.f32 %v16646_v27, %v16646_v27 }
 0xea0   : > { %v16661_v35 = vpop.f32.mrb[183].mxu0  ;;  %v7229_v56 = vadd.f32 1.0, %v11331_v33  ;;  %v7356_v41 = vmul.f32 %v7292_v28, %v16426_v59  ;;  %v7291_v57 = vmul.f32 0.5, %v7227_v11  ;;  %7697 = vmatmul.mubr.f32.gmra.mrb[194].mxu0 %v7353_v47  ;;  %v6926_v52 = vmul.f32 %v6862_v49, %v16637_v34 }
 0xea1   : > { %v7358_v8 = vmul.f32 %v7294_v6, %v16437_v58  ;;  %v16688_v58 = vadd.f32 %v16553_v25, %v16381_v22  ;;  %v6987_v25 = vmul.f32 0.044715, %v6923_v36  ;;  %v7048_v42 = vadd.f32 %v16594_v20, %v16527_v2 }
 0xea2   : > { %v7293_v48 = vmul.f32 0.5, %v7229_v56  ;;  %v16680_v29 = vpop.f32.mrb[152].mxu1  ;;  %v16682_v38 = vpop.f32.mrb[184].mxu0  ;;  %7556 = vmatprep.mubr.f32.mxu1 %v7356_v41  ;;  %v7355_v59 = vmul.f32 %v7291_v57, %v16409_v31  ;;  %v18022_v31 = vld [vmem:[#allocation79_spill] sm:$0xff]  ;;  %v6865_v26 = vmul.f32 %v16666_v43, %v16666_v43  ;;  %v6864_v16 = vmul.f32 %v16676_v37, %v16676_v37 }
 0xea3   : > { %v16691_v62 = vpop.f32.mrb[153].mxu1  ;;  %v16693_v30 = vpop.f32.mrb[185].mxu0  ;;  %7701 = vmatprep.mubr.f32.mxu0 %v7358_v8  ;;  %10112 = vmatprep.subr.bf16.mxu1 %v18022_v31  ;;  %v6866_v20 = vmul.f32 %v16688_v58, %v16688_v58  ;;  %v16722_v36 = vadd.f32 %v16566_v50, %v16365_v5  ;;  %11342 = vtanh.f32 %v7110_v21  ;;  %v18029_v56 = vld [vmem:[#allocation107_spill] sm:$0xff]  ;;  %v16730_v47 = vmul.f32 0.7978846, %v16608_v32 }
 0xea4   : > { %7557 = vmatmul.mubr.f32.gmra.mrb[164].mxu1 %v7355_v59  ;;  %v7357_v33 = vmul.f32 %v7293_v48, %v18023_v45  ;;  %v6989_v49 = vmul.f32 0.044715, %v6925_v54  ;;  %v6927_v14 = vmul.f32 %v6863_v44, %v16646_v27  ;;  %11344 = vtanh.f32 %v16587_v60  ;;  %v18032_v54 = vld [vmem:[#allocation82_spill] sm:$0xff] }
 0xea5   : > { %10120 = vmatpush3.bf16.msra.mxu1 %v18024_v24  ;;  %v7051_v41 = vadd.f32 %v6987_v25, %v16598_v12  ;;  %v6988_v57 = vmul.f32 0.044715, %v6924_v39  ;;  %v6990_v50 = vmul.f32 0.044715, %v6926_v52  ;;  %11346 = vtanh.f32 %v16592_v15  ;;  %v11333_v52 = vpop.eup %11332 }
 0xea6   : > { %v16712_v28 = vpop.f32.mrb[154].mxu1  ;;  %v16714_v11 = vpop.f32.mrb[186].mxu0  ;;  %7702 = vmatmul.mubr.f32.gmra.mrb[196].mxu0 %v7357_v33  ;;  %10113 = vmatprep.subr.bf16.mxu1 %v18029_v56  ;;  %v16737_v8 = vmul.f32 0.7978846, %v16615_v18  ;;  %v6929_v48 = vmul.f32 %v6865_v26, %v16666_v43  ;;  %v6928_v21 = vmul.f32 %v6864_v16, %v16676_v37  ;;  %v16743_v32 = vadd.f32 %v16568_v46, %v16367_v7  ;;  %v18035_v46 = vld [vmem:[#allocation81_spill] sm:$0xff] }
 0xea7   : > { %18025 = vst [vmem:[#allocation58_spill] sm:$0xff] %v16712_v28  ;;  %18026 = vst [vmem:[#allocation128_spill] sm:$0xff] %v16714_v11  ;;  %v16724_v6 = vpop.f32.mrb[155].mxu1  ;;  %v16726_v3 = vpop.f32.mrb[187].mxu0  ;;  %v16750_v39 = vmul.f32 0.7978846, %v7048_v42  ;;  %v6930_v18 = vmul.f32 %v6866_v20, %v16688_v58  ;;  %v6867_v44 = vmul.f32 %v16722_v36, %v16722_v36  ;;  %v16763_v45 = vadd.f32 %v6989_v49, %v16622_v17 }
 0xea8   : > { %18027 = vst [vmem:[#allocation129_spill] sm:$0xff] %v16724_v6  ;;  %18028 = vst [vmem:[#allocation127_spill] sm:$0xff] %v16726_v3  ;;  %v16752_v15 = vmul.f32 0.7978846, %v7050_v55  ;;  %v16765_v33 = vmul.f32 0.044715, %v6927_v14  ;;  %v16769_v42 = vadd.f32 %v16574_v23, %v16375_v40  ;;  %v16773_v26 = vadd.f32 %v16576_v51, %v16381_v22  ;;  %v11335_v16 = vpop.eup %11334 }
 0xea9   : > { %10121 = vmatpush3.bf16.msra.mxu1 %v18032_v54  ;;  %v16775_v24 = vmul.f32 0.7978846, %v7051_v41  ;;  %v16778_v55 = vadd.f32 %v6988_v57, %v16632_v10  ;;  %v16781_v20 = vadd.f32 %v6990_v50, %v16637_v34  ;;  %v7232_v56 = vadd.f32 1.0, %v11333_v52  ;;  %v11337_v49 = vpop.eup %11336  ;;  %v18038_v41 = vld [vmem:[#allocation86_spill] sm:$0xff]  ;;  %v18049_v6 = vld [vmem:[#allocation87_spill] sm:$0xff] }
 0xeaa   : > { %v16745_v59 = vpop.f32.mrb[156].mxu1  ;;  %v16747_v60 = vpop.f32.mrb[188].mxu0  ;;  %10114 = vmatprep.subr.bf16.mxu1 %v18035_v46  ;;  %v16783_v14 = vmul.f32 0.044715, %v6929_v48  ;;  %v16785_v54 = vmul.f32 0.044715, %v6928_v21  ;;  %v6869_v51 = vmul.f32 %v16743_v32, %v16743_v32  ;;  %v6931_v52 = vmul.f32 %v6867_v44, %v16722_v36 }
 0xeab   : > { %18030 = vst [vmem:[#allocation131_spill] sm:$0xff] %v16745_v59  ;;  %18031 = vst [vmem:[#allocation133_spill] sm:$0xff] %v16747_v60  ;;  %v16757_v31 = vpop.f32.mrb[157].mxu1  ;;  %v16759_v25 = vpop.f32.mrb[189].mxu0  ;;  %v7234_v23 = vadd.f32 1.0, %v11335_v16  ;;  %v7296_v12 = vmul.f32 0.5, %v7232_v56  ;;  %11348 = vtanh.f32 %v16750_v39  ;;  %v7055_v39 = vadd.f32 %v16765_v33, %v16646_v27 }
 0xeac   : > { %18033 = vst [vmem:[#allocation130_spill] sm:$0xff] %v16757_v31  ;;  %18034 = vst [vmem:[#allocation61_spill] sm:$0xff] %v16759_v25  ;;  %v11339_v17 = vpop.eup %11338  ;;  %v16792_v57 = vmul.f32 0.044715, %v6930_v18  ;;  %v7231_v50 = vadd.f32 1.0, %v11337_v49  ;;  %v18041_v21 = vld [vmem:[#allocation85_spill] sm:$0xff]  ;;  %v6870_v18 = vmul.f32 %v16773_v26, %v16773_v26  ;;  %11350 = vtanh.f32 %v16752_v15 }
 0xead   : > { %18036 = vst [vmem:[#allocation63_spill] sm:$0xff] %v16775_v24  ;;  %10122 = vmatpush3.bf16.msra.mxu1 %v18038_v41  ;;  %v11341_v16 = vpop.eup %11340  ;;  %v7298_v25 = vmul.f32 0.5, %v7234_v23  ;;  %v7233_v10 = vadd.f32 1.0, %v11339_v17  ;;  %v7360_v44 = vmul.f32 %v7296_v12, %v16463_v13  ;;  %v18044_v23 = vld [vmem:[#allocation60_spill] sm:$0xff]  ;;  %v18045_v59 = vld [vmem:[#allocation113_spill] sm:$0xff]  ;;  %v18048_v13 = vld [vmem:[#allocation95_spill] sm:$0xff]  ;;  %11352 = vtanh.f32 %v16730_v47 }
 0xeae   : > { %v16789_v46 = vpop.f32.mrb[158].mxu1  ;;  %v16795_v34 = vpop.f32.mrb[190].mxu0  ;;  %10115 = vmatprep.subr.bf16.mxu1 %v18041_v21  ;;  %v7295_v49 = vmul.f32 0.5, %v7231_v50  ;;  %v16814_v3 = vadd.f32 %v18045_v59, %v16367_v7  ;;  %v18047_v24 = vld [vmem:[#allocation88_spill] sm:$0xff]  ;;  %v6933_v50 = vmul.f32 %v6869_v51, %v16743_v32  ;;  %v18051_v11 = vld [vmem:[#allocation62_spill] sm:$0xff]  ;;  %11354 = vtanh.f32 %v16737_v8  ;;  %v18059_v33 = vld [vmem:[#allocation97_spill] sm:$0xff] }
 0xeaf   : > { %18037 = vst [vmem:[#allocation134_spill] sm:$0xff] %v16789_v46  ;;  %18039 = vst [vmem:[#allocation39_spill] sm:$0xff] %v16795_v34  ;;  %v16797_v48 = vpop.f32.mrb[159].mxu1  ;;  %v6868_v46 = vmul.f32 %v16769_v42, %v16769_v42  ;;  %v16804_v41 = vpop.f32.mrb[191].mxu0  ;;  %v7236_v34 = vadd.f32 1.0, %v11341_v16  ;;  %v7362_v17 = vmul.f32 %v7298_v25, %v18044_v23  ;;  %v7297_v31 = vmul.f32 0.5, %v7233_v10  ;;  %7561 = vmatprep.mubr.f32.mxu1 %v7360_v44 }
 0xeb0   : > { %18040 = vst [vmem:[#allocation137_spill] sm:$0xff] %v16797_v48  ;;  %18042 = vst [vmem:[#allocation136_spill] sm:$0xff] %v16804_v41  ;;  %v11343_v56 = vpop.eup %11342  ;;  %v16809_v48 = vadd.f32 %v16589_v4, %v16365_v5  ;;  %v7359_v12 = vmul.f32 %v7295_v49, %v18048_v13  ;;  %v18050_v25 = vld [vmem:[#allocation99_spill] sm:$0xff]  ;;  %v6997_v13 = vmul.f32 0.044715, %v6933_v50  ;;  %v7057_v50 = vadd.f32 %v16783_v14, %v16666_v43 }
 0xeb1   : > { %v11345_v21 = vpop.eup %11344  ;;  %v7238_v60 = vadd.f32 1.0, %v11343_v56  ;;  %18046 = vst [vmem:[#allocation140_spill] sm:$0xff] %v16814_v3  ;;  %10123 = vmatpush3.bf16.msra.mxu1 %v18047_v24  ;;  %v7300_v16 = vmul.f32 0.5, %v7236_v34  ;;  %7706 = vmatprep.mubr.f32.mxu0 %v7362_v17  ;;  %v7361_v10 = vmul.f32 %v7297_v31, %v18050_v25  ;;  %v6932_v56 = vmul.f32 %v6868_v46, %v16769_v42  ;;  %v18052_v34 = vld [vmem:[#allocation104_spill] sm:$0xff]  ;;  %v18056_v17 = vld [vmem:[#allocation90_spill] sm:$0xff] }
 0xeb2   : > { %18043 = vst [vmem:[#allocation40_spill] sm:$0xff] %v16809_v48  ;;  %v11347_v41 = vpop.eup %11346  ;;  %v7235_v4 = vadd.f32 1.0, %v11345_v21  ;;  %10116 = vmatprep.subr.bf16.mxu1 %v18049_v6  ;;  %7562 = vmatmul.mubr.f32.gmra.mrb[166].mxu1 %v7359_v12  ;;  %v6934_v24 = vmul.f32 %v6870_v18, %v16773_v26  ;;  %v6871_v51 = vmul.f32 %v16809_v48, %v16809_v48  ;;  %v6995_v46 = vmul.f32 0.044715, %v6931_v52  ;;  %v18054_v18 = vld [vmem:[#allocation98_spill] sm:$0xff] }
 0xeb3   : > { %v7302_v23 = vmul.f32 0.5, %v7238_v60  ;;  %v7237_v59 = vadd.f32 1.0, %v11347_v41  ;;  %v7364_v44 = vmul.f32 %v7300_v16, %v18051_v11  ;;  %7707 = vmatmul.mubr.f32.gmra.mrb[198].mxu0 %v7361_v10  ;;  %v6873_v31 = vmul.f32 %v16814_v3, %v16814_v3  ;;  %v18053_v60 = vld [vmem:[#allocation92_spill] sm:$0xff]  ;;  %v18055_v11 = vld [vmem:[#allocation41_spill] sm:$0xff]  ;;  %v18057_v16 = vld [vmem:[#allocation106_spill] sm:$0xff] }
 0xeb4   : > { %v7299_v28 = vmul.f32 0.5, %v7235_v4  ;;  %v16834_v21 = vadd.f32 %v18055_v11, %v16375_v40  ;;  %v6996_v12 = vmul.f32 0.044715, %v6932_v56  ;;  %v6998_v52 = vmul.f32 0.044715, %v6934_v24 }
 0xeb5   : > { %v7366_v49 = vmul.f32 %v7302_v23, %v18052_v34  ;;  %v7301_v6 = vmul.f32 0.5, %v7237_v59  ;;  %10124 = vmatpush3.bf16.msra.mxu1 %v18053_v60  ;;  %7566 = vmatprep.mubr.f32.mxu1 %v7364_v44  ;;  %v16845_v15 = vmul.f32 0.7978846, %v16763_v45  ;;  %v6937_v25 = vmul.f32 %v6873_v31, %v16814_v3  ;;  %v18060_v59 = vld [vmem:[#allocation64_spill] sm:$0xff] }
 0xeb6   : > { %v7363_v41 = vmul.f32 %v7299_v28, %v18054_v18  ;;  %10117 = vmatprep.subr.bf16.mxu1 %v18056_v17  ;;  %v6935_v28 = vmul.f32 %v6871_v51, %v16809_v48  ;;  %v16852_v47 = vadd.f32 %v16610_v9, %v16381_v22  ;;  %v7056_v10 = vadd.f32 %v16785_v54, %v16676_v37  ;;  %v18062_v51 = vld [vmem:[#allocation51_spill] sm:$0xff] }
 0xeb7   : > { %7711 = vmatprep.mubr.f32.mxu0 %v7366_v49  ;;  %v7365_v4 = vmul.f32 %v7301_v6, %v18057_v16  ;;  %v7058_v8 = vadd.f32 %v16792_v57, %v16688_v58  ;;  %v7059_v45 = vadd.f32 %v6995_v46, %v16722_v36  ;;  %v6872_v14 = vmul.f32 %v16834_v21, %v16834_v21 }
 0xeb8   : > { %7567 = vmatmul.mubr.f32.gmra.mrb[168].mxu1 %v7363_v41  ;;  %18058 = vst [vmem:[#allocation141_spill] sm:$0xff] %v16852_v47  ;;  %v16863_v56 = vmul.f32 0.7978846, %v16778_v55  ;;  %v7061_v23 = vadd.f32 %v6997_v13, %v16743_v32  ;;  %v7060_v9 = vadd.f32 %v6996_v12, %v16769_v42  ;;  %v16869_v24 = vadd.f32 %v18060_v59, %v16365_v5  ;;  %v11349_v41 = vpop.eup %11348 }
 0xeb9   : > { %7712 = vmatmul.mubr.f32.gmra.mrb[200].mxu0 %v7365_v4  ;;  %10125 = vmatpush3.bf16.msra.mxu1 %v18059_v33  ;;  %v16872_v54 = vmul.f32 0.7978846, %v16781_v20  ;;  %v7062_v57 = vadd.f32 %v6998_v52, %v16773_v26  ;;  %v6999_v44 = vmul.f32 0.044715, %v6935_v28  ;;  %v16877_v34 = vadd.f32 %v18062_v51, %v16367_v7  ;;  %v11351_v16 = vpop.eup %11350 }
 0xeba   : > { %18061 = vst [vmem:[#allocation135_spill] sm:$0xff] %v16869_v24  ;;  %v16879_v55 = vmul.f32 0.7978846, %v7055_v39  ;;  %v16881_v49 = vmul.f32 0.7978846, %v7057_v50  ;;  %v6874_v31 = vmul.f32 %v16852_v47, %v16852_v47  ;;  %v6936_v18 = vmul.f32 %v6872_v14, %v16834_v21  ;;  %v11353_v50 = vpop.eup %11352 }
 0xebb   : > { %18063 = vst [vmem:[#allocation42_spill] sm:$0xff] %v16877_v34  ;;  %v7001_v6 = vmul.f32 0.044715, %v6937_v25  ;;  %v16885_v60 = vmul.f32 0.7978846, %v7056_v10  ;;  %v6875_v13 = vmul.f32 %v16869_v24, %v16869_v24  ;;  %v16900_v12 = vadd.f32 %v16639_v61, %v16375_v40  ;;  %v11355_v61 = vpop.eup %11354 }
 0xebc   : > { %v16887_v46 = vmul.f32 0.7978846, %v7058_v8  ;;  %v16889_v20 = vmul.f32 0.7978846, %v7059_v45  ;;  %v16892_v11 = vmul.f32 0.7978846, %v7061_v23  ;;  %v7063_v39 = vadd.f32 %v6999_v44, %v16809_v48 }
 0xebd   : > { %v16894_v17 = vmul.f32 0.7978846, %v7060_v9  ;;  %18064 = vst [vmem:[#allocation139_spill] sm:$0xff] %v16900_v12  ;;  %v16902_v4 = vmul.f32 0.7978846, %v7062_v57  ;;  %v7240_v52 = vadd.f32 1.0, %v11349_v41  ;;  %v6877_v28 = vmul.f32 %v16877_v34, %v16877_v34 }
 0xebe   : > { %v7065_v25 = vadd.f32 %v7001_v6, %v16814_v3  ;;  %v6938_v33 = vmul.f32 %v6874_v31, %v16852_v47  ;;  %v7242_v10 = vadd.f32 1.0, %v11351_v16  ;;  %v16911_v8 = vadd.f32 %v16641_v63, %v16381_v22 }
 0xebf   : > { %v7000_v45 = vmul.f32 0.044715, %v6936_v18  ;;  %v7304_v14 = vmul.f32 0.5, %v7240_v52  ;;  %v7239_v23 = vadd.f32 1.0, %v11353_v50  ;;  %v16915_v9 = vadd.f32 %v16652_v53, %v16365_v5 }
 0xec0   : > { %v7306_v59 = vmul.f32 0.5, %v7242_v10  ;;  %v7241_v57 = vadd.f32 1.0, %v11355_v61  ;;  %v6939_v44 = vmul.f32 %v6875_v13, %v16869_v24  ;;  %v6876_v51 = vmul.f32 %v16900_v12, %v16900_v12  ;;  %v18067_v13 = vld [vmem:[#allocation111_spill] sm:$0xff] }
 0xec1   : > { %18065 = vst [vmem:[#allocation125_spill] sm:$0xff] %v16915_v9  ;;  %v7368_v6 = vmul.f32 %v7304_v14, %v16527_v2  ;;  %v7303_v31 = vmul.f32 0.5, %v7239_v23  ;;  %v6941_v63 = vmul.f32 %v6877_v28, %v16877_v34  ;;  %v16924_v18 = vadd.f32 %v16654_v1, %v16367_v7 }
 0xec2   : > { %v7002_v41 = vmul.f32 0.044715, %v6938_v33  ;;  %v7370_v53 = vmul.f32 %v7306_v59, %v16542_v19  ;;  %v7305_v16 = vmul.f32 0.5, %v7241_v57  ;;  %v6878_v52 = vmul.f32 %v16911_v8, %v16911_v8  ;;  %v18070_v19 = vld [vmem:[#allocation38_spill] sm:$0xff] }
 0xec3   : > { %18066 = vst [vmem:[#allocation89_spill] sm:$0xff] %v16924_v18  ;;  %7571 = vmatprep.mubr.f32.mxu1 %v7368_v6  ;;  %v7367_v50 = vmul.f32 %v7303_v31, %v18067_v13  ;;  %v6879_v2 = vmul.f32 %v16915_v9, %v16915_v9  ;;  %v16934_v28 = vadd.f32 %v16659_v0, %v16375_v40  ;;  %v7003_v10 = vmul.f32 0.044715, %v6939_v44 }
 0xec4   : > { %v16938_v1 = vadd.f32 %v16682_v38, %v16367_v7  ;;  %7716 = vmatprep.mubr.f32.mxu0 %v7370_v53  ;;  %v7369_v33 = vmul.f32 %v7305_v16, %v18070_v19  ;;  %v6940_v61 = vmul.f32 %v6876_v51, %v16900_v12  ;;  %v16944_v14 = vadd.f32 %v16661_v35, %v16381_v22 }
 0xec5   : > { %18068 = vst [vmem:[#allocation65_spill] sm:$0xff] %v16934_v28  ;;  %7572 = vmatmul.mubr.f32.gmra.mrb[170].mxu1 %v7367_v50  ;;  %v7005_v23 = vmul.f32 0.044715, %v6941_v63  ;;  %v6881_v0 = vmul.f32 %v16924_v18, %v16924_v18  ;;  %v16950_v59 = vadd.f32 %v16680_v29, %v16365_v5  ;;  %v16954_v38 = vadd.f32 %v16691_v62, %v16375_v40 }
 0xec6   : > { %18069 = vst [vmem:[#allocation138_spill] sm:$0xff] %v16938_v1  ;;  %18071 = vst [vmem:[#allocation35_spill] sm:$0xff] %v16944_v14  ;;  %v16956_v57 = vmul.f32 0.7978846, %v7063_v39  ;;  %v7064_v44 = vadd.f32 %v7000_v45, %v16834_v21  ;;  %v7066_v35 = vadd.f32 %v7002_v41, %v16852_v47  ;;  %7717 = vmatmul.mubr.f32.gmra.mrb[202].mxu0 %v7369_v33  ;;  %v16964_v6 = vmul.f32 0.7978846, %v7065_v25 }
 0xec7   : > { %18072 = vst [vmem:[#allocation145_spill] sm:$0xff] %v16950_v59  ;;  %18073 = vst [vmem:[#allocation75_spill] sm:$0xff] %v16954_v38  ;;  %v16962_v51 = vadd.f32 %v16693_v30, %v16381_v22  ;;  %v6942_v29 = vmul.f32 %v6878_v52, %v16911_v8  ;;  %v6880_v31 = vmul.f32 %v16934_v28, %v16934_v28  ;;  %v7004_v45 = vmul.f32 0.044715, %v6940_v61  ;;  %v18080_v47 = vld [vmem:[#allocation63_spill] sm:$0xff] }
 0xec8   : > { %v6885_v62 = vmul.f32 %v16938_v1, %v16938_v1  ;;  %v7067_v39 = vadd.f32 %v7003_v10, %v16869_v24  ;;  %v6943_v63 = vmul.f32 %v6879_v2, %v16915_v9  ;;  %v6882_v41 = vmul.f32 %v16944_v14, %v16944_v14  ;;  %v18075_v2 = vld [vmem:[#allocation58_spill] sm:$0xff] }
 0xec9   : > { %18074 = vst [vmem:[#allocation144_spill] sm:$0xff] %v16962_v51  ;;  %v7069_v30 = vadd.f32 %v7005_v23, %v16877_v34  ;;  %v6945_v25 = vmul.f32 %v6881_v0, %v16924_v18  ;;  %v6883_v53 = vmul.f32 %v16950_v59, %v16950_v59  ;;  %v6884_v16 = vmul.f32 %v16954_v38, %v16954_v38  ;;  %v18077_v23 = vld [vmem:[#allocation128_spill] sm:$0xff] }
 0xeca   : > { %v16981_v52 = vmul.f32 0.7978846, %v7064_v44  ;;  %v16983_v13 = vmul.f32 0.7978846, %v7066_v35  ;;  %v6886_v50 = vmul.f32 %v16962_v51, %v16962_v51  ;;  %v16989_v19 = vadd.f32 %v18075_v2, %v16365_v5 }
 0xecb   : > { %v7006_v33 = vmul.f32 0.044715, %v6942_v29  ;;  %v6944_v10 = vmul.f32 %v6880_v31, %v16934_v28  ;;  %v6949_v61 = vmul.f32 %v6885_v62, %v16938_v1  ;;  %v16995_v0 = vadd.f32 %v18077_v23, %v16367_v7 }
 0xecc   : > { %18076 = vst [vmem:[#allocation93_spill] sm:$0xff] %v16989_v19  ;;  %v16997_v44 = vmul.f32 0.7978846, %v7067_v39  ;;  %v7068_v35 = vadd.f32 %v7004_v45, %v16900_v12  ;;  %v7007_v34 = vmul.f32 0.044715, %v6943_v63  ;;  %v6946_v24 = vmul.f32 %v6882_v41, %v16944_v14  ;;  %v18079_v39 = vld [vmem:[#allocation129_spill] sm:$0xff] }
 0xecd   : > { %18078 = vst [vmem:[#allocation73_spill] sm:$0xff] %v16995_v0  ;;  %v17001_v3 = vmul.f32 0.7978846, %v7069_v30  ;;  %v7009_v2 = vmul.f32 0.044715, %v6945_v25  ;;  %v6947_v29 = vmul.f32 %v6883_v53, %v16950_v59  ;;  %v6948_v31 = vmul.f32 %v6884_v16, %v16954_v38 }
 0xece   : > { %v6950_v62 = vmul.f32 %v6886_v50, %v16962_v51  ;;  %v6887_v23 = vmul.f32 %v16989_v19, %v16989_v19  ;;  %v17010_v48 = vadd.f32 %v18079_v39, %v16375_v40  ;;  %11356 = vtanh.f32 %v16863_v56 }
 0xecf   : > { %v7070_v45 = vadd.f32 %v7006_v33, %v16911_v8  ;;  %v7008_v63 = vmul.f32 0.044715, %v6944_v10  ;;  %v7013_v41 = vmul.f32 0.044715, %v6949_v61  ;;  %v6889_v30 = vmul.f32 %v16995_v0, %v16995_v0 }
 0xed0   : > { %v17016_v25 = vmul.f32 0.7978846, %v7068_v35  ;;  %v7071_v53 = vadd.f32 %v7007_v34, %v16915_v9  ;;  %v7010_v16 = vmul.f32 0.044715, %v6946_v24  ;;  %11358 = vtanh.f32 %v16872_v54  ;;  %v18081_v35 = vld [vmem:[#allocation127_spill] sm:$0xff] }
 0xed1   : > { %v7073_v50 = vadd.f32 %v7009_v2, %v16924_v18  ;;  %v7011_v39 = vmul.f32 0.044715, %v6947_v29  ;;  %v7012_v12 = vmul.f32 0.044715, %v6948_v31  ;;  %11360 = vtanh.f32 %v18080_v47 }
 0xed2   : > { %v7014_v56 = vmul.f32 0.044715, %v6950_v62  ;;  %v6951_v33 = vmul.f32 %v6887_v23, %v16989_v19  ;;  %v6888_v10 = vmul.f32 %v17010_v48, %v17010_v48  ;;  %11362 = vtanh.f32 %v16845_v15 }
 0xed3   : > { %v7072_v61 = vadd.f32 %v7008_v63, %v16934_v28  ;;  %v7077_v24 = vadd.f32 %v7013_v41, %v16938_v1  ;;  %v6953_v54 = vmul.f32 %v6889_v30, %v16995_v0  ;;  %11364 = vtanh.f32 %v16885_v60 }
 0xed4   : > { %v17030_v34 = vmul.f32 0.7978846, %v7070_v45  ;;  %v7074_v47 = vadd.f32 %v7010_v16, %v16944_v14  ;;  %v17035_v2 = vadd.f32 %v18081_v35, %v16381_v22  ;;  %11366 = vtanh.f32 %v16887_v46  ;;  %v18085_v35 = vld [vmem:[#allocation130_spill] sm:$0xff] }
 0xed5   : > { %v17038_v29 = vmul.f32 0.7978846, %v7071_v53  ;;  %v17040_v15 = vmul.f32 0.7978846, %v7073_v50  ;;  %v7075_v31 = vadd.f32 %v7011_v39, %v16950_v59  ;;  %v7076_v62 = vadd.f32 %v7012_v12, %v16954_v38  ;;  %v18082_v50 = vld [vmem:[#allocation131_spill] sm:$0xff]  ;;  %v18088_v38 = vld [vmem:[#allocation61_spill] sm:$0xff] }
 0xed6   : > { %v7078_v60 = vadd.f32 %v7014_v56, %v16962_v51  ;;  %v7015_v23 = vmul.f32 0.044715, %v6951_v33  ;;  %v6952_v45 = vmul.f32 %v6888_v10, %v17010_v48  ;;  %11368 = vtanh.f32 %v16879_v55  ;;  %v18083_v33 = vld [vmem:[#allocation133_spill] sm:$0xff]  ;;  %v18091_v14 = vld [vmem:[#allocation110_spill] sm:$0xff] }
 0xed7   : > { %v17047_v63 = vmul.f32 0.7978846, %v7072_v61  ;;  %v7141_v41 = vmul.f32 0.7978846, %v7077_v24  ;;  %v7017_v30 = vmul.f32 0.044715, %v6953_v54  ;;  %v6890_v16 = vmul.f32 %v17035_v2, %v17035_v2 }
 0xed8   : > { %v11357_v46 = vpop.eup %11356  ;;  %v17049_v53 = vmul.f32 0.7978846, %v7074_v47  ;;  %v17055_v12 = vadd.f32 %v18082_v50, %v16365_v5  ;;  %11370 = vtanh.f32 %v16881_v49  ;;  %v17058_v39 = vmul.f32 0.7978846, %v7075_v31 }
 0xed9   : > { %v17060_v56 = vmul.f32 0.7978846, %v7076_v62  ;;  %v7244_v55 = vadd.f32 1.0, %v11357_v46  ;;  %v17064_v10 = vadd.f32 %v18083_v33, %v16367_v7  ;;  %v17066_v24 = vmul.f32 0.7978846, %v7078_v60 }
 0xeda   : > { %v11359_v61 = vpop.eup %11358  ;;  %v17069_v54 = vadd.f32 %v7015_v23, %v16989_v19  ;;  %v17071_v47 = vmul.f32 0.044715, %v6952_v45  ;;  %v17075_v49 = vadd.f32 %v18085_v35, %v16375_v40  ;;  %11372 = vtanh.f32 %v7141_v41  ;;  %v18086_v45 = vld [vmem:[#allocation134_spill] sm:$0xff]  ;;  %v18087_v19 = vld [vmem:[#allocation124_spill] sm:$0xff] }
 0xedb   : > { %18084 = vst [vmem:[#allocation94_spill] sm:$0xff] %v17066_v24  ;;  %v11361_v31 = vpop.eup %11360  ;;  %v17078_v62 = vadd.f32 %v7017_v30, %v16995_v0  ;;  %v7308_v46 = vmul.f32 0.5, %v7244_v55  ;;  %v7246_v50 = vadd.f32 1.0, %v11359_v61  ;;  %v6954_v60 = vmul.f32 %v6890_v16, %v17035_v2 }
 0xedc   : > { %v11363_v33 = vpop.eup %11362  ;;  %v6891_v23 = vmul.f32 %v17055_v12, %v17055_v12  ;;  %v7243_v1 = vadd.f32 1.0, %v11361_v31  ;;  %v17085_v51 = vadd.f32 %v18086_v45, %v16365_v5  ;;  %v6893_v30 = vmul.f32 %v17064_v10, %v17064_v10  ;;  %v18089_v5 = vld [vmem:[#allocation36_spill] sm:$0xff] }
 0xedd   : > { %v11365_v35 = vpop.eup %11364  ;;  %v7372_v59 = vmul.f32 %v7308_v46, %v18087_v19  ;;  %v7310_v41 = vmul.f32 0.5, %v7246_v50  ;;  %v7245_v55 = vadd.f32 1.0, %v11363_v33  ;;  %v6892_v16 = vmul.f32 %v17075_v49, %v17075_v49  ;;  %v18090_v46 = vld [vmem:[#allocation137_spill] sm:$0xff] }
 0xede   : > { %v11367_v61 = vpop.eup %11366  ;;  %v7307_v0 = vmul.f32 0.5, %v7243_v1  ;;  %v17094_v31 = vadd.f32 %v18088_v38, %v16381_v22  ;;  %v7248_v18 = vadd.f32 1.0, %v11365_v35  ;;  %v17099_v50 = vadd.f32 %v18090_v46, %v16375_v40  ;;  %v18092_v35 = vld [vmem:[#allocation112_spill] sm:$0xff] }
 0xedf   : > { %7576 = vmatprep.mubr.f32.mxu1 %v7372_v59  ;;  %v7374_v45 = vmul.f32 %v7310_v41, %v18089_v5  ;;  %v7309_v9 = vmul.f32 0.5, %v7245_v55  ;;  %v7250_v19 = vadd.f32 1.0, %v11367_v61  ;;  %v6955_v1 = vmul.f32 %v6891_v23, %v17055_v12 }
 0xee0   : > { %v11369_v33 = vpop.eup %11368  ;;  %v7371_v28 = vmul.f32 %v7307_v0, %v18091_v14  ;;  %v7312_v24 = vmul.f32 0.5, %v7248_v18  ;;  %v6895_v38 = vmul.f32 %v17085_v51, %v17085_v51  ;;  %v6957_v59 = vmul.f32 %v6893_v30, %v17064_v10 }
 0xee1   : > { %7721 = vmatprep.mubr.f32.mxu0 %v7374_v45  ;;  %v7373_v41 = vmul.f32 %v7309_v9, %v18092_v35  ;;  %v7314_v55 = vmul.f32 0.5, %v7250_v19  ;;  %v7247_v61 = vadd.f32 1.0, %v11369_v33  ;;  %v6894_v40 = vmul.f32 %v17094_v31, %v17094_v31 }
 0xee2   : > { %v11371_v5 = vpop.eup %11370  ;;  %7577 = vmatmul.mubr.f32.gmra.mrb[172].mxu1 %v7371_v28  ;;  %v7376_v23 = vmul.f32 %v7312_v24, %v16676_v37  ;;  %v6896_v18 = vmul.f32 %v17099_v50, %v17099_v50  ;;  %11374 = vtanh.f32 %v16894_v17  ;;  %v6956_v14 = vmul.f32 %v6892_v16, %v17075_v49  ;;  %v18093_v16 = vld [vmem:[#allocation39_spill] sm:$0xff] }
 0xee3   : > { %7722 = vmatmul.mubr.f32.gmra.mrb[204].mxu0 %v7373_v41  ;;  %v7378_v0 = vmul.f32 %v7314_v55, %v16688_v58  ;;  %v7311_v9 = vmul.f32 0.5, %v7247_v61  ;;  %v7249_v30 = vadd.f32 1.0, %v11371_v5  ;;  %v7018_v45 = vmul.f32 0.044715, %v6954_v60 }
 0xee4   : > { %v7019_v19 = vmul.f32 0.044715, %v6955_v1  ;;  %7581 = vmatprep.mubr.f32.mxu1 %v7376_v23  ;;  %v6959_v28 = vmul.f32 %v6895_v38, %v17085_v51  ;;  %11376 = vtanh.f32 %v16902_v4  ;;  %v17117_v37 = vpop.eup %11372  ;;  %v7021_v24 = vmul.f32 0.044715, %v6957_v59  ;;  %v18094_v59 = vld [vmem:[#allocation136_spill] sm:$0xff] }
 0xee5   : > { %7726 = vmatprep.mubr.f32.mxu0 %v7378_v0  ;;  %v7375_v17 = vmul.f32 %v7311_v9, %v16646_v27  ;;  %v7313_v46 = vmul.f32 0.5, %v7249_v30  ;;  %11378 = vtanh.f32 %v16889_v20  ;;  %v6958_v58 = vmul.f32 %v6894_v40, %v17094_v31 }
 0xee6   : > { %v17124_v60 = vadd.f32 %v18093_v16, %v16367_v7  ;;  %v6960_v33 = vmul.f32 %v6896_v18, %v17099_v50  ;;  %11380 = vtanh.f32 %v16892_v11  ;;  %v7080_v4 = vadd.f32 %v17071_v47, %v17010_v48 }
 0xee7   : > { %v7020_v1 = vmul.f32 0.044715, %v6956_v14  ;;  %7582 = vmatmul.mubr.f32.gmra.mrb[174].mxu1 %v7375_v17  ;;  %v7377_v27 = vmul.f32 %v7313_v46, %v16666_v43  ;;  %11382 = vtanh.f32 %v16981_v52  ;;  %v7082_v20 = vadd.f32 %v7018_v45, %v17035_v2 }
 0xee8   : > { %v7023_v38 = vmul.f32 0.044715, %v6959_v28  ;;  %v17135_v7 = vadd.f32 %v18094_v59, %v16381_v22  ;;  %11384 = vtanh.f32 %v16983_v13  ;;  %v17139_v11 = vmul.f32 0.7978846, %v17069_v54 }
 0xee9   : > { %v7083_v47 = vadd.f32 %v7019_v19, %v17055_v12  ;;  %v7085_v35 = vadd.f32 %v7021_v24, %v17064_v10  ;;  %7727 = vmatmul.mubr.f32.gmra.mrb[206].mxu0 %v7377_v27  ;;  %11386 = vtanh.f32 %v16956_v57  ;;  %v7022_v43 = vmul.f32 0.044715, %v6958_v58 }
 0xeea   : > { %v6897_v52 = vmul.f32 %v17124_v60, %v17124_v60  ;;  %v7024_v41 = vmul.f32 0.044715, %v6960_v33  ;;  %11388 = vtanh.f32 %v16964_v6  ;;  %v17148_v22 = vmul.f32 0.7978846, %v17078_v62 }
 0xeeb   : > { %v7144_v13 = vmul.f32 0.7978846, %v7080_v4  ;;  %v7084_v54 = vadd.f32 %v7020_v1, %v17075_v49  ;;  %11390 = vtanh.f32 %v17016_v25  ;;  %v17152_v61 = vmul.f32 0.7978846, %v7082_v20 }
 0xeec   : > { %v11375_v55 = vpop.eup %11374  ;;  %v7087_v57 = vadd.f32 %v7023_v38, %v17085_v51  ;;  %v6898_v5 = vmul.f32 %v17135_v7, %v17135_v7  ;;  %11392 = vtanh.f32 %v17030_v34  ;;  %v7147_v40 = vmul.f32 0.7978846, %v7083_v47 }
 0xeed   : > { %v17158_v6 = vmul.f32 0.7978846, %v7085_v35  ;;  %v7252_v62 = vadd.f32 1.0, %v11375_v55  ;;  %11394 = vtanh.f32 %v16997_v44  ;;  %v17162_v18 = vadd.f32 %v7022_v43, %v17094_v31 }
 0xeee   : > { %v11377_v23 = vpop.eup %11376  ;;  %v17165_v25 = vmul.f32 %v6897_v52, %v17124_v60  ;;  %v7088_v14 = vadd.f32 %v7024_v41, %v17099_v50  ;;  %11396 = vtanh.f32 %v17001_v3  ;;  %v7148_v9 = vmul.f32 0.7978846, %v7084_v54  ;;  %v18095_v41 = vld [vmem:[#allocation141_spill] sm:$0xff] }
 0xeef   : > { %v11379_v0 = vpop.eup %11378  ;;  %v7316_v34 = vmul.f32 0.5, %v7252_v62  ;;  %v7254_v30 = vadd.f32 1.0, %v11377_v23  ;;  %11398 = vtanh.f32 %v17047_v63  ;;  %v17170_v19 = vmul.f32 0.7978846, %v7087_v57 }
 0xef0   : > { %v11381_v45 = vpop.eup %11380  ;;  %v6962_v44 = vmul.f32 %v6898_v5, %v17135_v7  ;;  %v7251_v28 = vadd.f32 1.0, %v11379_v0  ;;  %11400 = vtanh.f32 %v17049_v53  ;;  %v7152_v16 = vmul.f32 0.7978846, %v7088_v14 }
 0xef1   : > { %v11383_v24 = vpop.eup %11382  ;;  %v7380_v17 = vmul.f32 %v7316_v34, %v16769_v42  ;;  %v7318_v46 = vmul.f32 0.5, %v7254_v30  ;;  %v7253_v58 = vadd.f32 1.0, %v11381_v45  ;;  %11402 = vtanh.f32 %v17038_v29  ;;  %v18098_v45 = vld [vmem:[#allocation139_spill] sm:$0xff] }
 0xef2   : > { %v11385_v3 = vpop.eup %11384  ;;  %v7315_v33 = vmul.f32 0.5, %v7251_v28  ;;  %v7256_v4 = vadd.f32 1.0, %v11383_v24  ;;  %11404 = vtanh.f32 %v17040_v15  ;;  %v7026_v30 = vmul.f32 0.044715, %v6962_v44  ;;  %v18100_v44 = vld [vmem:[#allocation94_spill] sm:$0xff] }
 0xef3   : > { %v11387_v63 = vpop.eup %11386  ;;  %7586 = vmatprep.mubr.f32.mxu1 %v7380_v17  ;;  %v7382_v1 = vmul.f32 %v7318_v46, %v16773_v26  ;;  %v7317_v27 = vmul.f32 0.5, %v7253_v58  ;;  %v7258_v20 = vadd.f32 1.0, %v11385_v3  ;;  %11406 = vtanh.f32 %v17060_v56 }
 0xef4   : > { %v11389_v53 = vpop.eup %11388  ;;  %v7379_v42 = vmul.f32 %v7315_v33, %v16722_v36  ;;  %v7320_v38 = vmul.f32 0.5, %v7256_v4  ;;  %v7255_v59 = vadd.f32 1.0, %v11387_v63  ;;  %11408 = vtanh.f32 %v17058_v39  ;;  %v18099_v33 = vld [vmem:[#allocation135_spill] sm:$0xff] }
 0xef5   : > { %v11391_v29 = vpop.eup %11390  ;;  %7731 = vmatprep.mubr.f32.mxu0 %v7382_v1  ;;  %v7381_v47 = vmul.f32 %v7317_v27, %v16743_v32  ;;  %v7322_v15 = vmul.f32 0.5, %v7258_v20  ;;  %v7257_v35 = vadd.f32 1.0, %v11389_v53  ;;  %11410 = vtanh.f32 %v7144_v13  ;;  %v18096_v32 = vld [vmem:[#allocation40_spill] sm:$0xff]  ;;  %v18101_v20 = vld [vmem:[#allocation42_spill] sm:$0xff] }
 0xef6   : > { %v11393_v43 = vpop.eup %11392  ;;  %7587 = vmatmul.mubr.f32.gmra.mrb[176].mxu1 %v7379_v42  ;;  %v7384_v26 = vmul.f32 %v7320_v38, %v16834_v21  ;;  %v7319_v52 = vmul.f32 0.5, %v7255_v59  ;;  %v7260_v56 = vadd.f32 1.0, %v11391_v29  ;;  %11412 = vtanh.f32 %v17139_v11  ;;  %v18097_v21 = vld [vmem:[#allocation140_spill] sm:$0xff] }
 0xef7   : > { %v11395_v36 = vpop.eup %11394  ;;  %7732 = vmatmul.mubr.f32.gmra.mrb[208].mxu0 %v7381_v47  ;;  %v7386_v54 = vmul.f32 %v7322_v15, %v18095_v41  ;;  %v7321_v39 = vmul.f32 0.5, %v7257_v35  ;;  %v7262_v55 = vadd.f32 1.0, %v11393_v43  ;;  %11414 = vtanh.f32 %v7148_v9  ;;  %v18104_v41 = vld [vmem:[#allocation125_spill] sm:$0xff] }
 0xef8   : > { %v11397_v57 = vpop.eup %11396  ;;  %7591 = vmatprep.mubr.f32.mxu1 %v7384_v26  ;;  %v7383_v5 = vmul.f32 %v7319_v52, %v18096_v32  ;;  %v7324_v13 = vmul.f32 0.5, %v7260_v56  ;;  %v7259_v62 = vadd.f32 1.0, %v11395_v36  ;;  %11416 = vtanh.f32 %v7147_v40  ;;  %v18103_v26 = vld [vmem:[#allocation35_spill] sm:$0xff]  ;;  %v18105_v32 = vld [vmem:[#allocation89_spill] sm:$0xff] }
 0xef9   : > { %v11399_v23 = vpop.eup %11398  ;;  %7736 = vmatprep.mubr.f32.mxu0 %v7386_v54  ;;  %v7385_v14 = vmul.f32 %v7321_v39, %v18097_v21  ;;  %v7326_v0 = vmul.f32 0.5, %v7262_v55  ;;  %v7261_v11 = vadd.f32 1.0, %v11397_v57  ;;  %11418 = vtanh.f32 %v7152_v16  ;;  %v18106_v21 = vld [vmem:[#allocation75_spill] sm:$0xff] }
 0xefa   : > { %v11401_v34 = vpop.eup %11400  ;;  %7592 = vmatmul.mubr.f32.gmra.mrb[178].mxu1 %v7383_v5  ;;  %v7388_v28 = vmul.f32 %v7324_v13, %v18098_v45  ;;  %v7323_v9 = vmul.f32 0.5, %v7259_v62  ;;  %v7264_v24 = vadd.f32 1.0, %v11399_v23  ;;  %11420 = vtanh.f32 %v17170_v19  ;;  %v18102_v19 = vld [vmem:[#allocation65_spill] sm:$0xff] }
 0xefb   : > { %v11403_v17 = vpop.eup %11402  ;;  %7737 = vmatmul.mubr.f32.gmra.mrb[210].mxu0 %v7385_v14  ;;  %v7390_v46 = vmul.f32 %v7326_v0, %v16911_v8  ;;  %v7325_v58 = vmul.f32 0.5, %v7261_v11  ;;  %v7266_v40 = vadd.f32 1.0, %v11401_v34  ;;  %11422 = vtanh.f32 %v18100_v44 }
 0xefc   : > { %v11405_v3 = vpop.eup %11404  ;;  %7596 = vmatprep.mubr.f32.mxu1 %v7388_v28  ;;  %v7387_v4 = vmul.f32 %v7323_v9, %v18099_v33  ;;  %v7328_v16 = vmul.f32 0.5, %v7264_v24  ;;  %v7263_v63 = vadd.f32 1.0, %v11403_v17  ;;  %v7025_v27 = vmul.f32 0.044715, %v17165_v25 }
 0xefd   : > { %v11407_v1 = vpop.eup %11406  ;;  %7741 = vmatprep.mubr.f32.mxu0 %v7390_v46  ;;  %v7389_v53 = vmul.f32 %v7325_v58, %v18101_v20  ;;  %v7330_v42 = vmul.f32 0.5, %v7266_v40  ;;  %v7265_v8 = vadd.f32 1.0, %v11405_v3  ;;  %v7150_v59 = vmul.f32 0.7978846, %v17162_v18 }
 0xefe   : > { %v11409_v38 = vpop.eup %11408  ;;  %7597 = vmatmul.mubr.f32.gmra.mrb[180].mxu1 %v7387_v4  ;;  %v7392_v29 = vmul.f32 %v7328_v16, %v18102_v19  ;;  %v7327_v47 = vmul.f32 0.5, %v7263_v63  ;;  %v7268_v15 = vadd.f32 1.0, %v11407_v1  ;;  %v7090_v43 = vadd.f32 %v7026_v30, %v17135_v7  ;;  %v18108_v4 = vld [vmem:[#allocation93_spill] sm:$0xff] }
 0xeff   : > { %v11411_v35 = vpop.eup %11410  ;;  %7742 = vmatmul.mubr.f32.gmra.mrb[212].mxu0 %v7389_v53  ;;  %v7394_v52 = vmul.f32 %v7330_v42, %v18103_v26  ;;  %v7329_v25 = vmul.f32 0.5, %v7265_v8  ;;  %v7267_v56 = vadd.f32 1.0, %v11409_v38  ;;  %11424 = vtanh.f32 %v17152_v61  ;;  %v18107_v61 = vld [vmem:[#allocation145_spill] sm:$0xff] }
 0xf00   : > { %v11413_v36 = vpop.eup %11412  ;;  %7601 = vmatprep.mubr.f32.mxu1 %v7392_v29  ;;  %v7391_v54 = vmul.f32 %v7327_v47, %v18104_v41  ;;  %v7332_v39 = vmul.f32 0.5, %v7268_v15  ;;  %v7272_v55 = vadd.f32 1.0, %v11411_v35  ;;  %v7089_v57 = vadd.f32 %v7025_v27, %v17124_v60  ;;  %v18109_v15 = vld [vmem:[#allocation144_spill] sm:$0xff] }
 0xf01   : > { %v11415_v18 = vpop.eup %11414  ;;  %7746 = vmatprep.mubr.f32.mxu0 %v7394_v52  ;;  %v7393_v5 = vmul.f32 %v7329_v25, %v18105_v32  ;;  %v7331_v13 = vmul.f32 0.5, %v7267_v56  ;;  %v7271_v62 = vadd.f32 1.0, %v11413_v36  ;;  %11426 = vtanh.f32 %v17148_v22 }
 0xf02   : > { %v11417_v23 = vpop.eup %11416  ;;  %7602 = vmatmul.mubr.f32.gmra.mrb[182].mxu1 %v7391_v54  ;;  %v7396_v14 = vmul.f32 %v7332_v39, %v18106_v21  ;;  %v7336_v0 = vmul.f32 0.5, %v7272_v55  ;;  %v7276_v11 = vadd.f32 1.0, %v11415_v18  ;;  %v7154_v30 = vmul.f32 0.7978846, %v7090_v43  ;;  %v17224_v21 = vld [vmem:[%s18112_s17] ss:$0 sm:$0xff] }
 0xf03   : > { %v11419_v34 = vpop.eup %11418  ;;  %7747 = vmatmul.mubr.f32.gmra.mrb[214].mxu0 %v7393_v5  ;;  %v7395_v45 = vmul.f32 %v7331_v13, %v18107_v61  ;;  %v7335_v28 = vmul.f32 0.5, %v7271_v62  ;;  %11428 = vtanh.f32 %v7150_v59  ;;  %v7275_v17 = vadd.f32 1.0, %v11417_v23 }
 0xf04   : > { %7606 = vmatprep.mubr.f32.mxu1 %v7396_v14  ;;  %v7400_v9 = vmul.f32 %v7336_v0, %v17010_v48  ;;  %v7340_v24 = vmul.f32 0.5, %v7276_v11  ;;  %v7280_v46 = vadd.f32 1.0, %v11419_v34  ;;  %v11421_v58 = vpop.eup %11420  ;;  %v7153_v3 = vmul.f32 0.7978846, %v7089_v57 }
 0xf05   : > { %v11423_v40 = vpop.eup %11422  ;;  %11430 = vtanh.f32 %v17158_v6  ;;  %v7399_v16 = vmul.f32 %v7335_v28, %v18108_v4  ;;  %v7339_v63 = vmul.f32 0.5, %v7275_v17  ;;  %v7279_v44 = vadd.f32 1.0, %v11421_v58 }
 0xf06   : > { %7607 = vmatmul.mubr.f32.gmra.mrb[184].mxu1 %v7395_v45  ;;  %v7404_v22 = vmul.f32 %v7340_v24, %v17075_v49  ;;  %v7344_v33 = vmul.f32 0.5, %v7280_v46  ;;  %11432 = vtanh.f32 %v7154_v30  ;;  %v7270_v1 = vadd.f32 1.0, %v11423_v40 }
 0xf07   : > { %7611 = vmatprep.mubr.f32.mxu1 %v7400_v9  ;;  %11434 = vtanh.f32 %v7153_v3  ;;  %v7269_v53 = vadd.f32 1.0, %v17117_v37  ;;  %v7403_v49 = vmul.f32 %v7339_v63, %v17055_v12  ;;  %v7343_v42 = vmul.f32 0.5, %v7279_v44  ;;  %v18110_v37 = vld [vmem:[#allocation138_spill] sm:$0xff] }
 0xf08   : > { %v7408_v27 = vmul.f32 %v7344_v33, %v17099_v50  ;;  %v7334_v6 = vmul.f32 0.5, %v7270_v1  ;;  %v18113_v9 = vld [vmem:[#allocation114_spill] sm:$0xff] }
 0xf09   : > { %v11425_v48 = vpop.eup %11424  ;;  %v7333_v59 = vmul.f32 0.5, %v7269_v53  ;;  %v7407_v19 = vmul.f32 %v7343_v42, %v17085_v51  ;;  %v18111_v51 = vld [vmem:[#allocation73_spill] sm:$0xff] }
 0xf0a   : > { %7612 = vmatmul.mubr.f32.gmra.mrb[186].mxu1 %v7399_v16  ;;  %v7274_v38 = vadd.f32 1.0, %v11425_v48  ;;  %v7398_v35 = vmul.f32 %v7334_v6, %v18109_v15  ;;  %v18114_v16 = vld [vmem:[#allocation109_spill] sm:$0xff] }
 0xf0b   : > { %7616 = vmatprep.mubr.f32.mxu1 %v7404_v22  ;;  %v11427_v20 = vpop.eup %11426  ;;  %v7397_v12 = vmul.f32 %v7333_v59, %v18110_v37 }
 0xf0c   : > { %v7273_v29 = vadd.f32 1.0, %v11427_v20  ;;  %v7338_v50 = vmul.f32 0.5, %v7274_v38 }
 0xf0d   : > { %v11429_v8 = vpop.eup %11428 }
 0xf0e   : > { %7617 = vmatmul.mubr.f32.gmra.mrb[188].mxu1 %v7403_v49  ;;  %v7278_v43 = vadd.f32 1.0, %v11429_v8  ;;  %v7337_v52 = vmul.f32 0.5, %v7273_v29  ;;  %v7402_v36 = vmul.f32 %v7338_v50, %v17035_v2 }
 0xf0f   : > { %7621 = vmatprep.mubr.f32.mxu1 %v7408_v27  ;;  %v11431_v47 = vpop.eup %11430  ;;  %v18115_v27 = vld [vmem:[#allocation123_spill] sm:$0xff] }
 0xf10   : > { %v11433_v26 = vpop.eup %11432  ;;  %v7277_v25 = vadd.f32 1.0, %v11431_v47  ;;  %v7342_v41 = vmul.f32 0.5, %v7278_v43  ;;  %v7401_v39 = vmul.f32 %v7337_v52, %v18111_v51 }
 0xf11   : > { %v11435_v56 = vpop.eup %11434  ;;  %v7282_v54 = vadd.f32 1.0, %v11433_v26  ;;  %v18116_v26 = vld [vmem:[#allocation115_spill] sm:$0xff] }
 0xf12   : > { %7622 = vmatmul.mubr.f32.gmra.mrb[190].mxu1 %v7407_v19  ;;  %v7341_v55 = vmul.f32 0.5, %v7277_v25  ;;  %v7281_v18 = vadd.f32 1.0, %v11435_v56  ;;  %v7406_v57 = vmul.f32 %v7342_v41, %v17094_v31  ;;  %v18117_v25 = vld [vmem:[#allocation117_spill] sm:$0xff] }
 0xf13   : > { %7751 = vmatprep.mubr.f32.mxu1 %v7398_v35  ;;  %v7346_v32 = vmul.f32 0.5, %v7282_v54 }
 0xf14   : > { %v7405_v5 = vmul.f32 %v7341_v55, %v17064_v10  ;;  %v7345_v13 = vmul.f32 0.5, %v7281_v18 }
 0xf15   : > { %v7410_v62 = vmul.f32 %v7346_v32, %v17135_v7  ;;  %v18118_v32 = vld [vmem:[#allocation116_spill] sm:$0xff] }
 0xf16   : > { %7752 = vmatmul.mubr.f32.vlgmr.msra.gmra.mrb[192].mxu1 %v7397_v12  ;;  %v7409_v2 = vmul.f32 %v7345_v13, %v17124_v60 }
 0xf17   : > { %7756 = vmatprep.mubr.f32.mxu1 %v7402_v36 }
 0xf1a   : > { %7757 = vmatmul.mubr.f32.gmra.mrb[194].mxu1 %v7401_v39 }
 0xf1b   : > { %7761 = vmatprep.mubr.f32.mxu1 %v7406_v57 }
 0xf1e   : > { %7762 = vmatmul.mubr.f32.gmra.mrb[196].mxu1 %v7405_v5 }
 0xf1f   : > { %7766 = vmatprep.mubr.f32.mxu1 %v7410_v62 }
 0xf22   : > { %7767 = vmatmul.mubr.f32.gmra.mrb[198].mxu1 %v7409_v2 }
 0xf6b   : > { %v9134_v23 = vpop.f32.mrb[160].mxu1 }
 0xf6c   : > { %v9135_v31 = vpop.f32.mrb[161].mxu1  ;;  %v9214_v14 = vpop.f32.mrb[192].mxu0 }
 0xf6d   : > { %v9136_v0 = vadd.f32 %v9135_v31, %v9134_v23  ;;  %v9215_v11 = vpop.f32.mrb[193].mxu0 }
 0xf6e   : > { %v9216_v34 = vadd.f32 %v9215_v11, %v9214_v14 }
 0xf6f   : > { %v7549_v10 = vadd.f32 %v9136_v0, %v17224_v21 }
 0xf71   : > { %v7694_v61 = vadd.f32 %v9216_v34, %v7549_v10 }
 0xf72   : > { %v9137_v7 = vpop.f32.mrb[162].mxu1 }
 0xf73   : > { %v9138_v30 = vpop.f32.mrb[163].mxu1  ;;  %v9217_v45 = vpop.f32.mrb[194].mxu0  ;;  %v7772_v24 = vadd.f32 %v7694_v61, %v18113_v9  ;;  %v18119_v61 = vld [vmem:[#allocation126_spill] sm:$0xff] }
 0xf74   : > { %v9139_v60 = vadd.f32 %v9138_v30, %v9137_v7  ;;  %v9218_v28 = vpop.f32.mrb[195].mxu0 }
 0xf75   : > { %v9219_v46 = vadd.f32 %v9218_v28, %v9217_v45  ;;  %7788 = vst [vmem:[%s12536_s4] sm:$0xff] %v7772_v24 }
 0xf76   : > { %v7554_v17 = vadd.f32 %v9139_v60, %v17224_v21 }
 0xf77   : > { %v9140_v58 = vpop.f32.mrb[164].mxu1 }
 0xf78   : > { %v9141_v40 = vpop.f32.mrb[165].mxu1  ;;  %v7699_v3 = vadd.f32 %v9219_v46, %v7554_v17  ;;  %v18120_v17 = vld [vmem:[#allocation118_spill] sm:$0xff] }
 0xf79   : > { %v9220_v22 = vpop.f32.mrb[196].mxu0  ;;  %v9142_v33 = vadd.f32 %v9141_v40, %v9140_v58 }
 0xf7a   : > { %v9221_v4 = vpop.f32.mrb[197].mxu0  ;;  %v7773_v63 = vadd.f32 %v7699_v3, %v18114_v16 }
 0xf7b   : > { %v7559_v44 = vadd.f32 %v9142_v33, %v17224_v21  ;;  %v9222_v1 = vadd.f32 %v9221_v4, %v9220_v22 }
 0xf7c   : > { %7789 = vst [vmem:[%s12536_s4 + $0x8] sm:$0xff] %v7773_v63 }
 0xf7d   : > { %v7704_v48 = vadd.f32 %v9222_v1, %v7559_v44 }
 0xf7f   : > { %v7774_v20 = vadd.f32 %v7704_v48, %v18115_v27 }
 0xf81   : > { %7790 = vst [vmem:[%s12536_s4 + $0x10] sm:$0xff] %v7774_v20 }
 0xf85   : > { %v9143_v53 = vpop.f32.mrb[166].mxu1 }
 0xf86   : > { %v9223_v49 = vpop.f32.mrb[198].mxu0  ;;  %v9144_v42 = vpop.f32.mrb[167].mxu1 }
 0xf87   : > { %v9145_v8 = vadd.f32 %v9144_v42, %v9143_v53  ;;  %v9224_v6 = vpop.f32.mrb[199].mxu0 }
 0xf88   : > { %v9225_v38 = vadd.f32 %v9224_v6, %v9223_v49  ;;  %v18121_v49 = vld [vmem:[#allocation83_spill] sm:$0xff] }
 0xf89   : > { %v7564_v59 = vadd.f32 %v9145_v8, %v17224_v21 }
 0xf8b   : > { %v9146_v19 = vpop.f32.mrb[168].mxu1  ;;  %v7709_v15 = vadd.f32 %v9225_v38, %v7564_v59 }
 0xf8c   : > { %v9226_v29 = vpop.f32.mrb[200].mxu0  ;;  %v9147_v47 = vpop.f32.mrb[169].mxu1 }
 0xf8d   : > { %v9148_v35 = vadd.f32 %v9147_v47, %v9146_v19  ;;  %v9227_v50 = vpop.f32.mrb[201].mxu0  ;;  %v7775_v37 = vadd.f32 %v7709_v15, %v18116_v26 }
 0xf8e   : > { %v9228_v43 = vadd.f32 %v9227_v50, %v9226_v29 }
 0xf8f   : > { %v7569_v12 = vadd.f32 %v9148_v35, %v17224_v21  ;;  %7791 = vst [vmem:[%s12536_s4 + $0x18] sm:$0xff] %v7775_v37  ;;  %v18122_v35 = vld [vmem:[#allocation132_spill] sm:$0xff] }
 0xf91   : > { %v7714_v52 = vadd.f32 %v9228_v43, %v7569_v12 }
 0xf93   : > { %v7776_v56 = vadd.f32 %v7714_v52, %v18117_v25 }
 0xf95   : > { %7792 = vst [vmem:[%s12536_s4 + $0x20] sm:$0xff] %v7776_v56 }
 0xf98   : > { %v9149_v36 = vpop.f32.mrb[170].mxu1 }
 0xf99   : > { %v9229_v41 = vpop.f32.mrb[202].mxu0  ;;  %v9150_v54 = vpop.f32.mrb[171].mxu1 }
 0xf9a   : > { %v9151_v51 = vadd.f32 %v9150_v54, %v9149_v36  ;;  %v9230_v39 = vpop.f32.mrb[203].mxu0 }
 0xf9b   : > { %v9231_v55 = vadd.f32 %v9230_v39, %v9229_v41  ;;  %v18123_v41 = vld [vmem:[#allocation120_spill] sm:$0xff] }
 0xf9c   : > { %v7574_v18 = vadd.f32 %v9151_v51, %v17224_v21 }
 0xf9e   : > { %v7719_v57 = vadd.f32 %v9231_v55, %v7574_v18 }
 0xfa0   : > { %v7777_v5 = vadd.f32 %v7719_v57, %v18118_v32  ;;  %v18124_v32 = vld [vmem:[#allocation84_spill] sm:$0xff] }
 0xfa2   : > { %7793 = vst [vmem:[%s12536_s4 + $0x28] sm:$0xff] %v7777_v5 }
 0xfb5   : > { %v9152_v13 = vpop.f32.mrb[172].mxu1 }
 0xfb6   : > { %v9232_v62 = vpop.f32.mrb[204].mxu0  ;;  %v9153_v2 = vpop.f32.mrb[173].mxu1 }
 0xfb7   : > { %v9154_v23 = vadd.f32 %v9153_v2, %v9152_v13  ;;  %v9233_v31 = vpop.f32.mrb[205].mxu0 }
 0xfb8   : > { %v9234_v14 = vadd.f32 %v9233_v31, %v9232_v62 }
 0xfb9   : > { %v7579_v0 = vadd.f32 %v9154_v23, %v17224_v21 }
 0xfba   : > { %v9155_v11 = vpop.f32.mrb[174].mxu1 }
 0xfbb   : > { %v7724_v10 = vadd.f32 %v9234_v14, %v7579_v0  ;;  %v9156_v34 = vpop.f32.mrb[175].mxu1 }
 0xfbc   : > { %v9235_v7 = vpop.f32.mrb[206].mxu0  ;;  %v9157_v30 = vadd.f32 %v9156_v34, %v9155_v11 }
 0xfbd   : > { %v7778_v45 = vadd.f32 %v7724_v10, %v18119_v61  ;;  %v9236_v60 = vpop.f32.mrb[207].mxu0 }
 0xfbe   : > { %v7584_v28 = vadd.f32 %v9157_v30, %v17224_v21  ;;  %v9237_v9 = vadd.f32 %v9236_v60, %v9235_v7 }
 0xfbf   : > { %7794 = vst [vmem:[%s12536_s4 + $0x30] sm:$0xff] %v7778_v45 }
 0xfc0   : > { %v7729_v24 = vadd.f32 %v9237_v9, %v7584_v28 }
 0xfc2   : > { %v7779_v46 = vadd.f32 %v7729_v24, %v18120_v17  ;;  %v18126_v24 = vld [vmem:[#allocation80_spill] sm:$0xff] }
 0xfc4   : > { %7795 = vst [vmem:[%s12536_s4 + $0x38] sm:$0xff] %v7779_v46 }
 0xfc9   : > { %v9158_v58 = vpop.f32.mrb[176].mxu1 }
 0xfca   : > { %v9238_v40 = vpop.f32.mrb[208].mxu0  ;;  %v9159_v3 = vpop.f32.mrb[177].mxu1 }
 0xfcb   : > { %v9160_v22 = vadd.f32 %v9159_v3, %v9158_v58  ;;  %v9239_v33 = vpop.f32.mrb[209].mxu0 }
 0xfcc   : > { %v9240_v4 = vadd.f32 %v9239_v33, %v9238_v40  ;;  %v18127_v33 = vld [vmem:[#allocation122_spill] sm:$0xff] }
 0xfcd   : > { %v7589_v16 = vadd.f32 %v9160_v22, %v17224_v21  ;;  %v9161_v63 = vpop.f32.mrb[178].mxu1 }
 0xfce   : > { %v9241_v44 = vpop.f32.mrb[210].mxu0  ;;  %v9162_v1 = vpop.f32.mrb[179].mxu1 }
 0xfcf   : > { %v7734_v48 = vadd.f32 %v9240_v4, %v7589_v16  ;;  %v9163_v27 = vadd.f32 %v9162_v1, %v9161_v63  ;;  %v9242_v20 = vpop.f32.mrb[211].mxu0 }
 0xfd0   : > { %v9243_v53 = vadd.f32 %v9242_v20, %v9241_v44 }
 0xfd1   : > { %v7780_v42 = vadd.f32 %v7734_v48, %v18121_v49  ;;  %v7594_v8 = vadd.f32 %v9163_v27, %v17224_v21  ;;  %v9164_v6 = vpop.f32.mrb[180].mxu1  ;;  %v18128_v27 = vld [vmem:[#allocation102_spill] sm:$0xff] }
 0xfd2   : > { %v9244_v38 = vpop.f32.mrb[212].mxu0  ;;  %v9165_v59 = vpop.f32.mrb[181].mxu1 }
 0xfd3   : > { %7796 = vst [vmem:[%s12536_s4 + $0x40] sm:$0xff] %v7780_v42  ;;  %v7739_v19 = vadd.f32 %v9243_v53, %v7594_v8  ;;  %v9166_v29 = vadd.f32 %v9165_v59, %v9164_v6  ;;  %v9245_v47 = vpop.f32.mrb[213].mxu0  ;;  %v18129_v42 = vld [vmem:[#allocation101_spill] sm:$0xff] }
 0xfd4   : > { %v9246_v15 = vadd.f32 %v9245_v47, %v9244_v38 }
 0xfd5   : > { %v7781_v50 = vadd.f32 %v7739_v19, %v18122_v35  ;;  %v7599_v43 = vadd.f32 %v9166_v29, %v17224_v21  ;;  %v9167_v26 = vpop.f32.mrb[182].mxu1 }
 0xfd6   : > { %v9247_v37 = vpop.f32.mrb[214].mxu0  ;;  %v9168_v12 = vpop.f32.mrb[183].mxu1 }
 0xfd7   : > { %7797 = vst [vmem:[%s12536_s4 + $0x48] sm:$0xff] %v7781_v50  ;;  %v7744_v52 = vadd.f32 %v9246_v15, %v7599_v43  ;;  %v9169_v25 = vadd.f32 %v9168_v12, %v9167_v26  ;;  %v9248_v56 = vpop.f32.mrb[215].mxu0 }
 0xfd8   : > { %v9249_v36 = vadd.f32 %v9248_v56, %v9247_v37 }
 0xfd9   : > { %v7782_v54 = vadd.f32 %v7744_v52, %v18123_v41  ;;  %v7604_v51 = vadd.f32 %v9169_v25, %v17224_v21  ;;  %v9170_v39 = vpop.f32.mrb[184].mxu1 }
 0xfda   : > { %v9171_v55 = vpop.f32.mrb[185].mxu1 }
 0xfdb   : > { %7798 = vst [vmem:[%s12536_s4 + $0x50] sm:$0xff] %v7782_v54  ;;  %v7749_v18 = vadd.f32 %v9249_v36, %v7604_v51  ;;  %v9172_v57 = vadd.f32 %v9171_v55, %v9170_v39 }
 0xfdd   : > { %v7783_v5 = vadd.f32 %v7749_v18, %v18124_v32  ;;  %v9173_v13 = vpop.f32.mrb[186].mxu1  ;;  %v7609_v30 = vadd.f32 %v9172_v57, %v17224_v21 }
 0xfde   : > { %v9174_v62 = vpop.f32.mrb[187].mxu1 }
 0xfdf   : > { %7799 = vst [vmem:[%s12536_s4 + $0x58] sm:$0xff] %v7783_v5  ;;  %v9175_v2 = vadd.f32 %v9174_v62, %v9173_v13 }
 0xfe1   : > { %v9176_v23 = vpop.f32.mrb[188].mxu1  ;;  %v7614_v9 = vadd.f32 %v9175_v2, %v17224_v21 }
 0xfe2   : > { %v9177_v31 = vpop.f32.mrb[189].mxu1 }
 0xfe3   : > { %v9178_v14 = vadd.f32 %v9177_v31, %v9176_v23 }
 0xfe5   : > { %v9179_v0 = vpop.f32.mrb[190].mxu1  ;;  %v7619_v22 = vadd.f32 %v9178_v14, %v17224_v21 }
 0xfe6   : > { %v9180_v11 = vpop.f32.mrb[191].mxu1 }
 0xfe7   : > { %v9181_v10 = vadd.f32 %v9180_v11, %v9179_v0 }
 0xfe9   : > { %v9250_v34 = vpop.f32.mrb[192].mxu1  ;;  %v7624_v48 = vadd.f32 %v9181_v10, %v17224_v21 }
 0xfea   : > { %v9251_v7 = vpop.f32.mrb[193].mxu1 }
 0xfeb   : > { %v9252_v61 = vadd.f32 %v9251_v7, %v9250_v34 }
 0xfed   : > { %v7754_v45 = vadd.f32 %v9252_v61, %v7609_v30  ;;  %v9253_v60 = vpop.f32.mrb[194].mxu1 }
 0xfee   : > { %v9254_v28 = vpop.f32.mrb[195].mxu1 }
 0xfef   : > { %v7784_v17 = vadd.f32 %v7754_v45, %v18126_v24  ;;  %v9255_v46 = vadd.f32 %v9254_v28, %v9253_v60 }
 0xff1   : > { %7800 = vst [vmem:[%s12536_s4 + $0x60] sm:$0xff] %v7784_v17  ;;  %v7759_v58 = vadd.f32 %v9255_v46, %v7614_v9  ;;  %v9256_v40 = vpop.f32.mrb[196].mxu1 }
 0xff2   : > { %v9257_v3 = vpop.f32.mrb[197].mxu1 }
 0xff3   : > { %v7785_v4 = vadd.f32 %v7759_v58, %v18127_v33  ;;  %v9258_v16 = vadd.f32 %v9257_v3, %v9256_v40 }
 0xff5   : > { %7801 = vst [vmem:[%s12536_s4 + $0x68] sm:$0xff] %v7785_v4  ;;  %v7764_v63 = vadd.f32 %v9258_v16, %v7619_v22  ;;  %v9259_v44 = vpop.f32.mrb[198].mxu1 }
 0xff6   : > { %v9260_v1 = vpop.f32.mrb[199].mxu1 }
 0xff7   : > { %v7786_v20 = vadd.f32 %v7764_v63, %v18128_v27  ;;  %v9261_v53 = vadd.f32 %v9260_v1, %v9259_v44 }
 0xff9   : > { %7802 = vst [vmem:[%s12536_s4 + $0x70] sm:$0xff] %v7786_v20  ;;  %v7769_v49 = vadd.f32 %v9261_v53, %v7624_v48 }
 0xffb   : > { %v7787_v8 = vadd.f32 %v7769_v49, %v18129_v42 }
 0xffd   : > { %7803 = vst [vmem:[%s12536_s4 + $0x78] sm:$0xff] %v7787_v8 }
 0xffe   : > { %11843 = shalt.err (!%p11840_p12)
}
 0xfff   : > { %s11844_s4 = scalar_lea.hbm %s17281_s2, 2048  ;;  %s11848_s28 = scalar_lea.hbm %s18131_s27, 8192 }
0x1000   : > { %p11845_p5 = scmp.ne.s32.totalorder %s17281_s2, %s11844_s4  ;;  %p11849_p6 = scmp.lt.u32.totalorder %s17281_s2, %s18131_s27 }
0x1001   : > { %p11850_p0 = scmp.lt.u32.totalorder %s11848_s28, %s11844_s4  ;;  %p11852_p3 = scmp.lt.u32.totalorder %s11844_s4, %s17281_s2 }
0x1002   : > { %p11846_p9 = pnand %p11845_p5, %p18132_p2 }
0x1003   : > { %p11851_p8 = por %p11850_p0, %p11849_p6 }
0x1004   : > { %p11847_p1 = pneg %p11846_p9 }
0x1005   : > { %p11853_p7 = por %p11852_p3, %p11851_p8 }
0x1007   : > { %p11854_p4 = pnand %p11853_p7, %p11847_p1 }
0x1009   : > { %11857 = shalt.err (!%p11854_p4)
}
0x100a   : > { %s11994_s19 = smov 128   ;;  %s11995_s12 = smov 8  }
0x100b   : > { %10158 = dma.vmem_to_hbm [thread:$0]  (%p18132_p2), %s17275_s10, 2048, %s17281_s2, %s7805_s0, %s11994_s19, %s11994_s19, %s11995_s12  }
0x100c PF: > { %s18133_s14 = sld [smem:[#allocation28_spill]]  ;;  %s18134_s26 = sld [smem:[#allocation34_spill]] }
0x100d   : > { %p10208_p11 = scmp.ge.s32.totalorder %s11972_s3, 2 }
0x1012   : > { %s7835_s21 = sand.u32 1, %s18133_s14   ;;  %p18135_p13 = scmp.ne.s32.totalorder %s18134_s26, 0 }
0x1013   : > { %s7836_s18 = scalar_lea.sflag [#allocation7], %s7835_s21 }
0x1014   : > { %p10190_p10 = pnand %p10208_p11, %p18135_p13 }
0x1016   : > { %11927 = dma.done.wait (!%p10190_p10), %s7836_s18, 2048  }
0x1017   : > { %11929 = vsyncadd (!%p10190_p10), %s7836_s18, 4294965248  ;;  %s41_s3 = sadd.s32 1, %s11972_s3   ;;  %s18136_s15 = sld [smem:[#allocation32_spill]] }
0x1018   : > { %p38_p12 = scmp.ge.s32.totalorder %s41_s3, 6   ;;  %s18137_s10 = sld [smem:[#allocation33_spill]] }
0x1019   : > { %s18138_s0 = smov %s11936_s30  ;;  %s18139_s30 = smov %s11940_s20 }
0x101a   : > { %s18140_s20 = smov %s12449_s5  ;;  %s18141_s21 = smov %s11948_s1 }
0x101b   : > { %s18142_s1 = smov %s11952_s22  ;;  %s18143_s22 = smov %s12446_s13 }
0x101c   : > { %s18144_s2 = smov %s11964_s24  ;;  %s18145_s23 = smov %s11968_s25 }
0x101d   : > { %s18146_s24 = smov %s18136_s15  ;;  %40 = sbr.rel (!%p38_p12) target bundleno = 35 (0x23), region = 191 }
0x101e   : > { %s18147_s25 = smov %s18137_s10 }
0x1024   :  { %7841 = vsyncpa [#allocation6], 1 }
0x1025   :  { %7843 = vsyncpa [#allocation6 + $0x1], 1 }
0x1026   :  { %7844 = vsyncpa [#allocation9], 1 }
0x1027   :  { %7846 = vsyncpa [#allocation9 + $0x1], 1 }
0x1028   :  { %7847 = vsyncpa [#allocation12], 1 }
0x1029   :  { %7848 = vsyncpa [#allocation15], 1 }
0x102a   :  { %7849 = vsyncpa [#allocation18], 1 }
0x102b   :  { %7850 = vsyncpa [#allocation7], 1 }
0x102c   :  { %7852 = vsyncpa [#allocation7 + $0x1], 1 }

</bundles_post_ra>
